<compile_context>
chip_gen: v6e
topology: v6e:2x2x1
jax: 0.10.0
libtpu: 0.0.40
codegen_flags: <defaults>
</compile_context>

<pallas_src>
import functools
import math

import jax
import jax.numpy as jnp
from jax.experimental import pallas as pl
from jax.experimental.pallas import tpu as pltpu

# ----------------------------- configuration -------------------------------
SAMPLE_RATE = 16000
MIN_LOW_HZ = 50.0
MIN_BAND_HZ = 50.0
SINC_LOW_HZ = 30.0

SINC_OUT = [16, 16, 16]          # out_channels
SINC_K = [31, 5, 5]              # kernel sizes (first must be odd)
SINC_STRIDE = [5, 1, 1]
SINC_POOL = [3, 3, 3]

TDNN_IN = SINC_OUT[-1]           # 16
TDNN_HS = 32                     # hidden_dim_small
TDNN_HL = 48                     # hidden_dim_large
TDNN_EMB = 64                    # embedding_dim
TDNN_K = [5, 3, 3, 1, 1]
TDNN_D = [1, 2, 3, 1, 1]

EPS = 1e-5
LEAKY_SLOPE = 0.2

_PARALLEL = pltpu.CompilerParams(dimension_semantics=("parallel",))


# ------------------------------ Pallas kernels ------------------------------
def _sinc_layer0_kernel(x_ref, w_ref, wg_ref, wb_ref, g_ref, b_ref, o_ref, *,
                        k_size, stride, pool, period, n_real, real_lo, real_hi,
                        lout, lw):
    """Waveform InstanceNorm -> SincConv1d(stride) -> abs -> MaxPool1d(3,3,1)
    -> InstanceNorm1d(affine) -> LeakyReLU, one batch element per grid step.

    x_ref block: (1, period, NQ) phase-decomposed padded waveform, where
    element (r, s) is padded-waveform[period*s + r]."""
    x = x_ref[0]                                        # (period, NQ)

    # --- waveform InstanceNorm1d(1, affine), padding-aware ---
    r_idx = jax.lax.broadcasted_iota(jnp.int32, x.shape, 0)
    s_idx = jax.lax.broadcasted_iota(jnp.int32, x.shape, 1)
    flat = s_idx * period + r_idx
    real = (flat >= real_lo) & (flat < real_hi)
    mean = jnp.sum(x) / n_real                          # zero padding adds 0
    d = jnp.where(real, x - mean, 0.0)
    var = jnp.sum(d * d) / n_real                       # biased (InstanceNorm)
    gain = jax.lax.rsqrt(var + EPS) * wg_ref[0]
    xn = jnp.where(real, d * gain + wb_ref[0], 0.0)     # conv zero-pads after norm

    # --- conv (stride) + abs + maxpool(3, stride 3, pad 1), fused via phases ---
    w = w_ref[...]                                      # (Cout, K)
    cout = w.shape[0]
    pos = jax.lax.broadcasted_iota(jnp.int32, (1, lw), 1) * pool
    pooled = None
    for o in (-1, 0, 1):                                # pool-window offsets
        acc = jnp.zeros((cout, lw), jnp.float32)
        for k in range(k_size):                         # shifted-slice MAC (VPU)
            t = stride * o + k + stride                 # >= 0 by construction
            r, q = t % period, t // period
            acc = acc + w[:, k:k + 1] * xn[r:r + 1, q:q + lw]
        y = jnp.abs(acc)
        m = pos + o                                     # conv-output position
        z = jnp.where((m >= 0) & (m < lout), y, -jnp.inf)
        pooled = z if pooled is None else jnp.maximum(pooled, z)

    # --- InstanceNorm1d(C, affine) + LeakyReLU(0.2) ---
    mu = jnp.mean(pooled, axis=-1, keepdims=True)
    var_c = jnp.mean(jnp.square(pooled - mu), axis=-1, keepdims=True)
    yn = (pooled - mu) * jax.lax.rsqrt(var_c + EPS) * g_ref[...] + b_ref[...]
    o_ref[0] = jnp.where(yn >= 0, yn, LEAKY_SLOPE * yn)


def _sinc_layer_kernel(x_ref, w_ref, bias_ref, g_ref, b_ref, o_ref, *,
                       k_size, l_in, lw):
    """Conv1d(K, stride 1, same pad, +bias) -> MaxPool1d(3,3,1)
    -> InstanceNorm1d(affine) -> LeakyReLU.

    x_ref block: (1, 3*Cin, NQ) phase-major: row (r*Cin + c), lane s holds
    padded-input[c, 3*s + r]."""
    xq = x_ref[0]                                       # (3*Cin, NQ)
    ksz, cout, cin = w_ref.shape
    pos = jax.lax.broadcasted_iota(jnp.int32, (1, lw), 1) * 3
    pooled = None
    for o in (-1, 0, 1):
        acc = jnp.zeros((cout, lw), jnp.float32)
        for k in range(k_size):
            t = o + k + 1
            r, q = t % 3, t // 3
            xs = xq[r * cin:(r + 1) * cin, q:q + lw]    # (Cin, Lw)
            acc = acc + jnp.dot(w_ref[k], xs, preferred_element_type=jnp.float32)
        m = pos + o
        z = jnp.where((m >= 0) & (m < l_in), acc, -jnp.inf)
        pooled = z if pooled is None else jnp.maximum(pooled, z)
    pooled = pooled + bias_ref[...]                     # bias commutes with max
    mu = jnp.mean(pooled, axis=-1, keepdims=True)
    var = jnp.mean(jnp.square(pooled - mu), axis=-1, keepdims=True)
    yn = (pooled - mu) * jax.lax.rsqrt(var + EPS) * g_ref[...] + b_ref[...]
    o_ref[0] = jnp.where(yn >= 0, yn, LEAKY_SLOPE * yn)


def _tdnn_head_kernel(x_ref, w1, b1, w2, b2, w3, b3, w4, b4, w5, b5,
                      wm_ref, ws_ref, sb_ref, o_ref, xbuf, *,
                      configs, seq_len, denom):
    """All 5 WeightNormConv1dReLU layers + MeanStdPool1d(None) + segment6,
    fully resident in VMEM (one batch element per grid step)."""
    act = x_ref[0]                                      # (Cin0, L)
    w_refs = (w1, w2, w3, w4, w5)
    b_refs = (b1, b2, b3, b4, b5)
    for (cin, cout, ksz, dil), w_r, b_r in zip(configs, w_refs, b_refs):
        pad = dil * (ksz // 2)
        xbuf[...] = jnp.zeros_like(xbuf)                # zero halo ("same" pad)
        xbuf[0:cin, pad:pad + seq_len] = act
        acc = jnp.zeros((cout, seq_len), jnp.float32)
        for k in range(ksz):
            acc = acc + jnp.dot(w_r[k],
                                xbuf[0:cin, k * dil:k * dil + seq_len],
                                preferred_element_type=jnp.float32)
        act = jnp.maximum(acc + b_r[...], 0.0)          # ReLU

    # MeanStdPool1d(kernel_size=None): mean + unbiased std over time.
    mean = jnp.mean(act, axis=-1, keepdims=True)        # (C, 1)
    var = jnp.sum(jnp.square(act - mean), axis=-1, keepdims=True) / denom
    std = jnp.sqrt(var)
    # segment6 as a 1x1 conv: W[:, :C] @ mean + W[:, C:] @ std + b
    o_ref[0] = (jnp.dot(wm_ref[...], mean, preferred_element_type=jnp.float32)
                + jnp.dot(ws_ref[...], std, preferred_element_type=jnp.float32)
                + sb_ref[...])


# ------------------------------ kernel wrappers -----------------------------
def sinc_layer0(wave, w0, wf_gamma, wf_beta, gamma, beta):
    """wave: (B, T); w0: (C, K) sinc filters; gamma/beta: (C, 1)."""
    B, T = wave.shape
    C, K = w0.shape
    stride, pool = SINC_STRIDE[0], SINC_POOL[0]
    assert pool == 3 and K % 2 == 1
    pad = K // 2
    lout = (T + 2 * pad - K) // stride + 1              # conv output length
    lw = (lout - 1) // pool + 1                         # pooled length
    period = stride * pool
    max_t = 2 * stride + (K - 1)
    nq = lw + max_t // period                           # lanes per phase
    left = stride + pad                                 # extra(=stride) + conv pad
    right = period * nq - left - T
    assert right >= pad
    # period-15 phase decomposition of the padded raw waveform (tiny XLA glue).
    xbig = jnp.pad(wave, ((0, 0), (left, right)))
    xph = xbig.reshape(B, nq, period).transpose(0, 2, 1)        # (B, period, nq)

    kern = functools.partial(
        _sinc_layer0_kernel, k_size=K, stride=stride, pool=pool, period=period,
        n_real=float(T), real_lo=left, real_hi=left + T, lout=lout, lw=lw)
    return pl.pallas_call(
        kern,
        out_shape=jax.ShapeDtypeStruct((B, C, lw), jnp.float32),
        grid=(B,),
        in_specs=[
            pl.BlockSpec((1, period, nq), lambda b: (b, 0, 0)),
            pl.BlockSpec((C, K), lambda b: (0, 0)),
            pl.BlockSpec(memory_space=pltpu.MemorySpace.SMEM),   # wf gamma (1,)
            pl.BlockSpec(memory_space=pltpu.MemorySpace.SMEM),   # wf beta  (1,)
            pl.BlockSpec((C, 1), lambda b: (0, 0)),
            pl.BlockSpec((C, 1), lambda b: (0, 0)),
        ],
        out_specs=pl.BlockSpec((1, C, lw), lambda b: (b, 0, 0)),
        compiler_params=_PARALLEL,
    )(xph, w0, wf_gamma, wf_beta, gamma, beta)


def sinc_layer(x, w, bias, gamma, beta, *, pool=3):
    """x: (B, Cin, L); w: (K, Cout, Cin); bias/gamma/beta: (Cout, 1)."""
    B, Cin, L = x.shape
    K, Cout, Cin2 = w.shape
    assert Cin2 == Cin and pool == 3 and K % 2 == 1
    lw = (L - 1) // pool + 1
    max_t = 1 + (K - 1) + 1
    nq = lw + max_t // pool
    left = 1 + K // 2                                   # pool offset + conv pad
    right = pool * nq - left - L
    assert right >= K // 2
    # period-3 phase decomposition, folded into the channel (sublane) axis.
    xbig = jnp.pad(x, ((0, 0), (0, 0), (left, right)))
    xq = (xbig.reshape(B, Cin, nq, pool)
          .transpose(0, 3, 1, 2)
          .reshape(B, pool * Cin, nq))                  # (B, 3*Cin, nq)

    kern = functools.partial(_sinc_layer_kernel, k_size=K, l_in=L, lw=lw)
    return pl.pallas_call(
        kern,
        out_shape=jax.ShapeDtypeStruct((B, Cout, lw), jnp.float32),
        grid=(B,),
        in_specs=[
            pl.BlockSpec((1, pool * Cin, nq), lambda b: (b, 0, 0)),
            pl.BlockSpec((K, Cout, Cin), lambda b: (0, 0, 0)),
            pl.BlockSpec((Cout, 1), lambda b: (0, 0)),
            pl.BlockSpec((Cout, 1), lambda b: (0, 0)),
            pl.BlockSpec((Cout, 1), lambda b: (0, 0)),
        ],
        out_specs=pl.BlockSpec((1, Cout, lw), lambda b: (b, 0, 0)),
        compiler_params=_PARALLEL,
    )(xq, w, bias, gamma, beta)


def tdnn_head(x, tdnn_ws, tdnn_bs, w_mean, w_std, seg_b):
    """x: (B, Cin, L); tdnn_ws[j]: (K_j, Cout_j, Cin_j); -> (B, E, 1)."""
    B, Cin, L = x.shape
    E = w_mean.shape[0]
    dims = [(TDNN_IN, TDNN_HS), (TDNN_HS, TDNN_HS), (TDNN_HS, TDNN_HS),
            (TDNN_HS, TDNN_HS), (TDNN_HS, TDNN_HL)]
    configs = tuple((ci, co, k, d) for (ci, co), k, d in zip(dims, TDNN_K, TDNN_D))
    buf_c = max(ci for ci, _, _, _ in configs)
    buf_l = L + 2 * max(d * (k // 2) for _, _, k, d in configs)

    in_specs = [pl.BlockSpec((1, Cin, L), lambda b: (b, 0, 0))]
    args = [x]
    for (ci, co, k, d), w, bi in zip(configs, tdnn_ws, tdnn_bs):
        in_specs.append(pl.BlockSpec((k, co, ci), lambda b: (0, 0, 0)))
        in_specs.append(pl.BlockSpec((co, 1), lambda b: (0, 0)))
        args += [w, bi]
    chl = w_mean.shape[1]
    in_specs += [pl.BlockSpec((E, chl), lambda b: (0, 0)),
                 pl.BlockSpec((E, chl), lambda b: (0, 0)),
                 pl.BlockSpec((E, 1), lambda b: (0, 0))]
    args += [w_mean, w_std, seg_b]

    kern = functools.partial(_tdnn_head_kernel, configs=configs, seq_len=L,
                             denom=float(max(L - 1, 1)))
    return pl.pallas_call(
        kern,
        out_shape=jax.ShapeDtypeStruct((B, E, 1), jnp.float32),
        grid=(B,),
        in_specs=in_specs,
        out_specs=pl.BlockSpec((1, E, 1), lambda b: (b, 0, 0)),
        scratch_shapes=[pltpu.VMEM((buf_c, buf_l), jnp.float32)],
        compiler_params=_PARALLEL,
    )(*args)


# ------------------------- parameter initialization -------------------------
def init_sinc_params(out_channels, sample_rate, min_low_hz, min_band_hz, low_hz):
    to_mel = lambda hz: 2595.0 * jnp.log10(1.0 + hz / 700.0)
    to_hz = lambda mel: 700.0 * (10.0 ** (mel / 2595.0) - 1.0)
    high_hz = sample_rate / 2 - (min_low_hz + min_band_hz)
    hz = to_hz(jnp.linspace(to_mel(jnp.asarray(low_hz, jnp.float32)),
                            to_mel(jnp.asarray(high_hz, jnp.float32)),
                            out_channels + 1))
    low_hz_ = hz[:-1, None]
    band_hz_ = (hz[1:] - hz[:-1])[:, None]
    return low_hz_.astype(jnp.float32), band_hz_.astype(jnp.float32)


def make_sinc_buffers(kernel_size, sample_rate):
    n = kernel_size // 2
    window = 0.54 - 0.46 * jnp.cos(
        2 * math.pi * jnp.linspace(0.0, kernel_size / 2 - 1, n) / kernel_size)
    sinct = 2 * math.pi * jnp.arange(-n, 0, dtype=jnp.float32) / sample_rate
    return window.astype(jnp.float32), sinct


def sinc_weight(low_hz_, band_hz_, window, sinct):
    """Reproduces SincConv1d.weight -> (C, K)."""
    lo = MIN_LOW_HZ + jnp.abs(low_hz_)
    hi = jnp.clip(lo + MIN_BAND_HZ + jnp.abs(band_hz_), MIN_LOW_HZ, SAMPLE_RATE / 2)
    left = (jnp.sin(hi * sinct) - jnp.sin(lo * sinct)) / (sinct / 2) * window
    center = (hi - lo) * 2
    right = left[:, ::-1]
    return jnp.concatenate([left, center, right], axis=1) / center


def init_params(key):
    p = {}
    keys = iter(jax.random.split(key, 32))

    # SincNet: waveform InstanceNorm1d(1, affine=True)
    p["wf_gamma"] = jnp.ones((1,), jnp.float32)
    p["wf_beta"] = jnp.zeros((1,), jnp.float32)

    # SincConv1d parameters / buffers
    p["low_hz"], p["band_hz"] = init_sinc_params(
        SINC_OUT[0], SAMPLE_RATE, MIN_LOW_HZ, MIN_BAND_HZ, SINC_LOW_HZ)
    p["window"], p["sinct"] = make_sinc_buffers(SINC_K[0], SAMPLE_RATE)

    # SincNet conv layers 1, 2 (Conv1d with bias)
    in_c = SINC_OUT[0]
    for i in (1, 2):
        out_c, k = SINC_OUT[i], SINC_K[i]
        scale = 1.0 / math.sqrt(in_c * k)
        p[f"sinc_conv{i}_w"] = scale * jax.random.normal(next(keys), (out_c, in_c, k), jnp.float32)
        p[f"sinc_conv{i}_b"] = 0.05 * jax.random.normal(next(keys), (out_c,), jnp.float32)
        in_c = out_c

    # SincNet InstanceNorm1d affine params (PyTorch default: ones / zeros)
    p["sinc_in_gamma"] = [jnp.ones((c,), jnp.float32) for c in SINC_OUT]
    p["sinc_in_beta"] = [jnp.zeros((c,), jnp.float32) for c in SINC_OUT]

    # XVectorNet TDNN: 5 WeightNormConv1dReLU layers
    dims = [(TDNN_IN, TDNN_HS), (TDNN_HS, TDNN_HS), (TDNN_HS, TDNN_HS),
            (TDNN_HS, TDNN_HS), (TDNN_HS, TDNN_HL)]
    p["tdnn_v"], p["tdnn_g"], p["tdnn_b"] = [], [], []
    for (ci, co), k in zip(dims, TDNN_K):
        scale = 1.0 / math.sqrt(ci * k)
        v = scale * jax.random.normal(next(keys), (co, ci, k), jnp.float32)
        g = jnp.sqrt(jnp.sum(v * v, axis=(1, 2), keepdims=True))   # init g = ||v||
        b = 0.05 * jax.random.normal(next(keys), (co,), jnp.float32)
        p["tdnn_v"].append(v)
        p["tdnn_g"].append(g)
        p["tdnn_b"].append(b)

    # segment6 Linear(2 * hidden_dim_large, embedding_dim)
    scale = 1.0 / math.sqrt(2 * TDNN_HL)
    p["seg6_w"] = scale * jax.random.normal(next(keys), (TDNN_EMB, 2 * TDNN_HL), jnp.float32)
    p["seg6_b"] = 0.05 * jax.random.normal(next(keys), (TDNN_EMB,), jnp.float32)
    return p


# --------------------------------- forward ----------------------------------
def sinctdnn_forward(waveforms, params):
    # ---- SincNet ----
    w0 = sinc_weight(params["low_hz"], params["band_hz"],
                     params["window"], params["sinct"])                # (16, 31)
    x = sinc_layer0(waveforms, w0, params["wf_gamma"], params["wf_beta"],
                    params["sinc_in_gamma"][0].reshape(-1, 1),
                    params["sinc_in_beta"][0].reshape(-1, 1))
    for i in (1, 2):
        w = jnp.transpose(params[f"sinc_conv{i}_w"], (2, 0, 1))        # (K, Cout, Cin)
        x = sinc_layer(x, w, params[f"sinc_conv{i}_b"].reshape(-1, 1),
                       params["sinc_in_gamma"][i].reshape(-1, 1),
                       params["sinc_in_beta"][i].reshape(-1, 1))
    # dropout(p=0) is the identity.

    # ---- XVectorNet: weight-norm reparameterization (tiny JAX glue) ----
    tdnn_ws, tdnn_bs = [], []
    for j in range(5):
        v, g, b = params["tdnn_v"][j], params["tdnn_g"][j], params["tdnn_b"][j]
        w = v * g / jnp.sqrt(jnp.sum(v * v, axis=(1, 2), keepdims=True))
        tdnn_ws.append(jnp.transpose(w, (2, 0, 1)))                    # (K, Cout, Cin)
        tdnn_bs.append(b.reshape(-1, 1))
    w_mean = params["seg6_w"][:, :TDNN_HL]
    w_std = params["seg6_w"][:, TDNN_HL:]
    return tdnn_head(x, tdnn_ws, tdnn_bs, w_mean, w_std,
                     params["seg6_b"].reshape(-1, 1))


# ----------------------------------- main ------------------------------------
if __name__ == "__main__":
    key = jax.random.PRNGKey(0)
    k_params, k_wave = jax.random.split(key)
    params = init_params(k_params)

    B, T = 2, 2000
    waveforms = jax.random.normal(k_wave, (B, T), jnp.float32)

    fwd = jax.jit(sinctdnn_forward)
    out = jax.block_until_ready(fwd(waveforms, params))

    assert out.shape == (B, TDNN_EMB, 1), out.shape
    assert bool(jnp.all(jnp.isfinite(out)))
    print("KERNEL_OK")
</pallas_src>

<mosaic_0001>
module attributes {stable_mosaic.version = 11 : i64} {
  func.func @_sinc_layer0_kernel(%arg0: i32, %arg1: memref<1x15x136xf32, #tpu.memory_space<vmem>>, %arg2: memref<16x31xf32, #tpu.memory_space<vmem>>, %arg3: memref<1xf32, #tpu.memory_space<smem>>, %arg4: memref<1xf32, #tpu.memory_space<smem>>, %arg5: memref<16x1xf32, #tpu.memory_space<vmem>>, %arg6: memref<16x1xf32, #tpu.memory_space<vmem>>, %arg7: memref<1x16x134xf32, #tpu.memory_space<vmem>>) attributes {dimension_semantics = [#tpu.dimension_semantics<parallel>], iteration_bounds = array<i64: 2>, scalar_prefetch = 0 : i64, scratch_operands = 0 : i64, tpu.core_type = #tpu.core_type<tc>, window_params = [{transform_indices = @transform_0, window_bounds = array<i64: 1, 15, 136>}, {pipeline_mode = #tpu.pipeline_mode<synchronous>, transform_indices = @transform_1, window_bounds = array<i64: 16, 31>}, {transform_indices = @transform_2, window_bounds = array<i64: 1>}, {transform_indices = @transform_3, window_bounds = array<i64: 1>}, {pipeline_mode = #tpu.pipeline_mode<synchronous>, transform_indices = @transform_4, window_bounds = array<i64: 16, 1>}, {pipeline_mode = #tpu.pipeline_mode<synchronous>, transform_indices = @transform_5, window_bounds = array<i64: 16, 1>}, {transform_indices = @transform_6, window_bounds = array<i64: 1, 16, 134>}]} {
    %c0 = arith.constant 0 : index
    %c0_0 = arith.constant 0 : index
    %c0_1 = arith.constant 0 : index
    %0 = vector.load %arg1[%c0, %c0_0, %c0_1] : memref<1x15x136xf32, #tpu.memory_space<vmem>>, vector<1x15x136xf32>
    %1 = vector.shape_cast %0 : vector<1x15x136xf32> to vector<15x136xf32>
    %2 = tpu.iota {dimensions = array<i32: 0>} : vector<15x136xi32>
    %3 = tpu.iota {dimensions = array<i32: 1>} : vector<15x136xi32>
    %c15_i32 = arith.constant 15 : i32
    %4 = vector.broadcast %c15_i32 : i32 to vector<15x136xi32>
    %5 = arith.muli %3, %4 : vector<15x136xi32>
    %6 = arith.addi %5, %2 : vector<15x136xi32>
    %c20_i32 = arith.constant 20 : i32
    %7 = vector.broadcast %c20_i32 : i32 to vector<15x136xi32>
    %8 = arith.cmpi sge, %6, %7 : vector<15x136xi32>
    %c2020_i32 = arith.constant 2020 : i32
    %9 = vector.broadcast %c2020_i32 : i32 to vector<15x136xi32>
    %10 = arith.cmpi slt, %6, %9 : vector<15x136xi32>
    %11 = arith.andi %8, %10 : vector<15x136xi1>
    %12 = vector.shape_cast %1 : vector<15x136xf32> to vector<1x15x136xf32>
    %cst = arith.constant dense<0.000000e+00> : vector<1xf32>
    %13 = vector.multi_reduction <add>, %12, %cst [1, 2] : vector<1x15x136xf32> to vector<1xf32>
    %14 = vector.shape_cast %13 : vector<1xf32> to vector<1x1x1xf32>
    %15 = vector.extract %14[0, 0, 0] : f32 from vector<1x1x1xf32>
    %cst_2 = arith.constant 2.000000e+03 : f32
    %16 = arith.divf %15, %cst_2 : f32
    %17 = vector.broadcast %16 : f32 to vector<15x136xf32>
    %18 = arith.subf %1, %17 : vector<15x136xf32>
    %cst_3 = arith.constant 0.000000e+00 : f32
    %19 = vector.broadcast %cst_3 : f32 to vector<15x136xf32>
    %20 = arith.select %11, %18, %19 : vector<15x136xi1>, vector<15x136xf32>
    %21 = arith.mulf %20, %20 : vector<15x136xf32>
    %22 = vector.shape_cast %21 : vector<15x136xf32> to vector<1x15x136xf32>
    %cst_4 = arith.constant dense<0.000000e+00> : vector<1xf32>
    %23 = vector.multi_reduction <add>, %22, %cst_4 [1, 2] : vector<1x15x136xf32> to vector<1xf32>
    %24 = vector.shape_cast %23 : vector<1xf32> to vector<1x1x1xf32>
    %25 = vector.extract %24[0, 0, 0] : f32 from vector<1x1x1xf32>
    %cst_5 = arith.constant 2.000000e+03 : f32
    %26 = arith.divf %25, %cst_5 : f32
    %cst_6 = arith.constant 9.99999974E-6 : f32
    %27 = arith.addf %26, %cst_6 : f32
    %28 = math.rsqrt %27 : f32
    %c0_7 = arith.constant 0 : index
    %29 = memref.load %arg3[%c0_7] : memref<1xf32, #tpu.memory_space<smem>>
    %30 = arith.mulf %28, %29 : f32
    %31 = vector.broadcast %30 : f32 to vector<15x136xf32>
    %32 = arith.mulf %20, %31 : vector<15x136xf32>
    %c0_8 = arith.constant 0 : index
    %33 = memref.load %arg4[%c0_8] : memref<1xf32, #tpu.memory_space<smem>>
    %34 = vector.broadcast %33 : f32 to vector<15x136xf32>
    %35 = arith.addf %32, %34 : vector<15x136xf32>
    %cst_9 = arith.constant 0.000000e+00 : f32
    %36 = vector.broadcast %cst_9 : f32 to vector<15x136xf32>
    %37 = arith.select %11, %35, %36 : vector<15x136xi1>, vector<15x136xf32>
    %c0_10 = arith.constant 0 : index
    %c0_11 = arith.constant 0 : index
    %38 = vector.load %arg2[%c0_10, %c0_11] : memref<16x31xf32, #tpu.memory_space<vmem>>, vector<16x31xf32>
    %39 = tpu.iota {dimensions = array<i32: 1>} : vector<1x134xi32>
    %c3_i32 = arith.constant 3 : i32
    %40 = vector.broadcast %c3_i32 : i32 to vector<1x134xi32>
    %41 = arith.muli %39, %40 : vector<1x134xi32>
    %cst_12 = arith.constant 0.000000e+00 : f32
    %42 = vector.broadcast %cst_12 : f32 to vector<16x134xf32>
    %43 = vector.extract_strided_slice %38 {offsets = [0, 0], sizes = [16, 1], strides = [1, 1]} : vector<16x31xf32> to vector<16x1xf32>
    %44 = vector.extract_strided_slice %37 {offsets = [0, 0], sizes = [1, 134], strides = [1, 1]} : vector<15x136xf32> to vector<1x134xf32>
    %45 = vector.broadcast %43 : vector<16x1xf32> to vector<16x134xf32>
    %46 = vector.broadcast %44 : vector<1x134xf32> to vector<16x134xf32>
    %47 = arith.mulf %45, %46 : vector<16x134xf32>
    %48 = arith.addf %42, %47 : vector<16x134xf32>
    %49 = vector.extract_strided_slice %38 {offsets = [0, 1], sizes = [16, 1], strides = [1, 1]} : vector<16x31xf32> to vector<16x1xf32>
    %50 = vector.extract_strided_slice %37 {offsets = [1, 0], sizes = [1, 134], strides = [1, 1]} : vector<15x136xf32> to vector<1x134xf32>
    %51 = vector.broadcast %49 : vector<16x1xf32> to vector<16x134xf32>
    %52 = vector.broadcast %50 : vector<1x134xf32> to vector<16x134xf32>
    %53 = arith.mulf %51, %52 : vector<16x134xf32>
    %54 = arith.addf %48, %53 : vector<16x134xf32>
    %55 = vector.extract_strided_slice %38 {offsets = [0, 2], sizes = [16, 1], strides = [1, 1]} : vector<16x31xf32> to vector<16x1xf32>
    %56 = vector.extract_strided_slice %37 {offsets = [2, 0], sizes = [1, 134], strides = [1, 1]} : vector<15x136xf32> to vector<1x134xf32>
    %57 = vector.broadcast %55 : vector<16x1xf32> to vector<16x134xf32>
    %58 = vector.broadcast %56 : vector<1x134xf32> to vector<16x134xf32>
    %59 = arith.mulf %57, %58 : vector<16x134xf32>
    %60 = arith.addf %54, %59 : vector<16x134xf32>
    %61 = vector.extract_strided_slice %38 {offsets = [0, 3], sizes = [16, 1], strides = [1, 1]} : vector<16x31xf32> to vector<16x1xf32>
    %62 = vector.extract_strided_slice %37 {offsets = [3, 0], sizes = [1, 134], strides = [1, 1]} : vector<15x136xf32> to vector<1x134xf32>
    %63 = vector.broadcast %61 : vector<16x1xf32> to vector<16x134xf32>
    %64 = vector.broadcast %62 : vector<1x134xf32> to vector<16x134xf32>
    %65 = arith.mulf %63, %64 : vector<16x134xf32>
    %66 = arith.addf %60, %65 : vector<16x134xf32>
    %67 = vector.extract_strided_slice %38 {offsets = [0, 4], sizes = [16, 1], strides = [1, 1]} : vector<16x31xf32> to vector<16x1xf32>
    %68 = vector.extract_strided_slice %37 {offsets = [4, 0], sizes = [1, 134], strides = [1, 1]} : vector<15x136xf32> to vector<1x134xf32>
    %69 = vector.broadcast %67 : vector<16x1xf32> to vector<16x134xf32>
    %70 = vector.broadcast %68 : vector<1x134xf32> to vector<16x134xf32>
    %71 = arith.mulf %69, %70 : vector<16x134xf32>
    %72 = arith.addf %66, %71 : vector<16x134xf32>
    %73 = vector.extract_strided_slice %38 {offsets = [0, 5], sizes = [16, 1], strides = [1, 1]} : vector<16x31xf32> to vector<16x1xf32>
    %74 = vector.extract_strided_slice %37 {offsets = [5, 0], sizes = [1, 134], strides = [1, 1]} : vector<15x136xf32> to vector<1x134xf32>
    %75 = vector.broadcast %73 : vector<16x1xf32> to vector<16x134xf32>
    %76 = vector.broadcast %74 : vector<1x134xf32> to vector<16x134xf32>
    %77 = arith.mulf %75, %76 : vector<16x134xf32>
    %78 = arith.addf %72, %77 : vector<16x134xf32>
    %79 = vector.extract_strided_slice %38 {offsets = [0, 6], sizes = [16, 1], strides = [1, 1]} : vector<16x31xf32> to vector<16x1xf32>
    %80 = vector.extract_strided_slice %37 {offsets = [6, 0], sizes = [1, 134], strides = [1, 1]} : vector<15x136xf32> to vector<1x134xf32>
    %81 = vector.broadcast %79 : vector<16x1xf32> to vector<16x134xf32>
    %82 = vector.broadcast %80 : vector<1x134xf32> to vector<16x134xf32>
    %83 = arith.mulf %81, %82 : vector<16x134xf32>
    %84 = arith.addf %78, %83 : vector<16x134xf32>
    %85 = vector.extract_strided_slice %38 {offsets = [0, 7], sizes = [16, 1], strides = [1, 1]} : vector<16x31xf32> to vector<16x1xf32>
    %86 = vector.extract_strided_slice %37 {offsets = [7, 0], sizes = [1, 134], strides = [1, 1]} : vector<15x136xf32> to vector<1x134xf32>
    %87 = vector.broadcast %85 : vector<16x1xf32> to vector<16x134xf32>
    %88 = vector.broadcast %86 : vector<1x134xf32> to vector<16x134xf32>
    %89 = arith.mulf %87, %88 : vector<16x134xf32>
    %90 = arith.addf %84, %89 : vector<16x134xf32>
    %91 = vector.extract_strided_slice %38 {offsets = [0, 8], sizes = [16, 1], strides = [1, 1]} : vector<16x31xf32> to vector<16x1xf32>
    %92 = vector.extract_strided_slice %37 {offsets = [8, 0], sizes = [1, 134], strides = [1, 1]} : vector<15x136xf32> to vector<1x134xf32>
    %93 = vector.broadcast %91 : vector<16x1xf32> to vector<16x134xf32>
    %94 = vector.broadcast %92 : vector<1x134xf32> to vector<16x134xf32>
    %95 = arith.mulf %93, %94 : vector<16x134xf32>
    %96 = arith.addf %90, %95 : vector<16x134xf32>
    %97 = vector.extract_strided_slice %38 {offsets = [0, 9], sizes = [16, 1], strides = [1, 1]} : vector<16x31xf32> to vector<16x1xf32>
    %98 = vector.extract_strided_slice %37 {offsets = [9, 0], sizes = [1, 134], strides = [1, 1]} : vector<15x136xf32> to vector<1x134xf32>
    %99 = vector.broadcast %97 : vector<16x1xf32> to vector<16x134xf32>
    %100 = vector.broadcast %98 : vector<1x134xf32> to vector<16x134xf32>
    %101 = arith.mulf %99, %100 : vector<16x134xf32>
    %102 = arith.addf %96, %101 : vector<16x134xf32>
    %103 = vector.extract_strided_slice %38 {offsets = [0, 10], sizes = [16, 1], strides = [1, 1]} : vector<16x31xf32> to vector<16x1xf32>
    %104 = vector.extract_strided_slice %37 {offsets = [10, 0], sizes = [1, 134], strides = [1, 1]} : vector<15x136xf32> to vector<1x134xf32>
    %105 = vector.broadcast %103 : vector<16x1xf32> to vector<16x134xf32>
    %106 = vector.broadcast %104 : vector<1x134xf32> to vector<16x134xf32>
    %107 = arith.mulf %105, %106 : vector<16x134xf32>
    %108 = arith.addf %102, %107 : vector<16x134xf32>
    %109 = vector.extract_strided_slice %38 {offsets = [0, 11], sizes = [16, 1], strides = [1, 1]} : vector<16x31xf32> to vector<16x1xf32>
    %110 = vector.extract_strided_slice %37 {offsets = [11, 0], sizes = [1, 134], strides = [1, 1]} : vector<15x136xf32> to vector<1x134xf32>
    %111 = vector.broadcast %109 : vector<16x1xf32> to vector<16x134xf32>
    %112 = vector.broadcast %110 : vector<1x134xf32> to vector<16x134xf32>
    %113 = arith.mulf %111, %112 : vector<16x134xf32>
    %114 = arith.addf %108, %113 : vector<16x134xf32>
    %115 = vector.extract_strided_slice %38 {offsets = [0, 12], sizes = [16, 1], strides = [1, 1]} : vector<16x31xf32> to vector<16x1xf32>
    %116 = vector.extract_strided_slice %37 {offsets = [12, 0], sizes = [1, 134], strides = [1, 1]} : vector<15x136xf32> to vector<1x134xf32>
    %117 = vector.broadcast %115 : vector<16x1xf32> to vector<16x134xf32>
    %118 = vector.broadcast %116 : vector<1x134xf32> to vector<16x134xf32>
    %119 = arith.mulf %117, %118 : vector<16x134xf32>
    %120 = arith.addf %114, %119 : vector<16x134xf32>
    %121 = vector.extract_strided_slice %38 {offsets = [0, 13], sizes = [16, 1], strides = [1, 1]} : vector<16x31xf32> to vector<16x1xf32>
    %122 = vector.extract_strided_slice %37 {offsets = [13, 0], sizes = [1, 134], strides = [1, 1]} : vector<15x136xf32> to vector<1x134xf32>
    %123 = vector.broadcast %121 : vector<16x1xf32> to vector<16x134xf32>
    %124 = vector.broadcast %122 : vector<1x134xf32> to vector<16x134xf32>
    %125 = arith.mulf %123, %124 : vector<16x134xf32>
    %126 = arith.addf %120, %125 : vector<16x134xf32>
    %127 = vector.extract_strided_slice %38 {offsets = [0, 14], sizes = [16, 1], strides = [1, 1]} : vector<16x31xf32> to vector<16x1xf32>
    %128 = vector.extract_strided_slice %37 {offsets = [14, 0], sizes = [1, 134], strides = [1, 1]} : vector<15x136xf32> to vector<1x134xf32>
    %129 = vector.broadcast %127 : vector<16x1xf32> to vector<16x134xf32>
    %130 = vector.broadcast %128 : vector<1x134xf32> to vector<16x134xf32>
    %131 = arith.mulf %129, %130 : vector<16x134xf32>
    %132 = arith.addf %126, %131 : vector<16x134xf32>
    %133 = vector.extract_strided_slice %38 {offsets = [0, 15], sizes = [16, 1], strides = [1, 1]} : vector<16x31xf32> to vector<16x1xf32>
    %134 = vector.extract_strided_slice %37 {offsets = [0, 1], sizes = [1, 134], strides = [1, 1]} : vector<15x136xf32> to vector<1x134xf32>
    %135 = vector.broadcast %133 : vector<16x1xf32> to vector<16x134xf32>
    %136 = vector.broadcast %134 : vector<1x134xf32> to vector<16x134xf32>
    %137 = arith.mulf %135, %136 : vector<16x134xf32>
    %138 = arith.addf %132, %137 : vector<16x134xf32>
    %139 = vector.extract_strided_slice %38 {offsets = [0, 16], sizes = [16, 1], strides = [1, 1]} : vector<16x31xf32> to vector<16x1xf32>
    %140 = vector.extract_strided_slice %37 {offsets = [1, 1], sizes = [1, 134], strides = [1, 1]} : vector<15x136xf32> to vector<1x134xf32>
    %141 = vector.broadcast %139 : vector<16x1xf32> to vector<16x134xf32>
    %142 = vector.broadcast %140 : vector<1x134xf32> to vector<16x134xf32>
    %143 = arith.mulf %141, %142 : vector<16x134xf32>
    %144 = arith.addf %138, %143 : vector<16x134xf32>
    %145 = vector.extract_strided_slice %38 {offsets = [0, 17], sizes = [16, 1], strides = [1, 1]} : vector<16x31xf32> to vector<16x1xf32>
    %146 = vector.extract_strided_slice %37 {offsets = [2, 1], sizes = [1, 134], strides = [1, 1]} : vector<15x136xf32> to vector<1x134xf32>
    %147 = vector.broadcast %145 : vector<16x1xf32> to vector<16x134xf32>
    %148 = vector.broadcast %146 : vector<1x134xf32> to vector<16x134xf32>
    %149 = arith.mulf %147, %148 : vector<16x134xf32>
    %150 = arith.addf %144, %149 : vector<16x134xf32>
    %151 = vector.extract_strided_slice %38 {offsets = [0, 18], sizes = [16, 1], strides = [1, 1]} : vector<16x31xf32> to vector<16x1xf32>
    %152 = vector.extract_strided_slice %37 {offsets = [3, 1], sizes = [1, 134], strides = [1, 1]} : vector<15x136xf32> to vector<1x134xf32>
    %153 = vector.broadcast %151 : vector<16x1xf32> to vector<16x134xf32>
    %154 = vector.broadcast %152 : vector<1x134xf32> to vector<16x134xf32>
    %155 = arith.mulf %153, %154 : vector<16x134xf32>
    %156 = arith.addf %150, %155 : vector<16x134xf32>
    %157 = vector.extract_strided_slice %38 {offsets = [0, 19], sizes = [16, 1], strides = [1, 1]} : vector<16x31xf32> to vector<16x1xf32>
    %158 = vector.extract_strided_slice %37 {offsets = [4, 1], sizes = [1, 134], strides = [1, 1]} : vector<15x136xf32> to vector<1x134xf32>
    %159 = vector.broadcast %157 : vector<16x1xf32> to vector<16x134xf32>
    %160 = vector.broadcast %158 : vector<1x134xf32> to vector<16x134xf32>
    %161 = arith.mulf %159, %160 : vector<16x134xf32>
    %162 = arith.addf %156, %161 : vector<16x134xf32>
    %163 = vector.extract_strided_slice %38 {offsets = [0, 20], sizes = [16, 1], strides = [1, 1]} : vector<16x31xf32> to vector<16x1xf32>
    %164 = vector.extract_strided_slice %37 {offsets = [5, 1], sizes = [1, 134], strides = [1, 1]} : vector<15x136xf32> to vector<1x134xf32>
    %165 = vector.broadcast %163 : vector<16x1xf32> to vector<16x134xf32>
    %166 = vector.broadcast %164 : vector<1x134xf32> to vector<16x134xf32>
    %167 = arith.mulf %165, %166 : vector<16x134xf32>
    %168 = arith.addf %162, %167 : vector<16x134xf32>
    %169 = vector.extract_strided_slice %38 {offsets = [0, 21], sizes = [16, 1], strides = [1, 1]} : vector<16x31xf32> to vector<16x1xf32>
    %170 = vector.extract_strided_slice %37 {offsets = [6, 1], sizes = [1, 134], strides = [1, 1]} : vector<15x136xf32> to vector<1x134xf32>
    %171 = vector.broadcast %169 : vector<16x1xf32> to vector<16x134xf32>
    %172 = vector.broadcast %170 : vector<1x134xf32> to vector<16x134xf32>
    %173 = arith.mulf %171, %172 : vector<16x134xf32>
    %174 = arith.addf %168, %173 : vector<16x134xf32>
    %175 = vector.extract_strided_slice %38 {offsets = [0, 22], sizes = [16, 1], strides = [1, 1]} : vector<16x31xf32> to vector<16x1xf32>
    %176 = vector.extract_strided_slice %37 {offsets = [7, 1], sizes = [1, 134], strides = [1, 1]} : vector<15x136xf32> to vector<1x134xf32>
    %177 = vector.broadcast %175 : vector<16x1xf32> to vector<16x134xf32>
    %178 = vector.broadcast %176 : vector<1x134xf32> to vector<16x134xf32>
    %179 = arith.mulf %177, %178 : vector<16x134xf32>
    %180 = arith.addf %174, %179 : vector<16x134xf32>
    %181 = vector.extract_strided_slice %38 {offsets = [0, 23], sizes = [16, 1], strides = [1, 1]} : vector<16x31xf32> to vector<16x1xf32>
    %182 = vector.extract_strided_slice %37 {offsets = [8, 1], sizes = [1, 134], strides = [1, 1]} : vector<15x136xf32> to vector<1x134xf32>
    %183 = vector.broadcast %181 : vector<16x1xf32> to vector<16x134xf32>
    %184 = vector.broadcast %182 : vector<1x134xf32> to vector<16x134xf32>
    %185 = arith.mulf %183, %184 : vector<16x134xf32>
    %186 = arith.addf %180, %185 : vector<16x134xf32>
    %187 = vector.extract_strided_slice %38 {offsets = [0, 24], sizes = [16, 1], strides = [1, 1]} : vector<16x31xf32> to vector<16x1xf32>
    %188 = vector.extract_strided_slice %37 {offsets = [9, 1], sizes = [1, 134], strides = [1, 1]} : vector<15x136xf32> to vector<1x134xf32>
    %189 = vector.broadcast %187 : vector<16x1xf32> to vector<16x134xf32>
    %190 = vector.broadcast %188 : vector<1x134xf32> to vector<16x134xf32>
    %191 = arith.mulf %189, %190 : vector<16x134xf32>
    %192 = arith.addf %186, %191 : vector<16x134xf32>
    %193 = vector.extract_strided_slice %38 {offsets = [0, 25], sizes = [16, 1], strides = [1, 1]} : vector<16x31xf32> to vector<16x1xf32>
    %194 = vector.extract_strided_slice %37 {offsets = [10, 1], sizes = [1, 134], strides = [1, 1]} : vector<15x136xf32> to vector<1x134xf32>
    %195 = vector.broadcast %193 : vector<16x1xf32> to vector<16x134xf32>
    %196 = vector.broadcast %194 : vector<1x134xf32> to vector<16x134xf32>
    %197 = arith.mulf %195, %196 : vector<16x134xf32>
    %198 = arith.addf %192, %197 : vector<16x134xf32>
    %199 = vector.extract_strided_slice %38 {offsets = [0, 26], sizes = [16, 1], strides = [1, 1]} : vector<16x31xf32> to vector<16x1xf32>
    %200 = vector.extract_strided_slice %37 {offsets = [11, 1], sizes = [1, 134], strides = [1, 1]} : vector<15x136xf32> to vector<1x134xf32>
    %201 = vector.broadcast %199 : vector<16x1xf32> to vector<16x134xf32>
    %202 = vector.broadcast %200 : vector<1x134xf32> to vector<16x134xf32>
    %203 = arith.mulf %201, %202 : vector<16x134xf32>
    %204 = arith.addf %198, %203 : vector<16x134xf32>
    %205 = vector.extract_strided_slice %38 {offsets = [0, 27], sizes = [16, 1], strides = [1, 1]} : vector<16x31xf32> to vector<16x1xf32>
    %206 = vector.extract_strided_slice %37 {offsets = [12, 1], sizes = [1, 134], strides = [1, 1]} : vector<15x136xf32> to vector<1x134xf32>
    %207 = vector.broadcast %205 : vector<16x1xf32> to vector<16x134xf32>
    %208 = vector.broadcast %206 : vector<1x134xf32> to vector<16x134xf32>
    %209 = arith.mulf %207, %208 : vector<16x134xf32>
    %210 = arith.addf %204, %209 : vector<16x134xf32>
    %211 = vector.extract_strided_slice %38 {offsets = [0, 28], sizes = [16, 1], strides = [1, 1]} : vector<16x31xf32> to vector<16x1xf32>
    %212 = vector.extract_strided_slice %37 {offsets = [13, 1], sizes = [1, 134], strides = [1, 1]} : vector<15x136xf32> to vector<1x134xf32>
    %213 = vector.broadcast %211 : vector<16x1xf32> to vector<16x134xf32>
    %214 = vector.broadcast %212 : vector<1x134xf32> to vector<16x134xf32>
    %215 = arith.mulf %213, %214 : vector<16x134xf32>
    %216 = arith.addf %210, %215 : vector<16x134xf32>
    %217 = vector.extract_strided_slice %38 {offsets = [0, 29], sizes = [16, 1], strides = [1, 1]} : vector<16x31xf32> to vector<16x1xf32>
    %218 = vector.extract_strided_slice %37 {offsets = [14, 1], sizes = [1, 134], strides = [1, 1]} : vector<15x136xf32> to vector<1x134xf32>
    %219 = vector.broadcast %217 : vector<16x1xf32> to vector<16x134xf32>
    %220 = vector.broadcast %218 : vector<1x134xf32> to vector<16x134xf32>
    %221 = arith.mulf %219, %220 : vector<16x134xf32>
    %222 = arith.addf %216, %221 : vector<16x134xf32>
    %223 = vector.extract_strided_slice %38 {offsets = [0, 30], sizes = [16, 1], strides = [1, 1]} : vector<16x31xf32> to vector<16x1xf32>
    %224 = vector.extract_strided_slice %37 {offsets = [0, 2], sizes = [1, 134], strides = [1, 1]} : vector<15x136xf32> to vector<1x134xf32>
    %225 = vector.broadcast %223 : vector<16x1xf32> to vector<16x134xf32>
    %226 = vector.broadcast %224 : vector<1x134xf32> to vector<16x134xf32>
    %227 = arith.mulf %225, %226 : vector<16x134xf32>
    %228 = arith.addf %222, %227 : vector<16x134xf32>
    %229 = math.absf %228 : vector<16x134xf32>
    %c-1_i32 = arith.constant -1 : i32
    %230 = vector.broadcast %c-1_i32 : i32 to vector<1x134xi32>
    %231 = arith.addi %41, %230 : vector<1x134xi32>
    %c0_i32 = arith.constant 0 : i32
    %232 = vector.broadcast %c0_i32 : i32 to vector<1x134xi32>
    %233 = arith.cmpi sge, %231, %232 : vector<1x134xi32>
    %c400_i32 = arith.constant 400 : i32
    %234 = vector.broadcast %c400_i32 : i32 to vector<1x134xi32>
    %235 = arith.cmpi slt, %231, %234 : vector<1x134xi32>
    %236 = arith.andi %233, %235 : vector<1x134xi1>
    %cst_13 = arith.constant 0xFF800000 : f32
    %237 = vector.shape_cast %236 : vector<1x134xi1> to vector<1x134xi1>
    %238 = vector.broadcast %237 : vector<1x134xi1> to vector<16x134xi1>
    %239 = vector.broadcast %cst_13 : f32 to vector<16x134xf32>
    %240 = arith.select %238, %229, %239 : vector<16x134xi1>, vector<16x134xf32>
    %cst_14 = arith.constant 0.000000e+00 : f32
    %241 = vector.broadcast %cst_14 : f32 to vector<16x134xf32>
    %242 = vector.extract_strided_slice %38 {offsets = [0, 0], sizes = [16, 1], strides = [1, 1]} : vector<16x31xf32> to vector<16x1xf32>
    %243 = vector.extract_strided_slice %37 {offsets = [5, 0], sizes = [1, 134], strides = [1, 1]} : vector<15x136xf32> to vector<1x134xf32>
    %244 = vector.broadcast %242 : vector<16x1xf32> to vector<16x134xf32>
    %245 = vector.broadcast %243 : vector<1x134xf32> to vector<16x134xf32>
    %246 = arith.mulf %244, %245 : vector<16x134xf32>
    %247 = arith.addf %241, %246 : vector<16x134xf32>
    %248 = vector.extract_strided_slice %38 {offsets = [0, 1], sizes = [16, 1], strides = [1, 1]} : vector<16x31xf32> to vector<16x1xf32>
    %249 = vector.extract_strided_slice %37 {offsets = [6, 0], sizes = [1, 134], strides = [1, 1]} : vector<15x136xf32> to vector<1x134xf32>
    %250 = vector.broadcast %248 : vector<16x1xf32> to vector<16x134xf32>
    %251 = vector.broadcast %249 : vector<1x134xf32> to vector<16x134xf32>
    %252 = arith.mulf %250, %251 : vector<16x134xf32>
    %253 = arith.addf %247, %252 : vector<16x134xf32>
    %254 = vector.extract_strided_slice %38 {offsets = [0, 2], sizes = [16, 1], strides = [1, 1]} : vector<16x31xf32> to vector<16x1xf32>
    %255 = vector.extract_strided_slice %37 {offsets = [7, 0], sizes = [1, 134], strides = [1, 1]} : vector<15x136xf32> to vector<1x134xf32>
    %256 = vector.broadcast %254 : vector<16x1xf32> to vector<16x134xf32>
    %257 = vector.broadcast %255 : vector<1x134xf32> to vector<16x134xf32>
    %258 = arith.mulf %256, %257 : vector<16x134xf32>
    %259 = arith.addf %253, %258 : vector<16x134xf32>
    %260 = vector.extract_strided_slice %38 {offsets = [0, 3], sizes = [16, 1], strides = [1, 1]} : vector<16x31xf32> to vector<16x1xf32>
    %261 = vector.extract_strided_slice %37 {offsets = [8, 0], sizes = [1, 134], strides = [1, 1]} : vector<15x136xf32> to vector<1x134xf32>
    %262 = vector.broadcast %260 : vector<16x1xf32> to vector<16x134xf32>
    %263 = vector.broadcast %261 : vector<1x134xf32> to vector<16x134xf32>
    %264 = arith.mulf %262, %263 : vector<16x134xf32>
    %265 = arith.addf %259, %264 : vector<16x134xf32>
    %266 = vector.extract_strided_slice %38 {offsets = [0, 4], sizes = [16, 1], strides = [1, 1]} : vector<16x31xf32> to vector<16x1xf32>
    %267 = vector.extract_strided_slice %37 {offsets = [9, 0], sizes = [1, 134], strides = [1, 1]} : vector<15x136xf32> to vector<1x134xf32>
    %268 = vector.broadcast %266 : vector<16x1xf32> to vector<16x134xf32>
    %269 = vector.broadcast %267 : vector<1x134xf32> to vector<16x134xf32>
    %270 = arith.mulf %268, %269 : vector<16x134xf32>
    %271 = arith.addf %265, %270 : vector<16x134xf32>
    %272 = vector.extract_strided_slice %38 {offsets = [0, 5], sizes = [16, 1], strides = [1, 1]} : vector<16x31xf32> to vector<16x1xf32>
    %273 = vector.extract_strided_slice %37 {offsets = [10, 0], sizes = [1, 134], strides = [1, 1]} : vector<15x136xf32> to vector<1x134xf32>
    %274 = vector.broadcast %272 : vector<16x1xf32> to vector<16x134xf32>
    %275 = vector.broadcast %273 : vector<1x134xf32> to vector<16x134xf32>
    %276 = arith.mulf %274, %275 : vector<16x134xf32>
    %277 = arith.addf %271, %276 : vector<16x134xf32>
    %278 = vector.extract_strided_slice %38 {offsets = [0, 6], sizes = [16, 1], strides = [1, 1]} : vector<16x31xf32> to vector<16x1xf32>
    %279 = vector.extract_strided_slice %37 {offsets = [11, 0], sizes = [1, 134], strides = [1, 1]} : vector<15x136xf32> to vector<1x134xf32>
    %280 = vector.broadcast %278 : vector<16x1xf32> to vector<16x134xf32>
    %281 = vector.broadcast %279 : vector<1x134xf32> to vector<16x134xf32>
    %282 = arith.mulf %280, %281 : vector<16x134xf32>
    %283 = arith.addf %277, %282 : vector<16x134xf32>
    %284 = vector.extract_strided_slice %38 {offsets = [0, 7], sizes = [16, 1], strides = [1, 1]} : vector<16x31xf32> to vector<16x1xf32>
    %285 = vector.extract_strided_slice %37 {offsets = [12, 0], sizes = [1, 134], strides = [1, 1]} : vector<15x136xf32> to vector<1x134xf32>
    %286 = vector.broadcast %284 : vector<16x1xf32> to vector<16x134xf32>
    %287 = vector.broadcast %285 : vector<1x134xf32> to vector<16x134xf32>
    %288 = arith.mulf %286, %287 : vector<16x134xf32>
    %289 = arith.addf %283, %288 : vector<16x134xf32>
    %290 = vector.extract_strided_slice %38 {offsets = [0, 8], sizes = [16, 1], strides = [1, 1]} : vector<16x31xf32> to vector<16x1xf32>
    %291 = vector.extract_strided_slice %37 {offsets = [13, 0], sizes = [1, 134], strides = [1, 1]} : vector<15x136xf32> to vector<1x134xf32>
    %292 = vector.broadcast %290 : vector<16x1xf32> to vector<16x134xf32>
    %293 = vector.broadcast %291 : vector<1x134xf32> to vector<16x134xf32>
    %294 = arith.mulf %292, %293 : vector<16x134xf32>
    %295 = arith.addf %289, %294 : vector<16x134xf32>
    %296 = vector.extract_strided_slice %38 {offsets = [0, 9], sizes = [16, 1], strides = [1, 1]} : vector<16x31xf32> to vector<16x1xf32>
    %297 = vector.extract_strided_slice %37 {offsets = [14, 0], sizes = [1, 134], strides = [1, 1]} : vector<15x136xf32> to vector<1x134xf32>
    %298 = vector.broadcast %296 : vector<16x1xf32> to vector<16x134xf32>
    %299 = vector.broadcast %297 : vector<1x134xf32> to vector<16x134xf32>
    %300 = arith.mulf %298, %299 : vector<16x134xf32>
    %301 = arith.addf %295, %300 : vector<16x134xf32>
    %302 = vector.extract_strided_slice %38 {offsets = [0, 10], sizes = [16, 1], strides = [1, 1]} : vector<16x31xf32> to vector<16x1xf32>
    %303 = vector.extract_strided_slice %37 {offsets = [0, 1], sizes = [1, 134], strides = [1, 1]} : vector<15x136xf32> to vector<1x134xf32>
    %304 = vector.broadcast %302 : vector<16x1xf32> to vector<16x134xf32>
    %305 = vector.broadcast %303 : vector<1x134xf32> to vector<16x134xf32>
    %306 = arith.mulf %304, %305 : vector<16x134xf32>
    %307 = arith.addf %301, %306 : vector<16x134xf32>
    %308 = vector.extract_strided_slice %38 {offsets = [0, 11], sizes = [16, 1], strides = [1, 1]} : vector<16x31xf32> to vector<16x1xf32>
    %309 = vector.extract_strided_slice %37 {offsets = [1, 1], sizes = [1, 134], strides = [1, 1]} : vector<15x136xf32> to vector<1x134xf32>
    %310 = vector.broadcast %308 : vector<16x1xf32> to vector<16x134xf32>
    %311 = vector.broadcast %309 : vector<1x134xf32> to vector<16x134xf32>
    %312 = arith.mulf %310, %311 : vector<16x134xf32>
    %313 = arith.addf %307, %312 : vector<16x134xf32>
    %314 = vector.extract_strided_slice %38 {offsets = [0, 12], sizes = [16, 1], strides = [1, 1]} : vector<16x31xf32> to vector<16x1xf32>
    %315 = vector.extract_strided_slice %37 {offsets = [2, 1], sizes = [1, 134], strides = [1, 1]} : vector<15x136xf32> to vector<1x134xf32>
    %316 = vector.broadcast %314 : vector<16x1xf32> to vector<16x134xf32>
    %317 = vector.broadcast %315 : vector<1x134xf32> to vector<16x134xf32>
    %318 = arith.mulf %316, %317 : vector<16x134xf32>
    %319 = arith.addf %313, %318 : vector<16x134xf32>
    %320 = vector.extract_strided_slice %38 {offsets = [0, 13], sizes = [16, 1], strides = [1, 1]} : vector<16x31xf32> to vector<16x1xf32>
    %321 = vector.extract_strided_slice %37 {offsets = [3, 1], sizes = [1, 134], strides = [1, 1]} : vector<15x136xf32> to vector<1x134xf32>
    %322 = vector.broadcast %320 : vector<16x1xf32> to vector<16x134xf32>
    %323 = vector.broadcast %321 : vector<1x134xf32> to vector<16x134xf32>
    %324 = arith.mulf %322, %323 : vector<16x134xf32>
    %325 = arith.addf %319, %324 : vector<16x134xf32>
    %326 = vector.extract_strided_slice %38 {offsets = [0, 14], sizes = [16, 1], strides = [1, 1]} : vector<16x31xf32> to vector<16x1xf32>
    %327 = vector.extract_strided_slice %37 {offsets = [4, 1], sizes = [1, 134], strides = [1, 1]} : vector<15x136xf32> to vector<1x134xf32>
    %328 = vector.broadcast %326 : vector<16x1xf32> to vector<16x134xf32>
    %329 = vector.broadcast %327 : vector<1x134xf32> to vector<16x134xf32>
    %330 = arith.mulf %328, %329 : vector<16x134xf32>
    %331 = arith.addf %325, %330 : vector<16x134xf32>
    %332 = vector.extract_strided_slice %38 {offsets = [0, 15], sizes = [16, 1], strides = [1, 1]} : vector<16x31xf32> to vector<16x1xf32>
    %333 = vector.extract_strided_slice %37 {offsets = [5, 1], sizes = [1, 134], strides = [1, 1]} : vector<15x136xf32> to vector<1x134xf32>
    %334 = vector.broadcast %332 : vector<16x1xf32> to vector<16x134xf32>
    %335 = vector.broadcast %333 : vector<1x134xf32> to vector<16x134xf32>
    %336 = arith.mulf %334, %335 : vector<16x134xf32>
    %337 = arith.addf %331, %336 : vector<16x134xf32>
    %338 = vector.extract_strided_slice %38 {offsets = [0, 16], sizes = [16, 1], strides = [1, 1]} : vector<16x31xf32> to vector<16x1xf32>
    %339 = vector.extract_strided_slice %37 {offsets = [6, 1], sizes = [1, 134], strides = [1, 1]} : vector<15x136xf32> to vector<1x134xf32>
    %340 = vector.broadcast %338 : vector<16x1xf32> to vector<16x134xf32>
    %341 = vector.broadcast %339 : vector<1x134xf32> to vector<16x134xf32>
    %342 = arith.mulf %340, %341 : vector<16x134xf32>
    %343 = arith.addf %337, %342 : vector<16x134xf32>
    %344 = vector.extract_strided_slice %38 {offsets = [0, 17], sizes = [16, 1], strides = [1, 1]} : vector<16x31xf32> to vector<16x1xf32>
    %345 = vector.extract_strided_slice %37 {offsets = [7, 1], sizes = [1, 134], strides = [1, 1]} : vector<15x136xf32> to vector<1x134xf32>
    %346 = vector.broadcast %344 : vector<16x1xf32> to vector<16x134xf32>
    %347 = vector.broadcast %345 : vector<1x134xf32> to vector<16x134xf32>
    %348 = arith.mulf %346, %347 : vector<16x134xf32>
    %349 = arith.addf %343, %348 : vector<16x134xf32>
    %350 = vector.extract_strided_slice %38 {offsets = [0, 18], sizes = [16, 1], strides = [1, 1]} : vector<16x31xf32> to vector<16x1xf32>
    %351 = vector.extract_strided_slice %37 {offsets = [8, 1], sizes = [1, 134], strides = [1, 1]} : vector<15x136xf32> to vector<1x134xf32>
    %352 = vector.broadcast %350 : vector<16x1xf32> to vector<16x134xf32>
    %353 = vector.broadcast %351 : vector<1x134xf32> to vector<16x134xf32>
    %354 = arith.mulf %352, %353 : vector<16x134xf32>
    %355 = arith.addf %349, %354 : vector<16x134xf32>
    %356 = vector.extract_strided_slice %38 {offsets = [0, 19], sizes = [16, 1], strides = [1, 1]} : vector<16x31xf32> to vector<16x1xf32>
    %357 = vector.extract_strided_slice %37 {offsets = [9, 1], sizes = [1, 134], strides = [1, 1]} : vector<15x136xf32> to vector<1x134xf32>
    %358 = vector.broadcast %356 : vector<16x1xf32> to vector<16x134xf32>
    %359 = vector.broadcast %357 : vector<1x134xf32> to vector<16x134xf32>
    %360 = arith.mulf %358, %359 : vector<16x134xf32>
    %361 = arith.addf %355, %360 : vector<16x134xf32>
    %362 = vector.extract_strided_slice %38 {offsets = [0, 20], sizes = [16, 1], strides = [1, 1]} : vector<16x31xf32> to vector<16x1xf32>
    %363 = vector.extract_strided_slice %37 {offsets = [10, 1], sizes = [1, 134], strides = [1, 1]} : vector<15x136xf32> to vector<1x134xf32>
    %364 = vector.broadcast %362 : vector<16x1xf32> to vector<16x134xf32>
    %365 = vector.broadcast %363 : vector<1x134xf32> to vector<16x134xf32>
    %366 = arith.mulf %364, %365 : vector<16x134xf32>
    %367 = arith.addf %361, %366 : vector<16x134xf32>
    %368 = vector.extract_strided_slice %38 {offsets = [0, 21], sizes = [16, 1], strides = [1, 1]} : vector<16x31xf32> to vector<16x1xf32>
    %369 = vector.extract_strided_slice %37 {offsets = [11, 1], sizes = [1, 134], strides = [1, 1]} : vector<15x136xf32> to vector<1x134xf32>
    %370 = vector.broadcast %368 : vector<16x1xf32> to vector<16x134xf32>
    %371 = vector.broadcast %369 : vector<1x134xf32> to vector<16x134xf32>
    %372 = arith.mulf %370, %371 : vector<16x134xf32>
    %373 = arith.addf %367, %372 : vector<16x134xf32>
    %374 = vector.extract_strided_slice %38 {offsets = [0, 22], sizes = [16, 1], strides = [1, 1]} : vector<16x31xf32> to vector<16x1xf32>
    %375 = vector.extract_strided_slice %37 {offsets = [12, 1], sizes = [1, 134], strides = [1, 1]} : vector<15x136xf32> to vector<1x134xf32>
    %376 = vector.broadcast %374 : vector<16x1xf32> to vector<16x134xf32>
    %377 = vector.broadcast %375 : vector<1x134xf32> to vector<16x134xf32>
    %378 = arith.mulf %376, %377 : vector<16x134xf32>
    %379 = arith.addf %373, %378 : vector<16x134xf32>
    %380 = vector.extract_strided_slice %38 {offsets = [0, 23], sizes = [16, 1], strides = [1, 1]} : vector<16x31xf32> to vector<16x1xf32>
    %381 = vector.extract_strided_slice %37 {offsets = [13, 1], sizes = [1, 134], strides = [1, 1]} : vector<15x136xf32> to vector<1x134xf32>
    %382 = vector.broadcast %380 : vector<16x1xf32> to vector<16x134xf32>
    %383 = vector.broadcast %381 : vector<1x134xf32> to vector<16x134xf32>
    %384 = arith.mulf %382, %383 : vector<16x134xf32>
    %385 = arith.addf %379, %384 : vector<16x134xf32>
    %386 = vector.extract_strided_slice %38 {offsets = [0, 24], sizes = [16, 1], strides = [1, 1]} : vector<16x31xf32> to vector<16x1xf32>
    %387 = vector.extract_strided_slice %37 {offsets = [14, 1], sizes = [1, 134], strides = [1, 1]} : vector<15x136xf32> to vector<1x134xf32>
    %388 = vector.broadcast %386 : vector<16x1xf32> to vector<16x134xf32>
    %389 = vector.broadcast %387 : vector<1x134xf32> to vector<16x134xf32>
    %390 = arith.mulf %388, %389 : vector<16x134xf32>
    %391 = arith.addf %385, %390 : vector<16x134xf32>
    %392 = vector.extract_strided_slice %38 {offsets = [0, 25], sizes = [16, 1], strides = [1, 1]} : vector<16x31xf32> to vector<16x1xf32>
    %393 = vector.extract_strided_slice %37 {offsets = [0, 2], sizes = [1, 134], strides = [1, 1]} : vector<15x136xf32> to vector<1x134xf32>
    %394 = vector.broadcast %392 : vector<16x1xf32> to vector<16x134xf32>
    %395 = vector.broadcast %393 : vector<1x134xf32> to vector<16x134xf32>
    %396 = arith.mulf %394, %395 : vector<16x134xf32>
    %397 = arith.addf %391, %396 : vector<16x134xf32>
    %398 = vector.extract_strided_slice %38 {offsets = [0, 26], sizes = [16, 1], strides = [1, 1]} : vector<16x31xf32> to vector<16x1xf32>
    %399 = vector.extract_strided_slice %37 {offsets = [1, 2], sizes = [1, 134], strides = [1, 1]} : vector<15x136xf32> to vector<1x134xf32>
    %400 = vector.broadcast %398 : vector<16x1xf32> to vector<16x134xf32>
    %401 = vector.broadcast %399 : vector<1x134xf32> to vector<16x134xf32>
    %402 = arith.mulf %400, %401 : vector<16x134xf32>
    %403 = arith.addf %397, %402 : vector<16x134xf32>
    %404 = vector.extract_strided_slice %38 {offsets = [0, 27], sizes = [16, 1], strides = [1, 1]} : vector<16x31xf32> to vector<16x1xf32>
    %405 = vector.extract_strided_slice %37 {offsets = [2, 2], sizes = [1, 134], strides = [1, 1]} : vector<15x136xf32> to vector<1x134xf32>
    %406 = vector.broadcast %404 : vector<16x1xf32> to vector<16x134xf32>
    %407 = vector.broadcast %405 : vector<1x134xf32> to vector<16x134xf32>
    %408 = arith.mulf %406, %407 : vector<16x134xf32>
    %409 = arith.addf %403, %408 : vector<16x134xf32>
    %410 = vector.extract_strided_slice %38 {offsets = [0, 28], sizes = [16, 1], strides = [1, 1]} : vector<16x31xf32> to vector<16x1xf32>
    %411 = vector.extract_strided_slice %37 {offsets = [3, 2], sizes = [1, 134], strides = [1, 1]} : vector<15x136xf32> to vector<1x134xf32>
    %412 = vector.broadcast %410 : vector<16x1xf32> to vector<16x134xf32>
    %413 = vector.broadcast %411 : vector<1x134xf32> to vector<16x134xf32>
    %414 = arith.mulf %412, %413 : vector<16x134xf32>
    %415 = arith.addf %409, %414 : vector<16x134xf32>
    %416 = vector.extract_strided_slice %38 {offsets = [0, 29], sizes = [16, 1], strides = [1, 1]} : vector<16x31xf32> to vector<16x1xf32>
    %417 = vector.extract_strided_slice %37 {offsets = [4, 2], sizes = [1, 134], strides = [1, 1]} : vector<15x136xf32> to vector<1x134xf32>
    %418 = vector.broadcast %416 : vector<16x1xf32> to vector<16x134xf32>
    %419 = vector.broadcast %417 : vector<1x134xf32> to vector<16x134xf32>
    %420 = arith.mulf %418, %419 : vector<16x134xf32>
    %421 = arith.addf %415, %420 : vector<16x134xf32>
    %422 = vector.extract_strided_slice %38 {offsets = [0, 30], sizes = [16, 1], strides = [1, 1]} : vector<16x31xf32> to vector<16x1xf32>
    %423 = vector.extract_strided_slice %37 {offsets = [5, 2], sizes = [1, 134], strides = [1, 1]} : vector<15x136xf32> to vector<1x134xf32>
    %424 = vector.broadcast %422 : vector<16x1xf32> to vector<16x134xf32>
    %425 = vector.broadcast %423 : vector<1x134xf32> to vector<16x134xf32>
    %426 = arith.mulf %424, %425 : vector<16x134xf32>
    %427 = arith.addf %421, %426 : vector<16x134xf32>
    %428 = math.absf %427 : vector<16x134xf32>
    %c0_i32_15 = arith.constant 0 : i32
    %429 = vector.broadcast %c0_i32_15 : i32 to vector<1x134xi32>
    %430 = arith.addi %41, %429 : vector<1x134xi32>
    %c0_i32_16 = arith.constant 0 : i32
    %431 = vector.broadcast %c0_i32_16 : i32 to vector<1x134xi32>
    %432 = arith.cmpi sge, %430, %431 : vector<1x134xi32>
    %c400_i32_17 = arith.constant 400 : i32
    %433 = vector.broadcast %c400_i32_17 : i32 to vector<1x134xi32>
    %434 = arith.cmpi slt, %430, %433 : vector<1x134xi32>
    %435 = arith.andi %432, %434 : vector<1x134xi1>
    %cst_18 = arith.constant 0xFF800000 : f32
    %436 = vector.shape_cast %435 : vector<1x134xi1> to vector<1x134xi1>
    %437 = vector.broadcast %436 : vector<1x134xi1> to vector<16x134xi1>
    %438 = vector.broadcast %cst_18 : f32 to vector<16x134xf32>
    %439 = arith.select %437, %428, %438 : vector<16x134xi1>, vector<16x134xf32>
    %440 = arith.maximumf %240, %439 : vector<16x134xf32>
    %cst_19 = arith.constant 0.000000e+00 : f32
    %441 = vector.broadcast %cst_19 : f32 to vector<16x134xf32>
    %442 = vector.extract_strided_slice %38 {offsets = [0, 0], sizes = [16, 1], strides = [1, 1]} : vector<16x31xf32> to vector<16x1xf32>
    %443 = vector.extract_strided_slice %37 {offsets = [10, 0], sizes = [1, 134], strides = [1, 1]} : vector<15x136xf32> to vector<1x134xf32>
    %444 = vector.broadcast %442 : vector<16x1xf32> to vector<16x134xf32>
    %445 = vector.broadcast %443 : vector<1x134xf32> to vector<16x134xf32>
    %446 = arith.mulf %444, %445 : vector<16x134xf32>
    %447 = arith.addf %441, %446 : vector<16x134xf32>
    %448 = vector.extract_strided_slice %38 {offsets = [0, 1], sizes = [16, 1], strides = [1, 1]} : vector<16x31xf32> to vector<16x1xf32>
    %449 = vector.extract_strided_slice %37 {offsets = [11, 0], sizes = [1, 134], strides = [1, 1]} : vector<15x136xf32> to vector<1x134xf32>
    %450 = vector.broadcast %448 : vector<16x1xf32> to vector<16x134xf32>
    %451 = vector.broadcast %449 : vector<1x134xf32> to vector<16x134xf32>
    %452 = arith.mulf %450, %451 : vector<16x134xf32>
    %453 = arith.addf %447, %452 : vector<16x134xf32>
    %454 = vector.extract_strided_slice %38 {offsets = [0, 2], sizes = [16, 1], strides = [1, 1]} : vector<16x31xf32> to vector<16x1xf32>
    %455 = vector.extract_strided_slice %37 {offsets = [12, 0], sizes = [1, 134], strides = [1, 1]} : vector<15x136xf32> to vector<1x134xf32>
    %456 = vector.broadcast %454 : vector<16x1xf32> to vector<16x134xf32>
    %457 = vector.broadcast %455 : vector<1x134xf32> to vector<16x134xf32>
    %458 = arith.mulf %456, %457 : vector<16x134xf32>
    %459 = arith.addf %453, %458 : vector<16x134xf32>
    %460 = vector.extract_strided_slice %38 {offsets = [0, 3], sizes = [16, 1], strides = [1, 1]} : vector<16x31xf32> to vector<16x1xf32>
    %461 = vector.extract_strided_slice %37 {offsets = [13, 0], sizes = [1, 134], strides = [1, 1]} : vector<15x136xf32> to vector<1x134xf32>
    %462 = vector.broadcast %460 : vector<16x1xf32> to vector<16x134xf32>
    %463 = vector.broadcast %461 : vector<1x134xf32> to vector<16x134xf32>
    %464 = arith.mulf %462, %463 : vector<16x134xf32>
    %465 = arith.addf %459, %464 : vector<16x134xf32>
    %466 = vector.extract_strided_slice %38 {offsets = [0, 4], sizes = [16, 1], strides = [1, 1]} : vector<16x31xf32> to vector<16x1xf32>
    %467 = vector.extract_strided_slice %37 {offsets = [14, 0], sizes = [1, 134], strides = [1, 1]} : vector<15x136xf32> to vector<1x134xf32>
    %468 = vector.broadcast %466 : vector<16x1xf32> to vector<16x134xf32>
    %469 = vector.broadcast %467 : vector<1x134xf32> to vector<16x134xf32>
    %470 = arith.mulf %468, %469 : vector<16x134xf32>
    %471 = arith.addf %465, %470 : vector<16x134xf32>
    %472 = vector.extract_strided_slice %38 {offsets = [0, 5], sizes = [16, 1], strides = [1, 1]} : vector<16x31xf32> to vector<16x1xf32>
    %473 = vector.extract_strided_slice %37 {offsets = [0, 1], sizes = [1, 134], strides = [1, 1]} : vector<15x136xf32> to vector<1x134xf32>
    %474 = vector.broadcast %472 : vector<16x1xf32> to vector<16x134xf32>
    %475 = vector.broadcast %473 : vector<1x134xf32> to vector<16x134xf32>
    %476 = arith.mulf %474, %475 : vector<16x134xf32>
    %477 = arith.addf %471, %476 : vector<16x134xf32>
    %478 = vector.extract_strided_slice %38 {offsets = [0, 6], sizes = [16, 1], strides = [1, 1]} : vector<16x31xf32> to vector<16x1xf32>
    %479 = vector.extract_strided_slice %37 {offsets = [1, 1], sizes = [1, 134], strides = [1, 1]} : vector<15x136xf32> to vector<1x134xf32>
    %480 = vector.broadcast %478 : vector<16x1xf32> to vector<16x134xf32>
    %481 = vector.broadcast %479 : vector<1x134xf32> to vector<16x134xf32>
    %482 = arith.mulf %480, %481 : vector<16x134xf32>
    %483 = arith.addf %477, %482 : vector<16x134xf32>
    %484 = vector.extract_strided_slice %38 {offsets = [0, 7], sizes = [16, 1], strides = [1, 1]} : vector<16x31xf32> to vector<16x1xf32>
    %485 = vector.extract_strided_slice %37 {offsets = [2, 1], sizes = [1, 134], strides = [1, 1]} : vector<15x136xf32> to vector<1x134xf32>
    %486 = vector.broadcast %484 : vector<16x1xf32> to vector<16x134xf32>
    %487 = vector.broadcast %485 : vector<1x134xf32> to vector<16x134xf32>
    %488 = arith.mulf %486, %487 : vector<16x134xf32>
    %489 = arith.addf %483, %488 : vector<16x134xf32>
    %490 = vector.extract_strided_slice %38 {offsets = [0, 8], sizes = [16, 1], strides = [1, 1]} : vector<16x31xf32> to vector<16x1xf32>
    %491 = vector.extract_strided_slice %37 {offsets = [3, 1], sizes = [1, 134], strides = [1, 1]} : vector<15x136xf32> to vector<1x134xf32>
    %492 = vector.broadcast %490 : vector<16x1xf32> to vector<16x134xf32>
    %493 = vector.broadcast %491 : vector<1x134xf32> to vector<16x134xf32>
    %494 = arith.mulf %492, %493 : vector<16x134xf32>
    %495 = arith.addf %489, %494 : vector<16x134xf32>
    %496 = vector.extract_strided_slice %38 {offsets = [0, 9], sizes = [16, 1], strides = [1, 1]} : vector<16x31xf32> to vector<16x1xf32>
    %497 = vector.extract_strided_slice %37 {offsets = [4, 1], sizes = [1, 134], strides = [1, 1]} : vector<15x136xf32> to vector<1x134xf32>
    %498 = vector.broadcast %496 : vector<16x1xf32> to vector<16x134xf32>
    %499 = vector.broadcast %497 : vector<1x134xf32> to vector<16x134xf32>
    %500 = arith.mulf %498, %499 : vector<16x134xf32>
    %501 = arith.addf %495, %500 : vector<16x134xf32>
    %502 = vector.extract_strided_slice %38 {offsets = [0, 10], sizes = [16, 1], strides = [1, 1]} : vector<16x31xf32> to vector<16x1xf32>
    %503 = vector.extract_strided_slice %37 {offsets = [5, 1], sizes = [1, 134], strides = [1, 1]} : vector<15x136xf32> to vector<1x134xf32>
    %504 = vector.broadcast %502 : vector<16x1xf32> to vector<16x134xf32>
    %505 = vector.broadcast %503 : vector<1x134xf32> to vector<16x134xf32>
    %506 = arith.mulf %504, %505 : vector<16x134xf32>
    %507 = arith.addf %501, %506 : vector<16x134xf32>
    %508 = vector.extract_strided_slice %38 {offsets = [0, 11], sizes = [16, 1], strides = [1, 1]} : vector<16x31xf32> to vector<16x1xf32>
    %509 = vector.extract_strided_slice %37 {offsets = [6, 1], sizes = [1, 134], strides = [1, 1]} : vector<15x136xf32> to vector<1x134xf32>
    %510 = vector.broadcast %508 : vector<16x1xf32> to vector<16x134xf32>
    %511 = vector.broadcast %509 : vector<1x134xf32> to vector<16x134xf32>
    %512 = arith.mulf %510, %511 : vector<16x134xf32>
    %513 = arith.addf %507, %512 : vector<16x134xf32>
    %514 = vector.extract_strided_slice %38 {offsets = [0, 12], sizes = [16, 1], strides = [1, 1]} : vector<16x31xf32> to vector<16x1xf32>
    %515 = vector.extract_strided_slice %37 {offsets = [7, 1], sizes = [1, 134], strides = [1, 1]} : vector<15x136xf32> to vector<1x134xf32>
    %516 = vector.broadcast %514 : vector<16x1xf32> to vector<16x134xf32>
    %517 = vector.broadcast %515 : vector<1x134xf32> to vector<16x134xf32>
    %518 = arith.mulf %516, %517 : vector<16x134xf32>
    %519 = arith.addf %513, %518 : vector<16x134xf32>
    %520 = vector.extract_strided_slice %38 {offsets = [0, 13], sizes = [16, 1], strides = [1, 1]} : vector<16x31xf32> to vector<16x1xf32>
    %521 = vector.extract_strided_slice %37 {offsets = [8, 1], sizes = [1, 134], strides = [1, 1]} : vector<15x136xf32> to vector<1x134xf32>
    %522 = vector.broadcast %520 : vector<16x1xf32> to vector<16x134xf32>
    %523 = vector.broadcast %521 : vector<1x134xf32> to vector<16x134xf32>
    %524 = arith.mulf %522, %523 : vector<16x134xf32>
    %525 = arith.addf %519, %524 : vector<16x134xf32>
    %526 = vector.extract_strided_slice %38 {offsets = [0, 14], sizes = [16, 1], strides = [1, 1]} : vector<16x31xf32> to vector<16x1xf32>
    %527 = vector.extract_strided_slice %37 {offsets = [9, 1], sizes = [1, 134], strides = [1, 1]} : vector<15x136xf32> to vector<1x134xf32>
    %528 = vector.broadcast %526 : vector<16x1xf32> to vector<16x134xf32>
    %529 = vector.broadcast %527 : vector<1x134xf32> to vector<16x134xf32>
    %530 = arith.mulf %528, %529 : vector<16x134xf32>
    %531 = arith.addf %525, %530 : vector<16x134xf32>
    %532 = vector.extract_strided_slice %38 {offsets = [0, 15], sizes = [16, 1], strides = [1, 1]} : vector<16x31xf32> to vector<16x1xf32>
    %533 = vector.extract_strided_slice %37 {offsets = [10, 1], sizes = [1, 134], strides = [1, 1]} : vector<15x136xf32> to vector<1x134xf32>
    %534 = vector.broadcast %532 : vector<16x1xf32> to vector<16x134xf32>
    %535 = vector.broadcast %533 : vector<1x134xf32> to vector<16x134xf32>
    %536 = arith.mulf %534, %535 : vector<16x134xf32>
    %537 = arith.addf %531, %536 : vector<16x134xf32>
    %538 = vector.extract_strided_slice %38 {offsets = [0, 16], sizes = [16, 1], strides = [1, 1]} : vector<16x31xf32> to vector<16x1xf32>
    %539 = vector.extract_strided_slice %37 {offsets = [11, 1], sizes = [1, 134], strides = [1, 1]} : vector<15x136xf32> to vector<1x134xf32>
    %540 = vector.broadcast %538 : vector<16x1xf32> to vector<16x134xf32>
    %541 = vector.broadcast %539 : vector<1x134xf32> to vector<16x134xf32>
    %542 = arith.mulf %540, %541 : vector<16x134xf32>
    %543 = arith.addf %537, %542 : vector<16x134xf32>
    %544 = vector.extract_strided_slice %38 {offsets = [0, 17], sizes = [16, 1], strides = [1, 1]} : vector<16x31xf32> to vector<16x1xf32>
    %545 = vector.extract_strided_slice %37 {offsets = [12, 1], sizes = [1, 134], strides = [1, 1]} : vector<15x136xf32> to vector<1x134xf32>
    %546 = vector.broadcast %544 : vector<16x1xf32> to vector<16x134xf32>
    %547 = vector.broadcast %545 : vector<1x134xf32> to vector<16x134xf32>
    %548 = arith.mulf %546, %547 : vector<16x134xf32>
    %549 = arith.addf %543, %548 : vector<16x134xf32>
    %550 = vector.extract_strided_slice %38 {offsets = [0, 18], sizes = [16, 1], strides = [1, 1]} : vector<16x31xf32> to vector<16x1xf32>
    %551 = vector.extract_strided_slice %37 {offsets = [13, 1], sizes = [1, 134], strides = [1, 1]} : vector<15x136xf32> to vector<1x134xf32>
    %552 = vector.broadcast %550 : vector<16x1xf32> to vector<16x134xf32>
    %553 = vector.broadcast %551 : vector<1x134xf32> to vector<16x134xf32>
    %554 = arith.mulf %552, %553 : vector<16x134xf32>
    %555 = arith.addf %549, %554 : vector<16x134xf32>
    %556 = vector.extract_strided_slice %38 {offsets = [0, 19], sizes = [16, 1], strides = [1, 1]} : vector<16x31xf32> to vector<16x1xf32>
    %557 = vector.extract_strided_slice %37 {offsets = [14, 1], sizes = [1, 134], strides = [1, 1]} : vector<15x136xf32> to vector<1x134xf32>
    %558 = vector.broadcast %556 : vector<16x1xf32> to vector<16x134xf32>
    %559 = vector.broadcast %557 : vector<1x134xf32> to vector<16x134xf32>
    %560 = arith.mulf %558, %559 : vector<16x134xf32>
    %561 = arith.addf %555, %560 : vector<16x134xf32>
    %562 = vector.extract_strided_slice %38 {offsets = [0, 20], sizes = [16, 1], strides = [1, 1]} : vector<16x31xf32> to vector<16x1xf32>
    %563 = vector.extract_strided_slice %37 {offsets = [0, 2], sizes = [1, 134], strides = [1, 1]} : vector<15x136xf32> to vector<1x134xf32>
    %564 = vector.broadcast %562 : vector<16x1xf32> to vector<16x134xf32>
    %565 = vector.broadcast %563 : vector<1x134xf32> to vector<16x134xf32>
    %566 = arith.mulf %564, %565 : vector<16x134xf32>
    %567 = arith.addf %561, %566 : vector<16x134xf32>
    %568 = vector.extract_strided_slice %38 {offsets = [0, 21], sizes = [16, 1], strides = [1, 1]} : vector<16x31xf32> to vector<16x1xf32>
    %569 = vector.extract_strided_slice %37 {offsets = [1, 2], sizes = [1, 134], strides = [1, 1]} : vector<15x136xf32> to vector<1x134xf32>
    %570 = vector.broadcast %568 : vector<16x1xf32> to vector<16x134xf32>
    %571 = vector.broadcast %569 : vector<1x134xf32> to vector<16x134xf32>
    %572 = arith.mulf %570, %571 : vector<16x134xf32>
    %573 = arith.addf %567, %572 : vector<16x134xf32>
    %574 = vector.extract_strided_slice %38 {offsets = [0, 22], sizes = [16, 1], strides = [1, 1]} : vector<16x31xf32> to vector<16x1xf32>
    %575 = vector.extract_strided_slice %37 {offsets = [2, 2], sizes = [1, 134], strides = [1, 1]} : vector<15x136xf32> to vector<1x134xf32>
    %576 = vector.broadcast %574 : vector<16x1xf32> to vector<16x134xf32>
    %577 = vector.broadcast %575 : vector<1x134xf32> to vector<16x134xf32>
    %578 = arith.mulf %576, %577 : vector<16x134xf32>
    %579 = arith.addf %573, %578 : vector<16x134xf32>
    %580 = vector.extract_strided_slice %38 {offsets = [0, 23], sizes = [16, 1], strides = [1, 1]} : vector<16x31xf32> to vector<16x1xf32>
    %581 = vector.extract_strided_slice %37 {offsets = [3, 2], sizes = [1, 134], strides = [1, 1]} : vector<15x136xf32> to vector<1x134xf32>
    %582 = vector.broadcast %580 : vector<16x1xf32> to vector<16x134xf32>
    %583 = vector.broadcast %581 : vector<1x134xf32> to vector<16x134xf32>
    %584 = arith.mulf %582, %583 : vector<16x134xf32>
    %585 = arith.addf %579, %584 : vector<16x134xf32>
    %586 = vector.extract_strided_slice %38 {offsets = [0, 24], sizes = [16, 1], strides = [1, 1]} : vector<16x31xf32> to vector<16x1xf32>
    %587 = vector.extract_strided_slice %37 {offsets = [4, 2], sizes = [1, 134], strides = [1, 1]} : vector<15x136xf32> to vector<1x134xf32>
    %588 = vector.broadcast %586 : vector<16x1xf32> to vector<16x134xf32>
    %589 = vector.broadcast %587 : vector<1x134xf32> to vector<16x134xf32>
    %590 = arith.mulf %588, %589 : vector<16x134xf32>
    %591 = arith.addf %585, %590 : vector<16x134xf32>
    %592 = vector.extract_strided_slice %38 {offsets = [0, 25], sizes = [16, 1], strides = [1, 1]} : vector<16x31xf32> to vector<16x1xf32>
    %593 = vector.extract_strided_slice %37 {offsets = [5, 2], sizes = [1, 134], strides = [1, 1]} : vector<15x136xf32> to vector<1x134xf32>
    %594 = vector.broadcast %592 : vector<16x1xf32> to vector<16x134xf32>
    %595 = vector.broadcast %593 : vector<1x134xf32> to vector<16x134xf32>
    %596 = arith.mulf %594, %595 : vector<16x134xf32>
    %597 = arith.addf %591, %596 : vector<16x134xf32>
    %598 = vector.extract_strided_slice %38 {offsets = [0, 26], sizes = [16, 1], strides = [1, 1]} : vector<16x31xf32> to vector<16x1xf32>
    %599 = vector.extract_strided_slice %37 {offsets = [6, 2], sizes = [1, 134], strides = [1, 1]} : vector<15x136xf32> to vector<1x134xf32>
    %600 = vector.broadcast %598 : vector<16x1xf32> to vector<16x134xf32>
    %601 = vector.broadcast %599 : vector<1x134xf32> to vector<16x134xf32>
    %602 = arith.mulf %600, %601 : vector<16x134xf32>
    %603 = arith.addf %597, %602 : vector<16x134xf32>
    %604 = vector.extract_strided_slice %38 {offsets = [0, 27], sizes = [16, 1], strides = [1, 1]} : vector<16x31xf32> to vector<16x1xf32>
    %605 = vector.extract_strided_slice %37 {offsets = [7, 2], sizes = [1, 134], strides = [1, 1]} : vector<15x136xf32> to vector<1x134xf32>
    %606 = vector.broadcast %604 : vector<16x1xf32> to vector<16x134xf32>
    %607 = vector.broadcast %605 : vector<1x134xf32> to vector<16x134xf32>
    %608 = arith.mulf %606, %607 : vector<16x134xf32>
    %609 = arith.addf %603, %608 : vector<16x134xf32>
    %610 = vector.extract_strided_slice %38 {offsets = [0, 28], sizes = [16, 1], strides = [1, 1]} : vector<16x31xf32> to vector<16x1xf32>
    %611 = vector.extract_strided_slice %37 {offsets = [8, 2], sizes = [1, 134], strides = [1, 1]} : vector<15x136xf32> to vector<1x134xf32>
    %612 = vector.broadcast %610 : vector<16x1xf32> to vector<16x134xf32>
    %613 = vector.broadcast %611 : vector<1x134xf32> to vector<16x134xf32>
    %614 = arith.mulf %612, %613 : vector<16x134xf32>
    %615 = arith.addf %609, %614 : vector<16x134xf32>
    %616 = vector.extract_strided_slice %38 {offsets = [0, 29], sizes = [16, 1], strides = [1, 1]} : vector<16x31xf32> to vector<16x1xf32>
    %617 = vector.extract_strided_slice %37 {offsets = [9, 2], sizes = [1, 134], strides = [1, 1]} : vector<15x136xf32> to vector<1x134xf32>
    %618 = vector.broadcast %616 : vector<16x1xf32> to vector<16x134xf32>
    %619 = vector.broadcast %617 : vector<1x134xf32> to vector<16x134xf32>
    %620 = arith.mulf %618, %619 : vector<16x134xf32>
    %621 = arith.addf %615, %620 : vector<16x134xf32>
    %622 = vector.extract_strided_slice %38 {offsets = [0, 30], sizes = [16, 1], strides = [1, 1]} : vector<16x31xf32> to vector<16x1xf32>
    %623 = vector.extract_strided_slice %37 {offsets = [10, 2], sizes = [1, 134], strides = [1, 1]} : vector<15x136xf32> to vector<1x134xf32>
    %624 = vector.broadcast %622 : vector<16x1xf32> to vector<16x134xf32>
    %625 = vector.broadcast %623 : vector<1x134xf32> to vector<16x134xf32>
    %626 = arith.mulf %624, %625 : vector<16x134xf32>
    %627 = arith.addf %621, %626 : vector<16x134xf32>
    %628 = math.absf %627 : vector<16x134xf32>
    %c1_i32 = arith.constant 1 : i32
    %629 = vector.broadcast %c1_i32 : i32 to vector<1x134xi32>
    %630 = arith.addi %41, %629 : vector<1x134xi32>
    %c0_i32_20 = arith.constant 0 : i32
    %631 = vector.broadcast %c0_i32_20 : i32 to vector<1x134xi32>
    %632 = arith.cmpi sge, %630, %631 : vector<1x134xi32>
    %c400_i32_21 = arith.constant 400 : i32
    %633 = vector.broadcast %c400_i32_21 : i32 to vector<1x134xi32>
    %634 = arith.cmpi slt, %630, %633 : vector<1x134xi32>
    %635 = arith.andi %632, %634 : vector<1x134xi1>
    %cst_22 = arith.constant 0xFF800000 : f32
    %636 = vector.shape_cast %635 : vector<1x134xi1> to vector<1x134xi1>
    %637 = vector.broadcast %636 : vector<1x134xi1> to vector<16x134xi1>
    %638 = vector.broadcast %cst_22 : f32 to vector<16x134xf32>
    %639 = arith.select %637, %628, %638 : vector<16x134xi1>, vector<16x134xf32>
    %640 = arith.maximumf %440, %639 : vector<16x134xf32>
    %cst_23 = arith.constant dense<0.000000e+00> : vector<16xf32>
    %641 = vector.multi_reduction <add>, %640, %cst_23 [1] : vector<16x134xf32> to vector<16xf32>
    %642 = vector.shape_cast %641 : vector<16xf32> to vector<16x1xf32>
    %cst_24 = arith.constant 1.340000e+02 : f32
    %643 = vector.broadcast %cst_24 : f32 to vector<16x1xf32>
    %644 = arith.divf %642, %643 : vector<16x1xf32>
    %645 = vector.broadcast %644 : vector<16x1xf32> to vector<16x134xf32>
    %646 = arith.subf %640, %645 : vector<16x134xf32>
    %647 = arith.mulf %646, %646 : vector<16x134xf32>
    %cst_25 = arith.constant dense<0.000000e+00> : vector<16xf32>
    %648 = vector.multi_reduction <add>, %647, %cst_25 [1] : vector<16x134xf32> to vector<16xf32>
    %649 = vector.shape_cast %648 : vector<16xf32> to vector<16x1xf32>
    %cst_26 = arith.constant 1.340000e+02 : f32
    %650 = vector.broadcast %cst_26 : f32 to vector<16x1xf32>
    %651 = arith.divf %649, %650 : vector<16x1xf32>
    %652 = vector.broadcast %644 : vector<16x1xf32> to vector<16x134xf32>
    %653 = arith.subf %640, %652 : vector<16x134xf32>
    %cst_27 = arith.constant 9.99999974E-6 : f32
    %654 = vector.broadcast %cst_27 : f32 to vector<16x1xf32>
    %655 = arith.addf %651, %654 : vector<16x1xf32>
    %656 = math.rsqrt %655 : vector<16x1xf32>
    %657 = vector.broadcast %656 : vector<16x1xf32> to vector<16x134xf32>
    %658 = arith.mulf %653, %657 : vector<16x134xf32>
    %c0_28 = arith.constant 0 : index
    %c0_29 = arith.constant 0 : index
    %659 = vector.load %arg5[%c0_28, %c0_29] : memref<16x1xf32, #tpu.memory_space<vmem>>, vector<16x1xf32>
    %660 = vector.broadcast %659 : vector<16x1xf32> to vector<16x134xf32>
    %661 = arith.mulf %658, %660 : vector<16x134xf32>
    %c0_30 = arith.constant 0 : index
    %c0_31 = arith.constant 0 : index
    %662 = vector.load %arg6[%c0_30, %c0_31] : memref<16x1xf32, #tpu.memory_space<vmem>>, vector<16x1xf32>
    %663 = vector.broadcast %662 : vector<16x1xf32> to vector<16x134xf32>
    %664 = arith.addf %661, %663 : vector<16x134xf32>
    %cst_32 = arith.constant 0.000000e+00 : f32
    %665 = vector.broadcast %cst_32 : f32 to vector<16x134xf32>
    %666 = arith.cmpf oge, %664, %665 : vector<16x134xf32>
    %cst_33 = arith.constant 2.000000e-01 : f32
    %667 = vector.broadcast %cst_33 : f32 to vector<16x134xf32>
    %668 = arith.mulf %667, %664 : vector<16x134xf32>
    %669 = arith.select %666, %664, %668 : vector<16x134xi1>, vector<16x134xf32>
    %c0_34 = arith.constant 0 : index
    %c0_35 = arith.constant 0 : index
    %c0_36 = arith.constant 0 : index
    %670 = vector.load %arg7[%c0_34, %c0_35, %c0_36] : memref<1x16x134xf32, #tpu.memory_space<vmem>>, vector<1x16x134xf32>
    %671 = vector.shape_cast %670 : vector<1x16x134xf32> to vector<16x134xf32>
    %672 = vector.shape_cast %669 : vector<16x134xf32> to vector<1x16x134xf32>
    tpu.vector_store %arg7[%c0_34, %c0_35, %c0_36], %672 {strides = array<i32>} : memref<1x16x134xf32, #tpu.memory_space<vmem>>, vector<1x16x134xf32>,
    return
  }
  func.func @transform_0(%arg0: i32) -> (i32, i32, i32) {
    %c0_i32 = arith.constant 0 : i32
    %c0_i32_0 = arith.constant 0 : i32
    %c0_i32_1 = arith.constant 0 : i32
    return %arg0, %c0_i32, %c0_i32_0 : i32, i32, i32
  }
  func.func @transform_1(%arg0: i32) -> (i32, i32) {
    %c0_i32 = arith.constant 0 : i32
    %c0_i32_0 = arith.constant 0 : i32
    %c0_i32_1 = arith.constant 0 : i32
    return %c0_i32, %c0_i32_0 : i32, i32
  }
  func.func @transform_2(%arg0: i32) -> i32 {
    %c0_i32 = arith.constant 0 : i32
    %c0_i32_0 = arith.constant 0 : i32
    return %c0_i32 : i32
  }
  func.func @transform_3(%arg0: i32) -> i32 {
    %c0_i32 = arith.constant 0 : i32
    %c0_i32_0 = arith.constant 0 : i32
    return %c0_i32 : i32
  }
  func.func @transform_4(%arg0: i32) -> (i32, i32) {
    %c0_i32 = arith.constant 0 : i32
    %c0_i32_0 = arith.constant 0 : i32
    %c0_i32_1 = arith.constant 0 : i32
    return %c0_i32, %c0_i32_0 : i32, i32
  }
  func.func @transform_5(%arg0: i32) -> (i32, i32) {
    %c0_i32 = arith.constant 0 : i32
    %c0_i32_0 = arith.constant 0 : i32
    %c0_i32_1 = arith.constant 0 : i32
    return %c0_i32, %c0_i32_0 : i32, i32
  }
  func.func @transform_6(%arg0: i32) -> (i32, i32, i32) {
    %c0_i32 = arith.constant 0 : i32
    %c0_i32_0 = arith.constant 0 : i32
    %c0_i32_1 = arith.constant 0 : i32
    return %arg0, %c0_i32, %c0_i32_0 : i32, i32, i32
  }
}

module attributes {stable_mosaic.version = 11 : i64} {
  func.func @_sinc_layer_kernel(%arg0: i32, %arg1: memref<1x48x47xf32, #tpu.memory_space<vmem>>, %arg2: memref<5x16x16xf32, #tpu.memory_space<vmem>>, %arg3: memref<16x1xf32, #tpu.memory_space<vmem>>, %arg4: memref<16x1xf32, #tpu.memory_space<vmem>>, %arg5: memref<16x1xf32, #tpu.memory_space<vmem>>, %arg6: memref<1x16x45xf32, #tpu.memory_space<vmem>>) attributes {dimension_semantics = [#tpu.dimension_semantics<parallel>], iteration_bounds = array<i64: 2>, scalar_prefetch = 0 : i64, scratch_operands = 0 : i64, tpu.core_type = #tpu.core_type<tc>, window_params = [{transform_indices = @transform_0, window_bounds = array<i64: 1, 48, 47>}, {pipeline_mode = #tpu.pipeline_mode<synchronous>, transform_indices = @transform_1, window_bounds = array<i64: 5, 16, 16>}, {pipeline_mode = #tpu.pipeline_mode<synchronous>, transform_indices = @transform_2, window_bounds = array<i64: 16, 1>}, {pipeline_mode = #tpu.pipeline_mode<synchronous>, transform_indices = @transform_3, window_bounds = array<i64: 16, 1>}, {pipeline_mode = #tpu.pipeline_mode<synchronous>, transform_indices = @transform_4, window_bounds = array<i64: 16, 1>}, {transform_indices = @transform_5, window_bounds = array<i64: 1, 16, 45>}]} {
    %c0 = arith.constant 0 : index
    %c0_0 = arith.constant 0 : index
    %c0_1 = arith.constant 0 : index
    %0 = vector.load %arg1[%c0, %c0_0, %c0_1] : memref<1x48x47xf32, #tpu.memory_space<vmem>>, vector<1x48x47xf32>
    %1 = vector.shape_cast %0 : vector<1x48x47xf32> to vector<48x47xf32>
    %2 = tpu.iota {dimensions = array<i32: 1>} : vector<1x45xi32>
    %c3_i32 = arith.constant 3 : i32
    %3 = vector.broadcast %c3_i32 : i32 to vector<1x45xi32>
    %4 = arith.muli %2, %3 : vector<1x45xi32>
    %cst = arith.constant 0.000000e+00 : f32
    %5 = vector.broadcast %cst : f32 to vector<16x45xf32>
    %6 = vector.extract_strided_slice %1 {offsets = [0, 0], sizes = [16, 45], strides = [1, 1]} : vector<48x47xf32> to vector<16x45xf32>
    %c0_2 = arith.constant 0 : index
    %c0_3 = arith.constant 0 : index
    %c0_4 = arith.constant 0 : index
    %7 = vector.load %arg2[%c0_2, %c0_3, %c0_4] : memref<5x16x16xf32, #tpu.memory_space<vmem>>, vector<1x16x16xf32>
    %8 = vector.shape_cast %7 : vector<1x16x16xf32> to vector<16x16xf32>
    %cst_5 = arith.constant dense<0.000000e+00> : vector<16x45xf32>
    %9 = tpu.matmul %8, %6, %cst_5 {dimension_numbers = #tpu.dot_dimension_numbers<[1], [0], [0], [1], [0, 0, 1, 1], [], []>} : vector<16x16xf32>, vector<16x45xf32>, vector<16x45xf32> -> vector<16x45xf32>
    %10 = arith.addf %5, %9 : vector<16x45xf32>
    %11 = vector.extract_strided_slice %1 {offsets = [16, 0], sizes = [16, 45], strides = [1, 1]} : vector<48x47xf32> to vector<16x45xf32>
    %c1 = arith.constant 1 : index
    %c0_6 = arith.constant 0 : index
    %c0_7 = arith.constant 0 : index
    %12 = vector.load %arg2[%c1, %c0_6, %c0_7] : memref<5x16x16xf32, #tpu.memory_space<vmem>>, vector<1x16x16xf32>
    %13 = vector.shape_cast %12 : vector<1x16x16xf32> to vector<16x16xf32>
    %cst_8 = arith.constant dense<0.000000e+00> : vector<16x45xf32>
    %14 = tpu.matmul %13, %11, %cst_8 {dimension_numbers = #tpu.dot_dimension_numbers<[1], [0], [0], [1], [0, 0, 1, 1], [], []>} : vector<16x16xf32>, vector<16x45xf32>, vector<16x45xf32> -> vector<16x45xf32>
    %15 = arith.addf %10, %14 : vector<16x45xf32>
    %16 = vector.extract_strided_slice %1 {offsets = [32, 0], sizes = [16, 45], strides = [1, 1]} : vector<48x47xf32> to vector<16x45xf32>
    %c2 = arith.constant 2 : index
    %c0_9 = arith.constant 0 : index
    %c0_10 = arith.constant 0 : index
    %17 = vector.load %arg2[%c2, %c0_9, %c0_10] : memref<5x16x16xf32, #tpu.memory_space<vmem>>, vector<1x16x16xf32>
    %18 = vector.shape_cast %17 : vector<1x16x16xf32> to vector<16x16xf32>
    %cst_11 = arith.constant dense<0.000000e+00> : vector<16x45xf32>
    %19 = tpu.matmul %18, %16, %cst_11 {dimension_numbers = #tpu.dot_dimension_numbers<[1], [0], [0], [1], [0, 0, 1, 1], [], []>} : vector<16x16xf32>, vector<16x45xf32>, vector<16x45xf32> -> vector<16x45xf32>
    %20 = arith.addf %15, %19 : vector<16x45xf32>
    %21 = vector.extract_strided_slice %1 {offsets = [0, 1], sizes = [16, 45], strides = [1, 1]} : vector<48x47xf32> to vector<16x45xf32>
    %c3 = arith.constant 3 : index
    %c0_12 = arith.constant 0 : index
    %c0_13 = arith.constant 0 : index
    %22 = vector.load %arg2[%c3, %c0_12, %c0_13] : memref<5x16x16xf32, #tpu.memory_space<vmem>>, vector<1x16x16xf32>
    %23 = vector.shape_cast %22 : vector<1x16x16xf32> to vector<16x16xf32>
    %cst_14 = arith.constant dense<0.000000e+00> : vector<16x45xf32>
    %24 = tpu.matmul %23, %21, %cst_14 {dimension_numbers = #tpu.dot_dimension_numbers<[1], [0], [0], [1], [0, 0, 1, 1], [], []>} : vector<16x16xf32>, vector<16x45xf32>, vector<16x45xf32> -> vector<16x45xf32>
    %25 = arith.addf %20, %24 : vector<16x45xf32>
    %26 = vector.extract_strided_slice %1 {offsets = [16, 1], sizes = [16, 45], strides = [1, 1]} : vector<48x47xf32> to vector<16x45xf32>
    %c4 = arith.constant 4 : index
    %c0_15 = arith.constant 0 : index
    %c0_16 = arith.constant 0 : index
    %27 = vector.load %arg2[%c4, %c0_15, %c0_16] : memref<5x16x16xf32, #tpu.memory_space<vmem>>, vector<1x16x16xf32>
    %28 = vector.shape_cast %27 : vector<1x16x16xf32> to vector<16x16xf32>
    %cst_17 = arith.constant dense<0.000000e+00> : vector<16x45xf32>
    %29 = tpu.matmul %28, %26, %cst_17 {dimension_numbers = #tpu.dot_dimension_numbers<[1], [0], [0], [1], [0, 0, 1, 1], [], []>} : vector<16x16xf32>, vector<16x45xf32>, vector<16x45xf32> -> vector<16x45xf32>
    %30 = arith.addf %25, %29 : vector<16x45xf32>
    %c-1_i32 = arith.constant -1 : i32
    %31 = vector.broadcast %c-1_i32 : i32 to vector<1x45xi32>
    %32 = arith.addi %4, %31 : vector<1x45xi32>
    %c0_i32 = arith.constant 0 : i32
    %33 = vector.broadcast %c0_i32 : i32 to vector<1x45xi32>
    %34 = arith.cmpi sge, %32, %33 : vector<1x45xi32>
    %c134_i32 = arith.constant 134 : i32
    %35 = vector.broadcast %c134_i32 : i32 to vector<1x45xi32>
    %36 = arith.cmpi slt, %32, %35 : vector<1x45xi32>
    %37 = arith.andi %34, %36 : vector<1x45xi1>
    %cst_18 = arith.constant 0xFF800000 : f32
    %38 = vector.shape_cast %37 : vector<1x45xi1> to vector<1x45xi1>
    %39 = vector.broadcast %38 : vector<1x45xi1> to vector<16x45xi1>
    %40 = vector.broadcast %cst_18 : f32 to vector<16x45xf32>
    %41 = arith.select %39, %30, %40 : vector<16x45xi1>, vector<16x45xf32>
    %cst_19 = arith.constant 0.000000e+00 : f32
    %42 = vector.broadcast %cst_19 : f32 to vector<16x45xf32>
    %43 = vector.extract_strided_slice %1 {offsets = [16, 0], sizes = [16, 45], strides = [1, 1]} : vector<48x47xf32> to vector<16x45xf32>
    %c0_20 = arith.constant 0 : index
    %c0_21 = arith.constant 0 : index
    %c0_22 = arith.constant 0 : index
    %44 = vector.load %arg2[%c0_20, %c0_21, %c0_22] : memref<5x16x16xf32, #tpu.memory_space<vmem>>, vector<1x16x16xf32>
    %45 = vector.shape_cast %44 : vector<1x16x16xf32> to vector<16x16xf32>
    %cst_23 = arith.constant dense<0.000000e+00> : vector<16x45xf32>
    %46 = tpu.matmul %45, %43, %cst_23 {dimension_numbers = #tpu.dot_dimension_numbers<[1], [0], [0], [1], [0, 0, 1, 1], [], []>} : vector<16x16xf32>, vector<16x45xf32>, vector<16x45xf32> -> vector<16x45xf32>
    %47 = arith.addf %42, %46 : vector<16x45xf32>
    %48 = vector.extract_strided_slice %1 {offsets = [32, 0], sizes = [16, 45], strides = [1, 1]} : vector<48x47xf32> to vector<16x45xf32>
    %c1_24 = arith.constant 1 : index
    %c0_25 = arith.constant 0 : index
    %c0_26 = arith.constant 0 : index
    %49 = vector.load %arg2[%c1_24, %c0_25, %c0_26] : memref<5x16x16xf32, #tpu.memory_space<vmem>>, vector<1x16x16xf32>
    %50 = vector.shape_cast %49 : vector<1x16x16xf32> to vector<16x16xf32>
    %cst_27 = arith.constant dense<0.000000e+00> : vector<16x45xf32>
    %51 = tpu.matmul %50, %48, %cst_27 {dimension_numbers = #tpu.dot_dimension_numbers<[1], [0], [0], [1], [0, 0, 1, 1], [], []>} : vector<16x16xf32>, vector<16x45xf32>, vector<16x45xf32> -> vector<16x45xf32>
    %52 = arith.addf %47, %51 : vector<16x45xf32>
    %53 = vector.extract_strided_slice %1 {offsets = [0, 1], sizes = [16, 45], strides = [1, 1]} : vector<48x47xf32> to vector<16x45xf32>
    %c2_28 = arith.constant 2 : index
    %c0_29 = arith.constant 0 : index
    %c0_30 = arith.constant 0 : index
    %54 = vector.load %arg2[%c2_28, %c0_29, %c0_30] : memref<5x16x16xf32, #tpu.memory_space<vmem>>, vector<1x16x16xf32>
    %55 = vector.shape_cast %54 : vector<1x16x16xf32> to vector<16x16xf32>
    %cst_31 = arith.constant dense<0.000000e+00> : vector<16x45xf32>
    %56 = tpu.matmul %55, %53, %cst_31 {dimension_numbers = #tpu.dot_dimension_numbers<[1], [0], [0], [1], [0, 0, 1, 1], [], []>} : vector<16x16xf32>, vector<16x45xf32>, vector<16x45xf32> -> vector<16x45xf32>
    %57 = arith.addf %52, %56 : vector<16x45xf32>
    %58 = vector.extract_strided_slice %1 {offsets = [16, 1], sizes = [16, 45], strides = [1, 1]} : vector<48x47xf32> to vector<16x45xf32>
    %c3_32 = arith.constant 3 : index
    %c0_33 = arith.constant 0 : index
    %c0_34 = arith.constant 0 : index
    %59 = vector.load %arg2[%c3_32, %c0_33, %c0_34] : memref<5x16x16xf32, #tpu.memory_space<vmem>>, vector<1x16x16xf32>
    %60 = vector.shape_cast %59 : vector<1x16x16xf32> to vector<16x16xf32>
    %cst_35 = arith.constant dense<0.000000e+00> : vector<16x45xf32>
    %61 = tpu.matmul %60, %58, %cst_35 {dimension_numbers = #tpu.dot_dimension_numbers<[1], [0], [0], [1], [0, 0, 1, 1], [], []>} : vector<16x16xf32>, vector<16x45xf32>, vector<16x45xf32> -> vector<16x45xf32>
    %62 = arith.addf %57, %61 : vector<16x45xf32>
    %63 = vector.extract_strided_slice %1 {offsets = [32, 1], sizes = [16, 45], strides = [1, 1]} : vector<48x47xf32> to vector<16x45xf32>
    %c4_36 = arith.constant 4 : index
    %c0_37 = arith.constant 0 : index
    %c0_38 = arith.constant 0 : index
    %64 = vector.load %arg2[%c4_36, %c0_37, %c0_38] : memref<5x16x16xf32, #tpu.memory_space<vmem>>, vector<1x16x16xf32>
    %65 = vector.shape_cast %64 : vector<1x16x16xf32> to vector<16x16xf32>
    %cst_39 = arith.constant dense<0.000000e+00> : vector<16x45xf32>
    %66 = tpu.matmul %65, %63, %cst_39 {dimension_numbers = #tpu.dot_dimension_numbers<[1], [0], [0], [1], [0, 0, 1, 1], [], []>} : vector<16x16xf32>, vector<16x45xf32>, vector<16x45xf32> -> vector<16x45xf32>
    %67 = arith.addf %62, %66 : vector<16x45xf32>
    %c0_i32_40 = arith.constant 0 : i32
    %68 = vector.broadcast %c0_i32_40 : i32 to vector<1x45xi32>
    %69 = arith.addi %4, %68 : vector<1x45xi32>
    %c0_i32_41 = arith.constant 0 : i32
    %70 = vector.broadcast %c0_i32_41 : i32 to vector<1x45xi32>
    %71 = arith.cmpi sge, %69, %70 : vector<1x45xi32>
    %c134_i32_42 = arith.constant 134 : i32
    %72 = vector.broadcast %c134_i32_42 : i32 to vector<1x45xi32>
    %73 = arith.cmpi slt, %69, %72 : vector<1x45xi32>
    %74 = arith.andi %71, %73 : vector<1x45xi1>
    %cst_43 = arith.constant 0xFF800000 : f32
    %75 = vector.shape_cast %74 : vector<1x45xi1> to vector<1x45xi1>
    %76 = vector.broadcast %75 : vector<1x45xi1> to vector<16x45xi1>
    %77 = vector.broadcast %cst_43 : f32 to vector<16x45xf32>
    %78 = arith.select %76, %67, %77 : vector<16x45xi1>, vector<16x45xf32>
    %79 = arith.maximumf %41, %78 : vector<16x45xf32>
    %cst_44 = arith.constant 0.000000e+00 : f32
    %80 = vector.broadcast %cst_44 : f32 to vector<16x45xf32>
    %81 = vector.extract_strided_slice %1 {offsets = [32, 0], sizes = [16, 45], strides = [1, 1]} : vector<48x47xf32> to vector<16x45xf32>
    %c0_45 = arith.constant 0 : index
    %c0_46 = arith.constant 0 : index
    %c0_47 = arith.constant 0 : index
    %82 = vector.load %arg2[%c0_45, %c0_46, %c0_47] : memref<5x16x16xf32, #tpu.memory_space<vmem>>, vector<1x16x16xf32>
    %83 = vector.shape_cast %82 : vector<1x16x16xf32> to vector<16x16xf32>
    %cst_48 = arith.constant dense<0.000000e+00> : vector<16x45xf32>
    %84 = tpu.matmul %83, %81, %cst_48 {dimension_numbers = #tpu.dot_dimension_numbers<[1], [0], [0], [1], [0, 0, 1, 1], [], []>} : vector<16x16xf32>, vector<16x45xf32>, vector<16x45xf32> -> vector<16x45xf32>
    %85 = arith.addf %80, %84 : vector<16x45xf32>
    %86 = vector.extract_strided_slice %1 {offsets = [0, 1], sizes = [16, 45], strides = [1, 1]} : vector<48x47xf32> to vector<16x45xf32>
    %c1_49 = arith.constant 1 : index
    %c0_50 = arith.constant 0 : index
    %c0_51 = arith.constant 0 : index
    %87 = vector.load %arg2[%c1_49, %c0_50, %c0_51] : memref<5x16x16xf32, #tpu.memory_space<vmem>>, vector<1x16x16xf32>
    %88 = vector.shape_cast %87 : vector<1x16x16xf32> to vector<16x16xf32>
    %cst_52 = arith.constant dense<0.000000e+00> : vector<16x45xf32>
    %89 = tpu.matmul %88, %86, %cst_52 {dimension_numbers = #tpu.dot_dimension_numbers<[1], [0], [0], [1], [0, 0, 1, 1], [], []>} : vector<16x16xf32>, vector<16x45xf32>, vector<16x45xf32> -> vector<16x45xf32>
    %90 = arith.addf %85, %89 : vector<16x45xf32>
    %91 = vector.extract_strided_slice %1 {offsets = [16, 1], sizes = [16, 45], strides = [1, 1]} : vector<48x47xf32> to vector<16x45xf32>
    %c2_53 = arith.constant 2 : index
    %c0_54 = arith.constant 0 : index
    %c0_55 = arith.constant 0 : index
    %92 = vector.load %arg2[%c2_53, %c0_54, %c0_55] : memref<5x16x16xf32, #tpu.memory_space<vmem>>, vector<1x16x16xf32>
    %93 = vector.shape_cast %92 : vector<1x16x16xf32> to vector<16x16xf32>
    %cst_56 = arith.constant dense<0.000000e+00> : vector<16x45xf32>
    %94 = tpu.matmul %93, %91, %cst_56 {dimension_numbers = #tpu.dot_dimension_numbers<[1], [0], [0], [1], [0, 0, 1, 1], [], []>} : vector<16x16xf32>, vector<16x45xf32>, vector<16x45xf32> -> vector<16x45xf32>
    %95 = arith.addf %90, %94 : vector<16x45xf32>
    %96 = vector.extract_strided_slice %1 {offsets = [32, 1], sizes = [16, 45], strides = [1, 1]} : vector<48x47xf32> to vector<16x45xf32>
    %c3_57 = arith.constant 3 : index
    %c0_58 = arith.constant 0 : index
    %c0_59 = arith.constant 0 : index
    %97 = vector.load %arg2[%c3_57, %c0_58, %c0_59] : memref<5x16x16xf32, #tpu.memory_space<vmem>>, vector<1x16x16xf32>
    %98 = vector.shape_cast %97 : vector<1x16x16xf32> to vector<16x16xf32>
    %cst_60 = arith.constant dense<0.000000e+00> : vector<16x45xf32>
    %99 = tpu.matmul %98, %96, %cst_60 {dimension_numbers = #tpu.dot_dimension_numbers<[1], [0], [0], [1], [0, 0, 1, 1], [], []>} : vector<16x16xf32>, vector<16x45xf32>, vector<16x45xf32> -> vector<16x45xf32>
    %100 = arith.addf %95, %99 : vector<16x45xf32>
    %101 = vector.extract_strided_slice %1 {offsets = [0, 2], sizes = [16, 45], strides = [1, 1]} : vector<48x47xf32> to vector<16x45xf32>
    %c4_61 = arith.constant 4 : index
    %c0_62 = arith.constant 0 : index
    %c0_63 = arith.constant 0 : index
    %102 = vector.load %arg2[%c4_61, %c0_62, %c0_63] : memref<5x16x16xf32, #tpu.memory_space<vmem>>, vector<1x16x16xf32>
    %103 = vector.shape_cast %102 : vector<1x16x16xf32> to vector<16x16xf32>
    %cst_64 = arith.constant dense<0.000000e+00> : vector<16x45xf32>
    %104 = tpu.matmul %103, %101, %cst_64 {dimension_numbers = #tpu.dot_dimension_numbers<[1], [0], [0], [1], [0, 0, 1, 1], [], []>} : vector<16x16xf32>, vector<16x45xf32>, vector<16x45xf32> -> vector<16x45xf32>
    %105 = arith.addf %100, %104 : vector<16x45xf32>
    %c1_i32 = arith.constant 1 : i32
    %106 = vector.broadcast %c1_i32 : i32 to vector<1x45xi32>
    %107 = arith.addi %4, %106 : vector<1x45xi32>
    %c0_i32_65 = arith.constant 0 : i32
    %108 = vector.broadcast %c0_i32_65 : i32 to vector<1x45xi32>
    %109 = arith.cmpi sge, %107, %108 : vector<1x45xi32>
    %c134_i32_66 = arith.constant 134 : i32
    %110 = vector.broadcast %c134_i32_66 : i32 to vector<1x45xi32>
    %111 = arith.cmpi slt, %107, %110 : vector<1x45xi32>
    %112 = arith.andi %109, %111 : vector<1x45xi1>
    %cst_67 = arith.constant 0xFF800000 : f32
    %113 = vector.shape_cast %112 : vector<1x45xi1> to vector<1x45xi1>
    %114 = vector.broadcast %113 : vector<1x45xi1> to vector<16x45xi1>
    %115 = vector.broadcast %cst_67 : f32 to vector<16x45xf32>
    %116 = arith.select %114, %105, %115 : vector<16x45xi1>, vector<16x45xf32>
    %117 = arith.maximumf %79, %116 : vector<16x45xf32>
    %c0_68 = arith.constant 0 : index
    %c0_69 = arith.constant 0 : index
    %118 = vector.load %arg3[%c0_68, %c0_69] : memref<16x1xf32, #tpu.memory_space<vmem>>, vector<16x1xf32>
    %119 = vector.broadcast %118 : vector<16x1xf32> to vector<16x45xf32>
    %120 = arith.addf %117, %119 : vector<16x45xf32>
    %cst_70 = arith.constant dense<0.000000e+00> : vector<16xf32>
    %121 = vector.multi_reduction <add>, %120, %cst_70 [1] : vector<16x45xf32> to vector<16xf32>
    %122 = vector.shape_cast %121 : vector<16xf32> to vector<16x1xf32>
    %cst_71 = arith.constant 4.500000e+01 : f32
    %123 = vector.broadcast %cst_71 : f32 to vector<16x1xf32>
    %124 = arith.divf %122, %123 : vector<16x1xf32>
    %125 = vector.broadcast %124 : vector<16x1xf32> to vector<16x45xf32>
    %126 = arith.subf %120, %125 : vector<16x45xf32>
    %127 = arith.mulf %126, %126 : vector<16x45xf32>
    %cst_72 = arith.constant dense<0.000000e+00> : vector<16xf32>
    %128 = vector.multi_reduction <add>, %127, %cst_72 [1] : vector<16x45xf32> to vector<16xf32>
    %129 = vector.shape_cast %128 : vector<16xf32> to vector<16x1xf32>
    %cst_73 = arith.constant 4.500000e+01 : f32
    %130 = vector.broadcast %cst_73 : f32 to vector<16x1xf32>
    %131 = arith.divf %129, %130 : vector<16x1xf32>
    %132 = vector.broadcast %124 : vector<16x1xf32> to vector<16x45xf32>
    %133 = arith.subf %120, %132 : vector<16x45xf32>
    %cst_74 = arith.constant 9.99999974E-6 : f32
    %134 = vector.broadcast %cst_74 : f32 to vector<16x1xf32>
    %135 = arith.addf %131, %134 : vector<16x1xf32>
    %136 = math.rsqrt %135 : vector<16x1xf32>
    %137 = vector.broadcast %136 : vector<16x1xf32> to vector<16x45xf32>
    %138 = arith.mulf %133, %137 : vector<16x45xf32>
    %c0_75 = arith.constant 0 : index
    %c0_76 = arith.constant 0 : index
    %139 = vector.load %arg4[%c0_75, %c0_76] : memref<16x1xf32, #tpu.memory_space<vmem>>, vector<16x1xf32>
    %140 = vector.broadcast %139 : vector<16x1xf32> to vector<16x45xf32>
    %141 = arith.mulf %138, %140 : vector<16x45xf32>
    %c0_77 = arith.constant 0 : index
    %c0_78 = arith.constant 0 : index
    %142 = vector.load %arg5[%c0_77, %c0_78] : memref<16x1xf32, #tpu.memory_space<vmem>>, vector<16x1xf32>
    %143 = vector.broadcast %142 : vector<16x1xf32> to vector<16x45xf32>
    %144 = arith.addf %141, %143 : vector<16x45xf32>
    %cst_79 = arith.constant 0.000000e+00 : f32
    %145 = vector.broadcast %cst_79 : f32 to vector<16x45xf32>
    %146 = arith.cmpf oge, %144, %145 : vector<16x45xf32>
    %cst_80 = arith.constant 2.000000e-01 : f32
    %147 = vector.broadcast %cst_80 : f32 to vector<16x45xf32>
    %148 = arith.mulf %147, %144 : vector<16x45xf32>
    %149 = arith.select %146, %144, %148 : vector<16x45xi1>, vector<16x45xf32>
    %c0_81 = arith.constant 0 : index
    %c0_82 = arith.constant 0 : index
    %c0_83 = arith.constant 0 : index
    %150 = vector.load %arg6[%c0_81, %c0_82, %c0_83] : memref<1x16x45xf32, #tpu.memory_space<vmem>>, vector<1x16x45xf32>
    %151 = vector.shape_cast %150 : vector<1x16x45xf32> to vector<16x45xf32>
    %152 = vector.shape_cast %149 : vector<16x45xf32> to vector<1x16x45xf32>
    tpu.vector_store %arg6[%c0_81, %c0_82, %c0_83], %152 {strides = array<i32>} : memref<1x16x45xf32, #tpu.memory_space<vmem>>, vector<1x16x45xf32>,
    return
  }
  func.func @transform_0(%arg0: i32) -> (i32, i32, i32) {
    %c0_i32 = arith.constant 0 : i32
    %c0_i32_0 = arith.constant 0 : i32
    %c0_i32_1 = arith.constant 0 : i32
    return %arg0, %c0_i32, %c0_i32_0 : i32, i32, i32
  }
  func.func @transform_1(%arg0: i32) -> (i32, i32, i32) {
    %c0_i32 = arith.constant 0 : i32
    %c0_i32_0 = arith.constant 0 : i32
    %c0_i32_1 = arith.constant 0 : i32
    %c0_i32_2 = arith.constant 0 : i32
    return %c0_i32, %c0_i32_0, %c0_i32_1 : i32, i32, i32
  }
  func.func @transform_2(%arg0: i32) -> (i32, i32) {
    %c0_i32 = arith.constant 0 : i32
    %c0_i32_0 = arith.constant 0 : i32
    %c0_i32_1 = arith.constant 0 : i32
    return %c0_i32, %c0_i32_0 : i32, i32
  }
  func.func @transform_3(%arg0: i32) -> (i32, i32) {
    %c0_i32 = arith.constant 0 : i32
    %c0_i32_0 = arith.constant 0 : i32
    %c0_i32_1 = arith.constant 0 : i32
    return %c0_i32, %c0_i32_0 : i32, i32
  }
  func.func @transform_4(%arg0: i32) -> (i32, i32) {
    %c0_i32 = arith.constant 0 : i32
    %c0_i32_0 = arith.constant 0 : i32
    %c0_i32_1 = arith.constant 0 : i32
    return %c0_i32, %c0_i32_0 : i32, i32
  }
  func.func @transform_5(%arg0: i32) -> (i32, i32, i32) {
    %c0_i32 = arith.constant 0 : i32
    %c0_i32_0 = arith.constant 0 : i32
    %c0_i32_1 = arith.constant 0 : i32
    return %arg0, %c0_i32, %c0_i32_0 : i32, i32, i32
  }
}

module attributes {stable_mosaic.version = 11 : i64} {
  func.func @_sinc_layer_kernel(%arg0: i32, %arg1: memref<1x48x17xf32, #tpu.memory_space<vmem>>, %arg2: memref<5x16x16xf32, #tpu.memory_space<vmem>>, %arg3: memref<16x1xf32, #tpu.memory_space<vmem>>, %arg4: memref<16x1xf32, #tpu.memory_space<vmem>>, %arg5: memref<16x1xf32, #tpu.memory_space<vmem>>, %arg6: memref<1x16x15xf32, #tpu.memory_space<vmem>>) attributes {dimension_semantics = [#tpu.dimension_semantics<parallel>], iteration_bounds = array<i64: 2>, scalar_prefetch = 0 : i64, scratch_operands = 0 : i64, tpu.core_type = #tpu.core_type<tc>, window_params = [{transform_indices = @transform_0, window_bounds = array<i64: 1, 48, 17>}, {pipeline_mode = #tpu.pipeline_mode<synchronous>, transform_indices = @transform_1, window_bounds = array<i64: 5, 16, 16>}, {pipeline_mode = #tpu.pipeline_mode<synchronous>, transform_indices = @transform_2, window_bounds = array<i64: 16, 1>}, {pipeline_mode = #tpu.pipeline_mode<synchronous>, transform_indices = @transform_3, window_bounds = array<i64: 16, 1>}, {pipeline_mode = #tpu.pipeline_mode<synchronous>, transform_indices = @transform_4, window_bounds = array<i64: 16, 1>}, {transform_indices = @transform_5, window_bounds = array<i64: 1, 16, 15>}]} {
    %c0 = arith.constant 0 : index
    %c0_0 = arith.constant 0 : index
    %c0_1 = arith.constant 0 : index
    %0 = vector.load %arg1[%c0, %c0_0, %c0_1] : memref<1x48x17xf32, #tpu.memory_space<vmem>>, vector<1x48x17xf32>
    %1 = vector.shape_cast %0 : vector<1x48x17xf32> to vector<48x17xf32>
    %2 = tpu.iota {dimensions = array<i32: 1>} : vector<1x15xi32>
    %c3_i32 = arith.constant 3 : i32
    %3 = vector.broadcast %c3_i32 : i32 to vector<1x15xi32>
    %4 = arith.muli %2, %3 : vector<1x15xi32>
    %cst = arith.constant 0.000000e+00 : f32
    %5 = vector.broadcast %cst : f32 to vector<16x15xf32>
    %6 = vector.extract_strided_slice %1 {offsets = [0, 0], sizes = [16, 15], strides = [1, 1]} : vector<48x17xf32> to vector<16x15xf32>
    %c0_2 = arith.constant 0 : index
    %c0_3 = arith.constant 0 : index
    %c0_4 = arith.constant 0 : index
    %7 = vector.load %arg2[%c0_2, %c0_3, %c0_4] : memref<5x16x16xf32, #tpu.memory_space<vmem>>, vector<1x16x16xf32>
    %8 = vector.shape_cast %7 : vector<1x16x16xf32> to vector<16x16xf32>
    %cst_5 = arith.constant dense<0.000000e+00> : vector<16x15xf32>
    %9 = tpu.matmul %8, %6, %cst_5 {dimension_numbers = #tpu.dot_dimension_numbers<[1], [0], [0], [1], [0, 0, 1, 1], [], []>} : vector<16x16xf32>, vector<16x15xf32>, vector<16x15xf32> -> vector<16x15xf32>
    %10 = arith.addf %5, %9 : vector<16x15xf32>
    %11 = vector.extract_strided_slice %1 {offsets = [16, 0], sizes = [16, 15], strides = [1, 1]} : vector<48x17xf32> to vector<16x15xf32>
    %c1 = arith.constant 1 : index
    %c0_6 = arith.constant 0 : index
    %c0_7 = arith.constant 0 : index
    %12 = vector.load %arg2[%c1, %c0_6, %c0_7] : memref<5x16x16xf32, #tpu.memory_space<vmem>>, vector<1x16x16xf32>
    %13 = vector.shape_cast %12 : vector<1x16x16xf32> to vector<16x16xf32>
    %cst_8 = arith.constant dense<0.000000e+00> : vector<16x15xf32>
    %14 = tpu.matmul %13, %11, %cst_8 {dimension_numbers = #tpu.dot_dimension_numbers<[1], [0], [0], [1], [0, 0, 1, 1], [], []>} : vector<16x16xf32>, vector<16x15xf32>, vector<16x15xf32> -> vector<16x15xf32>
    %15 = arith.addf %10, %14 : vector<16x15xf32>
    %16 = vector.extract_strided_slice %1 {offsets = [32, 0], sizes = [16, 15], strides = [1, 1]} : vector<48x17xf32> to vector<16x15xf32>
    %c2 = arith.constant 2 : index
    %c0_9 = arith.constant 0 : index
    %c0_10 = arith.constant 0 : index
    %17 = vector.load %arg2[%c2, %c0_9, %c0_10] : memref<5x16x16xf32, #tpu.memory_space<vmem>>, vector<1x16x16xf32>
    %18 = vector.shape_cast %17 : vector<1x16x16xf32> to vector<16x16xf32>
    %cst_11 = arith.constant dense<0.000000e+00> : vector<16x15xf32>
    %19 = tpu.matmul %18, %16, %cst_11 {dimension_numbers = #tpu.dot_dimension_numbers<[1], [0], [0], [1], [0, 0, 1, 1], [], []>} : vector<16x16xf32>, vector<16x15xf32>, vector<16x15xf32> -> vector<16x15xf32>
    %20 = arith.addf %15, %19 : vector<16x15xf32>
    %21 = vector.extract_strided_slice %1 {offsets = [0, 1], sizes = [16, 15], strides = [1, 1]} : vector<48x17xf32> to vector<16x15xf32>
    %c3 = arith.constant 3 : index
    %c0_12 = arith.constant 0 : index
    %c0_13 = arith.constant 0 : index
    %22 = vector.load %arg2[%c3, %c0_12, %c0_13] : memref<5x16x16xf32, #tpu.memory_space<vmem>>, vector<1x16x16xf32>
    %23 = vector.shape_cast %22 : vector<1x16x16xf32> to vector<16x16xf32>
    %cst_14 = arith.constant dense<0.000000e+00> : vector<16x15xf32>
    %24 = tpu.matmul %23, %21, %cst_14 {dimension_numbers = #tpu.dot_dimension_numbers<[1], [0], [0], [1], [0, 0, 1, 1], [], []>} : vector<16x16xf32>, vector<16x15xf32>, vector<16x15xf32> -> vector<16x15xf32>
    %25 = arith.addf %20, %24 : vector<16x15xf32>
    %26 = vector.extract_strided_slice %1 {offsets = [16, 1], sizes = [16, 15], strides = [1, 1]} : vector<48x17xf32> to vector<16x15xf32>
    %c4 = arith.constant 4 : index
    %c0_15 = arith.constant 0 : index
    %c0_16 = arith.constant 0 : index
    %27 = vector.load %arg2[%c4, %c0_15, %c0_16] : memref<5x16x16xf32, #tpu.memory_space<vmem>>, vector<1x16x16xf32>
    %28 = vector.shape_cast %27 : vector<1x16x16xf32> to vector<16x16xf32>
    %cst_17 = arith.constant dense<0.000000e+00> : vector<16x15xf32>
    %29 = tpu.matmul %28, %26, %cst_17 {dimension_numbers = #tpu.dot_dimension_numbers<[1], [0], [0], [1], [0, 0, 1, 1], [], []>} : vector<16x16xf32>, vector<16x15xf32>, vector<16x15xf32> -> vector<16x15xf32>
    %30 = arith.addf %25, %29 : vector<16x15xf32>
    %c-1_i32 = arith.constant -1 : i32
    %31 = vector.broadcast %c-1_i32 : i32 to vector<1x15xi32>
    %32 = arith.addi %4, %31 : vector<1x15xi32>
    %c0_i32 = arith.constant 0 : i32
    %33 = vector.broadcast %c0_i32 : i32 to vector<1x15xi32>
    %34 = arith.cmpi sge, %32, %33 : vector<1x15xi32>
    %c45_i32 = arith.constant 45 : i32
    %35 = vector.broadcast %c45_i32 : i32 to vector<1x15xi32>
    %36 = arith.cmpi slt, %32, %35 : vector<1x15xi32>
    %37 = arith.andi %34, %36 : vector<1x15xi1>
    %cst_18 = arith.constant 0xFF800000 : f32
    %38 = vector.shape_cast %37 : vector<1x15xi1> to vector<1x15xi1>
    %39 = vector.broadcast %38 : vector<1x15xi1> to vector<16x15xi1>
    %40 = vector.broadcast %cst_18 : f32 to vector<16x15xf32>
    %41 = arith.select %39, %30, %40 : vector<16x15xi1>, vector<16x15xf32>
    %cst_19 = arith.constant 0.000000e+00 : f32
    %42 = vector.broadcast %cst_19 : f32 to vector<16x15xf32>
    %43 = vector.extract_strided_slice %1 {offsets = [16, 0], sizes = [16, 15], strides = [1, 1]} : vector<48x17xf32> to vector<16x15xf32>
    %c0_20 = arith.constant 0 : index
    %c0_21 = arith.constant 0 : index
    %c0_22 = arith.constant 0 : index
    %44 = vector.load %arg2[%c0_20, %c0_21, %c0_22] : memref<5x16x16xf32, #tpu.memory_space<vmem>>, vector<1x16x16xf32>
    %45 = vector.shape_cast %44 : vector<1x16x16xf32> to vector<16x16xf32>
    %cst_23 = arith.constant dense<0.000000e+00> : vector<16x15xf32>
    %46 = tpu.matmul %45, %43, %cst_23 {dimension_numbers = #tpu.dot_dimension_numbers<[1], [0], [0], [1], [0, 0, 1, 1], [], []>} : vector<16x16xf32>, vector<16x15xf32>, vector<16x15xf32> -> vector<16x15xf32>
    %47 = arith.addf %42, %46 : vector<16x15xf32>
    %48 = vector.extract_strided_slice %1 {offsets = [32, 0], sizes = [16, 15], strides = [1, 1]} : vector<48x17xf32> to vector<16x15xf32>
    %c1_24 = arith.constant 1 : index
    %c0_25 = arith.constant 0 : index
    %c0_26 = arith.constant 0 : index
    %49 = vector.load %arg2[%c1_24, %c0_25, %c0_26] : memref<5x16x16xf32, #tpu.memory_space<vmem>>, vector<1x16x16xf32>
    %50 = vector.shape_cast %49 : vector<1x16x16xf32> to vector<16x16xf32>
    %cst_27 = arith.constant dense<0.000000e+00> : vector<16x15xf32>
    %51 = tpu.matmul %50, %48, %cst_27 {dimension_numbers = #tpu.dot_dimension_numbers<[1], [0], [0], [1], [0, 0, 1, 1], [], []>} : vector<16x16xf32>, vector<16x15xf32>, vector<16x15xf32> -> vector<16x15xf32>
    %52 = arith.addf %47, %51 : vector<16x15xf32>
    %53 = vector.extract_strided_slice %1 {offsets = [0, 1], sizes = [16, 15], strides = [1, 1]} : vector<48x17xf32> to vector<16x15xf32>
    %c2_28 = arith.constant 2 : index
    %c0_29 = arith.constant 0 : index
    %c0_30 = arith.constant 0 : index
    %54 = vector.load %arg2[%c2_28, %c0_29, %c0_30] : memref<5x16x16xf32, #tpu.memory_space<vmem>>, vector<1x16x16xf32>
    %55 = vector.shape_cast %54 : vector<1x16x16xf32> to vector<16x16xf32>
    %cst_31 = arith.constant dense<0.000000e+00> : vector<16x15xf32>
    %56 = tpu.matmul %55, %53, %cst_31 {dimension_numbers = #tpu.dot_dimension_numbers<[1], [0], [0], [1], [0, 0, 1, 1], [], []>} : vector<16x16xf32>, vector<16x15xf32>, vector<16x15xf32> -> vector<16x15xf32>
    %57 = arith.addf %52, %56 : vector<16x15xf32>
    %58 = vector.extract_strided_slice %1 {offsets = [16, 1], sizes = [16, 15], strides = [1, 1]} : vector<48x17xf32> to vector<16x15xf32>
    %c3_32 = arith.constant 3 : index
    %c0_33 = arith.constant 0 : index
    %c0_34 = arith.constant 0 : index
    %59 = vector.load %arg2[%c3_32, %c0_33, %c0_34] : memref<5x16x16xf32, #tpu.memory_space<vmem>>, vector<1x16x16xf32>
    %60 = vector.shape_cast %59 : vector<1x16x16xf32> to vector<16x16xf32>
    %cst_35 = arith.constant dense<0.000000e+00> : vector<16x15xf32>
    %61 = tpu.matmul %60, %58, %cst_35 {dimension_numbers = #tpu.dot_dimension_numbers<[1], [0], [0], [1], [0, 0, 1, 1], [], []>} : vector<16x16xf32>, vector<16x15xf32>, vector<16x15xf32> -> vector<16x15xf32>
    %62 = arith.addf %57, %61 : vector<16x15xf32>
    %63 = vector.extract_strided_slice %1 {offsets = [32, 1], sizes = [16, 15], strides = [1, 1]} : vector<48x17xf32> to vector<16x15xf32>
    %c4_36 = arith.constant 4 : index
    %c0_37 = arith.constant 0 : index
    %c0_38 = arith.constant 0 : index
    %64 = vector.load %arg2[%c4_36, %c0_37, %c0_38] : memref<5x16x16xf32, #tpu.memory_space<vmem>>, vector<1x16x16xf32>
    %65 = vector.shape_cast %64 : vector<1x16x16xf32> to vector<16x16xf32>
    %cst_39 = arith.constant dense<0.000000e+00> : vector<16x15xf32>
    %66 = tpu.matmul %65, %63, %cst_39 {dimension_numbers = #tpu.dot_dimension_numbers<[1], [0], [0], [1], [0, 0, 1, 1], [], []>} : vector<16x16xf32>, vector<16x15xf32>, vector<16x15xf32> -> vector<16x15xf32>
    %67 = arith.addf %62, %66 : vector<16x15xf32>
    %c0_i32_40 = arith.constant 0 : i32
    %68 = vector.broadcast %c0_i32_40 : i32 to vector<1x15xi32>
    %69 = arith.addi %4, %68 : vector<1x15xi32>
    %c0_i32_41 = arith.constant 0 : i32
    %70 = vector.broadcast %c0_i32_41 : i32 to vector<1x15xi32>
    %71 = arith.cmpi sge, %69, %70 : vector<1x15xi32>
    %c45_i32_42 = arith.constant 45 : i32
    %72 = vector.broadcast %c45_i32_42 : i32 to vector<1x15xi32>
    %73 = arith.cmpi slt, %69, %72 : vector<1x15xi32>
    %74 = arith.andi %71, %73 : vector<1x15xi1>
    %cst_43 = arith.constant 0xFF800000 : f32
    %75 = vector.shape_cast %74 : vector<1x15xi1> to vector<1x15xi1>
    %76 = vector.broadcast %75 : vector<1x15xi1> to vector<16x15xi1>
    %77 = vector.broadcast %cst_43 : f32 to vector<16x15xf32>
    %78 = arith.select %76, %67, %77 : vector<16x15xi1>, vector<16x15xf32>
    %79 = arith.maximumf %41, %78 : vector<16x15xf32>
    %cst_44 = arith.constant 0.000000e+00 : f32
    %80 = vector.broadcast %cst_44 : f32 to vector<16x15xf32>
    %81 = vector.extract_strided_slice %1 {offsets = [32, 0], sizes = [16, 15], strides = [1, 1]} : vector<48x17xf32> to vector<16x15xf32>
    %c0_45 = arith.constant 0 : index
    %c0_46 = arith.constant 0 : index
    %c0_47 = arith.constant 0 : index
    %82 = vector.load %arg2[%c0_45, %c0_46, %c0_47] : memref<5x16x16xf32, #tpu.memory_space<vmem>>, vector<1x16x16xf32>
    %83 = vector.shape_cast %82 : vector<1x16x16xf32> to vector<16x16xf32>
    %cst_48 = arith.constant dense<0.000000e+00> : vector<16x15xf32>
    %84 = tpu.matmul %83, %81, %cst_48 {dimension_numbers = #tpu.dot_dimension_numbers<[1], [0], [0], [1], [0, 0, 1, 1], [], []>} : vector<16x16xf32>, vector<16x15xf32>, vector<16x15xf32> -> vector<16x15xf32>
    %85 = arith.addf %80, %84 : vector<16x15xf32>
    %86 = vector.extract_strided_slice %1 {offsets = [0, 1], sizes = [16, 15], strides = [1, 1]} : vector<48x17xf32> to vector<16x15xf32>
    %c1_49 = arith.constant 1 : index
    %c0_50 = arith.constant 0 : index
    %c0_51 = arith.constant 0 : index
    %87 = vector.load %arg2[%c1_49, %c0_50, %c0_51] : memref<5x16x16xf32, #tpu.memory_space<vmem>>, vector<1x16x16xf32>
    %88 = vector.shape_cast %87 : vector<1x16x16xf32> to vector<16x16xf32>
    %cst_52 = arith.constant dense<0.000000e+00> : vector<16x15xf32>
    %89 = tpu.matmul %88, %86, %cst_52 {dimension_numbers = #tpu.dot_dimension_numbers<[1], [0], [0], [1], [0, 0, 1, 1], [], []>} : vector<16x16xf32>, vector<16x15xf32>, vector<16x15xf32> -> vector<16x15xf32>
    %90 = arith.addf %85, %89 : vector<16x15xf32>
    %91 = vector.extract_strided_slice %1 {offsets = [16, 1], sizes = [16, 15], strides = [1, 1]} : vector<48x17xf32> to vector<16x15xf32>
    %c2_53 = arith.constant 2 : index
    %c0_54 = arith.constant 0 : index
    %c0_55 = arith.constant 0 : index
    %92 = vector.load %arg2[%c2_53, %c0_54, %c0_55] : memref<5x16x16xf32, #tpu.memory_space<vmem>>, vector<1x16x16xf32>
    %93 = vector.shape_cast %92 : vector<1x16x16xf32> to vector<16x16xf32>
    %cst_56 = arith.constant dense<0.000000e+00> : vector<16x15xf32>
    %94 = tpu.matmul %93, %91, %cst_56 {dimension_numbers = #tpu.dot_dimension_numbers<[1], [0], [0], [1], [0, 0, 1, 1], [], []>} : vector<16x16xf32>, vector<16x15xf32>, vector<16x15xf32> -> vector<16x15xf32>
    %95 = arith.addf %90, %94 : vector<16x15xf32>
    %96 = vector.extract_strided_slice %1 {offsets = [32, 1], sizes = [16, 15], strides = [1, 1]} : vector<48x17xf32> to vector<16x15xf32>
    %c3_57 = arith.constant 3 : index
    %c0_58 = arith.constant 0 : index
    %c0_59 = arith.constant 0 : index
    %97 = vector.load %arg2[%c3_57, %c0_58, %c0_59] : memref<5x16x16xf32, #tpu.memory_space<vmem>>, vector<1x16x16xf32>
    %98 = vector.shape_cast %97 : vector<1x16x16xf32> to vector<16x16xf32>
    %cst_60 = arith.constant dense<0.000000e+00> : vector<16x15xf32>
    %99 = tpu.matmul %98, %96, %cst_60 {dimension_numbers = #tpu.dot_dimension_numbers<[1], [0], [0], [1], [0, 0, 1, 1], [], []>} : vector<16x16xf32>, vector<16x15xf32>, vector<16x15xf32> -> vector<16x15xf32>
    %100 = arith.addf %95, %99 : vector<16x15xf32>
    %101 = vector.extract_strided_slice %1 {offsets = [0, 2], sizes = [16, 15], strides = [1, 1]} : vector<48x17xf32> to vector<16x15xf32>
    %c4_61 = arith.constant 4 : index
    %c0_62 = arith.constant 0 : index
    %c0_63 = arith.constant 0 : index
    %102 = vector.load %arg2[%c4_61, %c0_62, %c0_63] : memref<5x16x16xf32, #tpu.memory_space<vmem>>, vector<1x16x16xf32>
    %103 = vector.shape_cast %102 : vector<1x16x16xf32> to vector<16x16xf32>
    %cst_64 = arith.constant dense<0.000000e+00> : vector<16x15xf32>
    %104 = tpu.matmul %103, %101, %cst_64 {dimension_numbers = #tpu.dot_dimension_numbers<[1], [0], [0], [1], [0, 0, 1, 1], [], []>} : vector<16x16xf32>, vector<16x15xf32>, vector<16x15xf32> -> vector<16x15xf32>
    %105 = arith.addf %100, %104 : vector<16x15xf32>
    %c1_i32 = arith.constant 1 : i32
    %106 = vector.broadcast %c1_i32 : i32 to vector<1x15xi32>
    %107 = arith.addi %4, %106 : vector<1x15xi32>
    %c0_i32_65 = arith.constant 0 : i32
    %108 = vector.broadcast %c0_i32_65 : i32 to vector<1x15xi32>
    %109 = arith.cmpi sge, %107, %108 : vector<1x15xi32>
    %c45_i32_66 = arith.constant 45 : i32
    %110 = vector.broadcast %c45_i32_66 : i32 to vector<1x15xi32>
    %111 = arith.cmpi slt, %107, %110 : vector<1x15xi32>
    %112 = arith.andi %109, %111 : vector<1x15xi1>
    %cst_67 = arith.constant 0xFF800000 : f32
    %113 = vector.shape_cast %112 : vector<1x15xi1> to vector<1x15xi1>
    %114 = vector.broadcast %113 : vector<1x15xi1> to vector<16x15xi1>
    %115 = vector.broadcast %cst_67 : f32 to vector<16x15xf32>
    %116 = arith.select %114, %105, %115 : vector<16x15xi1>, vector<16x15xf32>
    %117 = arith.maximumf %79, %116 : vector<16x15xf32>
    %c0_68 = arith.constant 0 : index
    %c0_69 = arith.constant 0 : index
    %118 = vector.load %arg3[%c0_68, %c0_69] : memref<16x1xf32, #tpu.memory_space<vmem>>, vector<16x1xf32>
    %119 = vector.broadcast %118 : vector<16x1xf32> to vector<16x15xf32>
    %120 = arith.addf %117, %119 : vector<16x15xf32>
    %cst_70 = arith.constant dense<0.000000e+00> : vector<16xf32>
    %121 = vector.multi_reduction <add>, %120, %cst_70 [1] : vector<16x15xf32> to vector<16xf32>
    %122 = vector.shape_cast %121 : vector<16xf32> to vector<16x1xf32>
    %cst_71 = arith.constant 1.500000e+01 : f32
    %123 = vector.broadcast %cst_71 : f32 to vector<16x1xf32>
    %124 = arith.divf %122, %123 : vector<16x1xf32>
    %125 = vector.broadcast %124 : vector<16x1xf32> to vector<16x15xf32>
    %126 = arith.subf %120, %125 : vector<16x15xf32>
    %127 = arith.mulf %126, %126 : vector<16x15xf32>
    %cst_72 = arith.constant dense<0.000000e+00> : vector<16xf32>
    %128 = vector.multi_reduction <add>, %127, %cst_72 [1] : vector<16x15xf32> to vector<16xf32>
    %129 = vector.shape_cast %128 : vector<16xf32> to vector<16x1xf32>
    %cst_73 = arith.constant 1.500000e+01 : f32
    %130 = vector.broadcast %cst_73 : f32 to vector<16x1xf32>
    %131 = arith.divf %129, %130 : vector<16x1xf32>
    %132 = vector.broadcast %124 : vector<16x1xf32> to vector<16x15xf32>
    %133 = arith.subf %120, %132 : vector<16x15xf32>
    %cst_74 = arith.constant 9.99999974E-6 : f32
    %134 = vector.broadcast %cst_74 : f32 to vector<16x1xf32>
    %135 = arith.addf %131, %134 : vector<16x1xf32>
    %136 = math.rsqrt %135 : vector<16x1xf32>
    %137 = vector.broadcast %136 : vector<16x1xf32> to vector<16x15xf32>
    %138 = arith.mulf %133, %137 : vector<16x15xf32>
    %c0_75 = arith.constant 0 : index
    %c0_76 = arith.constant 0 : index
    %139 = vector.load %arg4[%c0_75, %c0_76] : memref<16x1xf32, #tpu.memory_space<vmem>>, vector<16x1xf32>
    %140 = vector.broadcast %139 : vector<16x1xf32> to vector<16x15xf32>
    %141 = arith.mulf %138, %140 : vector<16x15xf32>
    %c0_77 = arith.constant 0 : index
    %c0_78 = arith.constant 0 : index
    %142 = vector.load %arg5[%c0_77, %c0_78] : memref<16x1xf32, #tpu.memory_space<vmem>>, vector<16x1xf32>
    %143 = vector.broadcast %142 : vector<16x1xf32> to vector<16x15xf32>
    %144 = arith.addf %141, %143 : vector<16x15xf32>
    %cst_79 = arith.constant 0.000000e+00 : f32
    %145 = vector.broadcast %cst_79 : f32 to vector<16x15xf32>
    %146 = arith.cmpf oge, %144, %145 : vector<16x15xf32>
    %cst_80 = arith.constant 2.000000e-01 : f32
    %147 = vector.broadcast %cst_80 : f32 to vector<16x15xf32>
    %148 = arith.mulf %147, %144 : vector<16x15xf32>
    %149 = arith.select %146, %144, %148 : vector<16x15xi1>, vector<16x15xf32>
    %c0_81 = arith.constant 0 : index
    %c0_82 = arith.constant 0 : index
    %c0_83 = arith.constant 0 : index
    %150 = vector.load %arg6[%c0_81, %c0_82, %c0_83] : memref<1x16x15xf32, #tpu.memory_space<vmem>>, vector<1x16x15xf32>
    %151 = vector.shape_cast %150 : vector<1x16x15xf32> to vector<16x15xf32>
    %152 = vector.shape_cast %149 : vector<16x15xf32> to vector<1x16x15xf32>
    tpu.vector_store %arg6[%c0_81, %c0_82, %c0_83], %152 {strides = array<i32>} : memref<1x16x15xf32, #tpu.memory_space<vmem>>, vector<1x16x15xf32>,
    return
  }
  func.func @transform_0(%arg0: i32) -> (i32, i32, i32) {
    %c0_i32 = arith.constant 0 : i32
    %c0_i32_0 = arith.constant 0 : i32
    %c0_i32_1 = arith.constant 0 : i32
    return %arg0, %c0_i32, %c0_i32_0 : i32, i32, i32
  }
  func.func @transform_1(%arg0: i32) -> (i32, i32, i32) {
    %c0_i32 = arith.constant 0 : i32
    %c0_i32_0 = arith.constant 0 : i32
    %c0_i32_1 = arith.constant 0 : i32
    %c0_i32_2 = arith.constant 0 : i32
    return %c0_i32, %c0_i32_0, %c0_i32_1 : i32, i32, i32
  }
  func.func @transform_2(%arg0: i32) -> (i32, i32) {
    %c0_i32 = arith.constant 0 : i32
    %c0_i32_0 = arith.constant 0 : i32
    %c0_i32_1 = arith.constant 0 : i32
    return %c0_i32, %c0_i32_0 : i32, i32
  }
  func.func @transform_3(%arg0: i32) -> (i32, i32) {
    %c0_i32 = arith.constant 0 : i32
    %c0_i32_0 = arith.constant 0 : i32
    %c0_i32_1 = arith.constant 0 : i32
    return %c0_i32, %c0_i32_0 : i32, i32
  }
  func.func @transform_4(%arg0: i32) -> (i32, i32) {
    %c0_i32 = arith.constant 0 : i32
    %c0_i32_0 = arith.constant 0 : i32
    %c0_i32_1 = arith.constant 0 : i32
    return %c0_i32, %c0_i32_0 : i32, i32
  }
  func.func @transform_5(%arg0: i32) -> (i32, i32, i32) {
    %c0_i32 = arith.constant 0 : i32
    %c0_i32_0 = arith.constant 0 : i32
    %c0_i32_1 = arith.constant 0 : i32
    return %arg0, %c0_i32, %c0_i32_0 : i32, i32, i32
  }
}

module attributes {stable_mosaic.version = 11 : i64} {
  func.func @_tdnn_head_kernel(%arg0: i32, %arg1: memref<1x16x15xf32, #tpu.memory_space<vmem>>, %arg2: memref<5x32x16xf32, #tpu.memory_space<vmem>>, %arg3: memref<32x1xf32, #tpu.memory_space<vmem>>, %arg4: memref<3x32x32xf32, #tpu.memory_space<vmem>>, %arg5: memref<32x1xf32, #tpu.memory_space<vmem>>, %arg6: memref<3x32x32xf32, #tpu.memory_space<vmem>>, %arg7: memref<32x1xf32, #tpu.memory_space<vmem>>, %arg8: memref<1x32x32xf32, #tpu.memory_space<vmem>>, %arg9: memref<32x1xf32, #tpu.memory_space<vmem>>, %arg10: memref<1x48x32xf32, #tpu.memory_space<vmem>>, %arg11: memref<48x1xf32, #tpu.memory_space<vmem>>, %arg12: memref<64x48xf32, #tpu.memory_space<vmem>>, %arg13: memref<64x48xf32, #tpu.memory_space<vmem>>, %arg14: memref<64x1xf32, #tpu.memory_space<vmem>>, %arg15: memref<1x64x1xf32, #tpu.memory_space<vmem>>, %arg16: memref<32x21xf32, #tpu.memory_space<vmem>>) attributes {dimension_semantics = [#tpu.dimension_semantics<parallel>], iteration_bounds = array<i64: 2>, scalar_prefetch = 0 : i64, scratch_operands = 1 : i64, tpu.core_type = #tpu.core_type<tc>, window_params = [{transform_indices = @transform_0, window_bounds = array<i64: 1, 16, 15>}, {pipeline_mode = #tpu.pipeline_mode<synchronous>, transform_indices = @transform_1, window_bounds = array<i64: 5, 32, 16>}, {pipeline_mode = #tpu.pipeline_mode<synchronous>, transform_indices = @transform_2, window_bounds = array<i64: 32, 1>}, {pipeline_mode = #tpu.pipeline_mode<synchronous>, transform_indices = @transform_3, window_bounds = array<i64: 3, 32, 32>}, {pipeline_mode = #tpu.pipeline_mode<synchronous>, transform_indices = @transform_4, window_bounds = array<i64: 32, 1>}, {pipeline_mode = #tpu.pipeline_mode<synchronous>, transform_indices = @transform_5, window_bounds = array<i64: 3, 32, 32>}, {pipeline_mode = #tpu.pipeline_mode<synchronous>, transform_indices = @transform_6, window_bounds = array<i64: 32, 1>}, {pipeline_mode = #tpu.pipeline_mode<synchronous>, transform_indices = @transform_7, window_bounds = array<i64: 1, 32, 32>}, {pipeline_mode = #tpu.pipeline_mode<synchronous>, transform_indices = @transform_8, window_bounds = array<i64: 32, 1>}, {pipeline_mode = #tpu.pipeline_mode<synchronous>, transform_indices = @transform_9, window_bounds = array<i64: 1, 48, 32>}, {pipeline_mode = #tpu.pipeline_mode<synchronous>, transform_indices = @transform_10, window_bounds = array<i64: 48, 1>}, {pipeline_mode = #tpu.pipeline_mode<synchronous>, transform_indices = @transform_11, window_bounds = array<i64: 64, 48>}, {pipeline_mode = #tpu.pipeline_mode<synchronous>, transform_indices = @transform_12, window_bounds = array<i64: 64, 48>}, {pipeline_mode = #tpu.pipeline_mode<synchronous>, transform_indices = @transform_13, window_bounds = array<i64: 64, 1>}, {transform_indices = @transform_14, window_bounds = array<i64: 1, 64, 1>}]} {
    %c0 = arith.constant 0 : index
    %c0_0 = arith.constant 0 : index
    %c0_1 = arith.constant 0 : index
    %0 = vector.load %arg1[%c0, %c0_0, %c0_1] : memref<1x16x15xf32, #tpu.memory_space<vmem>>, vector<1x16x15xf32>
    %1 = vector.shape_cast %0 : vector<1x16x15xf32> to vector<16x15xf32>
    %cst = arith.constant 0.000000e+00 : f32
    %2 = vector.broadcast %cst : f32 to vector<32x21xf32>
    %c0_2 = arith.constant 0 : index
    %c0_3 = arith.constant 0 : index
    %3 = vector.load %arg16[%c0_2, %c0_3] : memref<32x21xf32, #tpu.memory_space<vmem>>, vector<32x21xf32>
    tpu.vector_store %arg16[%c0_2, %c0_3], %2 {strides = array<i32>} : memref<32x21xf32, #tpu.memory_space<vmem>>, vector<32x21xf32>,
    %c0_4 = arith.constant 0 : index
    %c2 = arith.constant 2 : index
    %4 = vector.load %arg16[%c0_4, %c2] : memref<32x21xf32, #tpu.memory_space<vmem>>, vector<16x15xf32>
    tpu.vector_store %arg16[%c0_4, %c2], %1 {strides = array<i32>} : memref<32x21xf32, #tpu.memory_space<vmem>>, vector<16x15xf32>,
    %cst_5 = arith.constant 0.000000e+00 : f32
    %5 = vector.broadcast %cst_5 : f32 to vector<32x15xf32>
    %c0_6 = arith.constant 0 : index
    %c0_7 = arith.constant 0 : index
    %c0_8 = arith.constant 0 : index
    %6 = vector.load %arg2[%c0_6, %c0_7, %c0_8] : memref<5x32x16xf32, #tpu.memory_space<vmem>>, vector<1x32x16xf32>
    %7 = vector.shape_cast %6 : vector<1x32x16xf32> to vector<32x16xf32>
    %c0_9 = arith.constant 0 : index
    %c0_10 = arith.constant 0 : index
    %8 = vector.load %arg16[%c0_9, %c0_10] : memref<32x21xf32, #tpu.memory_space<vmem>>, vector<16x15xf32>
    %cst_11 = arith.constant dense<0.000000e+00> : vector<32x15xf32>
    %9 = tpu.matmul %7, %8, %cst_11 {dimension_numbers = #tpu.dot_dimension_numbers<[1], [0], [0], [1], [0, 0, 1, 1], [], []>} : vector<32x16xf32>, vector<16x15xf32>, vector<32x15xf32> -> vector<32x15xf32>
    %10 = arith.addf %5, %9 : vector<32x15xf32>
    %c1 = arith.constant 1 : index
    %c0_12 = arith.constant 0 : index
    %c0_13 = arith.constant 0 : index
    %11 = vector.load %arg2[%c1, %c0_12, %c0_13] : memref<5x32x16xf32, #tpu.memory_space<vmem>>, vector<1x32x16xf32>
    %12 = vector.shape_cast %11 : vector<1x32x16xf32> to vector<32x16xf32>
    %c0_14 = arith.constant 0 : index
    %c1_15 = arith.constant 1 : index
    %13 = vector.load %arg16[%c0_14, %c1_15] : memref<32x21xf32, #tpu.memory_space<vmem>>, vector<16x15xf32>
    %cst_16 = arith.constant dense<0.000000e+00> : vector<32x15xf32>
    %14 = tpu.matmul %12, %13, %cst_16 {dimension_numbers = #tpu.dot_dimension_numbers<[1], [0], [0], [1], [0, 0, 1, 1], [], []>} : vector<32x16xf32>, vector<16x15xf32>, vector<32x15xf32> -> vector<32x15xf32>
    %15 = arith.addf %10, %14 : vector<32x15xf32>
    %c2_17 = arith.constant 2 : index
    %c0_18 = arith.constant 0 : index
    %c0_19 = arith.constant 0 : index
    %16 = vector.load %arg2[%c2_17, %c0_18, %c0_19] : memref<5x32x16xf32, #tpu.memory_space<vmem>>, vector<1x32x16xf32>
    %17 = vector.shape_cast %16 : vector<1x32x16xf32> to vector<32x16xf32>
    %c0_20 = arith.constant 0 : index
    %c2_21 = arith.constant 2 : index
    %18 = vector.load %arg16[%c0_20, %c2_21] : memref<32x21xf32, #tpu.memory_space<vmem>>, vector<16x15xf32>
    %cst_22 = arith.constant dense<0.000000e+00> : vector<32x15xf32>
    %19 = tpu.matmul %17, %18, %cst_22 {dimension_numbers = #tpu.dot_dimension_numbers<[1], [0], [0], [1], [0, 0, 1, 1], [], []>} : vector<32x16xf32>, vector<16x15xf32>, vector<32x15xf32> -> vector<32x15xf32>
    %20 = arith.addf %15, %19 : vector<32x15xf32>
    %c3 = arith.constant 3 : index
    %c0_23 = arith.constant 0 : index
    %c0_24 = arith.constant 0 : index
    %21 = vector.load %arg2[%c3, %c0_23, %c0_24] : memref<5x32x16xf32, #tpu.memory_space<vmem>>, vector<1x32x16xf32>
    %22 = vector.shape_cast %21 : vector<1x32x16xf32> to vector<32x16xf32>
    %c0_25 = arith.constant 0 : index
    %c3_26 = arith.constant 3 : index
    %23 = vector.load %arg16[%c0_25, %c3_26] : memref<32x21xf32, #tpu.memory_space<vmem>>, vector<16x15xf32>
    %cst_27 = arith.constant dense<0.000000e+00> : vector<32x15xf32>
    %24 = tpu.matmul %22, %23, %cst_27 {dimension_numbers = #tpu.dot_dimension_numbers<[1], [0], [0], [1], [0, 0, 1, 1], [], []>} : vector<32x16xf32>, vector<16x15xf32>, vector<32x15xf32> -> vector<32x15xf32>
    %25 = arith.addf %20, %24 : vector<32x15xf32>
    %c4 = arith.constant 4 : index
    %c0_28 = arith.constant 0 : index
    %c0_29 = arith.constant 0 : index
    %26 = vector.load %arg2[%c4, %c0_28, %c0_29] : memref<5x32x16xf32, #tpu.memory_space<vmem>>, vector<1x32x16xf32>
    %27 = vector.shape_cast %26 : vector<1x32x16xf32> to vector<32x16xf32>
    %c0_30 = arith.constant 0 : index
    %c4_31 = arith.constant 4 : index
    %28 = vector.load %arg16[%c0_30, %c4_31] : memref<32x21xf32, #tpu.memory_space<vmem>>, vector<16x15xf32>
    %cst_32 = arith.constant dense<0.000000e+00> : vector<32x15xf32>
    %29 = tpu.matmul %27, %28, %cst_32 {dimension_numbers = #tpu.dot_dimension_numbers<[1], [0], [0], [1], [0, 0, 1, 1], [], []>} : vector<32x16xf32>, vector<16x15xf32>, vector<32x15xf32> -> vector<32x15xf32>
    %30 = arith.addf %25, %29 : vector<32x15xf32>
    %c0_33 = arith.constant 0 : index
    %c0_34 = arith.constant 0 : index
    %31 = vector.load %arg3[%c0_33, %c0_34] : memref<32x1xf32, #tpu.memory_space<vmem>>, vector<32x1xf32>
    %32 = vector.broadcast %31 : vector<32x1xf32> to vector<32x15xf32>
    %33 = arith.addf %30, %32 : vector<32x15xf32>
    %cst_35 = arith.constant 0.000000e+00 : f32
    %34 = vector.broadcast %cst_35 : f32 to vector<32x15xf32>
    %35 = arith.maximumf %33, %34 : vector<32x15xf32>
    %cst_36 = arith.constant 0.000000e+00 : f32
    %36 = vector.broadcast %cst_36 : f32 to vector<32x21xf32>
    %c0_37 = arith.constant 0 : index
    %c0_38 = arith.constant 0 : index
    %37 = vector.load %arg16[%c0_37, %c0_38] : memref<32x21xf32, #tpu.memory_space<vmem>>, vector<32x21xf32>
    tpu.vector_store %arg16[%c0_37, %c0_38], %36 {strides = array<i32>} : memref<32x21xf32, #tpu.memory_space<vmem>>, vector<32x21xf32>,
    %c0_39 = arith.constant 0 : index
    %c2_40 = arith.constant 2 : index
    %38 = vector.load %arg16[%c0_39, %c2_40] : memref<32x21xf32, #tpu.memory_space<vmem>>, vector<32x15xf32>
    tpu.vector_store %arg16[%c0_39, %c2_40], %35 {strides = array<i32>} : memref<32x21xf32, #tpu.memory_space<vmem>>, vector<32x15xf32>,
    %cst_41 = arith.constant 0.000000e+00 : f32
    %39 = vector.broadcast %cst_41 : f32 to vector<32x15xf32>
    %c0_42 = arith.constant 0 : index
    %c0_43 = arith.constant 0 : index
    %c0_44 = arith.constant 0 : index
    %40 = vector.load %arg4[%c0_42, %c0_43, %c0_44] : memref<3x32x32xf32, #tpu.memory_space<vmem>>, vector<1x32x32xf32>
    %41 = vector.shape_cast %40 : vector<1x32x32xf32> to vector<32x32xf32>
    %c0_45 = arith.constant 0 : index
    %c0_46 = arith.constant 0 : index
    %42 = vector.load %arg16[%c0_45, %c0_46] : memref<32x21xf32, #tpu.memory_space<vmem>>, vector<32x15xf32>
    %cst_47 = arith.constant dense<0.000000e+00> : vector<32x15xf32>
    %43 = tpu.matmul %41, %42, %cst_47 {dimension_numbers = #tpu.dot_dimension_numbers<[1], [0], [0], [1], [0, 0, 1, 1], [], []>} : vector<32x32xf32>, vector<32x15xf32>, vector<32x15xf32> -> vector<32x15xf32>
    %44 = arith.addf %39, %43 : vector<32x15xf32>
    %c1_48 = arith.constant 1 : index
    %c0_49 = arith.constant 0 : index
    %c0_50 = arith.constant 0 : index
    %45 = vector.load %arg4[%c1_48, %c0_49, %c0_50] : memref<3x32x32xf32, #tpu.memory_space<vmem>>, vector<1x32x32xf32>
    %46 = vector.shape_cast %45 : vector<1x32x32xf32> to vector<32x32xf32>
    %c0_51 = arith.constant 0 : index
    %c2_52 = arith.constant 2 : index
    %47 = vector.load %arg16[%c0_51, %c2_52] : memref<32x21xf32, #tpu.memory_space<vmem>>, vector<32x15xf32>
    %cst_53 = arith.constant dense<0.000000e+00> : vector<32x15xf32>
    %48 = tpu.matmul %46, %47, %cst_53 {dimension_numbers = #tpu.dot_dimension_numbers<[1], [0], [0], [1], [0, 0, 1, 1], [], []>} : vector<32x32xf32>, vector<32x15xf32>, vector<32x15xf32> -> vector<32x15xf32>
    %49 = arith.addf %44, %48 : vector<32x15xf32>
    %c2_54 = arith.constant 2 : index
    %c0_55 = arith.constant 0 : index
    %c0_56 = arith.constant 0 : index
    %50 = vector.load %arg4[%c2_54, %c0_55, %c0_56] : memref<3x32x32xf32, #tpu.memory_space<vmem>>, vector<1x32x32xf32>
    %51 = vector.shape_cast %50 : vector<1x32x32xf32> to vector<32x32xf32>
    %c0_57 = arith.constant 0 : index
    %c4_58 = arith.constant 4 : index
    %52 = vector.load %arg16[%c0_57, %c4_58] : memref<32x21xf32, #tpu.memory_space<vmem>>, vector<32x15xf32>
    %cst_59 = arith.constant dense<0.000000e+00> : vector<32x15xf32>
    %53 = tpu.matmul %51, %52, %cst_59 {dimension_numbers = #tpu.dot_dimension_numbers<[1], [0], [0], [1], [0, 0, 1, 1], [], []>} : vector<32x32xf32>, vector<32x15xf32>, vector<32x15xf32> -> vector<32x15xf32>
    %54 = arith.addf %49, %53 : vector<32x15xf32>
    %c0_60 = arith.constant 0 : index
    %c0_61 = arith.constant 0 : index
    %55 = vector.load %arg5[%c0_60, %c0_61] : memref<32x1xf32, #tpu.memory_space<vmem>>, vector<32x1xf32>
    %56 = vector.broadcast %55 : vector<32x1xf32> to vector<32x15xf32>
    %57 = arith.addf %54, %56 : vector<32x15xf32>
    %cst_62 = arith.constant 0.000000e+00 : f32
    %58 = vector.broadcast %cst_62 : f32 to vector<32x15xf32>
    %59 = arith.maximumf %57, %58 : vector<32x15xf32>
    %cst_63 = arith.constant 0.000000e+00 : f32
    %60 = vector.broadcast %cst_63 : f32 to vector<32x21xf32>
    %c0_64 = arith.constant 0 : index
    %c0_65 = arith.constant 0 : index
    %61 = vector.load %arg16[%c0_64, %c0_65] : memref<32x21xf32, #tpu.memory_space<vmem>>, vector<32x21xf32>
    tpu.vector_store %arg16[%c0_64, %c0_65], %60 {strides = array<i32>} : memref<32x21xf32, #tpu.memory_space<vmem>>, vector<32x21xf32>,
    %c0_66 = arith.constant 0 : index
    %c3_67 = arith.constant 3 : index
    %62 = vector.load %arg16[%c0_66, %c3_67] : memref<32x21xf32, #tpu.memory_space<vmem>>, vector<32x15xf32>
    tpu.vector_store %arg16[%c0_66, %c3_67], %59 {strides = array<i32>} : memref<32x21xf32, #tpu.memory_space<vmem>>, vector<32x15xf32>,
    %cst_68 = arith.constant 0.000000e+00 : f32
    %63 = vector.broadcast %cst_68 : f32 to vector<32x15xf32>
    %c0_69 = arith.constant 0 : index
    %c0_70 = arith.constant 0 : index
    %c0_71 = arith.constant 0 : index
    %64 = vector.load %arg6[%c0_69, %c0_70, %c0_71] : memref<3x32x32xf32, #tpu.memory_space<vmem>>, vector<1x32x32xf32>
    %65 = vector.shape_cast %64 : vector<1x32x32xf32> to vector<32x32xf32>
    %c0_72 = arith.constant 0 : index
    %c0_73 = arith.constant 0 : index
    %66 = vector.load %arg16[%c0_72, %c0_73] : memref<32x21xf32, #tpu.memory_space<vmem>>, vector<32x15xf32>
    %cst_74 = arith.constant dense<0.000000e+00> : vector<32x15xf32>
    %67 = tpu.matmul %65, %66, %cst_74 {dimension_numbers = #tpu.dot_dimension_numbers<[1], [0], [0], [1], [0, 0, 1, 1], [], []>} : vector<32x32xf32>, vector<32x15xf32>, vector<32x15xf32> -> vector<32x15xf32>
    %68 = arith.addf %63, %67 : vector<32x15xf32>
    %c1_75 = arith.constant 1 : index
    %c0_76 = arith.constant 0 : index
    %c0_77 = arith.constant 0 : index
    %69 = vector.load %arg6[%c1_75, %c0_76, %c0_77] : memref<3x32x32xf32, #tpu.memory_space<vmem>>, vector<1x32x32xf32>
    %70 = vector.shape_cast %69 : vector<1x32x32xf32> to vector<32x32xf32>
    %c0_78 = arith.constant 0 : index
    %c3_79 = arith.constant 3 : index
    %71 = vector.load %arg16[%c0_78, %c3_79] : memref<32x21xf32, #tpu.memory_space<vmem>>, vector<32x15xf32>
    %cst_80 = arith.constant dense<0.000000e+00> : vector<32x15xf32>
    %72 = tpu.matmul %70, %71, %cst_80 {dimension_numbers = #tpu.dot_dimension_numbers<[1], [0], [0], [1], [0, 0, 1, 1], [], []>} : vector<32x32xf32>, vector<32x15xf32>, vector<32x15xf32> -> vector<32x15xf32>
    %73 = arith.addf %68, %72 : vector<32x15xf32>
    %c2_81 = arith.constant 2 : index
    %c0_82 = arith.constant 0 : index
    %c0_83 = arith.constant 0 : index
    %74 = vector.load %arg6[%c2_81, %c0_82, %c0_83] : memref<3x32x32xf32, #tpu.memory_space<vmem>>, vector<1x32x32xf32>
    %75 = vector.shape_cast %74 : vector<1x32x32xf32> to vector<32x32xf32>
    %c0_84 = arith.constant 0 : index
    %c6 = arith.constant 6 : index
    %76 = vector.load %arg16[%c0_84, %c6] : memref<32x21xf32, #tpu.memory_space<vmem>>, vector<32x15xf32>
    %cst_85 = arith.constant dense<0.000000e+00> : vector<32x15xf32>
    %77 = tpu.matmul %75, %76, %cst_85 {dimension_numbers = #tpu.dot_dimension_numbers<[1], [0], [0], [1], [0, 0, 1, 1], [], []>} : vector<32x32xf32>, vector<32x15xf32>, vector<32x15xf32> -> vector<32x15xf32>
    %78 = arith.addf %73, %77 : vector<32x15xf32>
    %c0_86 = arith.constant 0 : index
    %c0_87 = arith.constant 0 : index
    %79 = vector.load %arg7[%c0_86, %c0_87] : memref<32x1xf32, #tpu.memory_space<vmem>>, vector<32x1xf32>
    %80 = vector.broadcast %79 : vector<32x1xf32> to vector<32x15xf32>
    %81 = arith.addf %78, %80 : vector<32x15xf32>
    %cst_88 = arith.constant 0.000000e+00 : f32
    %82 = vector.broadcast %cst_88 : f32 to vector<32x15xf32>
    %83 = arith.maximumf %81, %82 : vector<32x15xf32>
    %cst_89 = arith.constant 0.000000e+00 : f32
    %84 = vector.broadcast %cst_89 : f32 to vector<32x21xf32>
    %c0_90 = arith.constant 0 : index
    %c0_91 = arith.constant 0 : index
    %85 = vector.load %arg16[%c0_90, %c0_91] : memref<32x21xf32, #tpu.memory_space<vmem>>, vector<32x21xf32>
    tpu.vector_store %arg16[%c0_90, %c0_91], %84 {strides = array<i32>} : memref<32x21xf32, #tpu.memory_space<vmem>>, vector<32x21xf32>,
    %c0_92 = arith.constant 0 : index
    %c0_93 = arith.constant 0 : index
    %86 = vector.load %arg16[%c0_92, %c0_93] : memref<32x21xf32, #tpu.memory_space<vmem>>, vector<32x15xf32>
    tpu.vector_store %arg16[%c0_92, %c0_93], %83 {strides = array<i32>} : memref<32x21xf32, #tpu.memory_space<vmem>>, vector<32x15xf32>,
    %cst_94 = arith.constant 0.000000e+00 : f32
    %87 = vector.broadcast %cst_94 : f32 to vector<32x15xf32>
    %c0_95 = arith.constant 0 : index
    %c0_96 = arith.constant 0 : index
    %c0_97 = arith.constant 0 : index
    %88 = vector.load %arg8[%c0_95, %c0_96, %c0_97] : memref<1x32x32xf32, #tpu.memory_space<vmem>>, vector<1x32x32xf32>
    %89 = vector.shape_cast %88 : vector<1x32x32xf32> to vector<32x32xf32>
    %c0_98 = arith.constant 0 : index
    %c0_99 = arith.constant 0 : index
    %90 = vector.load %arg16[%c0_98, %c0_99] : memref<32x21xf32, #tpu.memory_space<vmem>>, vector<32x15xf32>
    %cst_100 = arith.constant dense<0.000000e+00> : vector<32x15xf32>
    %91 = tpu.matmul %89, %90, %cst_100 {dimension_numbers = #tpu.dot_dimension_numbers<[1], [0], [0], [1], [0, 0, 1, 1], [], []>} : vector<32x32xf32>, vector<32x15xf32>, vector<32x15xf32> -> vector<32x15xf32>
    %92 = arith.addf %87, %91 : vector<32x15xf32>
    %c0_101 = arith.constant 0 : index
    %c0_102 = arith.constant 0 : index
    %93 = vector.load %arg9[%c0_101, %c0_102] : memref<32x1xf32, #tpu.memory_space<vmem>>, vector<32x1xf32>
    %94 = vector.broadcast %93 : vector<32x1xf32> to vector<32x15xf32>
    %95 = arith.addf %92, %94 : vector<32x15xf32>
    %cst_103 = arith.constant 0.000000e+00 : f32
    %96 = vector.broadcast %cst_103 : f32 to vector<32x15xf32>
    %97 = arith.maximumf %95, %96 : vector<32x15xf32>
    %cst_104 = arith.constant 0.000000e+00 : f32
    %98 = vector.broadcast %cst_104 : f32 to vector<32x21xf32>
    %c0_105 = arith.constant 0 : index
    %c0_106 = arith.constant 0 : index
    %99 = vector.load %arg16[%c0_105, %c0_106] : memref<32x21xf32, #tpu.memory_space<vmem>>, vector<32x21xf32>
    tpu.vector_store %arg16[%c0_105, %c0_106], %98 {strides = array<i32>} : memref<32x21xf32, #tpu.memory_space<vmem>>, vector<32x21xf32>,
    %c0_107 = arith.constant 0 : index
    %c0_108 = arith.constant 0 : index
    %100 = vector.load %arg16[%c0_107, %c0_108] : memref<32x21xf32, #tpu.memory_space<vmem>>, vector<32x15xf32>
    tpu.vector_store %arg16[%c0_107, %c0_108], %97 {strides = array<i32>} : memref<32x21xf32, #tpu.memory_space<vmem>>, vector<32x15xf32>,
    %cst_109 = arith.constant 0.000000e+00 : f32
    %101 = vector.broadcast %cst_109 : f32 to vector<48x15xf32>
    %c0_110 = arith.constant 0 : index
    %c0_111 = arith.constant 0 : index
    %c0_112 = arith.constant 0 : index
    %102 = vector.load %arg10[%c0_110, %c0_111, %c0_112] : memref<1x48x32xf32, #tpu.memory_space<vmem>>, vector<1x48x32xf32>
    %103 = vector.shape_cast %102 : vector<1x48x32xf32> to vector<48x32xf32>
    %c0_113 = arith.constant 0 : index
    %c0_114 = arith.constant 0 : index
    %104 = vector.load %arg16[%c0_113, %c0_114] : memref<32x21xf32, #tpu.memory_space<vmem>>, vector<32x15xf32>
    %cst_115 = arith.constant dense<0.000000e+00> : vector<48x15xf32>
    %105 = tpu.matmul %103, %104, %cst_115 {dimension_numbers = #tpu.dot_dimension_numbers<[1], [0], [0], [1], [0, 0, 1, 1], [], []>} : vector<48x32xf32>, vector<32x15xf32>, vector<48x15xf32> -> vector<48x15xf32>
    %106 = arith.addf %101, %105 : vector<48x15xf32>
    %c0_116 = arith.constant 0 : index
    %c0_117 = arith.constant 0 : index
    %107 = vector.load %arg11[%c0_116, %c0_117] : memref<48x1xf32, #tpu.memory_space<vmem>>, vector<48x1xf32>
    %108 = vector.broadcast %107 : vector<48x1xf32> to vector<48x15xf32>
    %109 = arith.addf %106, %108 : vector<48x15xf32>
    %cst_118 = arith.constant 0.000000e+00 : f32
    %110 = vector.broadcast %cst_118 : f32 to vector<48x15xf32>
    %111 = arith.maximumf %109, %110 : vector<48x15xf32>
    %cst_119 = arith.constant dense<0.000000e+00> : vector<48xf32>
    %112 = vector.multi_reduction <add>, %111, %cst_119 [1] : vector<48x15xf32> to vector<48xf32>
    %113 = vector.shape_cast %112 : vector<48xf32> to vector<48x1xf32>
    %cst_120 = arith.constant 1.500000e+01 : f32
    %114 = vector.broadcast %cst_120 : f32 to vector<48x1xf32>
    %115 = arith.divf %113, %114 : vector<48x1xf32>
    %116 = vector.broadcast %115 : vector<48x1xf32> to vector<48x15xf32>
    %117 = arith.subf %111, %116 : vector<48x15xf32>
    %118 = arith.mulf %117, %117 : vector<48x15xf32>
    %cst_121 = arith.constant dense<0.000000e+00> : vector<48xf32>
    %119 = vector.multi_reduction <add>, %118, %cst_121 [1] : vector<48x15xf32> to vector<48xf32>
    %120 = vector.shape_cast %119 : vector<48xf32> to vector<48x1xf32>
    %cst_122 = arith.constant 1.400000e+01 : f32
    %121 = vector.broadcast %cst_122 : f32 to vector<48x1xf32>
    %122 = arith.divf %120, %121 : vector<48x1xf32>
    %123 = math.sqrt %122 : vector<48x1xf32>
    %c0_123 = arith.constant 0 : index
    %c0_124 = arith.constant 0 : index
    %124 = vector.load %arg12[%c0_123, %c0_124] : memref<64x48xf32, #tpu.memory_space<vmem>>, vector<64x48xf32>
    %cst_125 = arith.constant dense<0.000000e+00> : vector<64x1xf32>
    %125 = tpu.matmul %124, %115, %cst_125 {dimension_numbers = #tpu.dot_dimension_numbers<[1], [0], [0], [1], [0, 0, 1, 1], [], []>} : vector<64x48xf32>, vector<48x1xf32>, vector<64x1xf32> -> vector<64x1xf32>
    %c0_126 = arith.constant 0 : index
    %c0_127 = arith.constant 0 : index
    %126 = vector.load %arg13[%c0_126, %c0_127] : memref<64x48xf32, #tpu.memory_space<vmem>>, vector<64x48xf32>
    %cst_128 = arith.constant dense<0.000000e+00> : vector<64x1xf32>
    %127 = tpu.matmul %126, %123, %cst_128 {dimension_numbers = #tpu.dot_dimension_numbers<[1], [0], [0], [1], [0, 0, 1, 1], [], []>} : vector<64x48xf32>, vector<48x1xf32>, vector<64x1xf32> -> vector<64x1xf32>
    %128 = arith.addf %125, %127 : vector<64x1xf32>
    %c0_129 = arith.constant 0 : index
    %c0_130 = arith.constant 0 : index
    %129 = vector.load %arg14[%c0_129, %c0_130] : memref<64x1xf32, #tpu.memory_space<vmem>>, vector<64x1xf32>
    %130 = arith.addf %128, %129 : vector<64x1xf32>
    %c0_131 = arith.constant 0 : index
    %c0_132 = arith.constant 0 : index
    %c0_133 = arith.constant 0 : index
    %131 = vector.load %arg15[%c0_131, %c0_132, %c0_133] : memref<1x64x1xf32, #tpu.memory_space<vmem>>, vector<1x64x1xf32>
    %132 = vector.shape_cast %131 : vector<1x64x1xf32> to vector<64x1xf32>
    %133 = vector.shape_cast %130 : vector<64x1xf32> to vector<1x64x1xf32>
    tpu.vector_store %arg15[%c0_131, %c0_132, %c0_133], %133 {strides = array<i32>} : memref<1x64x1xf32, #tpu.memory_space<vmem>>, vector<1x64x1xf32>,
    return
  }
  func.func @transform_0(%arg0: i32) -> (i32, i32, i32) {
    %c0_i32 = arith.constant 0 : i32
    %c0_i32_0 = arith.constant 0 : i32
    %c0_i32_1 = arith.constant 0 : i32
    return %arg0, %c0_i32, %c0_i32_0 : i32, i32, i32
  }
  func.func @transform_1(%arg0: i32) -> (i32, i32, i32) {
    %c0_i32 = arith.constant 0 : i32
    %c0_i32_0 = arith.constant 0 : i32
    %c0_i32_1 = arith.constant 0 : i32
    %c0_i32_2 = arith.constant 0 : i32
    return %c0_i32, %c0_i32_0, %c0_i32_1 : i32, i32, i32
  }
  func.func @transform_2(%arg0: i32) -> (i32, i32) {
    %c0_i32 = arith.constant 0 : i32
    %c0_i32_0 = arith.constant 0 : i32
    %c0_i32_1 = arith.constant 0 : i32
    return %c0_i32, %c0_i32_0 : i32, i32
  }
  func.func @transform_3(%arg0: i32) -> (i32, i32, i32) {
    %c0_i32 = arith.constant 0 : i32
    %c0_i32_0 = arith.constant 0 : i32
    %c0_i32_1 = arith.constant 0 : i32
    %c0_i32_2 = arith.constant 0 : i32
    return %c0_i32, %c0_i32_0, %c0_i32_1 : i32, i32, i32
  }
  func.func @transform_4(%arg0: i32) -> (i32, i32) {
    %c0_i32 = arith.constant 0 : i32
    %c0_i32_0 = arith.constant 0 : i32
    %c0_i32_1 = arith.constant 0 : i32
    return %c0_i32, %c0_i32_0 : i32, i32
  }
  func.func @transform_5(%arg0: i32) -> (i32, i32, i32) {
    %c0_i32 = arith.constant 0 : i32
    %c0_i32_0 = arith.constant 0 : i32
    %c0_i32_1 = arith.constant 0 : i32
    %c0_i32_2 = arith.constant 0 : i32
    return %c0_i32, %c0_i32_0, %c0_i32_1 : i32, i32, i32
  }
  func.func @transform_6(%arg0: i32) -> (i32, i32) {
    %c0_i32 = arith.constant 0 : i32
    %c0_i32_0 = arith.constant 0 : i32
    %c0_i32_1 = arith.constant 0 : i32
    return %c0_i32, %c0_i32_0 : i32, i32
  }
  func.func @transform_7(%arg0: i32) -> (i32, i32, i32) {
    %c0_i32 = arith.constant 0 : i32
    %c0_i32_0 = arith.constant 0 : i32
    %c0_i32_1 = arith.constant 0 : i32
    %c0_i32_2 = arith.constant 0 : i32
    return %c0_i32, %c0_i32_0, %c0_i32_1 : i32, i32, i32
  }
  func.func @transform_8(%arg0: i32) -> (i32, i32) {
    %c0_i32 = arith.constant 0 : i32
    %c0_i32_0 = arith.constant 0 : i32
    %c0_i32_1 = arith.constant 0 : i32
    return %c0_i32, %c0_i32_0 : i32, i32
  }
  func.func @transform_9(%arg0: i32) -> (i32, i32, i32) {
    %c0_i32 = arith.constant 0 : i32
    %c0_i32_0 = arith.constant 0 : i32
    %c0_i32_1 = arith.constant 0 : i32
    %c0_i32_2 = arith.constant 0 : i32
    return %c0_i32, %c0_i32_0, %c0_i32_1 : i32, i32, i32
  }
  func.func @transform_10(%arg0: i32) -> (i32, i32) {
    %c0_i32 = arith.constant 0 : i32
    %c0_i32_0 = arith.constant 0 : i32
    %c0_i32_1 = arith.constant 0 : i32
    return %c0_i32, %c0_i32_0 : i32, i32
  }
  func.func @transform_11(%arg0: i32) -> (i32, i32) {
    %c0_i32 = arith.constant 0 : i32
    %c0_i32_0 = arith.constant 0 : i32
    %c0_i32_1 = arith.constant 0 : i32
    return %c0_i32, %c0_i32_0 : i32, i32
  }
  func.func @transform_12(%arg0: i32) -> (i32, i32) {
    %c0_i32 = arith.constant 0 : i32
    %c0_i32_0 = arith.constant 0 : i32
    %c0_i32_1 = arith.constant 0 : i32
    return %c0_i32, %c0_i32_0 : i32, i32
  }
  func.func @transform_13(%arg0: i32) -> (i32, i32) {
    %c0_i32 = arith.constant 0 : i32
    %c0_i32_0 = arith.constant 0 : i32
    %c0_i32_1 = arith.constant 0 : i32
    return %c0_i32, %c0_i32_0 : i32, i32
  }
  func.func @transform_14(%arg0: i32) -> (i32, i32, i32) {
    %c0_i32 = arith.constant 0 : i32
    %c0_i32_0 = arith.constant 0 : i32
    %c0_i32_1 = arith.constant 0 : i32
    return %arg0, %c0_i32, %c0_i32_0 : i32, i32, i32
  }
}

</mosaic_0001>

<bundles_post_ra>
// kernel: sinctdnn_forward.5
= control target key start
LH: loop header
LB: loop body
LE: loop exit
PB: predicated region body
PF: predicated region fallthrough
CT: control target
= control target key end

     0   :  { %s1885_s18 = smov 0   ;;  %s2096_s0 = inlined_call_operand.vmem [shape: f32[2,48,47], index: 0, kind: input, shape index: {}]   ;;  %s2097_s1 = inlined_call_operand.vmem [shape: f32[5,16,16], index: 1, kind: input, shape index: {}]   ;;  %s2098_s2 = inlined_call_operand.vmem [shape: f32[16,1], index: 2, kind: input, shape index: {}]   ;;  %s2099_s3 = inlined_call_operand.vmem [shape: f32[16,1], index: 3, kind: input, shape index: {}]   ;;  %s2100_s4 = inlined_call_operand.vmem [shape: f32[16,1], index: 4, kind: input, shape index: {}]   ;;  %s2101_s5 = inlined_call_operand.vmem [shape: f32[2,16,45], index: 5, kind: output, shape index: {}]  }
   0x1 LB: > { %s1612_s19 = sadd.s32 4294967295, %s1850_s18   ;;  %p1616_p0 = scmp.ge.s32.totalorder %s1850_s18, 1  ;;  %s1850_s18 = sphi %s1885_s18, %s15_s18  }
   0x2   : > { %p187_p1 = scmp.lt.s32.totalorder %s1850_s18, 3 }
   0x4   : > { %p188_p2 = pnand %p1616_p0, %p187_p1 }
   0x5   : > { %p215_p3 = scmp.lt.s32.totalorder (!%p188_p2), %s1612_s19, 1  ;;  %s1852_s28 = smov (!%p188_p2), 127  }
   0x6   : > { %191 = sbr.rel (%p188_p2) target bundleno = 682 (0x2aa), region = 40  ;;  %s1853_s16 = smov (!%p188_p2), 126  }
   0xb   : > { %v1896_v0 = vld [vmem:[%s2097_s1 + $0x10] sm:$0xff]  ;;  %vm239_vm0 = vcmask 130048   ;;  %v1901_v1 = vld [vmem:[%s2097_s1] sm:$0xff]  ;;  %s2109_s19 = smov (!%p215_p3, %s1612_s19), 1  ;;  %v1924_v6 = vld [vmem:[%s2097_s1 + $0x18] sm:$0xff]  ;;  %v1854_v16 = vmov 0   ;;  %v231_v41 = vlaneseq }
   0xc   : > { %1725 = vmatprep.mubr.msk.f32.mxu0 %vm239_vm0, %v1896_v0  ;;  %1732 = vmatprep.mubr.msk.f32.mxu1 %vm239_vm0, %v1901_v1  ;;  %s1826_s24 = smul.u32 48, %s2109_s19  ;;  %v1930_v7 = vld [vmem:[%s2097_s1 + $0x8] sm:$0xff]  ;;  %v1943_v10 = vld [vmem:[%s2097_s1 + $0x20] sm:$0xff]  ;;  %v1951_v11 = vld [vmem:[%s2097_s1 + $0x30] sm:$0xff]  ;;  %vm1493_vm10 = vcmask 367616   ;;  %s1660_s10 = sshll.u32 %s2109_s19, 4 }
   0xd   : > { %v1958_v12 = vld [vmem:[%s2097_s1 + $0x28] sm:$0xff]  ;;  %v1969_v13 = vld [vmem:[%s2097_s1 + $0x40] sm:$0xff]  ;;  %1839 = vset.pattern.permute.xlu1 %v1854_v16  ;;  %1838 = vset.pattern.permute.xlu0 %v1854_v16  ;;  %v1984_v21 = vld [vmem:[%s2097_s1 + $0x38] sm:$0xff]  ;;  %v232_v44 = vand.u32 127, %v231_v41  ;;  %s224_s13 = scalar_lea.vmem %s2101_s5, %s1660_s10 }
   0xe   : > { %s219_s27 = scalar_lea.vmem %s2096_s0, %s1826_s24  ;;  %v1480_v14 = vld [vmem:[%s2098_s2 + $0x8] sm:$0xff]  ;;  %v1479_v15 = vld [vmem:[%s2098_s2] sm:$0xff] }
   0xf   : > { %v1913_v2 = vld [vmem:[%s219_s27 + $0x18] sm:$0xff]  ;;  %v226_v3 = vld [vmem:[%s219_s27 + $0x8] sm:$0xff]  ;;  %v1916_v4 = vld [vmem:[%s219_s27 + $0x10] sm:$0xff]  ;;  %v233_v50 = vmul.u32 3, %v232_v44 }
  0x10   : > { %589 = vrot.lane.b32.xlu1 %v1913_v2, %s1852_s28  ;;  %495 = vrot.lane.b32.xlu0 %v226_v3, %s1852_s28  ;;  %v225_v5 = vld [vmem:[%s219_s27] sm:$0xff]  ;;  %v1932_v8 = vld [vmem:[%s219_s27 + $0x28] sm:$0xff] }
  0x11   : > { %1721 = vmatprep.subr.mxu0 %v1913_v2  ;;  %1728 = vmatprep.subr.mxu1 %v226_v3  ;;  %v1934_v9 = vld [vmem:[%s219_s27 + $0x20] sm:$0xff]  ;;  %v1989_v22 = vld [vmem:[%s2097_s1 + $0x48] sm:$0xff]  ;;  %v676_v59 = vadd.s32 4294967295, %v233_v50  ;;  %vm1073_vm1 = vcmp.ge.s32.totalorder %v233_v50, 0  ;;  %vm1074_vm2 = vcmp.lt.s32.totalorder %v233_v50, 134 }
  0x12   : > { %1722 = vmatpush3.msra.mxu0 %v1913_v2  ;;  %1729 = vmatpush3.msra.mxu1 %v226_v3  ;;  %vm2047_vm5 = vmand %vm1073_vm1, %vm1074_vm2  ;;  %v1522_v41 = vld [vmem:[%s2099_s3 + $0x8] sm:$0xff] }
  0x13   : > { %1723 = vmatprep.subr.mxu0 %v1916_v4  ;;  %1730 = vmatprep.subr.mxu1 %v225_v5  ;;  %vm677_vm3 = vcmp.ge.s32.totalorder %v676_v59, 0  ;;  %vm678_vm4 = vcmp.lt.s32.totalorder %v676_v59, 134 }
  0x14   : > { %587 = vrot.lane.b32.xlu1 %v1916_v4, %s1852_s28  ;;  %493 = vrot.lane.b32.xlu0 %v225_v5, %s1852_s28  ;;  %vm2051_vm8 = vmand %vm677_vm3, %vm678_vm4 }
  0x15   : > { %1724 = vmatpush3.msra.mxu0 %v1916_v4  ;;  %1731 = vmatpush3.msra.mxu1 %v225_v5 }
  0x16   : > { %1726 = vmatmul.mubr.msk.f32.vlgmr.msra.gmra.mxu0 %vm239_vm0, %v1924_v6  ;;  %1735 = vmatprep.subr.mxu0 %v1932_v8 }
  0x17   : > { %1736 = vmatpush3.msra.mxu0 %v1932_v8  ;;  %1733 = vmatmul.mubr.msk.f32.vlgmr.msra.gmra.mxu1 %vm239_vm0, %v1930_v7 }
  0x18   : > { %992 = vrot.lane.b32.xlu0 %v1932_v8, %s1852_s28  ;;  %990 = vrot.lane.b32.xlu1 %v1934_v9, %s1852_s28 }
  0x19   : > { %1737 = vmatprep.subr.mxu0 %v1934_v9  ;;  %1739 = vmatprep.mubr.msk.f32.mxu0 %vm239_vm0, %v1943_v10 }
  0x1a   : > { %1738 = vmatpush3.msra.mxu0 %v1934_v9  ;;  %1746 = vmatprep.mubr.msk.f32.mxu1 %vm239_vm0, %v1951_v11 }
  0x1b   : > { %1740 = vmatmul.mubr.msk.f32.vlgmr.msra.gmra.mxu0 %vm239_vm0, %v1958_v12 }
  0x1c   : > { %1388 = vrot.lane.b32.xlu0 %v226_v3, %s1853_s16  ;;  %1386 = vrot.lane.b32.xlu1 %v225_v5, %s1853_s16 }
  0x1d   : > { %1753 = vmatprep.mubr.msk.f32.mxu0 %vm239_vm0, %v1969_v13 }
  0x20   : > { %1488 = vperm.xlu1 %1839, %v1480_v14   ;;  %1483 = vperm.xlu0 %1838, %v1479_v15  }
  0x82   : > { %v590_v17 = vpop.permute.xlu1 %589  ;;  %v496_v18 = vpop.permute.xlu0 %495 }
  0x83   : > { %1742 = vmatprep.subr.mxu1 %v496_v18  ;;  %1749 = vmatprep.subr.mxu0 %v590_v17 }
  0x84   : > { %1743 = vmatpush3.msra.mxu1 %v496_v18  ;;  %1750 = vmatpush3.msra.mxu0 %v590_v17 }
  0x86   : > { %v588_v19 = vpop.permute.xlu1 %587  ;;  %v494_v20 = vpop.permute.xlu0 %493 }
  0x87   : > { %1744 = vmatprep.subr.mxu1 %v494_v20  ;;  %1751 = vmatprep.subr.mxu0 %v588_v19 }
  0x88   : > { %1745 = vmatpush3.msra.mxu1 %v494_v20  ;;  %1752 = vmatpush3.msra.mxu0 %v588_v19 }
  0x89   : > { %1747 = vmatmul.mubr.msk.f32.vlgmr.msra.gmra.mxu1 %vm239_vm0, %v1984_v21  ;;  %1754 = vmatmul.mubr.msk.f32.vlgmr.msra.gmra.mxu0 %vm239_vm0, %v1989_v22 }
  0x8a   : > { %1756 = vmatprep.subr.mxu1 %v1932_v8  ;;  %1763 = vmatprep.subr.mxu0 %v1913_v2  ;;  %v993_v23 = vpop.permute.xlu0 %992  ;;  %v991_v24 = vpop.permute.xlu1 %990 }
  0x8b   : > { %1757 = vmatpush3.msra.mxu1 %v1932_v8  ;;  %1764 = vmatpush3.msra.mxu0 %v1913_v2 }
  0x8c   : > { %1758 = vmatprep.subr.mxu1 %v1934_v9  ;;  %1765 = vmatprep.subr.mxu0 %v1916_v4 }
  0x8d   : > { %1759 = vmatpush3.msra.mxu1 %v1934_v9  ;;  %1760 = vmatprep.mubr.msk.f32.mxu1 %vm239_vm0, %v1896_v0 }
  0x8e   : > { %1766 = vmatpush3.msra.mxu0 %v1916_v4  ;;  %1767 = vmatprep.mubr.msk.f32.mxu0 %vm239_vm0, %v1901_v1  ;;  %v1389_v25 = vpop.permute.xlu0 %1388  ;;  %v1387_v26 = vpop.permute.xlu1 %1386 }
  0x8f   : > { %1761 = vmatmul.mubr.msk.f32.vlgmr.msra.gmra.mxu1 %vm239_vm0, %v1924_v6  ;;  %1768 = vmatmul.mubr.msk.f32.vlgmr.msra.gmra.mxu0 %vm239_vm0, %v1930_v7 }
  0x90   : > { %1770 = vmatprep.subr.mxu1 %v496_v18  ;;  %1777 = vmatprep.subr.mxu0 %v590_v17 }
  0x91   : > { %1771 = vmatpush3.msra.mxu1 %v496_v18  ;;  %1778 = vmatpush3.msra.mxu0 %v590_v17 }
  0x92   : > { %1772 = vmatprep.subr.mxu1 %v494_v20  ;;  %1779 = vmatprep.subr.mxu0 %v588_v19 }
  0x93   : > { %1780 = vmatpush3.msra.mxu0 %v588_v19  ;;  %1773 = vmatpush3.msra.mxu1 %v494_v20 }
  0x94   : > { %1774 = vmatprep.mubr.msk.f32.mxu1 %vm239_vm0, %v1943_v10  ;;  %1781 = vmatprep.mubr.msk.f32.mxu0 %vm239_vm0, %v1951_v11 }
  0x95   : > { %1775 = vmatmul.mubr.msk.f32.vlgmr.msra.gmra.mxu1 %vm239_vm0, %v1958_v12  ;;  %1784 = vmatprep.subr.mxu1 %v993_v23 }
  0x96   : > { %1791 = vmatprep.subr.mxu0 %v496_v18  ;;  %1782 = vmatmul.mubr.msk.f32.vlgmr.msra.gmra.mxu0 %vm239_vm0, %v1984_v21 }
  0x97   : > { %1785 = vmatpush3.msra.mxu1 %v993_v23  ;;  %1792 = vmatpush3.msra.mxu0 %v496_v18 }
  0x98   : > { %1786 = vmatprep.subr.mxu1 %v991_v24  ;;  %1793 = vmatprep.subr.mxu0 %v494_v20 }
  0x99   : > { %1787 = vmatpush3.msra.mxu1 %v991_v24  ;;  %1788 = vmatprep.mubr.msk.f32.mxu1 %vm239_vm0, %v1969_v13 }
  0x9a   : > { %1794 = vmatpush3.msra.mxu0 %v494_v20  ;;  %1789 = vmatmul.mubr.msk.f32.vlgmr.msra.gmra.mxu1 %vm239_vm0, %v1989_v22 }
  0x9b   : > { %1795 = vmatprep.mubr.msk.f32.mxu0 %vm239_vm0, %v1896_v0  ;;  %1798 = vmatprep.subr.mxu1 %v1932_v8 }
  0x9c   : > { %1805 = vmatprep.subr.mxu0 %v590_v17  ;;  %1796 = vmatmul.mubr.msk.f32.vlgmr.msra.gmra.mxu0 %vm239_vm0, %v1924_v6 }
  0x9d   : > { %1799 = vmatpush3.msra.mxu1 %v1932_v8  ;;  %1806 = vmatpush3.msra.mxu0 %v590_v17 }
  0x9e   : > { %1800 = vmatprep.subr.mxu1 %v1934_v9  ;;  %1807 = vmatprep.subr.mxu0 %v588_v19 }
  0x9f   : > { %1801 = vmatpush3.msra.mxu1 %v1934_v9  ;;  %1802 = vmatprep.mubr.msk.f32.mxu1 %vm239_vm0, %v1901_v1  ;;  %v1469_v1 = vadd.s32 1, %v233_v50 }
  0xa0   : > { %1808 = vmatpush3.msra.mxu0 %v588_v19  ;;  %1809 = vmatprep.mubr.msk.f32.mxu0 %vm239_vm0, %v1943_v10 }
  0xa1   : > { %1803 = vmatmul.mubr.msk.f32.vlgmr.msra.gmra.mxu1 %vm239_vm0, %v1930_v7  ;;  %1812 = vmatprep.subr.mxu1 %v993_v23  ;;  %vm1470_vm6 = vcmp.ge.s32.totalorder %v1469_v1, 0  ;;  %vm1471_vm7 = vcmp.lt.s32.totalorder %v1469_v1, 134 }
  0xa2   : > { %1810 = vmatmul.mubr.msk.f32.vlgmr.msra.gmra.mxu0 %vm239_vm0, %v1958_v12  ;;  %1813 = vmatpush3.msra.mxu1 %v993_v23  ;;  %vm2057_vm9 = vmand %vm1470_vm6, %vm1471_vm7 }
  0xa3   : > { %1819 = vmatprep.subr.mxu0 %v1389_v25  ;;  %1814 = vmatprep.subr.mxu1 %v991_v24 }
  0xa4   : > { %1820 = vmatpush3.msra.mxu0 %v1389_v25  ;;  %1815 = vmatpush3.msra.mxu1 %v991_v24 }
  0xa5   : > { %1816 = vmatprep.mubr.msk.f32.mxu1 %vm239_vm0, %v1951_v11  ;;  %1821 = vmatprep.subr.mxu0 %v1387_v26 }
  0xa6   : > { %1817 = vmatmul.mubr.msk.f32.vlgmr.msra.gmra.mxu1 %vm239_vm0, %v1984_v21  ;;  %1822 = vmatpush3.msra.mxu0 %v1387_v26 }
  0xa7   : > { %1823 = vmatprep.mubr.msk.f32.mxu0 %vm239_vm0, %v1969_v13 }
  0xa8   : > { %1824 = vmatmul.mubr.msk.f32.vlgmr.msra.gmra.mxu0 %vm239_vm0, %v1989_v22 }
  0xd6   : > { %v1727_v27 = vpop.f32.mrf.mxu0 }
  0xd7   : > { %v1734_v29 = vpop.f32.mrf.mxu1 }
  0xd8   : > { %v312_v28 = vpop.f32.mrf.mxu0  ;;  %v399_v49 = vadd.f32 %v1734_v29, %v1727_v27 }
  0xd9   : > { %v393_v31 = vpop.f32.mrf.mxu1 }
  0xda   : > { %v394_v54 = vadd.f32 %v393_v31, %v312_v28  ;;  %v1489_v31 = vpop.permute.xlu1 %1488 }
  0xdb   : > { %v1741_v30 = vpop.f32.mrf.mxu0 }
  0xdc   : > { %v487_v58 = vadd.f32 %v1741_v30, %v399_v49 }
  0xdd   : > { %v477_v32 = vpop.f32.mrf.mxu0 }
  0xde   : > { %v486_v61 = vadd.f32 %v477_v32, %v394_v54  ;;  %v1536_v54 = vld [vmem:[%s2100_s4 + $0x8] sm:$0xff] }
 0x149   : > { %v1748_v33 = vpop.f32.mrf.mxu1  ;;  %v1755_v34 = vpop.f32.mrf.mxu0 }
 0x14a   : > { %v581_v62 = vadd.f32 %v1748_v33, %v487_v58 }
 0x14b   : > { %v571_v35 = vpop.f32.mrf.mxu1  ;;  %v665_v36 = vpop.f32.mrf.mxu0 }
 0x14c   : > { %v580_v4 = vadd.f32 %v571_v35, %v486_v61  ;;  %v675_v11 = vadd.f32 %v1755_v34, %v581_v62  ;;  %v1484_v35 = vpop.permute.xlu0 %1483 }
 0x14e   : > { %v674_v16 = vadd.f32 %v665_v36, %v580_v4  ;;  %v683_v22 = vsel %vm2051_vm8, %v675_v11, -inf }
 0x14f   : > { %v1762_v37 = vpop.f32.mrf.mxu1  ;;  %v1769_v38 = vpop.f32.mrf.mxu0 }
 0x150   : > { %v831_v47 = vadd.f32 %v1769_v38, %v1762_v37  ;;  %v682_v28 = vsel %vm2051_vm8, %v674_v16, -inf }
 0x151   : > { %v750_v39 = vpop.f32.mrf.mxu1  ;;  %v825_v40 = vpop.f32.mrf.mxu0 }
 0x152   : > { %v826_v51 = vadd.f32 %v825_v40, %v750_v39 }
 0x155   : > { %v1776_v42 = vpop.f32.mrf.mxu1 }
 0x156   : > { %v1783_v43 = vpop.f32.mrf.mxu0  ;;  %v910_v52 = vadd.f32 %v1776_v42, %v831_v47  ;;  %v1521_v42 = vld [vmem:[%s2099_s3] sm:$0xff] }
 0x157   : > { %v900_v45 = vpop.f32.mrf.mxu1 }
 0x158   : > { %v977_v46 = vpop.f32.mrf.mxu0  ;;  %v909_v55 = vadd.f32 %v900_v45, %v826_v51  ;;  %v987_v60 = vadd.f32 %v1783_v43, %v910_v52 }
 0x15a   : > { %v1790_v48 = vpop.f32.mrf.mxu1  ;;  %v986_v63 = vadd.f32 %v977_v46, %v909_v55 }
 0x15b   : > { %v1072_v5 = vadd.f32 %v1790_v48, %v987_v60 }
 0x15c   : > { %v1797_v53 = vpop.f32.mrf.mxu0  ;;  %v1062_v56 = vpop.f32.mrf.mxu1 }
 0x15d   : > { %v1071_v12 = vadd.f32 %v1062_v56, %v986_v63  ;;  %v1079_v17 = vsel %vm2047_vm5, %v1072_v5, -inf }
 0x15e   : > { %v1148_v57 = vpop.f32.mrf.mxu0  ;;  %v1081_v26 = vmax.f32 %v683_v22, %v1079_v17 }
 0x15f   : > { %v1078_v23 = vsel %vm2047_vm5, %v1071_v12, -inf }
 0x160   : > { %v1080_v32 = vmax.f32 %v682_v28, %v1078_v23 }
 0x161   : > { %v1804_v0 = vpop.f32.mrf.mxu1 }
 0x162   : > { %v1229_v2 = vadd.f32 %v1804_v0, %v1797_v53  ;;  %v1811_v3 = vpop.f32.mrf.mxu0  ;;  %v1535_v53 = vld [vmem:[%s2100_s4] sm:$0xff] }
 0x163   : > { %v1223_v6 = vpop.f32.mrf.mxu1 }
 0x164   : > { %v1308_v8 = vadd.f32 %v1811_v3, %v1229_v2  ;;  %v1224_v9 = vadd.f32 %v1223_v6, %v1148_v57  ;;  %v1298_v10 = vpop.f32.mrf.mxu0 }
 0x166   : > { %v1307_v14 = vadd.f32 %v1298_v10, %v1224_v9  ;;  %v1818_v15 = vpop.f32.mrf.mxu1 }
 0x167   : > { %v1385_v18 = vadd.f32 %v1818_v15, %v1308_v8 }
 0x168   : > { %v1825_v19 = vpop.f32.mrf.mxu0  ;;  %v1375_v21 = vpop.f32.mrf.mxu1 }
 0x169   : > { %v1468_v24 = vadd.f32 %v1825_v19, %v1385_v18  ;;  %v1384_v25 = vadd.f32 %v1375_v21, %v1307_v14 }
 0x16a   : > { %v1458_v27 = vpop.f32.mrf.mxu0 }
 0x16b   : > { %v1476_v29 = vsel %vm2057_vm9, %v1468_v24, -inf  ;;  %v1467_v30 = vadd.f32 %v1458_v27, %v1384_v25 }
 0x16c   : > { %v1478_v33 = vmax.f32 %v1081_v26, %v1476_v29 }
 0x16d   : > { %v1475_v34 = vsel %vm2057_vm9, %v1467_v30, -inf }
 0x16e   : > { %v1492_v36 = vadd.f32 %v1489_v31, %v1478_v33  ;;  %v1477_v37 = vmax.f32 %v1080_v32, %v1475_v34 }
 0x170   : > { %v1491_v38 = vadd.f32 %v1484_v35, %v1477_v37  ;;  %v1497_v39 = vsel %vm1493_vm10, %v1492_v36, 0.0 }
 0x171   : > { %1498 = vadd.xlane.f32.xlu0 %v1497_v39 }
 0x172   : > { %v1494_v40 = vsel %vm1493_vm10, %v1491_v38, 0.0 }
 0x173   : > { %1495 = vadd.xlane.f32.xlu1 %v1494_v40 }
 0x184   : > { %1530 = vperm.xlu1 %1839, %v1522_v41  }
 0x187   : > { %1525 = vperm.xlu0 %1838, %v1521_v42  }
 0x1fa   : > { %v1499_v43 = vpop.xlane.xlu0 %1498 }
 0x1fb   : > { %v1502_v44 = vmul.f32 0.022222223, %v1499_v43 }
 0x1fc   : > { %v1496_v45 = vpop.xlane.xlu1 %1495 }
 0x1fd   : > { %v1504_v46 = vsub.f32 %v1492_v36, %v1502_v44  ;;  %v1501_v47 = vmul.f32 0.022222223, %v1496_v45 }
 0x1ff   : > { %v1503_v48 = vsub.f32 %v1491_v38, %v1501_v47  ;;  %v1506_v49 = vmul.f32 %v1504_v46, %v1504_v46 }
 0x200   : > { %v1531_v55 = vpop.permute.xlu1 %1530 }
 0x201   : > { %v1510_v50 = vsel %vm1493_vm10, %v1506_v49, 0.0  ;;  %v1505_v51 = vmul.f32 %v1503_v48, %v1503_v48 }
 0x202   : > { %1511 = vadd.xlane.f32.xlu1 %v1510_v50  ;;  %v1526_v56 = vpop.permute.xlu0 %1525 }
 0x203   : > { %v1507_v52 = vsel %vm1493_vm10, %v1505_v51, 0.0 }
 0x204   : > { %1508 = vadd.xlane.f32.xlu0 %v1507_v52 }
 0x213   : > { %1539 = vperm.xlu1 %1839, %v1535_v53  }
 0x21a   : > { %1544 = vperm.xlu0 %1838, %v1536_v54  }
 0x28b   : > { %v1512_v57 = vpop.xlane.xlu1 %1511 }
 0x28c   : > { %v1514_v58 = vmul.f32 0.022222223, %v1512_v57 }
 0x28d   : > { %v1509_v59 = vpop.xlane.xlu0 %1508 }
 0x28e   : > { %v1516_v60 = vadd.f32 1e-05, %v1514_v58  ;;  %v1513_v61 = vmul.f32 0.022222223, %v1509_v59 }
 0x28f   : > { %v1540_v7 = vpop.permute.xlu1 %1539 }
 0x290   : > { %1840 = vrsqrt.f32 %v1516_v60  ;;  %v1515_v62 = vadd.f32 1e-05, %v1513_v61 }
 0x292   : > { %1842 = vrsqrt.f32 %v1515_v62 }
 0x295   : > { %v1545_v4 = vpop.permute.xlu0 %1544 }
 0x29d   : > { %v1841_v63 = vpop.eup %1840 }
 0x29e   : > { %v1520_v0 = vmul.f32 %v1841_v63, %v1504_v46 }
 0x29f   : > { %v1843_v1 = vpop.eup %1842 }
 0x2a0   : > { %v1519_v2 = vmul.f32 %v1843_v1, %v1503_v48  ;;  %v1534_v3 = vmul.f32 %v1531_v55, %v1520_v0 }
 0x2a2   : > { %v1533_v5 = vmul.f32 %v1526_v56, %v1519_v2  ;;  %v1548_v6 = vadd.f32 %v1545_v4, %v1534_v3 }
 0x2a4   : > { %v1547_v8 = vadd.f32 %v1540_v7, %v1533_v5  ;;  %vm1550_vm11 = vcmp.ge.f32.partialorder %v1548_v6, 0.0  ;;  %v1552_v9 = vmul.f32 0.2, %v1548_v6 }
 0x2a6   : > { %vm1549_vm12 = vcmp.ge.f32.partialorder %v1547_v8, 0.0  ;;  %v1551_v10 = vmul.f32 0.2, %v1547_v8  ;;  %v1554_v11 = vsel %vm1550_vm11, %v1548_v6, %v1552_v9 }
 0x2a7   : > { %1556 = vst.msk [vmem:[%s224_s13 + $0x8] sm:$0xff] %vm1493_vm10, %v1554_v11 }
 0x2a8   : > { %v1553_v12 = vsel %vm1549_vm12, %v1547_v8, %v1551_v10 }
 0x2a9   : > { %1555 = vst.msk [vmem:[%s224_s13] sm:$0xff] %vm1493_vm10, %v1553_v12 }
 0x2aa PF: > { %s15_s18 = sadd.s32 1, %s1850_s18  }
 0x2ab   : > { %p12_p4 = scmp.ge.s32.totalorder %s15_s18, 4  }
 0x2ad   :  { %14 = sbr.rel (!%p12_p4) target bundleno = 1 (0x1), region = 74 }

// kernel: sinctdnn_forward.4
= control target key start
LH: loop header
LB: loop body
LE: loop exit
PB: predicated region body
PF: predicated region fallthrough
CT: control target
= control target key end

     0   :  { %s3019_s25 = smov 0   ;;  %s5547_s0 = inlined_call_operand.vmem [shape: f32[2,15,136], index: 0, kind: input, shape index: {}]   ;;  %s5548_s1 = inlined_call_operand.vmem [shape: f32[16,31], index: 1, kind: input, shape index: {}]   ;;  %s5549_s2 = inlined_call_operand.<no memory space> [shape: f32[1], index: 2, kind: input, shape index: {}]   ;;  %s5550_s3 = inlined_call_operand.<no memory space> [shape: f32[1], index: 3, kind: input, shape index: {}]   ;;  %s5551_s4 = inlined_call_operand.vmem [shape: f32[16,1], index: 4, kind: input, shape index: {}]   ;;  %s5552_s5 = inlined_call_operand.vmem [shape: f32[16,1], index: 5, kind: input, shape index: {}]   ;;  %s5553_s6 = inlined_call_operand.vmem [shape: f32[2,16,134], index: 6, kind: output, shape index: {}]  }
   0x1   :  { %11 = sst [smem:[#allocation2]] %s5549_s2 }
   0x2   :  { %12 = sst [smem:[#allocation3]] %s5550_s3 }
   0x3 LB: > { %s2816_s26 = sadd.s32 4294967295, %s2943_s25   ;;  %p2820_p0 = scmp.ge.s32.totalorder %s2943_s25, 1  ;;  %s2943_s25 = sphi %s3019_s25, %s18_s25  }
   0x4   : > { %p214_p1 = scmp.lt.s32.totalorder %s2943_s25, 3 }
   0x6   : > { %p215_p2 = pnand %p2820_p0, %p214_p1 }
   0x8   : > { %218 = sbr.rel (%p215_p2) target bundleno = 1488 (0x5d0), region = 44 }
   0xd   : > { %p244_p3 = scmp.lt.s32.totalorder %s2816_s26, 1  ;;  %v2945_v0 = vmov 1   ;;  %vm282_vm0 = vcmask 64512   ;;  %vm285_vm1 = vcmask 1046528   ;;  %vm288_vm2 = vcmask 63488   ;;  %v3053_v11 = vld [vmem:[%s5548_s1] sm:$0xff] }
   0xe   : > { %2877 = vset.pattern.permute.xlu0 %v2945_v0  ;;  %v2946_v12 = vmov 0   ;;  %v2947_v13 = vmov 7   ;;  %v3063_v14 = vld [vmem:[%s5548_s1 + $0x8] sm:$0xff]  ;;  %v2948_v15 = vmov 8   ;;  %v2949_v16 = vmov 10   ;;  %s338_s14 = sld [smem:[#allocation2]] }
   0xf   : > { %s6342_s26 = smov (!%p244_p3, %s2816_s26), 1  ;;  %2876 = vset.pattern.permute.xlu1 %v2946_v12  ;;  %v2950_v17 = vmov 2   ;;  %v2951_v18 = vmov 11   ;;  %v2952_v19 = vmov 13   ;;  %v2953_v20 = vmov 14   ;;  %s345_s15 = sld [smem:[#allocation3]] }
  0x10   : > { %s2827_s2 = sshll.u32 %s6342_s26, 5  ;;  %361 = vperm.xlu1 %2876, %v3053_v11   ;;  %v2954_v21 = vmov 16   ;;  %v2955_v22 = vmov 17   ;;  %v2956_v23 = vmov 18   ;;  %v2957_v24 = vmov 19   ;;  %s2976_s18 = smov 127  }
  0x11   : > { %s248_s28 = scalar_lea.vmem %s5547_s0, %s2827_s2  ;;  %v2958_v25 = vmov 20   ;;  %v2959_v26 = vmov 3   ;;  %v2960_v27 = vmov 21   ;;  %v2961_v28 = vmov 22   ;;  %s2977_s19 = smov 126  }
  0x12   : > { %v3035_v1 = vld [vmem:[%s248_s28] sm:$0xff]  ;;  %v3037_v2 = vld [vmem:[%s248_s28 + $0x8] sm:$0xff]  ;;  %v3039_v3 = vld [vmem:[%s248_s28 + $0x10] sm:$0x7f]  ;;  %v2962_v29 = vmov 4   ;;  %v2963_v30 = vmov 23   ;;  %v258_v50 = vlaneseq  ;;  %s253_s7 = scalar_lea.vmem %s5553_s6, %s2827_s2 }
  0x13   : > { %v3041_v4 = vld [vmem:[%s248_s28 + $0x18] sm:$0x7f]  ;;  %v283_v5 = vsel %vm282_vm0, %v3037_v2, 0.0  ;;  %v286_v6 = vsel %vm285_vm1, %v3039_v3, 0.0  ;;  %v2964_v31 = vmov 24   ;;  %v2965_v32 = vmov 5  }
  0x14   : > { %v284_v7 = vadd.f32 %v283_v5, %v3035_v1  ;;  %v289_v8 = vsel %vm288_vm2, %v3041_v4, 0.0  ;;  %366 = vperm.xlu1 %2876, %v3063_v14   ;;  %v2966_v33 = vmov 25   ;;  %v2967_v34 = vmov 6  }
  0x15   : > { %v2968_v35 = vmov 26   ;;  %v2969_v36 = vmov 27   ;;  %v2970_v37 = vmov 28   ;;  %v2971_v38 = vmov 29  }
  0x16   : > { %v287_v9 = vadd.f32 %v286_v6, %v284_v7  ;;  %v2972_v39 = vmov 9   ;;  %v2973_v40 = vmov 30   ;;  %v2974_v45 = vmov 12  }
  0x17   : > { %v2975_v49 = vmov 15   ;;  %v3141_v51 = vand.u32 127, %v258_v50  ;;  %v3144_v52 = vshrl.u32 %v258_v50, 7  ;;  %vm745_vm15 = vcmask 1039360  }
  0x18   : > { %v290_v10 = vadd.f32 %v289_v8, %v287_v9  ;;  %2878 = vset.pattern.permute.xlu1 %v2945_v0 }
  0x19   : > { %390 = vperm.xlu1 %2878, %v3063_v14   ;;  %5805 = vst [vmem:[#allocation4_spill] sm:$0xff] %v3141_v51  ;;  %v3147_v53 = vadd.s32 128, %v3141_v51  ;;  %v264_v54 = vmul.u32 15, %v3141_v51  ;;  %v260_v55 = vadd.s32 8, %v3144_v52  ;;  %v3367_v62 = vsub.s32 1, %v3144_v52 }
  0x1a   : > { %291 = vadd.xlane.f32.xlu0 %v290_v10 }
  0x1b   : > { %5806 = vst [vmem:[#allocation5_spill] sm:$0xff] %v3147_v53  ;;  %v265_v56 = vmul.u32 15, %v3147_v53  ;;  %v266_v57 = vadd.s32 %v264_v54, %v3144_v52  ;;  %v268_v58 = vadd.s32 %v264_v54, %v260_v55  ;;  %v3321_v53 = vsub.s32 0, %v3144_v52 }
  0x1d   : > { %2879 = vset.pattern.permute.xlu1 %v2950_v17  ;;  %v267_v59 = vadd.s32 %v265_v56, %v3144_v52  ;;  %v269_v60 = vadd.s32 %v265_v56, %v260_v55  ;;  %vm270_vm3 = vcmp.ge.s32.totalorder %v266_v57, 20  ;;  %vm274_vm4 = vcmp.lt.s32.totalorder %v266_v57, 2020 }
  0x1e   : > { %410 = vperm.xlu1 %2879, %v3053_v11   ;;  %vm272_vm5 = vcmp.ge.s32.totalorder %v268_v58, 20  ;;  %vm276_vm6 = vcmp.lt.s32.totalorder %v268_v58, 2020  ;;  %vm3160_vm9 = vmand %vm270_vm3, %vm274_vm4 }
  0x1f   : > { %vm271_vm7 = vcmp.ge.s32.totalorder %v267_v59, 20  ;;  %vm275_vm8 = vcmp.lt.s32.totalorder %v267_v59, 2020  ;;  %vm273_vm10 = vcmp.ge.s32.totalorder %v269_v60, 20  ;;  %vm277_vm11 = vcmp.lt.s32.totalorder %v269_v60, 2020  ;;  %vm3164_vm12 = vmand %vm272_vm5, %vm276_vm6 }
  0x20   : > { %vm3168_vm13 = vmand %vm271_vm7, %vm275_vm8 }
  0x21   : > { %vm3173_vm14 = vmand %vm273_vm10, %vm277_vm11 }
  0x22   : > { %414 = vperm.xlu1 %2879, %v3063_v14  }
  0x26   : > { %2880 = vset.pattern.permute.xlu1 %v2959_v26 }
  0x27   : > { %434 = vperm.xlu1 %2880, %v3053_v11  }
  0x2b   : > { %438 = vperm.xlu1 %2880, %v3063_v14  }
  0x2f   : > { %2881 = vset.pattern.permute.xlu1 %v2962_v29 }
  0x30   : > { %386 = vperm.xlu0 %2877, %v3053_v11   ;;  %458 = vperm.xlu1 %2881, %v3053_v11  }
  0x34   : > { %2884 = vset.pattern.permute.xlu0 %v2947_v13  ;;  %462 = vperm.xlu1 %2881, %v3063_v14  }
  0x35   : > { %530 = vperm.xlu0 %2884, %v3053_v11  }
  0x38   : > { %2882 = vset.pattern.permute.xlu1 %v2965_v32 }
  0x39   : > { %2887 = vset.pattern.permute.xlu0 %v2948_v15  ;;  %482 = vperm.xlu1 %2882, %v3053_v11  }
  0x3a   : > { %558 = vperm.xlu0 %2887, %v3063_v14  }
  0x3d   : > { %486 = vperm.xlu1 %2882, %v3063_v14  }
  0x3e   : > { %2889 = vset.pattern.permute.xlu0 %v2949_v16 }
  0x3f   : > { %602 = vperm.xlu0 %2889, %v3053_v11  }
  0x41   : > { %2883 = vset.pattern.permute.xlu1 %v2967_v34 }
  0x42   : > { %506 = vperm.xlu1 %2883, %v3053_v11  }
  0x43   : > { %2892 = vset.pattern.permute.xlu0 %v2951_v18 }
  0x44   : > { %630 = vperm.xlu0 %2892, %v3063_v14  }
  0x46   : > { %510 = vperm.xlu1 %2883, %v3063_v14  }
  0x48   : > { %2894 = vset.pattern.permute.xlu0 %v2952_v19 }
  0x49   : > { %674 = vperm.xlu0 %2894, %v3053_v11  }
  0x4a   : > { %2885 = vset.pattern.permute.xlu1 %v2947_v13 }
  0x4b   : > { %534 = vperm.xlu1 %2885, %v3063_v14  }
  0x4d   : > { %2897 = vset.pattern.permute.xlu0 %v2953_v20 }
  0x4e   : > { %702 = vperm.xlu0 %2897, %v3063_v14  }
  0x4f   : > { %2886 = vset.pattern.permute.xlu1 %v2948_v15 }
  0x50   : > { %554 = vperm.xlu1 %2886, %v3053_v11  }
  0x52   : > { %2899 = vset.pattern.permute.xlu0 %v2954_v21 }
  0x53   : > { %757 = vperm.xlu0 %2899, %v3053_v11  }
  0x54   : > { %2888 = vset.pattern.permute.xlu1 %v2972_v39 }
  0x55   : > { %578 = vperm.xlu1 %2888, %v3053_v11  }
  0x57   : > { %2902 = vset.pattern.permute.xlu0 %v2955_v22 }
  0x58   : > { %795 = vperm.xlu0 %2902, %v3063_v14  }
  0x59   : > { %582 = vperm.xlu1 %2888, %v3063_v14  }
  0x5c   : > { %2903 = vset.pattern.permute.xlu0 %v2956_v23 }
  0x5d   : > { %825 = vperm.xlu0 %2903, %v3053_v11   ;;  %2890 = vset.pattern.permute.xlu1 %v2949_v16 }
  0x5e   : > { %606 = vperm.xlu1 %2890, %v3063_v14  }
  0x61   : > { %2906 = vset.pattern.permute.xlu0 %v2957_v24 }
  0x62   : > { %863 = vperm.xlu0 %2906, %v3063_v14   ;;  %2891 = vset.pattern.permute.xlu1 %v2951_v18 }
  0x63   : > { %626 = vperm.xlu1 %2891, %v3053_v11  }
  0x66   : > { %2907 = vset.pattern.permute.xlu0 %v2958_v25 }
  0x67   : > { %893 = vperm.xlu0 %2907, %v3053_v11   ;;  %2893 = vset.pattern.permute.xlu1 %v2974_v45 }
  0x68   : > { %650 = vperm.xlu1 %2893, %v3053_v11  }
  0x6b   : > { %2910 = vset.pattern.permute.xlu0 %v2960_v27 }
  0x6c   : > { %931 = vperm.xlu0 %2910, %v3063_v14   ;;  %654 = vperm.xlu1 %2893, %v3063_v14  }
  0x70   : > { %2911 = vset.pattern.permute.xlu0 %v2961_v28  ;;  %2895 = vset.pattern.permute.xlu1 %v2952_v19 }
  0x71   : > { %961 = vperm.xlu0 %2911, %v3053_v11   ;;  %678 = vperm.xlu1 %2895, %v3063_v14  }
  0x75   : > { %2914 = vset.pattern.permute.xlu0 %v2963_v30  ;;  %2896 = vset.pattern.permute.xlu1 %v2953_v20 }
  0x76   : > { %999 = vperm.xlu0 %2914, %v3063_v14   ;;  %698 = vperm.xlu1 %2896, %v3053_v11  }
  0x7a   : > { %2915 = vset.pattern.permute.xlu0 %v2964_v31  ;;  %2898 = vset.pattern.permute.xlu1 %v2975_v49 }
  0x7b   : > { %1029 = vperm.xlu0 %2915, %v3053_v11   ;;  %722 = vperm.xlu1 %2898, %v3053_v11  }
  0x7f   : > { %2918 = vset.pattern.permute.xlu0 %v2966_v33  ;;  %726 = vperm.xlu1 %2898, %v3063_v14  }
  0x80   : > { %1067 = vperm.xlu0 %2918, %v3063_v14  }
  0x83   : > { %2900 = vset.pattern.permute.xlu1 %v2954_v21 }
  0x84   : > { %2919 = vset.pattern.permute.xlu0 %v2968_v35  ;;  %761 = vperm.xlu1 %2900, %v3063_v14  }
  0x85   : > { %1097 = vperm.xlu0 %2919, %v3053_v11  }
  0x88   : > { %2901 = vset.pattern.permute.xlu1 %v2955_v22 }
  0x89   : > { %2922 = vset.pattern.permute.xlu0 %v2969_v36  ;;  %791 = vperm.xlu1 %2901, %v3053_v11  }
  0x8a   : > { %1135 = vperm.xlu0 %2922, %v3063_v14  }
  0x8d   : > { %2904 = vset.pattern.permute.xlu1 %v2956_v23 }
  0x8e   : > { %2923 = vset.pattern.permute.xlu0 %v2970_v37  ;;  %829 = vperm.xlu1 %2904, %v3063_v14  }
  0x8f   : > { %1165 = vperm.xlu0 %2923, %v3053_v11  }
  0x92   : > { %2905 = vset.pattern.permute.xlu1 %v2957_v24 }
  0x93   : > { %2926 = vset.pattern.permute.xlu0 %v2971_v38  ;;  %859 = vperm.xlu1 %2905, %v3053_v11  }
  0x94   : > { %1203 = vperm.xlu0 %2926, %v3063_v14  }
  0x97   : > { %2908 = vset.pattern.permute.xlu1 %v2958_v25 }
  0x98   : > { %2927 = vset.pattern.permute.xlu0 %v2973_v40  ;;  %897 = vperm.xlu1 %2908, %v3063_v14  }
  0x99   : > { %1233 = vperm.xlu0 %2927, %v3053_v11  }
  0x9c   : > { %2909 = vset.pattern.permute.xlu1 %v2960_v27 }
  0x9d   : > { %2929 = vset.pattern.permute.xlu0 %v2946_v12  ;;  %927 = vperm.xlu1 %2909, %v3053_v11  }
  0xa1   : > { %2912 = vset.pattern.permute.xlu1 %v2961_v28 }
  0xa2   : > { %965 = vperm.xlu1 %2912, %v3063_v14  }
  0xa3   : > { %v292_v41 = vpop.xlane.xlu0 %291 }
  0xa4   : > { %v293_v42 = vrot.slane %v292_v41, 4 }
  0xa6   : > { %v294_v43 = vadd.f32 %v293_v42, %v292_v41  ;;  %2913 = vset.pattern.permute.xlu1 %v2963_v30 }
  0xa7   : > { %995 = vperm.xlu1 %2913, %v3053_v11  }
  0xa8   : > { %v295_v44 = vrot.slane %v294_v43, 2 }
  0xaa   : > { %v296_v46 = vadd.f32 %v295_v44, %v294_v43 }
  0xab   : > { %2916 = vset.pattern.permute.xlu1 %v2964_v31  ;;  %v3216_v23 = vpop.permute.xlu0 %386 }
  0xac   : > { %v297_v47 = vrot.slane %v296_v46, 1  ;;  %1033 = vperm.xlu1 %2916, %v3063_v14   ;;  %5815 = vst [vmem:[#allocation6_spill] sm:$0xff] %v3216_v23 }
  0xae   : > { %v298_v48 = vadd.f32 %v297_v47, %v296_v46  ;;  %v3270_v46 = vpop.permute.xlu1 %361 }
  0xaf   : > { %5833 = vst [vmem:[#allocation24_spill] sm:$0xff] %v3270_v46 }
  0xb0   : > { %2829 = vpush %v298_v48  ;;  %2917 = vset.pattern.permute.xlu1 %v2966_v33  ;;  %v3221_v24 = vpop.permute.xlu0 %530 }
  0xb1   : > { %1063 = vperm.xlu1 %2917, %v3053_v11   ;;  %5816 = vst [vmem:[#allocation7_spill] sm:$0xff] %v3221_v24 }
  0xb2   : > { %v3272_v50 = vpop.permute.xlu1 %366 }
  0xb3   : > { %5834 = vst [vmem:[#allocation25_spill] sm:$0xff] %v3272_v50 }
  0xb5   : > { %2920 = vset.pattern.permute.xlu1 %v2968_v35  ;;  %v3225_v25 = vpop.permute.xlu0 %558 }
  0xb6   : > { %1101 = vperm.xlu1 %2920, %v3063_v14   ;;  %5817 = vst [vmem:[#allocation8_spill] sm:$0xff] %v3225_v25  ;;  %v3274_v54 = vpop.permute.xlu1 %390 }
  0xb7   : > { %5835 = vst [vmem:[#allocation26_spill] sm:$0xff] %v3274_v54 }
  0xba   : > { %2921 = vset.pattern.permute.xlu1 %v2969_v36  ;;  %v3229_v26 = vpop.permute.xlu0 %602  ;;  %v3276_v55 = vpop.permute.xlu1 %410 }
  0xbb   : > { %1131 = vperm.xlu1 %2921, %v3053_v11   ;;  %5818 = vst [vmem:[#allocation9_spill] sm:$0xff] %v3229_v26  ;;  %5836 = vst [vmem:[#allocation27_spill] sm:$0xff] %v3276_v55 }
  0xbe   : > { %v3278_v56 = vpop.permute.xlu1 %414 }
  0xbf   : > { %2924 = vset.pattern.permute.xlu1 %v2970_v37  ;;  %v3233_v27 = vpop.permute.xlu0 %630  ;;  %5837 = vst [vmem:[#allocation28_spill] sm:$0xff] %v3278_v56 }
  0xc0   : > { %1169 = vperm.xlu1 %2924, %v3063_v14   ;;  %5819 = vst [vmem:[#allocation10_spill] sm:$0xff] %v3233_v27 }
  0xc2   : > { %v3280_v57 = vpop.permute.xlu1 %434 }
  0xc3   : > { %5838 = vst [vmem:[#allocation29_spill] sm:$0xff] %v3280_v57 }
  0xc4   : > { %2925 = vset.pattern.permute.xlu1 %v2971_v38  ;;  %v3236_v28 = vpop.permute.xlu0 %674 }
  0xc5   : > { %1199 = vperm.xlu1 %2925, %v3053_v11   ;;  %5820 = vst [vmem:[#allocation11_spill] sm:$0xff] %v3236_v28 }
  0xc6   : > { %v3282_v58 = vpop.permute.xlu1 %438 }
  0xc7   : > { %5839 = vst [vmem:[#allocation30_spill] sm:$0xff] %v3282_v58 }
  0xc9   : > { %2928 = vset.pattern.permute.xlu1 %v2973_v40  ;;  %v3238_v29 = vpop.permute.xlu0 %702 }
  0xca   : > { %1237 = vperm.xlu1 %2928, %v3063_v14   ;;  %5821 = vst [vmem:[#allocation12_spill] sm:$0xff] %v3238_v29  ;;  %v3284_v59 = vpop.permute.xlu1 %458 }
  0xcb   : > { %5840 = vst [vmem:[#allocation31_spill] sm:$0xff] %v3284_v59 }
  0xce   : > { %2930 = vset.pattern.permute.xlu1 %v2946_v12  ;;  %v3240_v30 = vpop.permute.xlu0 %757  ;;  %v3286_v60 = vpop.permute.xlu1 %462 }
  0xcf   : > { %5841 = vst [vmem:[#allocation32_spill] sm:$0xff] %v3286_v60 }
  0xd3   : > { %v3242_v31 = vpop.permute.xlu0 %795 }
  0xd8   : > { %v3244_v32 = vpop.permute.xlu0 %825 }
  0xd9   : > { %5822 = vst [vmem:[#allocation13_spill] sm:$0xff] %v3244_v32 }
  0xdd   : > { %v3246_v11 = vpop.permute.xlu0 %863 }
  0xde   : > { %5823 = vst [vmem:[#allocation14_spill] sm:$0xff] %v3246_v11 }
  0xe1   : > { %s2830_s9 = spop %2829 }
  0xe2   : > { %s302_s10 = smul.f32 0.0005, %s2830_s9  ;;  %v3248_v33 = vpop.permute.xlu0 %893 }
  0xe3   : > { %5824 = vst [vmem:[#allocation15_spill] sm:$0xff] %v3248_v33 }
  0xe4   : > { %v303_v0 = vstv %s302_s10 }
  0xe5   : > { %v304_v6 = vsub.f32 %v3035_v1, %v303_v0  ;;  %v305_v7 = vsub.f32 %v3037_v2, %v303_v0  ;;  %v306_v8 = vsub.f32 %v3039_v3, %v303_v0  ;;  %v307_v9 = vsub.f32 %v3041_v4, %v303_v0  ;;  %v3288_v0 = vpop.permute.xlu1 %482 }
  0xe6   : > { %5842 = vst [vmem:[#allocation33_spill] sm:$0xff] %v3288_v0 }
  0xe7   : > { %v3184_v10 = vsel %vm3160_vm9, %v304_v6, 0.0  ;;  %v3188_v13 = vsel %vm3168_vm13, %v305_v7, 0.0  ;;  %v3192_v15 = vsel %vm3164_vm12, %v306_v8, 0.0  ;;  %v3196_v1 = vsel %vm3173_vm14, %v307_v9, 0.0  ;;  %v3250_v34 = vpop.permute.xlu0 %931 }
  0xe8   : > { %v313_v2 = vmul.f32 %v3188_v13, %v3188_v13  ;;  %v312_v3 = vmul.f32 %v3184_v10, %v3184_v10  ;;  %v314_v4 = vmul.f32 %v3192_v15, %v3192_v15  ;;  %v315_v16 = vmul.f32 %v3196_v1, %v3196_v1  ;;  %5825 = vst [vmem:[#allocation16_spill] sm:$0xff] %v3250_v34 }
  0xe9   : > { %v3290_v6 = vpop.permute.xlu1 %486 }
  0xea   : > { %v316_v17 = vsel %vm282_vm0, %v313_v2, 0.0  ;;  %v318_v19 = vsel %vm285_vm1, %v314_v4, 0.0  ;;  %v320_v21 = vsel %vm288_vm2, %v315_v16, 0.0  ;;  %5843 = vst [vmem:[#allocation34_spill] sm:$0xff] %v3290_v6  ;;  %vm1256_vm0 = vcmask 1031168  }
  0xeb   : > { %v317_v18 = vadd.f32 %v316_v17, %v312_v3 }
  0xec   : > { %v3252_v14 = vpop.permute.xlu0 %961 }
  0xed   : > { %v319_v20 = vadd.f32 %v318_v19, %v317_v18  ;;  %5826 = vst [vmem:[#allocation17_spill] sm:$0xff] %v3252_v14  ;;  %v3292_v8 = vpop.permute.xlu1 %506 }
  0xee   : > { %5844 = vst [vmem:[#allocation35_spill] sm:$0xff] %v3292_v8  ;;  %v539_v8 = vsub.s32 7, %v3144_v52 }
  0xef   : > { %v321_v22 = vadd.f32 %v320_v21, %v319_v20 }
  0xf1   : > { %322 = vadd.xlane.f32.xlu0 %v321_v22  ;;  %v3254_v35 = vpop.permute.xlu0 %999  ;;  %v3294_v9 = vpop.permute.xlu1 %510 }
  0xf2   : > { %5827 = vst [vmem:[#allocation18_spill] sm:$0xff] %v3254_v35  ;;  %5845 = vst [vmem:[#allocation36_spill] sm:$0xff] %v3294_v9 }
  0xf5   : > { %v3296_v3 = vpop.permute.xlu1 %534 }
  0xf6   : > { %v3256_v12 = vpop.permute.xlu0 %1029  ;;  %5846 = vst [vmem:[#allocation37_spill] sm:$0xff] %v3296_v3 }
  0xf7   : > { %5828 = vst [vmem:[#allocation19_spill] sm:$0xff] %v3256_v12 }
  0xf9   : > { %v3298_v4 = vpop.permute.xlu1 %554 }
  0xfa   : > { %5847 = vst [vmem:[#allocation38_spill] sm:$0xff] %v3298_v4 }
  0xfb   : > { %v3258_v36 = vpop.permute.xlu0 %1067 }
  0xfd   : > { %v3300_v16 = vpop.permute.xlu1 %578 }
  0xfe   : > { %5848 = vst [vmem:[#allocation39_spill] sm:$0xff] %v3300_v16 }
 0x100   : > { %v3260_v37 = vpop.permute.xlu0 %1097 }
 0x101   : > { %v3302_v17 = vpop.permute.xlu1 %582 }
 0x102   : > { %5849 = vst [vmem:[#allocation40_spill] sm:$0xff] %v3302_v17 }
 0x105   : > { %v3262_v38 = vpop.permute.xlu0 %1135  ;;  %v3304_v18 = vpop.permute.xlu1 %606 }
 0x106   : > { %5829 = vst [vmem:[#allocation20_spill] sm:$0xff] %v3262_v38  ;;  %5850 = vst [vmem:[#allocation41_spill] sm:$0xff] %v3304_v18 }
 0x109   : > { %v3306_v19 = vpop.permute.xlu1 %626 }
 0x10a   : > { %v3264_v39 = vpop.permute.xlu0 %1165  ;;  %5851 = vst [vmem:[#allocation42_spill] sm:$0xff] %v3306_v19 }
 0x10b   : > { %5830 = vst [vmem:[#allocation21_spill] sm:$0xff] %v3264_v39 }
 0x10d   : > { %v3308_v20 = vpop.permute.xlu1 %650 }
 0x10e   : > { %5852 = vst [vmem:[#allocation43_spill] sm:$0xff] %v3308_v20 }
 0x10f   : > { %v3266_v40 = vpop.permute.xlu0 %1203 }
 0x110   : > { %5831 = vst [vmem:[#allocation22_spill] sm:$0xff] %v3266_v40 }
 0x111   : > { %v3310_v21 = vpop.permute.xlu1 %654 }
 0x112   : > { %5853 = vst [vmem:[#allocation44_spill] sm:$0xff] %v3310_v21 }
 0x114   : > { %v3268_v41 = vpop.permute.xlu0 %1233 }
 0x115   : > { %5832 = vst [vmem:[#allocation23_spill] sm:$0xff] %v3268_v41  ;;  %v3312_v22 = vpop.permute.xlu1 %678 }
 0x116   : > { %5854 = vst [vmem:[#allocation45_spill] sm:$0xff] %v3312_v22 }
 0x17a   : > { %v323_v42 = vpop.xlane.xlu0 %322 }
 0x17b   : > { %v324_v43 = vrot.slane %v323_v42, 4 }
 0x17d   : > { %v325_v44 = vadd.f32 %v324_v43, %v323_v42  ;;  %v346_v43 = vstv %s345_s15 }
 0x17f   : > { %v326_v45 = vrot.slane %v325_v44, 2 }
 0x181   : > { %v327_v47 = vadd.f32 %v326_v45, %v325_v44 }
 0x183   : > { %v328_v48 = vrot.slane %v327_v47, 1 }
 0x185   : > { %v329_v49 = vadd.f32 %v328_v48, %v327_v47 }
 0x187   : > { %2831 = vpush %v329_v49 }
 0x1b8   : > { %s2832_s11 = spop %2831 }
 0x1b9   : > { %s333_s12 = smul.f32 0.0005, %s2832_s11 }
 0x1bb   : > { %s334_s13 = sadd.f32 1e-05, %s333_s12 }
 0x1bd   : > { %v335_v7 = vstv %s334_s13 }
 0x1be   : > { %2931 = vrsqrt.f32 %v335_v7 }
 0x1cb   : > { %v2932_v2 = vpop.eup %2931 }
 0x1cc   : > { %2833 = vpush %v2932_v2  ;;  %v3318_v2 = vpop.permute.xlu1 %698 }
 0x1cd   : > { %5855 = vst [vmem:[#allocation46_spill] sm:$0xff] %v3318_v2 }
 0x1fd   : > { %s2834_s16 = spop %2833 }
 0x1fe   : > { %s339_s17 = smul.f32 %s2834_s16, %s338_s14 }
 0x200   : > { %v340_v42 = vstv %s339_s17 }
 0x201   : > { %v341_v44 = vmul.f32 %v340_v42, %v3184_v10  ;;  %v342_v45 = vmul.f32 %v340_v42, %v3188_v13  ;;  %v343_v47 = vmul.f32 %v340_v42, %v3192_v15  ;;  %v344_v48 = vmul.f32 %v340_v42, %v3196_v1 }
 0x202   : > { %v3332_v13 = vsub.s32 5, %v3144_v52  ;;  %v3335_v15 = vsub.s32 6, %v3144_v52  ;;  %v3338_v1 = vsub.s32 4, %v3144_v52 }
 0x203   : > { %v347_v49 = vadd.f32 %v346_v43, %v341_v44  ;;  %v348_v7 = vadd.f32 %v346_v43, %v342_v45  ;;  %v349_v51 = vadd.f32 %v346_v43, %v343_v47  ;;  %v350_v60 = vadd.f32 %v346_v43, %v344_v48  ;;  %v3356_v44 = vpop.permute.xlu1 %722 }
 0x205   : > { %v3325_v59 = vsel %vm3160_vm9, %v347_v49, 0.0  ;;  %v3329_v10 = vsel %vm3168_vm13, %v348_v7, 0.0  ;;  %v3342_v42 = vsel %vm3164_vm12, %v349_v51, 0.0  ;;  %v3346_v61 = vsel %vm3173_vm14, %v350_v60, 0.0 }
 0x206   : > { %v3350_v63 = vrot.slane %v3325_v59, %v3321_v53  ;;  %v3354_v43 = vrot.slane %v3329_v10, %v3321_v53  ;;  %v3360_v45 = vrot.slane %v3346_v61, %v3338_v1  ;;  %v3364_v51 = vrot.slane %v3342_v42, %v3332_v13 }
 0x207   : > { %v3371_v5 = vrot.slane %v3346_v61, %v3335_v15  ;;  %v3379_v48 = vpop.permute.xlu1 %726  ;;  %v3383_v49 = vrot.slane %v3325_v59, %v3367_v62  ;;  %v3387_v7 = vrot.slane %v3329_v10, %v3367_v62  ;;  %v3480_v6 = vrot.slane %v3329_v10, %v3338_v1 }
 0x208   : > { %5856 = vst [vmem:[#allocation47_spill] sm:$0xff] %v3350_v63  ;;  %5857 = vst [vmem:[#allocation48_spill] sm:$0xff] %v3354_v43  ;;  %v730_v60 = vmul.f32 %v3356_v44, %v3354_v43  ;;  %v729_v47 = vmul.f32 %v3356_v44, %v3350_v63  ;;  %v732_v58 = vmul.f32 %v3379_v48, %v3354_v43 }
 0x209   : > { %5858 = vst [vmem:[#allocation49_spill] sm:$0xff] %v3360_v45  ;;  %5859 = vst [vmem:[#allocation50_spill] sm:$0xff] %v3371_v5  ;;  %v731_v57 = vmul.f32 %v3379_v48, %v3350_v63  ;;  %v765_v56 = vmul.f32 %v3240_v30, %v3387_v7 }
 0x20a   : > { %739 = vrot.lane.b32.xlu1 %v730_v60, %s2976_s18  ;;  %737 = vrot.lane.b32.xlu0 %v729_v47, %s2976_s18  ;;  %5860 = vst [vmem:[#allocation51_spill] sm:$0xff] %v3383_v49  ;;  %5861 = vst [vmem:[#allocation52_spill] sm:$0xff] %v3387_v7  ;;  %v3396_v60 = vsub.s32 2, %v3144_v52  ;;  %v764_v47 = vmul.f32 %v3240_v30, %v3383_v49 }
 0x20b   : > { %v3402_v55 = vpop.permute.xlu1 %761  ;;  %5870 = vst [vmem:[#allocation61_spill] sm:$0xff] %v3480_v6 }
 0x20c   : > { %v766_v54 = vmul.f32 %v3402_v55, %v3383_v49  ;;  %v767_v50 = vmul.f32 %v3402_v55, %v3387_v7 }
 0x20e   : > { %743 = vrot.lane.b32.xlu1 %v732_v58, %s2976_s18  ;;  %741 = vrot.lane.b32.xlu0 %v731_v57, %s2976_s18  ;;  %v3408_v58 = vrot.slane %v3325_v59, %v3396_v60  ;;  %v3411_v57 = vsub.s32 3, %v3144_v52  ;;  %v3495_v52 = vrot.slane %v3329_v10, %v539_v8 }
 0x210   : > { %5862 = vst [vmem:[#allocation53_spill] sm:$0xff] %v3408_v58  ;;  %v3427_v23 = vrot.slane %v3329_v10, %v3411_v57  ;;  %v800_v17 = vmul.f32 %v3242_v31, %v3408_v58  ;;  %v3445_v25 = vrot.slane %v3325_v59, %v3411_v57  ;;  %5873 = vst [vmem:[#allocation64_spill] sm:$0xff] %v3495_v52 }
 0x212   : > { %772 = vrot.lane.b32.xlu1 %v764_v47, %s2976_s18  ;;  %774 = vrot.lane.b32.xlu0 %v765_v56, %s2976_s18  ;;  %v3419_v47 = vpop.permute.xlu1 %791  ;;  %v3423_v56 = vrot.slane %v3329_v10, %v3396_v60  ;;  %5864 = vst [vmem:[#allocation55_spill] sm:$0xff] %v3427_v23  ;;  %5866 = vst [vmem:[#allocation57_spill] sm:$0xff] %v3445_v25  ;;  %v832_v3 = vmul.f32 %v3244_v32, %v3445_v25 }
 0x213   : > { %v798_v46 = vmul.f32 %v3419_v47, %v3408_v58 }
 0x214   : > { %5863 = vst [vmem:[#allocation54_spill] sm:$0xff] %v3423_v56 }
 0x216   : > { %776 = vrot.lane.b32.xlu1 %v766_v54, %s2976_s18  ;;  %778 = vrot.lane.b32.xlu0 %v767_v50, %s2976_s18  ;;  %v799_v50 = vmul.f32 %v3419_v47, %v3423_v56  ;;  %v833_v54 = vmul.f32 %v3244_v32, %v3427_v23  ;;  %v3439_v16 = vpop.permute.xlu1 %829 }
 0x217   : > { %5865 = vst [vmem:[#allocation56_spill] sm:$0xff] %v3439_v16  ;;  %v835_v4 = vmul.f32 %v3439_v16, %v3427_v23 }
 0x21a   : > { %806 = vrot.lane.b32.xlu1 %v798_v46, %s2976_s18  ;;  %810 = vrot.lane.b32.xlu0 %v800_v17, %s2976_s18  ;;  %v3449_v46 = vrot.slane %v3325_v59, %v3338_v1  ;;  %v801_v17 = vmul.f32 %v3242_v31, %v3423_v56 }
 0x21c   : > { %5867 = vst [vmem:[#allocation58_spill] sm:$0xff] %v3449_v46  ;;  %v868_v24 = vmul.f32 %v3246_v11, %v3449_v46 }
 0x21e   : > { %808 = vrot.lane.b32.xlu1 %v799_v50, %s2976_s18  ;;  %842 = vrot.lane.b32.xlu0 %v833_v54, %s2976_s18  ;;  %v3457_v50 = vpop.permute.xlu1 %859  ;;  %v3461_v54 = vrot.slane %v3329_v10, %v3332_v13 }
 0x21f   : > { %5868 = vst [vmem:[#allocation59_spill] sm:$0xff] %v3457_v50 }
 0x222   : > { %812 = vrot.lane.b32.xlu1 %v801_v17, %s2976_s18  ;;  %846 = vrot.lane.b32.xlu0 %v835_v4, %s2976_s18  ;;  %v834_v17 = vmul.f32 %v3439_v16, %v3445_v25  ;;  %v901_v4 = vmul.f32 %v3248_v33, %v3461_v54  ;;  %v3473_v9 = vpop.permute.xlu1 %897 }
 0x223   : > { %5869 = vst [vmem:[#allocation60_spill] sm:$0xff] %v3473_v9  ;;  %v903_v0 = vmul.f32 %v3473_v9, %v3461_v54 }
 0x226   : > { %840 = vrot.lane.b32.xlu1 %v832_v3, %s2976_s18  ;;  %878 = vrot.lane.b32.xlu0 %v868_v24, %s2976_s18  ;;  %v3484_v24 = vrot.slane %v3325_v59, %v3335_v15  ;;  %v866_v3 = vmul.f32 %v3457_v50, %v3449_v46  ;;  %v969_v46 = vmul.f32 %v3252_v14, %v3495_v52 }
 0x228   : > { %5871 = vst [vmem:[#allocation62_spill] sm:$0xff] %v3484_v24  ;;  %v936_v25 = vmul.f32 %v3250_v34, %v3484_v24 }
 0x22a   : > { %844 = vrot.lane.b32.xlu1 %v834_v17, %s2976_s18  ;;  %910 = vrot.lane.b32.xlu0 %v901_v4, %s2976_s18  ;;  %v3492_v17 = vpop.permute.xlu1 %927  ;;  %v867_v4 = vmul.f32 %v3457_v50, %v3480_v6 }
 0x22b   : > { %5872 = vst [vmem:[#allocation63_spill] sm:$0xff] %v3492_v17 }
 0x22e   : > { %874 = vrot.lane.b32.xlu1 %v866_v3, %s2976_s18  ;;  %914 = vrot.lane.b32.xlu0 %v903_v0, %s2976_s18  ;;  %v3505_v3 = vrot.slane %v3325_v59, %v3332_v13  ;;  %v869_v0 = vmul.f32 %v3246_v11, %v3480_v6  ;;  %v3511_v58 = vpop.permute.xlu1 %965 }
 0x22f   : > { %5875 = vst [vmem:[#allocation66_spill] sm:$0xff] %v3511_v58  ;;  %v971_v50 = vmul.f32 %v3511_v58, %v3495_v52 }
 0x230   : > { %5874 = vst [vmem:[#allocation65_spill] sm:$0xff] %v3505_v3 }
 0x232   : > { %876 = vrot.lane.b32.xlu1 %v867_v4, %s2976_s18  ;;  %946 = vrot.lane.b32.xlu0 %v936_v25, %s2976_s18  ;;  %v3517_v4 = vrot.slane %v3342_v42, %v3321_v53  ;;  %v900_v25 = vmul.f32 %v3248_v33, %v3505_v3  ;;  %v3525_v11 = vpop.permute.xlu1 %995 }
 0x233   : > { %5877 = vst [vmem:[#allocation68_spill] sm:$0xff] %v3525_v11 }
 0x234   : > { %5876 = vst [vmem:[#allocation67_spill] sm:$0xff] %v3517_v4  ;;  %v1004_v16 = vmul.f32 %v3254_v35, %v3517_v4 }
 0x236   : > { %880 = vrot.lane.b32.xlu1 %v869_v0, %s2976_s18  ;;  %978 = vrot.lane.b32.xlu0 %v969_v46, %s2976_s18  ;;  %v3529_v0 = vrot.slane %v3346_v61, %v3367_v62  ;;  %v902_v46 = vmul.f32 %v3473_v9, %v3505_v3  ;;  %v3545_v32 = vpop.permute.xlu1 %1033 }
 0x238   : > { %5878 = vst [vmem:[#allocation69_spill] sm:$0xff] %v3529_v0  ;;  %v1037_v33 = vmul.f32 %v3256_v12, %v3529_v0 }
 0x23a   : > { %908 = vrot.lane.b32.xlu1 %v900_v25, %s2976_s18  ;;  %982 = vrot.lane.b32.xlu0 %v971_v50, %s2976_s18  ;;  %v3539_v25 = vrot.slane %v3329_v10, %v3335_v15  ;;  %v934_v50 = vmul.f32 %v3492_v17, %v3484_v24  ;;  %v1039_v10 = vmul.f32 %v3545_v32, %v3529_v0  ;;  %v3559_v24 = vpop.permute.xlu1 %1063 }
 0x23c   : > { %5879 = vst [vmem:[#allocation70_spill] sm:$0xff] %v3539_v25  ;;  %v937_v3 = vmul.f32 %v3250_v34, %v3539_v25 }
 0x23e   : > { %912 = vrot.lane.b32.xlu1 %v902_v46, %s2976_s18  ;;  %1014 = vrot.lane.b32.xlu0 %v1004_v16, %s2976_s18  ;;  %v3551_v46 = vrot.slane %v3342_v42, %v3396_v60  ;;  %v935_v16 = vmul.f32 %v3492_v17, %v3539_v25 }
 0x240   : > { %5880 = vst [vmem:[#allocation71_spill] sm:$0xff] %v3551_v46  ;;  %v1072_v17 = vmul.f32 %v3258_v36, %v3551_v46 }
 0x242   : > { %942 = vrot.lane.b32.xlu1 %v934_v50, %s2976_s18  ;;  %1046 = vrot.lane.b32.xlu0 %v1037_v33, %s2976_s18  ;;  %v3562_v50 = vrot.slane %v3325_v59, %v539_v8  ;;  %v3566_v33 = vrot.slane %v3346_v61, %v3411_v57  ;;  %v3578_v8 = vpop.permute.xlu1 %1101 }
 0x244   : > { %5881 = vst [vmem:[#allocation72_spill] sm:$0xff] %v3562_v50  ;;  %5882 = vst [vmem:[#allocation73_spill] sm:$0xff] %v3566_v33  ;;  %v1105_v59 = vmul.f32 %v3260_v37, %v3566_v33 }
 0x246   : > { %944 = vrot.lane.b32.xlu1 %v935_v16, %s2976_s18  ;;  %1050 = vrot.lane.b32.xlu0 %v1039_v10, %s2976_s18  ;;  %v968_v16 = vmul.f32 %v3252_v14, %v3562_v50  ;;  %v3584_v10 = vrot.slane %v3342_v42, %v3338_v1  ;;  %v3592_v14 = vpop.permute.xlu1 %1131  ;;  %v3600_v1 = vrot.slane %v3346_v61, %v3332_v13 }
 0x247   : > { %5884 = vst [vmem:[#allocation75_spill] sm:$0xff] %v3592_v14  ;;  %v3618_v13 = vrot.slane %v3342_v42, %v3367_v62 }
 0x248   : > { %5883 = vst [vmem:[#allocation74_spill] sm:$0xff] %v3584_v10  ;;  %5886 = vst [vmem:[#allocation77_spill] sm:$0xff] %v3600_v1 }
 0x249   : > { %5888 = vst [vmem:[#allocation79_spill] sm:$0xff] %v3618_v13  ;;  %v1036_v62 = vmul.f32 %v3256_v12, %v3618_v13 }
 0x24a   : > { %948 = vrot.lane.b32.xlu1 %v937_v3, %s2976_s18  ;;  %1082 = vrot.lane.b32.xlu0 %v1072_v17, %s2976_s18  ;;  %v970_v3 = vmul.f32 %v3511_v58, %v3562_v50  ;;  %v1107_v17 = vmul.f32 %v3578_v8, %v3566_v33  ;;  %v1140_v50 = vmul.f32 %v3262_v38, %v3584_v10 }
 0x24e   : > { %976 = vrot.lane.b32.xlu1 %v968_v16, %s2976_s18  ;;  %1114 = vrot.lane.b32.xlu0 %v1105_v59, %s2976_s18  ;;  %v3596_v16 = vrot.slane %v3346_v61, %v3321_v53  ;;  %v1002_v59 = vmul.f32 %v3525_v11, %v3517_v4  ;;  %v1173_v53 = vmul.f32 %v3264_v39, %v3600_v1 }
 0x250   : > { %5885 = vst [vmem:[#allocation76_spill] sm:$0xff] %v3596_v16 }
 0x252   : > { %980 = vrot.lane.b32.xlu1 %v970_v3, %s2976_s18  ;;  %1118 = vrot.lane.b32.xlu0 %v1107_v17, %s2976_s18  ;;  %v1003_v3 = vmul.f32 %v3525_v11, %v3596_v16  ;;  %v3612_v17 = vpop.permute.xlu1 %1169 }
 0x253   : > { %5887 = vst [vmem:[#allocation78_spill] sm:$0xff] %v3612_v17  ;;  %v1175_v4 = vmul.f32 %v3612_v17, %v3600_v1 }
 0x256   : > { %1010 = vrot.lane.b32.xlu1 %v1002_v59, %s2976_s18  ;;  %1150 = vrot.lane.b32.xlu0 %v1140_v50, %s2976_s18  ;;  %v3622_v59 = vrot.slane %v3342_v42, %v3335_v15  ;;  %v1005_v50 = vmul.f32 %v3254_v35, %v3596_v16  ;;  %v1038_v15 = vmul.f32 %v3545_v32, %v3618_v13 }
 0x25a   : > { %1012 = vrot.lane.b32.xlu1 %v1003_v3, %s2976_s18  ;;  %1182 = vrot.lane.b32.xlu0 %v1173_v53, %s2976_s18  ;;  %v3630_v3 = vpop.permute.xlu1 %1199  ;;  %v1208_v53 = vmul.f32 %v3266_v40, %v3622_v59 }
 0x25b   : > { %5889 = vst [vmem:[#allocation80_spill] sm:$0xff] %v3630_v3 }
 0x25e   : > { %1016 = vrot.lane.b32.xlu1 %v1005_v50, %s2976_s18  ;;  %1186 = vrot.lane.b32.xlu0 %v1175_v4, %s2976_s18  ;;  %v1241_v50 = vmul.f32 %v3268_v41, %v3354_v43  ;;  %v3642_v35 = vpop.permute.xlu1 %1237  ;;  %v3648_v4 = vrot.slane %v3346_v61, %v3396_v60  ;;  %v3664_v61 = vrot.slane %v3342_v42, %v3411_v57 }
 0x25f   : > { %5890 = vst [vmem:[#allocation81_spill] sm:$0xff] %v3642_v35  ;;  %v1396_v57 = vmul.f32 %v3233_v27, %v3387_v7 }
 0x260   : > { %5891 = vst [vmem:[#allocation82_spill] sm:$0xff] %v3648_v4  ;;  %5892 = vst [vmem:[#allocation83_spill] sm:$0xff] %v3664_v61  ;;  %v1073_v60 = vmul.f32 %v3258_v36, %v3648_v4  ;;  %v1106_v42 = vmul.f32 %v3578_v8, %v3664_v61 }
 0x262   : > { %1044 = vrot.lane.b32.xlu1 %v1036_v62, %s2976_s18  ;;  %1218 = vrot.lane.b32.xlu0 %v1208_v53, %s2976_s18  ;;  %v1070_v62 = vmul.f32 %v3559_v24, %v3551_v46  ;;  %v1243_v53 = vmul.f32 %v3642_v35, %v3354_v43 }
 0x266   : > { %1048 = vrot.lane.b32.xlu1 %v1038_v15, %s2976_s18  ;;  %1250 = vrot.lane.b32.xlu0 %v1241_v50, %s2977_s19  ;;  %v1071_v15 = vmul.f32 %v3559_v24, %v3648_v4  ;;  %v1368_v50 = vmul.f32 %v3229_v26, %v3354_v43 }
 0x26a   : > { %1078 = vrot.lane.b32.xlu1 %v1070_v62, %s2976_s18  ;;  %1254 = vrot.lane.b32.xlu0 %v1243_v53, %s2977_s19  ;;  %v1370_v62 = vmul.f32 %v3304_v18, %v3354_v43  ;;  %v1104_v53 = vmul.f32 %v3260_v37, %v3664_v61 }
 0x26e   : > { %1080 = vrot.lane.b32.xlu1 %v1071_v15, %s2976_s18  ;;  %1377 = vrot.lane.b32.xlu0 %v1368_v50, %s2976_s18  ;;  %v1394_v15 = vmul.f32 %v3306_v19, %v3387_v7 }
 0x272   : > { %1084 = vrot.lane.b32.xlu1 %v1073_v60, %s2976_s18  ;;  %1381 = vrot.lane.b32.xlu0 %v1370_v62, %s2976_s18  ;;  %v1138_v62 = vmul.f32 %v3592_v14, %v3584_v10 }
 0x276   : > { %1112 = vrot.lane.b32.xlu1 %v1104_v53, %s2976_s18  ;;  %1403 = vrot.lane.b32.xlu0 %v1394_v15, %s2976_s18  ;;  %v1420_v53 = vmul.f32 %v3308_v20, %v3423_v56 }
 0x27a   : > { %1116 = vrot.lane.b32.xlu1 %v1106_v42, %s2976_s18  ;;  %1407 = vrot.lane.b32.xlu0 %v1396_v57, %s2976_s18  ;;  %v1139_v42 = vmul.f32 %v3592_v14, %v3360_v45  ;;  %v1422_v57 = vmul.f32 %v3310_v21, %v3423_v56 }
 0x27c   : > { %v3684_v50 = vpop.permute.xlu1 %739  ;;  %v3686_v60 = vpop.permute.xlu0 %737 }
 0x27d   : > { %5893 = vst [vmem:[#allocation84_spill] sm:$0xff] %v3684_v50  ;;  %5894 = vst [vmem:[#allocation85_spill] sm:$0xff] %v3686_v60 }
 0x27e   : > { %1146 = vrot.lane.b32.xlu1 %v1138_v62, %s2976_s18  ;;  %1429 = vrot.lane.b32.xlu0 %v1420_v53, %s2976_s18  ;;  %v1141_v62 = vmul.f32 %v3262_v38, %v3360_v45  ;;  %v1446_v53 = vmul.f32 %v3236_v28, %v3427_v23 }
 0x280   : > { %v3694_v15 = vpop.permute.xlu1 %743  ;;  %v3696_v61 = vpop.permute.xlu0 %741 }
 0x281   : > { %5895 = vst [vmem:[#allocation86_spill] sm:$0xff] %v3694_v15  ;;  %5896 = vst [vmem:[#allocation87_spill] sm:$0xff] %v3696_v61 }
 0x282   : > { %1148 = vrot.lane.b32.xlu1 %v1139_v42, %s2976_s18  ;;  %1433 = vrot.lane.b32.xlu0 %v1422_v57, %s2976_s18  ;;  %v1172_v42 = vmul.f32 %v3264_v39, %v3364_v51  ;;  %v1448_v57 = vmul.f32 %v3312_v22, %v3427_v23 }
 0x284   : > { %v3704_v60 = vpop.permute.xlu1 %772  ;;  %v3706_v50 = vpop.permute.xlu0 %774 }
 0x285   : > { %5897 = vst [vmem:[#allocation88_spill] sm:$0xff] %v3704_v60  ;;  %5898 = vst [vmem:[#allocation89_spill] sm:$0xff] %v3706_v50 }
 0x286   : > { %1152 = vrot.lane.b32.xlu1 %v1141_v62, %s2976_s18  ;;  %1455 = vrot.lane.b32.xlu0 %v1446_v53, %s2976_s18  ;;  %v1174_v62 = vmul.f32 %v3612_v17, %v3364_v51  ;;  %v1472_v53 = vmul.f32 %v3318_v2, %v3480_v6 }
 0x288   : > { %v3714_v61 = vpop.permute.xlu1 %776  ;;  %v3716_v15 = vpop.permute.xlu0 %778 }
 0x289   : > { %5899 = vst [vmem:[#allocation90_spill] sm:$0xff] %v3714_v61  ;;  %5900 = vst [vmem:[#allocation91_spill] sm:$0xff] %v3716_v15 }
 0x28a   : > { %1180 = vrot.lane.b32.xlu1 %v1172_v42, %s2976_s18  ;;  %1459 = vrot.lane.b32.xlu0 %v1448_v57, %s2976_s18  ;;  %v1206_v42 = vmul.f32 %v3630_v3, %v3622_v59  ;;  %v1474_v57 = vmul.f32 %v3238_v29, %v3480_v6 }
 0x28c   : > { %v3724_v60 = vpop.permute.xlu1 %806  ;;  %v3726_v50 = vpop.permute.xlu0 %810 }
 0x28d   : > { %5901 = vst [vmem:[#allocation92_spill] sm:$0xff] %v3724_v60  ;;  %5902 = vst [vmem:[#allocation93_spill] sm:$0xff] %v3726_v50 }
 0x28e   : > { %1184 = vrot.lane.b32.xlu1 %v1174_v62, %s2976_s18  ;;  %1481 = vrot.lane.b32.xlu0 %v1472_v53, %s2976_s18  ;;  %v1207_v62 = vmul.f32 %v3630_v3, %v3371_v5  ;;  %v1498_v53 = vmul.f32 %v3356_v44, %v3461_v54 }
 0x290   : > { %v3734_v61 = vpop.permute.xlu1 %808  ;;  %v3736_v15 = vpop.permute.xlu0 %842 }
 0x291   : > { %5903 = vst [vmem:[#allocation94_spill] sm:$0xff] %v3734_v61  ;;  %5904 = vst [vmem:[#allocation95_spill] sm:$0xff] %v3736_v15 }
 0x292   : > { %1214 = vrot.lane.b32.xlu1 %v1206_v42, %s2976_s18  ;;  %1485 = vrot.lane.b32.xlu0 %v1474_v57, %s2976_s18  ;;  %v1209_v42 = vmul.f32 %v3266_v40, %v3371_v5  ;;  %v1500_v57 = vmul.f32 %v3379_v48, %v3461_v54 }
 0x294   : > { %v3744_v50 = vpop.permute.xlu1 %812  ;;  %v3746_v60 = vpop.permute.xlu0 %846 }
 0x295   : > { %5905 = vst [vmem:[#allocation96_spill] sm:$0xff] %v3744_v50  ;;  %5906 = vst [vmem:[#allocation97_spill] sm:$0xff] %v3746_v60 }
 0x296   : > { %1216 = vrot.lane.b32.xlu1 %v1207_v62, %s2976_s18  ;;  %1507 = vrot.lane.b32.xlu0 %v1498_v53, %s2976_s18  ;;  %v1240_v62 = vmul.f32 %v3268_v41, %v3350_v63  ;;  %v1524_v53 = vmul.f32 %v3240_v30, %v3539_v25 }
 0x298   : > { %v3754_v15 = vpop.permute.xlu1 %840  ;;  %v3756_v61 = vpop.permute.xlu0 %878 }
 0x299   : > { %5907 = vst [vmem:[#allocation98_spill] sm:$0xff] %v3754_v15  ;;  %5908 = vst [vmem:[#allocation99_spill] sm:$0xff] %v3756_v61 }
 0x29a   : > { %1220 = vrot.lane.b32.xlu1 %v1209_v42, %s2976_s18  ;;  %1511 = vrot.lane.b32.xlu0 %v1500_v57, %s2976_s18  ;;  %v1242_v42 = vmul.f32 %v3642_v35, %v3350_v63  ;;  %v1526_v57 = vmul.f32 %v3402_v55, %v3539_v25 }
 0x29c   : > { %v3764_v60 = vpop.permute.xlu1 %844  ;;  %v3766_v50 = vpop.permute.xlu0 %910 }
 0x29d   : > { %5909 = vst [vmem:[#allocation100_spill] sm:$0xff] %v3764_v60  ;;  %5910 = vst [vmem:[#allocation101_spill] sm:$0xff] %v3766_v50 }
 0x29e   : > { %1248 = vrot.lane.b32.xlu1 %v1240_v62, %s2977_s19  ;;  %1533 = vrot.lane.b32.xlu0 %v1524_v53, %s2976_s18  ;;  %v1367_v62 = vmul.f32 %v3229_v26, %v3350_v63  ;;  %v1550_v53 = vmul.f32 %v3419_v47, %v3495_v52 }
 0x2a0   : > { %v3774_v61 = vpop.permute.xlu1 %874  ;;  %v3776_v15 = vpop.permute.xlu0 %914 }
 0x2a1   : > { %5911 = vst [vmem:[#allocation102_spill] sm:$0xff] %v3774_v61  ;;  %5912 = vst [vmem:[#allocation103_spill] sm:$0xff] %v3776_v15 }
 0x2a2   : > { %1252 = vrot.lane.b32.xlu1 %v1242_v42, %s2977_s19  ;;  %1537 = vrot.lane.b32.xlu0 %v1526_v57, %s2976_s18  ;;  %v1369_v42 = vmul.f32 %v3304_v18, %v3350_v63  ;;  %v1552_v57 = vmul.f32 %v3242_v31, %v3495_v52 }
 0x2a4   : > { %v3784_v60 = vpop.permute.xlu1 %876  ;;  %v3786_v50 = vpop.permute.xlu0 %946 }
 0x2a5   : > { %5913 = vst [vmem:[#allocation104_spill] sm:$0xff] %v3784_v60  ;;  %5914 = vst [vmem:[#allocation105_spill] sm:$0xff] %v3786_v50 }
 0x2a6   : > { %1375 = vrot.lane.b32.xlu1 %v1367_v62, %s2976_s18  ;;  %1559 = vrot.lane.b32.xlu0 %v1550_v53, %s2976_s18  ;;  %v1393_v62 = vmul.f32 %v3306_v19, %v3383_v49  ;;  %v5919_v53 = vld [vmem:[#allocation13_spill] sm:$0xff] }
 0x2a8   : > { %v3794_v61 = vpop.permute.xlu1 %880  ;;  %v3796_v15 = vpop.permute.xlu0 %978 }
 0x2a9   : > { %5915 = vst [vmem:[#allocation106_spill] sm:$0xff] %v3794_v61  ;;  %5916 = vst [vmem:[#allocation107_spill] sm:$0xff] %v3796_v15  ;;  %v1576_v15 = vmul.f32 %v5919_v53, %v3596_v16 }
 0x2aa   : > { %1379 = vrot.lane.b32.xlu1 %v1369_v42, %s2976_s18  ;;  %1563 = vrot.lane.b32.xlu0 %v1552_v57, %s2976_s18  ;;  %v1395_v42 = vmul.f32 %v3233_v27, %v3383_v49  ;;  %v5922_v57 = vld [vmem:[#allocation56_spill] sm:$0xff] }
 0x2ac   : > { %v3804_v50 = vpop.permute.xlu1 %908  ;;  %v3806_v60 = vpop.permute.xlu0 %982 }
 0x2ad   : > { %5917 = vst [vmem:[#allocation108_spill] sm:$0xff] %v3804_v50  ;;  %5918 = vst [vmem:[#allocation109_spill] sm:$0xff] %v3806_v60  ;;  %v1578_v60 = vmul.f32 %v5922_v57, %v3596_v16 }
 0x2ae   : > { %1401 = vrot.lane.b32.xlu1 %v1393_v62, %s2976_s18  ;;  %1585 = vrot.lane.b32.xlu0 %v1576_v15, %s2976_s18  ;;  %v5925_v62 = vld [vmem:[#allocation53_spill] sm:$0xff] }
 0x2af   : > { %v1419_v15 = vmul.f32 %v3308_v20, %v5925_v62 }
 0x2b0   : > { %v3814_v61 = vpop.permute.xlu1 %912  ;;  %v3816_v35 = vpop.permute.xlu0 %1014 }
 0x2b1   : > { %5920 = vst [vmem:[#allocation13_spill] sm:$0xff] %v3814_v61  ;;  %5921 = vst [vmem:[#allocation110_spill] sm:$0xff] %v3816_v35  ;;  %v5926_v61 = vld [vmem:[#allocation59_spill] sm:$0xff] }
 0x2b2   : > { %1405 = vrot.lane.b32.xlu1 %v1395_v42, %s2976_s18  ;;  %1589 = vrot.lane.b32.xlu0 %v1578_v60, %s2976_s18  ;;  %v1602_v35 = vmul.f32 %v5926_v61, %v3529_v0  ;;  %v1421_v60 = vmul.f32 %v3310_v21, %v5925_v62  ;;  %v5929_v42 = vld [vmem:[#allocation14_spill] sm:$0xff] }
 0x2b4   : > { %v3824_v50 = vpop.permute.xlu1 %942  ;;  %v3826_v41 = vpop.permute.xlu0 %1046 }
 0x2b5   : > { %5923 = vst [vmem:[#allocation56_spill] sm:$0xff] %v3824_v50  ;;  %5924 = vst [vmem:[#allocation111_spill] sm:$0xff] %v3826_v41  ;;  %v1604_v41 = vmul.f32 %v5929_v42, %v3529_v0 }
 0x2b6   : > { %1427 = vrot.lane.b32.xlu1 %v1419_v15, %s2976_s18  ;;  %1611 = vrot.lane.b32.xlu0 %v1602_v35, %s2976_s18  ;;  %v5932_v15 = vld [vmem:[#allocation57_spill] sm:$0xff] }
 0x2b7   : > { %v1445_v35 = vmul.f32 %v3236_v28, %v5932_v15 }
 0x2b8   : > { %v3834_v40 = vpop.permute.xlu1 %944  ;;  %v3836_v3 = vpop.permute.xlu0 %1050 }
 0x2b9   : > { %5927 = vst [vmem:[#allocation53_spill] sm:$0xff] %v3834_v40  ;;  %5928 = vst [vmem:[#allocation112_spill] sm:$0xff] %v3836_v3  ;;  %v5933_v40 = vld [vmem:[#allocation15_spill] sm:$0xff] }
 0x2ba   : > { %1431 = vrot.lane.b32.xlu1 %v1421_v60, %s2976_s18  ;;  %1615 = vrot.lane.b32.xlu0 %v1604_v41, %s2976_s18  ;;  %v1628_v3 = vmul.f32 %v5933_v40, %v3648_v4  ;;  %v1447_v41 = vmul.f32 %v3312_v22, %v5932_v15  ;;  %v1630_v60 = vmul.f32 %v3473_v9, %v3648_v4 }
 0x2bc   : > { %v3844_v50 = vpop.permute.xlu1 %948  ;;  %v3846_v17 = vpop.permute.xlu0 %1082 }
 0x2bd   : > { %5930 = vst [vmem:[#allocation113_spill] sm:$0xff] %v3844_v50  ;;  %5931 = vst [vmem:[#allocation114_spill] sm:$0xff] %v3846_v17 }
 0x2be   : > { %1453 = vrot.lane.b32.xlu1 %v1445_v35, %s2976_s18  ;;  %1637 = vrot.lane.b32.xlu0 %v1628_v3, %s2976_s18  ;;  %v5938_v35 = vld [vmem:[#allocation58_spill] sm:$0xff] }
 0x2bf   : > { %v1471_v3 = vmul.f32 %v3318_v2, %v5938_v35 }
 0x2c0   : > { %v3854_v39 = vpop.permute.xlu1 %976  ;;  %v3856_v38 = vpop.permute.xlu0 %1114 }
 0x2c1   : > { %5934 = vst [vmem:[#allocation115_spill] sm:$0xff] %v3854_v39  ;;  %5935 = vst [vmem:[#allocation116_spill] sm:$0xff] %v3856_v38  ;;  %v5939_v39 = vld [vmem:[#allocation63_spill] sm:$0xff] }
 0x2c2   : > { %1457 = vrot.lane.b32.xlu1 %v1447_v41, %s2976_s18  ;;  %1641 = vrot.lane.b32.xlu0 %v1630_v60, %s2976_s18  ;;  %v1654_v38 = vmul.f32 %v5939_v39, %v3566_v33  ;;  %v1473_v41 = vmul.f32 %v3238_v29, %v5938_v35  ;;  %v1656_v60 = vmul.f32 %v3250_v34, %v3566_v33 }
 0x2c4   : > { %v3864_v17 = vpop.permute.xlu1 %980  ;;  %v3866_v50 = vpop.permute.xlu0 %1118 }
 0x2c5   : > { %5936 = vst [vmem:[#allocation117_spill] sm:$0xff] %v3864_v17  ;;  %5937 = vst [vmem:[#allocation118_spill] sm:$0xff] %v3866_v50 }
 0x2c6   : > { %1479 = vrot.lane.b32.xlu1 %v1471_v3, %s2976_s18  ;;  %1663 = vrot.lane.b32.xlu0 %v1654_v38, %s2976_s18  ;;  %v5944_v3 = vld [vmem:[#allocation65_spill] sm:$0xff] }
 0x2c7   : > { %v1497_v38 = vmul.f32 %v3356_v44, %v5944_v3 }
 0x2c8   : > { %v3874_v0 = vpop.permute.xlu1 %1010  ;;  %v3876_v4 = vpop.permute.xlu0 %1150 }
 0x2c9   : > { %5940 = vst [vmem:[#allocation119_spill] sm:$0xff] %v3874_v0  ;;  %5941 = vst [vmem:[#allocation120_spill] sm:$0xff] %v3876_v4  ;;  %v5945_v0 = vld [vmem:[#allocation17_spill] sm:$0xff] }
 0x2ca   : > { %1483 = vrot.lane.b32.xlu1 %v1473_v41, %s2976_s18  ;;  %1667 = vrot.lane.b32.xlu0 %v1656_v60, %s2976_s18  ;;  %v1680_v4 = vmul.f32 %v5945_v0, %v3360_v45  ;;  %v1499_v41 = vmul.f32 %v3379_v48, %v5944_v3  ;;  %v1682_v60 = vmul.f32 %v3511_v58, %v3360_v45 }
 0x2cc   : > { %v3884_v50 = vpop.permute.xlu1 %1012  ;;  %v3886_v17 = vpop.permute.xlu0 %1182 }
 0x2cd   : > { %5942 = vst [vmem:[#allocation121_spill] sm:$0xff] %v3884_v50  ;;  %5943 = vst [vmem:[#allocation122_spill] sm:$0xff] %v3886_v17 }
 0x2ce   : > { %1505 = vrot.lane.b32.xlu1 %v1497_v38, %s2976_s18  ;;  %1689 = vrot.lane.b32.xlu0 %v1680_v4, %s2976_s18  ;;  %v5950_v38 = vld [vmem:[#allocation62_spill] sm:$0xff] }
 0x2cf   : > { %v1523_v4 = vmul.f32 %v3240_v30, %v5950_v38 }
 0x2d0   : > { %v3894_v16 = vpop.permute.xlu1 %1016  ;;  %v3896_v33 = vpop.permute.xlu0 %1186 }
 0x2d1   : > { %5946 = vst [vmem:[#allocation123_spill] sm:$0xff] %v3894_v16  ;;  %5947 = vst [vmem:[#allocation124_spill] sm:$0xff] %v3896_v33  ;;  %v1706_v33 = vmul.f32 %v3525_v11, %v3600_v1 }
 0x2d2   : > { %1509 = vrot.lane.b32.xlu1 %v1499_v41, %s2976_s18  ;;  %1693 = vrot.lane.b32.xlu0 %v1682_v60, %s2976_s18  ;;  %v1525_v41 = vmul.f32 %v3402_v55, %v5950_v38  ;;  %v5953_v60 = vld [vmem:[#allocation18_spill] sm:$0xff] }
 0x2d4   : > { %v3904_v17 = vpop.permute.xlu1 %1044  ;;  %v3906_v50 = vpop.permute.xlu0 %1218 }
 0x2d5   : > { %5948 = vst [vmem:[#allocation125_spill] sm:$0xff] %v3904_v17  ;;  %5949 = vst [vmem:[#allocation126_spill] sm:$0xff] %v3906_v50  ;;  %v1708_v50 = vmul.f32 %v5953_v60, %v3600_v1 }
 0x2d6   : > { %1531 = vrot.lane.b32.xlu1 %v1523_v4, %s2976_s18  ;;  %1715 = vrot.lane.b32.xlu0 %v1706_v33, %s2976_s18  ;;  %v5956_v4 = vld [vmem:[#allocation72_spill] sm:$0xff] }
 0x2d7   : > { %v1549_v33 = vmul.f32 %v3419_v47, %v5956_v4 }
 0x2d8   : > { %v3914_v16 = vpop.permute.xlu1 %1048  ;;  %v3916_v45 = vpop.permute.xlu0 %1250 }
 0x2d9   : > { %5951 = vst [vmem:[#allocation62_spill] sm:$0xff] %v3914_v16  ;;  %5952 = vst [vmem:[#allocation127_spill] sm:$0xff] %v3916_v45  ;;  %v1732_v45 = vmul.f32 %v3256_v12, %v3371_v5 }
 0x2da   : > { %1535 = vrot.lane.b32.xlu1 %v1525_v41, %s2976_s18  ;;  %1719 = vrot.lane.b32.xlu0 %v1708_v50, %s2976_s18  ;;  %v1551_v50 = vmul.f32 %v3242_v31, %v5956_v4  ;;  %v1734_v41 = vmul.f32 %v3545_v32, %v3371_v5 }
 0x2dc   : > { %v3924_v17 = vpop.permute.xlu1 %1078  ;;  %v3926_v52 = vpop.permute.xlu0 %1254 }
 0x2dd   : > { %5954 = vst [vmem:[#allocation128_spill] sm:$0xff] %v3924_v17  ;;  %5955 = vst [vmem:[#allocation129_spill] sm:$0xff] %v3926_v52 }
 0x2de   : > { %1557 = vrot.lane.b32.xlu1 %v1549_v33, %s2976_s18  ;;  %1741 = vrot.lane.b32.xlu0 %v1732_v45, %s2976_s18  ;;  %v5961_v33 = vld [vmem:[#allocation67_spill] sm:$0xff] }
 0x2df   : > { %v1575_v45 = vmul.f32 %v5919_v53, %v5961_v33 }
 0x2e0   : > { %v3934_v16 = vpop.permute.xlu1 %1080  ;;  %v3936_v1 = vpop.permute.xlu0 %1377 }
 0x2e1   : > { %5957 = vst [vmem:[#allocation130_spill] sm:$0xff] %v3934_v16  ;;  %5958 = vst [vmem:[#allocation131_spill] sm:$0xff] %v3936_v1  ;;  %v1758_v1 = vmul.f32 %v3559_v24, %v3354_v43 }
 0x2e2   : > { %1561 = vrot.lane.b32.xlu1 %v1551_v50, %s2976_s18  ;;  %1745 = vrot.lane.b32.xlu0 %v1734_v41, %s2976_s18  ;;  %v1577_v50 = vmul.f32 %v5922_v57, %v5961_v33  ;;  %v1760_v41 = vmul.f32 %v3258_v36, %v3354_v43 }
 0x2e4   : > { %v3944_v52 = vpop.permute.xlu1 %1084  ;;  %v3946_v17 = vpop.permute.xlu0 %1381 }
 0x2e5   : > { %5959 = vst [vmem:[#allocation132_spill] sm:$0xff] %v3944_v52  ;;  %5960 = vst [vmem:[#allocation133_spill] sm:$0xff] %v3946_v17 }
 0x2e6   : > { %1583 = vrot.lane.b32.xlu1 %v1575_v45, %s2976_s18  ;;  %1767 = vrot.lane.b32.xlu0 %v1758_v1, %s2977_s19  ;;  %v1601_v1 = vmul.f32 %v5926_v61, %v3618_v13  ;;  %v1784_v45 = vmul.f32 %v3260_v37, %v3387_v7 }
 0x2e8   : > { %v3954_v16 = vpop.permute.xlu1 %1112  ;;  %v3956_v5 = vpop.permute.xlu0 %1403 }
 0x2e9   : > { %5962 = vst [vmem:[#allocation134_spill] sm:$0xff] %v3954_v16  ;;  %5963 = vst [vmem:[#allocation135_spill] sm:$0xff] %v3956_v5 }
 0x2ea   : > { %1587 = vrot.lane.b32.xlu1 %v1577_v50, %s2976_s18  ;;  %1771 = vrot.lane.b32.xlu0 %v1760_v41, %s2977_s19  ;;  %v1603_v50 = vmul.f32 %v5929_v42, %v3618_v13  ;;  %v1786_v41 = vmul.f32 %v3578_v8, %v3387_v7 }
 0x2ec   : > { %v3964_v17 = vpop.permute.xlu1 %1116  ;;  %v3966_v52 = vpop.permute.xlu0 %1407 }
 0x2ed   : > { %5964 = vst [vmem:[#allocation136_spill] sm:$0xff] %v3964_v17  ;;  %5965 = vst [vmem:[#allocation137_spill] sm:$0xff] %v3966_v52 }
 0x2ee   : > { %1609 = vrot.lane.b32.xlu1 %v1601_v1, %s2976_s18  ;;  %1793 = vrot.lane.b32.xlu0 %v1784_v45, %s2977_s19  ;;  %v1627_v1 = vmul.f32 %v5933_v40, %v3551_v46  ;;  %v5970_v45 = vld [vmem:[#allocation33_spill] sm:$0xff] }
 0x2f0   : > { %v3974_v5 = vpop.permute.xlu1 %1146  ;;  %v3976_v16 = vpop.permute.xlu0 %1429 }
 0x2f1   : > { %5966 = vst [vmem:[#allocation138_spill] sm:$0xff] %v3974_v5  ;;  %5967 = vst [vmem:[#allocation139_spill] sm:$0xff] %v3976_v16  ;;  %v1975_v5 = vmul.f32 %v5970_v45, %v3350_v63 }
 0x2f2   : > { %1613 = vrot.lane.b32.xlu1 %v1603_v50, %s2976_s18  ;;  %1797 = vrot.lane.b32.xlu0 %v1786_v41, %s2977_s19  ;;  %v1629_v50 = vmul.f32 %v3473_v9, %v3551_v46  ;;  %v5973_v41 = vld [vmem:[#allocation34_spill] sm:$0xff] }
 0x2f4   : > { %v3984_v52 = vpop.permute.xlu1 %1148  ;;  %v3986_v17 = vpop.permute.xlu0 %1433 }
 0x2f5   : > { %5968 = vst [vmem:[#allocation140_spill] sm:$0xff] %v3984_v52  ;;  %5969 = vst [vmem:[#allocation141_spill] sm:$0xff] %v3986_v17  ;;  %v1977_v17 = vmul.f32 %v5973_v41, %v3350_v63 }
 0x2f6   : > { %1635 = vrot.lane.b32.xlu1 %v1627_v1, %s2976_s18  ;;  %1983 = vrot.lane.b32.xlu0 %v1975_v5, %s2976_s18  ;;  %v5976_v1 = vld [vmem:[#allocation83_spill] sm:$0xff] }
 0x2f7   : > { %v1653_v5 = vmul.f32 %v5939_v39, %v5976_v1 }
 0x2f8   : > { %v3994_v16 = vpop.permute.xlu1 %1152  ;;  %v3996_v42 = vpop.permute.xlu0 %1455 }
 0x2f9   : > { %5971 = vst [vmem:[#allocation142_spill] sm:$0xff] %v3994_v16  ;;  %5972 = vst [vmem:[#allocation143_spill] sm:$0xff] %v3996_v42  ;;  %v5977_v16 = vld [vmem:[#allocation35_spill] sm:$0xff] }
 0x2fa   : > { %1639 = vrot.lane.b32.xlu1 %v1629_v50, %s2976_s18  ;;  %1987 = vrot.lane.b32.xlu0 %v1977_v17, %s2976_s18  ;;  %v2001_v42 = vmul.f32 %v5977_v16, %v3383_v49  ;;  %v1655_v17 = vmul.f32 %v3250_v34, %v5976_v1  ;;  %v5980_v50 = vld [vmem:[#allocation36_spill] sm:$0xff] }
 0x2fc   : > { %v4004_v52 = vpop.permute.xlu1 %1180  ;;  %v4006_v40 = vpop.permute.xlu0 %1459 }
 0x2fd   : > { %5974 = vst [vmem:[#allocation144_spill] sm:$0xff] %v4004_v52  ;;  %5975 = vst [vmem:[#allocation145_spill] sm:$0xff] %v4006_v40  ;;  %v2003_v40 = vmul.f32 %v5980_v50, %v3383_v49 }
 0x2fe   : > { %1661 = vrot.lane.b32.xlu1 %v1653_v5, %s2976_s18  ;;  %2009 = vrot.lane.b32.xlu0 %v2001_v42, %s2976_s18  ;;  %v1679_v42 = vmul.f32 %v5945_v0, %v3584_v10  ;;  %v5983_v5 = vld [vmem:[#allocation7_spill] sm:$0xff] }
 0x300   : > { %v4014_v9 = vpop.permute.xlu1 %1184  ;;  %v4016_v61 = vpop.permute.xlu0 %1481 }
 0x301   : > { %5978 = vst [vmem:[#allocation146_spill] sm:$0xff] %v4014_v9  ;;  %5979 = vst [vmem:[#allocation147_spill] sm:$0xff] %v4016_v61  ;;  %v2027_v9 = vmul.f32 %v5983_v5, %v5925_v62 }
 0x302   : > { %1665 = vrot.lane.b32.xlu1 %v1655_v17, %s2976_s18  ;;  %2013 = vrot.lane.b32.xlu0 %v2003_v40, %s2976_s18  ;;  %v1681_v40 = vmul.f32 %v3511_v58, %v3584_v10  ;;  %v5986_v17 = vld [vmem:[#allocation37_spill] sm:$0xff] }
 0x304   : > { %v4024_v52 = vpop.permute.xlu1 %1214  ;;  %v4026_v39 = vpop.permute.xlu0 %1485 }
 0x305   : > { %5981 = vst [vmem:[#allocation148_spill] sm:$0xff] %v4024_v52  ;;  %5982 = vst [vmem:[#allocation149_spill] sm:$0xff] %v4026_v39  ;;  %v2029_v52 = vmul.f32 %v5986_v17, %v5925_v62 }
 0x306   : > { %1687 = vrot.lane.b32.xlu1 %v1679_v42, %s2976_s18  ;;  %2035 = vrot.lane.b32.xlu0 %v2027_v9, %s2976_s18  ;;  %v1705_v9 = vmul.f32 %v3525_v11, %v3364_v51  ;;  %v5989_v42 = vld [vmem:[#allocation38_spill] sm:$0xff] }
 0x308   : > { %v4034_v61 = vpop.permute.xlu1 %1216  ;;  %v4036_v34 = vpop.permute.xlu0 %1507 }
 0x309   : > { %5984 = vst [vmem:[#allocation150_spill] sm:$0xff] %v4034_v61  ;;  %5985 = vst [vmem:[#allocation151_spill] sm:$0xff] %v4036_v34  ;;  %v2053_v61 = vmul.f32 %v5989_v42, %v5932_v15 }
 0x30a   : > { %1691 = vrot.lane.b32.xlu1 %v1681_v40, %s2976_s18  ;;  %2039 = vrot.lane.b32.xlu0 %v2029_v52, %s2976_s18  ;;  %v1707_v52 = vmul.f32 %v5953_v60, %v3364_v51  ;;  %v5992_v40 = vld [vmem:[#allocation8_spill] sm:$0xff] }
 0x30c   : > { %v4044_v39 = vpop.permute.xlu1 %1220  ;;  %v4046_v0 = vpop.permute.xlu0 %1511 }
 0x30d   : > { %5987 = vst [vmem:[#allocation152_spill] sm:$0xff] %v4044_v39  ;;  %5988 = vst [vmem:[#allocation153_spill] sm:$0xff] %v4046_v0  ;;  %v2055_v39 = vmul.f32 %v5992_v40, %v5932_v15 }
 0x30e   : > { %1713 = vrot.lane.b32.xlu1 %v1705_v9, %s2976_s18  ;;  %2061 = vrot.lane.b32.xlu0 %v2053_v61, %s2976_s18  ;;  %v1731_v61 = vmul.f32 %v3256_v12, %v3622_v59  ;;  %v5995_v9 = vld [vmem:[#allocation39_spill] sm:$0xff] }
 0x310   : > { %v4054_v34 = vpop.permute.xlu1 %1248  ;;  %v4056_v58 = vpop.permute.xlu0 %1533 }
 0x311   : > { %5990 = vst [vmem:[#allocation154_spill] sm:$0xff] %v4054_v34  ;;  %5991 = vst [vmem:[#allocation155_spill] sm:$0xff] %v4056_v58  ;;  %v2079_v34 = vmul.f32 %v5995_v9, %v5938_v35 }
 0x312   : > { %1717 = vrot.lane.b32.xlu1 %v1707_v52, %s2976_s18  ;;  %2065 = vrot.lane.b32.xlu0 %v2055_v39, %s2976_s18  ;;  %v1733_v39 = vmul.f32 %v3545_v32, %v3622_v59  ;;  %v5998_v52 = vld [vmem:[#allocation40_spill] sm:$0xff] }
 0x314   : > { %v4064_v0 = vpop.permute.xlu1 %1252  ;;  %v4066_v11 = vpop.permute.xlu0 %1537 }
 0x315   : > { %5993 = vst [vmem:[#allocation156_spill] sm:$0xff] %v4064_v0  ;;  %5994 = vst [vmem:[#allocation157_spill] sm:$0xff] %v4066_v11  ;;  %v2081_v0 = vmul.f32 %v5998_v52, %v5938_v35 }
 0x316   : > { %1739 = vrot.lane.b32.xlu1 %v1731_v61, %s2976_s18  ;;  %2087 = vrot.lane.b32.xlu0 %v2079_v34, %s2976_s18  ;;  %v1757_v34 = vmul.f32 %v3559_v24, %v3350_v63  ;;  %v2105_v61 = vmul.f32 %v3229_v26, %v5944_v3 }
 0x318   : > { %v4074_v58 = vpop.permute.xlu1 %1375  ;;  %v4076_v60 = vpop.permute.xlu0 %1559 }
 0x319   : > { %5996 = vst [vmem:[#allocation158_spill] sm:$0xff] %v4074_v58  ;;  %5997 = vst [vmem:[#allocation159_spill] sm:$0xff] %v4076_v60 }
 0x31a   : > { %1743 = vrot.lane.b32.xlu1 %v1733_v39, %s2976_s18  ;;  %2091 = vrot.lane.b32.xlu0 %v2081_v0, %s2976_s18  ;;  %v1759_v0 = vmul.f32 %v3258_v36, %v3350_v63  ;;  %v2107_v39 = vmul.f32 %v3304_v18, %v5944_v3 }
 0x31c   : > { %v4084_v11 = vpop.permute.xlu1 %1379  ;;  %v4086_v12 = vpop.permute.xlu0 %1563 }
 0x31d   : > { %5999 = vst [vmem:[#allocation160_spill] sm:$0xff] %v4084_v11  ;;  %6000 = vst [vmem:[#allocation161_spill] sm:$0xff] %v4086_v12 }
 0x31e   : > { %1765 = vrot.lane.b32.xlu1 %v1757_v34, %s2977_s19  ;;  %2113 = vrot.lane.b32.xlu0 %v2105_v61, %s2976_s18  ;;  %v1783_v34 = vmul.f32 %v3260_v37, %v3383_v49  ;;  %v2131_v61 = vmul.f32 %v3306_v19, %v5950_v38 }
 0x320   : > { %v4094_v60 = vpop.permute.xlu1 %1401  ;;  %v4096_v58 = vpop.permute.xlu0 %1585 }
 0x321   : > { %6001 = vst [vmem:[#allocation162_spill] sm:$0xff] %v4094_v60  ;;  %6002 = vst [vmem:[#allocation163_spill] sm:$0xff] %v4096_v58 }
 0x322   : > { %1769 = vrot.lane.b32.xlu1 %v1759_v0, %s2977_s19  ;;  %2117 = vrot.lane.b32.xlu0 %v2107_v39, %s2976_s18  ;;  %v1785_v0 = vmul.f32 %v3578_v8, %v3383_v49  ;;  %v2133_v39 = vmul.f32 %v3233_v27, %v5950_v38 }
 0x324   : > { %v4104_v12 = vpop.permute.xlu1 %1405  ;;  %v4106_v11 = vpop.permute.xlu0 %1589 }
 0x325   : > { %6003 = vst [vmem:[#allocation164_spill] sm:$0xff] %v4104_v12  ;;  %6004 = vst [vmem:[#allocation165_spill] sm:$0xff] %v4106_v11 }
 0x326   : > { %1791 = vrot.lane.b32.xlu1 %v1783_v34, %s2977_s19  ;;  %2139 = vrot.lane.b32.xlu0 %v2131_v61, %s2976_s18  ;;  %v1809_v34 = vmul.f32 %v3592_v14, %v5925_v62  ;;  %v2157_v61 = vmul.f32 %v3308_v20, %v5956_v4 }
 0x328   : > { %v4114_v58 = vpop.permute.xlu1 %1427  ;;  %v4116_v60 = vpop.permute.xlu0 %1611 }
 0x329   : > { %6005 = vst [vmem:[#allocation166_spill] sm:$0xff] %v4114_v58  ;;  %6006 = vst [vmem:[#allocation167_spill] sm:$0xff] %v4116_v60 }
 0x32a   : > { %1795 = vrot.lane.b32.xlu1 %v1785_v0, %s2977_s19  ;;  %2143 = vrot.lane.b32.xlu0 %v2133_v39, %s2976_s18  ;;  %v1976_v0 = vmul.f32 %v5970_v45, %v3354_v43  ;;  %v2159_v39 = vmul.f32 %v3310_v21, %v5956_v4 }
 0x32c   : > { %v4124_v11 = vpop.permute.xlu1 %1431  ;;  %v4126_v12 = vpop.permute.xlu0 %1615 }
 0x32d   : > { %6007 = vst [vmem:[#allocation168_spill] sm:$0xff] %v4124_v11  ;;  %6008 = vst [vmem:[#allocation169_spill] sm:$0xff] %v4126_v12 }
 0x32e   : > { %1817 = vrot.lane.b32.xlu1 %v1809_v34, %s2977_s19  ;;  %2165 = vrot.lane.b32.xlu0 %v2157_v61, %s2976_s18  ;;  %v1978_v34 = vmul.f32 %v5973_v41, %v3354_v43  ;;  %v2183_v61 = vmul.f32 %v3236_v28, %v5961_v33 }
 0x330   : > { %v4134_v60 = vpop.permute.xlu1 %1453  ;;  %v4136_v58 = vpop.permute.xlu0 %1637 }
 0x331   : > { %6009 = vst [vmem:[#allocation170_spill] sm:$0xff] %v4134_v60  ;;  %6010 = vst [vmem:[#allocation171_spill] sm:$0xff] %v4136_v58 }
 0x332   : > { %1985 = vrot.lane.b32.xlu1 %v1976_v0, %s2976_s18  ;;  %2169 = vrot.lane.b32.xlu0 %v2159_v39, %s2976_s18  ;;  %v2002_v0 = vmul.f32 %v5977_v16, %v3387_v7  ;;  %v2185_v39 = vmul.f32 %v3312_v22, %v5961_v33 }
 0x334   : > { %v4144_v12 = vpop.permute.xlu1 %1457  ;;  %v4146_v11 = vpop.permute.xlu0 %1641 }
 0x335   : > { %6011 = vst [vmem:[#allocation172_spill] sm:$0xff] %v4144_v12  ;;  %6012 = vst [vmem:[#allocation173_spill] sm:$0xff] %v4146_v11 }
 0x336   : > { %1989 = vrot.lane.b32.xlu1 %v1978_v34, %s2976_s18  ;;  %2191 = vrot.lane.b32.xlu0 %v2183_v61, %s2976_s18  ;;  %v2004_v34 = vmul.f32 %v5980_v50, %v3387_v7  ;;  %v2209_v61 = vmul.f32 %v3318_v2, %v3618_v13 }
 0x338   : > { %v4154_v58 = vpop.permute.xlu1 %1479  ;;  %v4156_v60 = vpop.permute.xlu0 %1663 }
 0x339   : > { %6013 = vst [vmem:[#allocation174_spill] sm:$0xff] %v4154_v58  ;;  %6014 = vst [vmem:[#allocation175_spill] sm:$0xff] %v4156_v60 }
 0x33a   : > { %2011 = vrot.lane.b32.xlu1 %v2002_v0, %s2976_s18  ;;  %2195 = vrot.lane.b32.xlu0 %v2185_v39, %s2976_s18  ;;  %v2028_v0 = vmul.f32 %v5983_v5, %v3423_v56  ;;  %v2211_v39 = vmul.f32 %v3238_v29, %v3618_v13 }
 0x33c   : > { %v4164_v11 = vpop.permute.xlu1 %1483  ;;  %v4166_v12 = vpop.permute.xlu0 %1667 }
 0x33d   : > { %6015 = vst [vmem:[#allocation176_spill] sm:$0xff] %v4164_v11  ;;  %6016 = vst [vmem:[#allocation177_spill] sm:$0xff] %v4166_v12 }
 0x33e   : > { %2015 = vrot.lane.b32.xlu1 %v2004_v34, %s2976_s18  ;;  %2217 = vrot.lane.b32.xlu0 %v2209_v61, %s2976_s18  ;;  %v2030_v34 = vmul.f32 %v5986_v17, %v3423_v56  ;;  %v2235_v61 = vmul.f32 %v3356_v44, %v3551_v46 }
 0x340   : > { %v4174_v60 = vpop.permute.xlu1 %1505  ;;  %v4176_v58 = vpop.permute.xlu0 %1689 }
 0x341   : > { %6017 = vst [vmem:[#allocation178_spill] sm:$0xff] %v4174_v60  ;;  %6018 = vst [vmem:[#allocation179_spill] sm:$0xff] %v4176_v58 }
 0x342   : > { %2037 = vrot.lane.b32.xlu1 %v2028_v0, %s2976_s18  ;;  %2221 = vrot.lane.b32.xlu0 %v2211_v39, %s2976_s18  ;;  %v2054_v0 = vmul.f32 %v5989_v42, %v3427_v23  ;;  %v2237_v39 = vmul.f32 %v3379_v48, %v3551_v46 }
 0x344   : > { %v4184_v12 = vpop.permute.xlu1 %1509  ;;  %v4186_v11 = vpop.permute.xlu0 %1693 }
 0x345   : > { %6019 = vst [vmem:[#allocation180_spill] sm:$0xff] %v4184_v12  ;;  %6020 = vst [vmem:[#allocation181_spill] sm:$0xff] %v4186_v11 }
 0x346   : > { %2041 = vrot.lane.b32.xlu1 %v2030_v34, %s2976_s18  ;;  %2243 = vrot.lane.b32.xlu0 %v2235_v61, %s2976_s18  ;;  %v2056_v34 = vmul.f32 %v5992_v40, %v3427_v23  ;;  %v2261_v61 = vmul.f32 %v3240_v30, %v5976_v1 }
 0x348   : > { %v4194_v58 = vpop.permute.xlu1 %1531  ;;  %v4196_v60 = vpop.permute.xlu0 %1715 }
 0x349   : > { %6021 = vst [vmem:[#allocation182_spill] sm:$0xff] %v4194_v58  ;;  %6022 = vst [vmem:[#allocation183_spill] sm:$0xff] %v4196_v60 }
 0x34a   : > { %2063 = vrot.lane.b32.xlu1 %v2054_v0, %s2976_s18  ;;  %2247 = vrot.lane.b32.xlu0 %v2237_v39, %s2976_s18  ;;  %v2080_v0 = vmul.f32 %v5995_v9, %v3480_v6  ;;  %v2263_v39 = vmul.f32 %v3402_v55, %v5976_v1 }
 0x34c   : > { %v4204_v11 = vpop.permute.xlu1 %1535  ;;  %v4206_v12 = vpop.permute.xlu0 %1719 }
 0x34d   : > { %6023 = vst [vmem:[#allocation184_spill] sm:$0xff] %v4204_v11  ;;  %6024 = vst [vmem:[#allocation185_spill] sm:$0xff] %v4206_v12 }
 0x34e   : > { %2067 = vrot.lane.b32.xlu1 %v2056_v34, %s2976_s18  ;;  %2269 = vrot.lane.b32.xlu0 %v2261_v61, %s2976_s18  ;;  %v2082_v34 = vmul.f32 %v5998_v52, %v3480_v6  ;;  %v2287_v61 = vmul.f32 %v3419_v47, %v3584_v10 }
 0x350   : > { %v4214_v60 = vpop.permute.xlu1 %1557  ;;  %v4216_v58 = vpop.permute.xlu0 %1741 }
 0x351   : > { %6025 = vst [vmem:[#allocation186_spill] sm:$0xff] %v4214_v60  ;;  %6026 = vst [vmem:[#allocation187_spill] sm:$0xff] %v4216_v58 }
 0x352   : > { %2089 = vrot.lane.b32.xlu1 %v2080_v0, %s2976_s18  ;;  %2273 = vrot.lane.b32.xlu0 %v2263_v39, %s2976_s18  ;;  %v2106_v0 = vmul.f32 %v3229_v26, %v3461_v54  ;;  %v2289_v39 = vmul.f32 %v3242_v31, %v3584_v10 }
 0x354   : > { %v4224_v12 = vpop.permute.xlu1 %1561  ;;  %v4226_v11 = vpop.permute.xlu0 %1745 }
 0x355   : > { %6027 = vst [vmem:[#allocation188_spill] sm:$0xff] %v4224_v12  ;;  %6028 = vst [vmem:[#allocation189_spill] sm:$0xff] %v4226_v11 }
 0x356   : > { %2093 = vrot.lane.b32.xlu1 %v2082_v34, %s2976_s18  ;;  %2295 = vrot.lane.b32.xlu0 %v2287_v61, %s2976_s18  ;;  %v2108_v34 = vmul.f32 %v3304_v18, %v3461_v54  ;;  %v2313_v61 = vmul.f32 %v5919_v53, %v3364_v51 }
 0x358   : > { %v4234_v58 = vpop.permute.xlu1 %1583  ;;  %v4236_v60 = vpop.permute.xlu0 %1767 }
 0x359   : > { %6029 = vst [vmem:[#allocation190_spill] sm:$0xff] %v4234_v58  ;;  %6030 = vst [vmem:[#allocation191_spill] sm:$0xff] %v4236_v60 }
 0x35a   : > { %2115 = vrot.lane.b32.xlu1 %v2106_v0, %s2976_s18  ;;  %2299 = vrot.lane.b32.xlu0 %v2289_v39, %s2976_s18  ;;  %v2132_v0 = vmul.f32 %v3306_v19, %v3539_v25  ;;  %v2315_v39 = vmul.f32 %v5922_v57, %v3364_v51 }
 0x35c   : > { %v4244_v11 = vpop.permute.xlu1 %1587  ;;  %v4246_v12 = vpop.permute.xlu0 %1771 }
 0x35d   : > { %6031 = vst [vmem:[#allocation192_spill] sm:$0xff] %v4244_v11  ;;  %6032 = vst [vmem:[#allocation193_spill] sm:$0xff] %v4246_v12 }
 0x35e   : > { %2119 = vrot.lane.b32.xlu1 %v2108_v34, %s2976_s18  ;;  %2321 = vrot.lane.b32.xlu0 %v2313_v61, %s2976_s18  ;;  %v2134_v34 = vmul.f32 %v3233_v27, %v3539_v25  ;;  %v6037_v61 = vld [vmem:[#allocation59_spill] sm:$0xff] }
 0x360   : > { %v4254_v60 = vpop.permute.xlu1 %1609  ;;  %v4256_v58 = vpop.permute.xlu0 %1793 }
 0x361   : > { %6033 = vst [vmem:[#allocation194_spill] sm:$0xff] %v4254_v60  ;;  %6034 = vst [vmem:[#allocation195_spill] sm:$0xff] %v4256_v58  ;;  %v2339_v58 = vmul.f32 %v6037_v61, %v3622_v59 }
 0x362   : > { %2141 = vrot.lane.b32.xlu1 %v2132_v0, %s2976_s18  ;;  %2325 = vrot.lane.b32.xlu0 %v2315_v39, %s2976_s18  ;;  %v6039_v0 = vld [vmem:[#allocation64_spill] sm:$0xff] }
 0x363   : > { %v2158_v39 = vmul.f32 %v3308_v20, %v6039_v0 }
 0x364   : > { %v4264_v12 = vpop.permute.xlu1 %1613  ;;  %v4266_v11 = vpop.permute.xlu0 %1797 }
 0x365   : > { %6035 = vst [vmem:[#allocation196_spill] sm:$0xff] %v4264_v12  ;;  %6036 = vst [vmem:[#allocation197_spill] sm:$0xff] %v4266_v11  ;;  %v6040_v12 = vld [vmem:[#allocation14_spill] sm:$0xff] }
 0x366   : > { %2145 = vrot.lane.b32.xlu1 %v2134_v34, %s2976_s18  ;;  %2347 = vrot.lane.b32.xlu0 %v2339_v58, %s2976_s18  ;;  %v2341_v11 = vmul.f32 %v6040_v12, %v3622_v59  ;;  %v2160_v58 = vmul.f32 %v3310_v21, %v6039_v0  ;;  %v6042_v34 = vld [vmem:[#allocation15_spill] sm:$0xff] }
 0x368   : > { %v4274_v60 = vpop.permute.xlu1 %1635  ;;  %v4276_v18 = vpop.permute.xlu0 %1983 }
 0x369   : > { %6038 = vst [vmem:[#allocation59_spill] sm:$0xff] %v4274_v60  ;;  %v2365_v60 = vmul.f32 %v6042_v34, %v3350_v63 }
 0x36a   : > { %2167 = vrot.lane.b32.xlu1 %v2158_v39, %s2976_s18  ;;  %2351 = vrot.lane.b32.xlu0 %v2341_v11, %s2976_s18  ;;  %v6044_v39 = vld [vmem:[#allocation76_spill] sm:$0xff] }
 0x36b   : > { %v2184_v11 = vmul.f32 %v3236_v28, %v6044_v39 }
 0x36c   : > { %v4284_v27 = vpop.permute.xlu1 %1639  ;;  %v4286_v19 = vpop.permute.xlu0 %1987 }
 0x36d   : > { %6041 = vst [vmem:[#allocation14_spill] sm:$0xff] %v4284_v27  ;;  %v6045_v27 = vld [vmem:[#allocation60_spill] sm:$0xff] }
 0x36e   : > { %2171 = vrot.lane.b32.xlu1 %v2160_v58, %s2976_s18  ;;  %2373 = vrot.lane.b32.xlu0 %v2365_v60, %s2977_s19  ;;  %v2367_v52 = vmul.f32 %v6045_v27, %v3350_v63  ;;  %v2186_v60 = vmul.f32 %v3312_v22, %v6044_v39  ;;  %v6047_v58 = vld [vmem:[#allocation63_spill] sm:$0xff] }
 0x370   : > { %v4294_v20 = vpop.permute.xlu1 %1661  ;;  %v4296_v26 = vpop.permute.xlu0 %2009 }
 0x371   : > { %6043 = vst [vmem:[#allocation15_spill] sm:$0xff] %v4294_v20  ;;  %v2391_v20 = vmul.f32 %v6047_v58, %v3383_v49 }
 0x372   : > { %2193 = vrot.lane.b32.xlu1 %v2184_v11, %s2976_s18  ;;  %2377 = vrot.lane.b32.xlu0 %v2367_v52, %s2977_s19  ;;  %v6049_v11 = vld [vmem:[#allocation69_spill] sm:$0xff] }
 0x373   : > { %v2210_v52 = vmul.f32 %v3318_v2, %v6049_v11 }
 0x374   : > { %v4304_v21 = vpop.permute.xlu1 %1665  ;;  %v4306_v9 = vpop.permute.xlu0 %2013 }
 0x375   : > { %6046 = vst [vmem:[#allocation60_spill] sm:$0xff] %v4304_v21  ;;  %v6050_v21 = vld [vmem:[#allocation16_spill] sm:$0xff] }
 0x376   : > { %2197 = vrot.lane.b32.xlu1 %v2186_v60, %s2976_s18  ;;  %2399 = vrot.lane.b32.xlu0 %v2391_v20, %s2977_s19  ;;  %v2393_v42 = vmul.f32 %v6050_v21, %v3383_v49  ;;  %v2212_v20 = vmul.f32 %v3238_v29, %v6049_v11  ;;  %v6052_v60 = vld [vmem:[#allocation17_spill] sm:$0xff] }
 0x378   : > { %v4314_v28 = vpop.permute.xlu1 %1687  ;;  %v4316_v40 = vpop.permute.xlu0 %2035 }
 0x379   : > { %6048 = vst [vmem:[#allocation63_spill] sm:$0xff] %v4314_v28  ;;  %v2417_v28 = vmul.f32 %v6052_v60, %v5925_v62 }
 0x37a   : > { %2219 = vrot.lane.b32.xlu1 %v2210_v52, %s2976_s18  ;;  %2403 = vrot.lane.b32.xlu0 %v2393_v42, %s2977_s19  ;;  %v6054_v52 = vld [vmem:[#allocation82_spill] sm:$0xff] }
 0x37b   : > { %v2236_v42 = vmul.f32 %v3356_v44, %v6054_v52 }
 0x37c   : > { %v4324_v22 = vpop.permute.xlu1 %1691  ;;  %v4326_v17 = vpop.permute.xlu0 %2039 }
 0x37d   : > { %6051 = vst [vmem:[#allocation69_spill] sm:$0xff] %v4324_v22  ;;  %v6055_v22 = vld [vmem:[#allocation66_spill] sm:$0xff] }
 0x37e   : > { %2223 = vrot.lane.b32.xlu1 %v2212_v20, %s2976_s18  ;;  %2425 = vrot.lane.b32.xlu0 %v2417_v28, %s2977_s19  ;;  %v2419_v50 = vmul.f32 %v6055_v22, %v5925_v62  ;;  %v2238_v28 = vmul.f32 %v3379_v48, %v6054_v52  ;;  %v6057_v20 = vld [vmem:[#allocation68_spill] sm:$0xff] }
 0x380   : > { %v4334_v2 = vpop.permute.xlu1 %1713  ;;  %v4336_v5 = vpop.permute.xlu0 %2061 }
 0x381   : > { %6053 = vst [vmem:[#allocation16_spill] sm:$0xff] %v4334_v2  ;;  %v2443_v2 = vmul.f32 %v6057_v20, %v5932_v15 }
 0x382   : > { %2245 = vrot.lane.b32.xlu1 %v2236_v42, %s2976_s18  ;;  %2429 = vrot.lane.b32.xlu0 %v2419_v50, %s2977_s19  ;;  %v6059_v42 = vld [vmem:[#allocation73_spill] sm:$0xff] }
 0x383   : > { %v2262_v50 = vmul.f32 %v3240_v30, %v6059_v42 }
 0x384   : > { %v4344_v29 = vpop.permute.xlu1 %1717  ;;  %v4346_v16 = vpop.permute.xlu0 %2065 }
 0x385   : > { %6056 = vst [vmem:[#allocation17_spill] sm:$0xff] %v4344_v29  ;;  %v6060_v29 = vld [vmem:[#allocation18_spill] sm:$0xff] }
 0x386   : > { %2249 = vrot.lane.b32.xlu1 %v2238_v28, %s2976_s18  ;;  %2451 = vrot.lane.b32.xlu0 %v2443_v2, %s2977_s19  ;;  %v2445_v13 = vmul.f32 %v6060_v29, %v5932_v15  ;;  %v2264_v2 = vmul.f32 %v3402_v55, %v6059_v42  ;;  %v6062_v28 = vld [vmem:[#allocation19_spill] sm:$0xff] }
 0x388   : > { %v4354_v44 = vpop.permute.xlu1 %1739  ;;  %v4356_v41 = vpop.permute.xlu0 %2087 }
 0x389   : > { %6058 = vst [vmem:[#allocation82_spill] sm:$0xff] %v4354_v44  ;;  %v2469_v44 = vmul.f32 %v6062_v28, %v5938_v35 }
 0x38a   : > { %2271 = vrot.lane.b32.xlu1 %v2262_v50, %s2976_s18  ;;  %2455 = vrot.lane.b32.xlu0 %v2445_v13, %s2977_s19  ;;  %v6064_v50 = vld [vmem:[#allocation49_spill] sm:$0xff] }
 0x38b   : > { %v2288_v13 = vmul.f32 %v3419_v47, %v6064_v50 }
 0x38c   : > { %v4364_v48 = vpop.permute.xlu1 %1743  ;;  %v4366_v45 = vpop.permute.xlu0 %2091 }
 0x38d   : > { %6061 = vst [vmem:[#allocation66_spill] sm:$0xff] %v4364_v48  ;;  %v2471_v48 = vmul.f32 %v3545_v32, %v5938_v35 }
 0x38e   : > { %2275 = vrot.lane.b32.xlu1 %v2264_v2, %s2976_s18  ;;  %2477 = vrot.lane.b32.xlu0 %v2469_v44, %s2977_s19  ;;  %v2290_v44 = vmul.f32 %v3242_v31, %v6064_v50  ;;  %v2495_v2 = vmul.f32 %v3559_v24, %v5944_v3 }
 0x390   : > { %v4374_v30 = vpop.permute.xlu1 %1765  ;;  %v4376_v33 = vpop.permute.xlu0 %2113 }
 0x391   : > { %6063 = vst [vmem:[#allocation68_spill] sm:$0xff] %v4374_v30 }
 0x392   : > { %2297 = vrot.lane.b32.xlu1 %v2288_v13, %s2976_s18  ;;  %2481 = vrot.lane.b32.xlu0 %v2471_v48, %s2977_s19  ;;  %v6067_v13 = vld [vmem:[#allocation77_spill] sm:$0xff] }
 0x393   : > { %v2314_v48 = vmul.f32 %v5919_v53, %v6067_v13 }
 0x394   : > { %v4384_v55 = vpop.permute.xlu1 %1769  ;;  %v4386_v63 = vpop.permute.xlu0 %2117 }
 0x395   : > { %6065 = vst [vmem:[#allocation18_spill] sm:$0xff] %v4384_v55  ;;  %v2497_v55 = vmul.f32 %v3258_v36, %v5944_v3 }
 0x396   : > { %2301 = vrot.lane.b32.xlu1 %v2290_v44, %s2976_s18  ;;  %2503 = vrot.lane.b32.xlu0 %v2495_v2, %s2977_s19  ;;  %v2316_v44 = vmul.f32 %v5922_v57, %v6067_v13  ;;  %v1810_v2 = vmul.f32 %v3592_v14, %v3423_v56 }
 0x398   : > { %v4394_v47 = vpop.permute.xlu1 %1791  ;;  %v4396_v30 = vpop.permute.xlu0 %2139 }
 0x399   : > { %6066 = vst [vmem:[#allocation19_spill] sm:$0xff] %v4394_v47 }
 0x39a   : > { %2323 = vrot.lane.b32.xlu1 %v2314_v48, %s2976_s18  ;;  %2507 = vrot.lane.b32.xlu0 %v2497_v55, %s2977_s19  ;;  %v6072_v48 = vld [vmem:[#allocation50_spill] sm:$0xff] }
 0x39b   : > { %v2340_v55 = vmul.f32 %v6037_v61, %v6072_v48 }
 0x39c   : > { %v4404_v31 = vpop.permute.xlu1 %1795  ;;  %v4406_v49 = vpop.permute.xlu0 %2143 }
 0x39d   : > { %6068 = vst [vmem:[#allocation198_spill] sm:$0xff] %v4404_v31  ;;  %6069 = vst [vmem:[#allocation199_spill] sm:$0xff] %v4406_v49  ;;  %v6073_v31 = vld [vmem:[#allocation20_spill] sm:$0xff]  ;;  %v6089_v49 = vld [vmem:[#allocation25_spill] sm:$0xff] }
 0x39e   : > { %2327 = vrot.lane.b32.xlu1 %v2316_v44, %s2976_s18  ;;  %1819 = vrot.lane.b32.xlu0 %v1810_v2, %s2977_s19  ;;  %v1812_v3 = vmul.f32 %v6073_v31, %v3423_v56  ;;  %v2342_v44 = vmul.f32 %v6040_v12, %v6072_v48  ;;  %v2522_v2 = vmul.f32 %v3260_v37, %v3539_v25 }
 0x3a0   : > { %v4414_v53 = vpop.permute.xlu1 %1817  ;;  %v4416_v47 = vpop.permute.xlu0 %2165 }
 0x3a1   : > { %6070 = vst [vmem:[#allocation200_spill] sm:$0xff] %v4414_v53  ;;  %6071 = vst [vmem:[#allocation201_spill] sm:$0xff] %v4416_v47 }
 0x3a2   : > { %2349 = vrot.lane.b32.xlu1 %v2340_v55, %s2976_s18  ;;  %1823 = vrot.lane.b32.xlu0 %v1812_v3, %s2977_s19  ;;  %v2366_v3 = vmul.f32 %v6042_v34, %v3354_v43  ;;  %v2524_v55 = vmul.f32 %v3578_v8, %v3539_v25 }
 0x3a4   : > { %v4424_v57 = vpop.permute.xlu1 %1985  ;;  %v4426_v35 = vpop.permute.xlu0 %2169 }
 0x3a5   : > { %6074 = vst [vmem:[#allocation50_spill] sm:$0xff] %v4426_v35  ;;  %v6090_v35 = vld [vmem:[#allocation26_spill] sm:$0xff] }
 0x3a6   : > { %2353 = vrot.lane.b32.xlu1 %v2342_v44, %s2976_s18  ;;  %2531 = vrot.lane.b32.xlu0 %v2522_v2, %s2977_s19  ;;  %v2368_v44 = vmul.f32 %v6045_v27, %v3354_v43  ;;  %v6077_v2 = vld [vmem:[#allocation21_spill] sm:$0xff] }
 0x3a8   : > { %v4434_v61 = vpop.permute.xlu1 %1989  ;;  %v4436_v53 = vpop.permute.xlu0 %2191 }
 0x3a9   : > { %6075 = vst [vmem:[#allocation20_spill] sm:$0xff] %v4436_v53  ;;  %v1836_v53 = vmul.f32 %v6077_v2, %v3427_v23 }
 0x3aa   : > { %2375 = vrot.lane.b32.xlu1 %v2366_v3, %s2977_s19  ;;  %2535 = vrot.lane.b32.xlu0 %v2524_v55, %s2977_s19  ;;  %v2392_v3 = vmul.f32 %v6047_v58, %v3387_v7  ;;  %v6079_v55 = vld [vmem:[#allocation78_spill] sm:$0xff] }
 0x3ac   : > { %v4444_v12 = vpop.permute.xlu1 %2011  ;;  %v4446_v4 = vpop.permute.xlu0 %2195 }
 0x3ad   : > { %6076 = vst [vmem:[#allocation202_spill] sm:$0xff] %v4446_v4  ;;  %v1838_v4 = vmul.f32 %v6079_v55, %v3427_v23 }
 0x3ae   : > { %2379 = vrot.lane.b32.xlu1 %v2368_v44, %s2977_s19  ;;  %1845 = vrot.lane.b32.xlu0 %v1836_v53, %s2977_s19  ;;  %v2394_v53 = vmul.f32 %v6050_v21, %v3387_v7  ;;  %v2548_v44 = vmul.f32 %v3592_v14, %v6039_v0 }
 0x3b0   : > { %v4454_v34 = vpop.permute.xlu1 %2015  ;;  %v4456_v25 = vpop.permute.xlu0 %2217 }
 0x3b1   : > { %6078 = vst [vmem:[#allocation203_spill] sm:$0xff] %v4456_v25 }
 0x3b2   : > { %2401 = vrot.lane.b32.xlu1 %v2392_v3, %s2977_s19  ;;  %1849 = vrot.lane.b32.xlu0 %v1838_v4, %s2977_s19  ;;  %v2418_v4 = vmul.f32 %v6052_v60, %v3423_v56  ;;  %v2550_v3 = vmul.f32 %v6073_v31, %v6039_v0 }
 0x3b4   : > { %v4464_v27 = vpop.permute.xlu1 %2037  ;;  %v4466_v43 = vpop.permute.xlu0 %2221 }
 0x3b5   : > { %6080 = vst [vmem:[#allocation204_spill] sm:$0xff] %v4466_v43 }
 0x3b6   : > { %2405 = vrot.lane.b32.xlu1 %v2394_v53, %s2977_s19  ;;  %2557 = vrot.lane.b32.xlu0 %v2548_v44, %s2977_s19  ;;  %v2420_v53 = vmul.f32 %v6055_v22, %v3423_v56  ;;  %v6083_v44 = vld [vmem:[#allocation80_spill] sm:$0xff] }
 0x3b7   : > { %v6086_v22 = vld [vmem:[#allocation24_spill] sm:$0xff] }
 0x3b8   : > { %v4474_v58 = vpop.permute.xlu1 %2041  ;;  %v4476_v25 = vpop.permute.xlu0 %2243  ;;  %v1935_v56 = vmul.f32 %v3551_v46, %v6086_v22 }
 0x3b9   : > { %6081 = vst [vmem:[#allocation205_spill] sm:$0xff] %v4476_v25  ;;  %v1862_v25 = vmul.f32 %v6083_v44, %v3480_v6 }
 0x3ba   : > { %2427 = vrot.lane.b32.xlu1 %v2418_v4, %s2977_s19  ;;  %2561 = vrot.lane.b32.xlu0 %v2550_v3, %s2977_s19  ;;  %v2444_v4 = vmul.f32 %v6057_v20, %v3427_v23  ;;  %v6085_v3 = vld [vmem:[#allocation22_spill] sm:$0xff]  ;;  %v2446_v20 = vmul.f32 %v6060_v29, %v3427_v23  ;;  %v1946_v29 = vmul.f32 %v6059_v42, %v6090_v35 }
 0x3bb   : > { %v1937_v23 = vmul.f32 %v3551_v46, %v6089_v49 }
 0x3bc   : > { %v4484_v21 = vpop.permute.xlu1 %2063  ;;  %v4486_v7 = vpop.permute.xlu0 %2247 }
 0x3bd   : > { %6082 = vst [vmem:[#allocation206_spill] sm:$0xff] %v4486_v7  ;;  %v1864_v7 = vmul.f32 %v6085_v3, %v3480_v6 }
 0x3be   : > { %2431 = vrot.lane.b32.xlu1 %v2420_v53, %s2977_s19  ;;  %1871 = vrot.lane.b32.xlu0 %v1862_v25, %s2977_s19  ;;  %v6087_v53 = vld [vmem:[#allocation6_spill] sm:$0xff] }
 0x3bf   : > { %v1943_v25 = vmul.f32 %v5976_v1, %v6087_v53 }
 0x3c0   : > { %v4494_v60 = vpop.permute.xlu1 %2067  ;;  %v4496_v0 = vpop.permute.xlu0 %2269 }
 0x3c1   : > { %6084 = vst [vmem:[#allocation80_spill] sm:$0xff] %v4496_v0  ;;  %v2574_v0 = vmul.f32 %v6077_v2, %v6044_v39  ;;  %v1947_v15 = vadd.f32 %v1943_v25, %v1935_v56  ;;  %v2576_v56 = vmul.f32 %v6079_v55, %v6044_v39  ;;  %v6092_v25 = vld [vmem:[#allocation27_spill] sm:$0xff] }
 0x3c2   : > { %2453 = vrot.lane.b32.xlu1 %v2444_v4, %s2977_s19  ;;  %1875 = vrot.lane.b32.xlu0 %v1864_v7, %s2977_s19  ;;  %v1936_v4 = vmul.f32 %v6054_v52, %v6086_v22  ;;  %v1944_v7 = vmul.f32 %v6059_v42, %v6087_v53  ;;  %v1945_v22 = vmul.f32 %v5976_v1, %v6090_v35  ;;  %v6094_v39 = vld [vmem:[#allocation23_spill] sm:$0xff] }
 0x3c3   : > { %v1951_v53 = vmul.f32 %v3584_v10, %v6092_v25  ;;  %v1888_v55 = vmul.f32 %v6094_v39, %v3461_v54  ;;  %v1952_v47 = vmul.f32 %v6064_v50, %v6092_v25 }
 0x3c4   : > { %v4508_v43 = vpop.permute.xlu1 %2089  ;;  %v4510_v14 = vpop.permute.xlu0 %2273  ;;  %v1948_v42 = vadd.f32 %v1944_v7, %v1936_v4  ;;  %v6096_v4 = vld [vmem:[#allocation29_spill] sm:$0xff] }
 0x3c5   : > { %6088 = vst [vmem:[#allocation22_spill] sm:$0xff] %v4510_v14  ;;  %v1938_v14 = vmul.f32 %v6054_v52, %v6089_v49  ;;  %v1955_v1 = vadd.f32 %v1951_v53, %v1947_v15  ;;  %v1949_v49 = vadd.f32 %v1945_v22, %v1937_v23 }
 0x3c6   : > { %2457 = vrot.lane.b32.xlu1 %v2446_v20, %s2977_s19  ;;  %2583 = vrot.lane.b32.xlu0 %v2574_v0, %s2977_s19  ;;  %v2470_v0 = vmul.f32 %v6062_v28, %v3480_v6  ;;  %v2472_v28 = vmul.f32 %v3545_v32, %v3480_v6  ;;  %v1956_v32 = vadd.f32 %v1952_v47, %v1948_v42 }
 0x3c7   : > { %v1950_v46 = vadd.f32 %v1946_v29, %v1938_v14  ;;  %v1959_v14 = vmul.f32 %v3364_v51, %v6096_v4  ;;  %v1991_v42 = vsel %vm745_vm15, %v4276_v18, %v4424_v57  ;;  %v2017_v18 = vsel %vm745_vm15, %v4296_v26, %v4444_v12 }
 0x3c8   : > { %v4530_v2 = vpop.permute.xlu1 %2093  ;;  %v4532_v20 = vpop.permute.xlu0 %2295 }
 0x3c9   : > { %6091 = vst [vmem:[#allocation207_spill] sm:$0xff] %v4532_v20  ;;  %v1963_v22 = vadd.f32 %v1959_v14, %v1955_v1 }
 0x3ca   : > { %2479 = vrot.lane.b32.xlu1 %v2470_v0, %s2977_s19  ;;  %2587 = vrot.lane.b32.xlu0 %v2576_v56, %s2977_s19  ;;  %v6095_v0 = vld [vmem:[#allocation28_spill] sm:$0xff] }
 0x3cb   : > { %v1954_v56 = vmul.f32 %v6064_v50, %v6095_v0  ;;  %v1953_v23 = vmul.f32 %v3584_v10, %v6095_v0  ;;  %v2496_v50 = vmul.f32 %v3559_v24, %v3461_v54  ;;  %v1960_v10 = vmul.f32 %v6067_v13, %v6096_v4 }
 0x3cc   : > { %v4542_v35 = vpop.permute.xlu1 %2115  ;;  %v4544_v20 = vpop.permute.xlu0 %2299 }
 0x3cd   : > { %6093 = vst [vmem:[#allocation208_spill] sm:$0xff] %v4544_v20  ;;  %v1958_v15 = vadd.f32 %v1954_v56, %v1950_v46  ;;  %v1957_v53 = vadd.f32 %v1953_v23, %v1949_v49  ;;  %v6098_v20 = vld [vmem:[#allocation81_spill] sm:$0xff]  ;;  %v6100_v46 = vld [vmem:[#allocation31_spill] sm:$0xff]  ;;  %v1964_v24 = vadd.f32 %v1960_v10, %v1956_v32  ;;  %v6101_v10 = vld [vmem:[#allocation32_spill] sm:$0xff] }
 0x3ce   : > { %2483 = vrot.lane.b32.xlu1 %v2472_v28, %s2977_s19  ;;  %1897 = vrot.lane.b32.xlu0 %v1888_v55, %s2977_s19  ;;  %v1890_v6 = vmul.f32 %v6098_v20, %v3461_v54  ;;  %v6099_v28 = vld [vmem:[#allocation30_spill] sm:$0xff]  ;;  %v1967_v49 = vmul.f32 %v3622_v59, %v6100_v46  ;;  %v1970_v32 = vmul.f32 %v6072_v48, %v6101_v10 }
 0x3cf   : > { %v1962_v55 = vmul.f32 %v6067_v13, %v6099_v28  ;;  %v1961_v1 = vmul.f32 %v3364_v51, %v6099_v28 }
 0x3d0   : > { %v4560_v7 = vpop.permute.xlu1 %2119  ;;  %v4562_v29 = vpop.permute.xlu0 %2321  ;;  %v1971_v56 = vadd.f32 %v1967_v49, %v1963_v22  ;;  %v1969_v22 = vmul.f32 %v3622_v59, %v6101_v10  ;;  %v2043_v49 = vsel %vm745_vm15, %v4316_v40, %v4464_v27  ;;  %v2069_v40 = vsel %vm745_vm15, %v4336_v5, %v4484_v21 }
 0x3d1   : > { %6097 = vst [vmem:[#allocation23_spill] sm:$0xff] %v4562_v29  ;;  %v1966_v47 = vadd.f32 %v1962_v55, %v1958_v15  ;;  %v1965_v14 = vadd.f32 %v1961_v1, %v1957_v53  ;;  %v2498_v29 = vmul.f32 %v3258_v36, %v3461_v54  ;;  %v1992_v55 = vsel %vm745_vm15, %v4286_v19, %v4434_v61 }
 0x3d2   : > { %2505 = vrot.lane.b32.xlu1 %v2496_v50, %s2977_s19  ;;  %1901 = vrot.lane.b32.xlu0 %v1890_v6, %s2977_s19  ;;  %v2600_v50 = vmul.f32 %v6083_v44, %v6049_v11  ;;  %v1968_v6 = vmul.f32 %v6072_v48, %v6100_v46  ;;  %v1997_v15 = vadd.f32 %v1991_v42, %v1971_v56 }
 0x3d3   : > { %v1974_v53 = vadd.f32 %v1970_v32, %v1966_v47  ;;  %v1973_v1 = vadd.f32 %v1969_v22, %v1965_v14  ;;  %v2018_v19 = vsel %vm745_vm15, %v4306_v9, %v4454_v34  ;;  %v2095_v9 = vsel %vm745_vm15, %v4356_v41, %v4508_v43 }
 0x3d4   : > { %v4581_v23 = vpop.permute.xlu1 %2141  ;;  %v4583_v13 = vpop.permute.xlu0 %2325  ;;  %v1972_v36 = vadd.f32 %v1968_v6, %v1964_v24  ;;  %v2023_v26 = vadd.f32 %v2017_v18, %v1997_v15  ;;  %v2602_v24 = vmul.f32 %v6085_v3, %v6049_v11  ;;  %v2521_v5 = vmul.f32 %v3260_v37, %v5950_v38 }
 0x3d5   : > { %v2000_v47 = vadd.f32 %v4434_v61, %v1974_v53  ;;  %v2044_v61 = vsel %vm745_vm15, %v4326_v17, %v4474_v58  ;;  %v2070_v17 = vsel %vm745_vm15, %v4346_v16, %v4494_v60  ;;  %v2121_v37 = vsel %vm745_vm15, %v4376_v33, %v4542_v35 }
 0x3d6   : > { %2509 = vrot.lane.b32.xlu1 %v2498_v29, %s2977_s19  ;;  %2609 = vrot.lane.b32.xlu0 %v2600_v50, %s2977_s19  ;;  %v1811_v29 = vmul.f32 %v6073_v31, %v5925_v62  ;;  %v1998_v14 = vadd.f32 %v4424_v57, %v1972_v36  ;;  %v1999_v50 = vadd.f32 %v1992_v55, %v1973_v1 }
 0x3d7   : > { %v2049_v6 = vadd.f32 %v2043_v49, %v2023_v26  ;;  %v2026_v32 = vadd.f32 %v4454_v34, %v2000_v47  ;;  %v2626_v34 = vmul.f32 %v6094_v39, %v6054_v52  ;;  %v2147_v16 = vsel %vm745_vm15, %v4396_v30, %v4581_v23  ;;  %v6102_v30 = vld [vmem:[#allocation201_spill] sm:$0xff] }
 0x3d8   : > { %v2146_v42 = vpop.permute.xlu1 %2145  ;;  %v4606_v56 = vpop.permute.xlu0 %2347  ;;  %v2024_v57 = vadd.f32 %v4444_v12, %v1998_v14  ;;  %v2025_v18 = vadd.f32 %v2018_v19, %v1999_v50  ;;  %v2523_v33 = vmul.f32 %v3578_v8, %v5950_v38  ;;  %v6103_v8 = vld [vmem:[#allocation50_spill] sm:$0xff] }
 0x3d9   : > { %v2075_v15 = vadd.f32 %v2069_v40, %v2049_v6  ;;  %v2052_v53 = vadd.f32 %v4474_v58, %v2026_v32  ;;  %v2096_v58 = vsel %vm745_vm15, %v4366_v45, %v4530_v2  ;;  %v2122_v45 = vsel %vm745_vm15, %v4386_v63, %v4560_v7  ;;  %v6104_v6 = vld [vmem:[#allocation199_spill] sm:$0xff] }
 0x3da   : > { %1821 = vrot.lane.b32.xlu1 %v1811_v29, %s2977_s19  ;;  %2613 = vrot.lane.b32.xlu0 %v2602_v24, %s2977_s19  ;;  %v2050_v41 = vadd.f32 %v4464_v27, %v2024_v57  ;;  %v2051_v12 = vadd.f32 %v2044_v61, %v2025_v18  ;;  %v2148_v32 = vsel %vm745_vm15, %v6104_v6, %v2146_v42  ;;  %v6105_v57 = vld [vmem:[#allocation57_spill] sm:$0xff] }
 0x3db   : > { %v2101_v55 = vadd.f32 %v2095_v9, %v2075_v15  ;;  %v2078_v49 = vadd.f32 %v4494_v60, %v2052_v53  ;;  %v2628_v60 = vmul.f32 %v6098_v20, %v6054_v52  ;;  %v6106_v18 = vld [vmem:[#allocation21_spill] sm:$0xff] }
 0x3dc   : > { %v2168_v22 = vpop.permute.xlu1 %2167  ;;  %v4632_v36 = vpop.permute.xlu0 %2351  ;;  %v2076_v27 = vadd.f32 %v4484_v21, %v2050_v41  ;;  %v2077_v1 = vadd.f32 %v2070_v17, %v2051_v12  ;;  %v1835_v15 = vmul.f32 %v6106_v18, %v6105_v57  ;;  %v6107_v17 = vld [vmem:[#allocation20_spill] sm:$0xff] }
 0x3dd   : > { %v2127_v26 = vadd.f32 %v2121_v37, %v2101_v55  ;;  %v2104_v47 = vadd.f32 %v4530_v2, %v2078_v49  ;;  %v2173_v19 = vsel %vm745_vm15, %v6102_v30, %v2168_v22 }
 0x3de   : > { %2529 = vrot.lane.b32.xlu1 %v2521_v5, %s2977_s19  ;;  %2635 = vrot.lane.b32.xlu0 %v2626_v34, %s2977_s19  ;;  %v2103_v40 = vadd.f32 %v2096_v58, %v2077_v1  ;;  %v2102_v50 = vadd.f32 %v4508_v43, %v2076_v27 }
 0x3df   : > { %v2153_v14 = vadd.f32 %v2147_v16, %v2127_v26  ;;  %v2130_v2 = vadd.f32 %v4560_v7, %v2104_v47  ;;  %v6108_v16 = vld [vmem:[#allocation78_spill] sm:$0xff] }
 0x3e0   : > { %v2172_v29 = vpop.permute.xlu1 %2171  ;;  %v4656_v24 = vpop.permute.xlu0 %2373  ;;  %v2129_v63 = vadd.f32 %v2122_v45, %v2103_v40  ;;  %v2128_v34 = vadd.f32 %v4542_v35, %v2102_v50  ;;  %v6109_v35 = vld [vmem:[#allocation202_spill] sm:$0xff] }
 0x3e1   : > { %v2174_v21 = vsel %vm745_vm15, %v6103_v8, %v2172_v29  ;;  %v2179_v61 = vadd.f32 %v2173_v19, %v2153_v14  ;;  %v2156_v53 = vadd.f32 %v2146_v42, %v2130_v2  ;;  %v6112_v19 = vld [vmem:[#allocation203_spill] sm:$0xff]  ;;  %v6113_v2 = vld [vmem:[#allocation204_spill] sm:$0xff] }
 0x3e2   : > { %2533 = vrot.lane.b32.xlu1 %v2523_v33, %s2977_s19  ;;  %2639 = vrot.lane.b32.xlu0 %v2628_v60, %s2977_s19  ;;  %v2155_v43 = vadd.f32 %v2148_v32, %v2129_v63  ;;  %v2154_v7 = vadd.f32 %v4581_v23, %v2128_v34  ;;  %v1837_v33 = vmul.f32 %v6108_v16, %v6105_v57  ;;  %v6110_v23 = vld [vmem:[#allocation72_spill] sm:$0xff] }
 0x3e3   : > { %v2182_v12 = vadd.f32 %v2172_v29, %v2156_v53  ;;  %v6111_v29 = vld [vmem:[#allocation75_spill] sm:$0xff]  ;;  %v2549_v50 = vmul.f32 %v6073_v31, %v6110_v23  ;;  %v6115_v53 = vld [vmem:[#allocation205_spill] sm:$0xff] }
 0x3e4   : > { %v2194_v9 = vpop.permute.xlu1 %2193  ;;  %v4674_v5 = vpop.permute.xlu0 %2377  ;;  %v2181_v55 = vadd.f32 %v2174_v21, %v2155_v43  ;;  %v2180_v27 = vadd.f32 %v2168_v22, %v2154_v7  ;;  %v2547_v30 = vmul.f32 %v6111_v29, %v6110_v23  ;;  %v6123_v29 = vld [vmem:[#allocation47_spill] sm:$0xff] }
 0x3e5   : > { %v2199_v37 = vsel %vm745_vm15, %v6107_v17, %v2194_v9 }
 0x3e6   : > { %v2205_v41 = vadd.f32 %v2199_v37, %v2179_v61  ;;  %1843 = vrot.lane.b32.xlu1 %v1835_v15, %s2977_s19  ;;  %v2206_v60 = vadd.f32 %v2194_v9, %v2180_v27  ;;  %v6114_v15 = vld [vmem:[#allocation58_spill] sm:$0xff]  ;;  %v6120_v27 = vld [vmem:[#allocation48_spill] sm:$0xff] }
 0x3e7   : > { %v1861_v34 = vmul.f32 %v6083_v44, %v6114_v15  ;;  %v1863_v7 = vmul.f32 %v6085_v3, %v6114_v15 }
 0x3e8   : > { %v2198_v49 = vpop.permute.xlu1 %2197  ;;  %v4683_v58 = vpop.permute.xlu0 %2399 }
 0x3e9   : > { %v2200_v42 = vsel %vm745_vm15, %v6109_v35, %v2198_v49  ;;  %v2208_v1 = vadd.f32 %v2198_v49, %v2182_v12  ;;  %v6117_v12 = vld [vmem:[#allocation6_spill] sm:$0xff] }
 0x3ea   : > { %v2207_v26 = vadd.f32 %v2200_v42, %v2181_v55  ;;  %1847 = vrot.lane.b32.xlu1 %v1837_v33, %s2977_s19  ;;  %v6118_v55 = vld [vmem:[#allocation52_spill] sm:$0xff]  ;;  %v6121_v42 = vld [vmem:[#allocation206_spill] sm:$0xff] }
 0x3eb   : > { %v402_v49 = vmul.f32 %v6118_v55, %v6117_v12  ;;  %v6119_v33 = vld [vmem:[#allocation24_spill] sm:$0xff] }
 0x3ec   : > { %v2220_v47 = vpop.permute.xlu1 %2219  ;;  %v4690_v45 = vpop.permute.xlu0 %2403  ;;  %v378_v35 = vmul.f32 %v6120_v27, %v6119_v33 }
 0x3ed   : > { %v2225_v8 = vsel %vm745_vm15, %v6112_v19, %v2220_v47  ;;  %v2232_v21 = vadd.f32 %v2220_v47, %v2206_v60  ;;  %v6122_v60 = vld [vmem:[#allocation51_spill] sm:$0xff] }
 0x3ee   : > { %v2231_v40 = vadd.f32 %v2225_v8, %v2205_v41  ;;  %2555 = vrot.lane.b32.xlu1 %v2547_v30, %s2977_s19  ;;  %v401_v47 = vmul.f32 %v6122_v60, %v6117_v12  ;;  %v377_v30 = vmul.f32 %v6123_v29, %v6119_v33  ;;  %v6124_v8 = vld [vmem:[#allocation26_spill] sm:$0xff] }
 0x3f0   : > { %v2224_v22 = vpop.permute.xlu1 %2223  ;;  %v4697_v14 = vpop.permute.xlu0 %2425 }
 0x3f1   : > { %v2226_v6 = vsel %vm745_vm15, %v6113_v2, %v2224_v22  ;;  %v2234_v32 = vadd.f32 %v2224_v22, %v2208_v1  ;;  %v6126_v2 = vld [vmem:[#allocation67_spill] sm:$0xff] }
 0x3f2   : > { %v2233_v63 = vadd.f32 %v2226_v6, %v2207_v26  ;;  %2559 = vrot.lane.b32.xlu1 %v2549_v50, %s2977_s19  ;;  %v2573_v6 = vmul.f32 %v6106_v18, %v6126_v2  ;;  %v403_v18 = vmul.f32 %v6122_v60, %v6124_v8  ;;  %v6131_v60 = vld [vmem:[#allocation55_spill] sm:$0xff] }
 0x3f4   : > { %v2246_v61 = vpop.permute.xlu1 %2245  ;;  %v4704_v9 = vpop.permute.xlu0 %2429 }
 0x3f5   : > { %v2251_v17 = vsel %vm745_vm15, %v6115_v53, %v2246_v61  ;;  %v2258_v37 = vadd.f32 %v2246_v61, %v2232_v21  ;;  %v404_v21 = vmul.f32 %v6118_v55, %v6124_v8  ;;  %v6127_v61 = vld [vmem:[#allocation80_spill] sm:$0xff] }
 0x3f6   : > { %v2257_v43 = vadd.f32 %v2251_v17, %v2231_v40  ;;  %1869 = vrot.lane.b32.xlu1 %v1861_v34, %s2977_s19  ;;  %v6125_v40 = vld [vmem:[#allocation25_spill] sm:$0xff]  ;;  %v405_v17 = vadd.f32 %v401_v47, %v377_v30  ;;  %v6130_v47 = vld [vmem:[#allocation22_spill] sm:$0xff] }
 0x3f7   : > { %v380_v22 = vmul.f32 %v6120_v27, %v6125_v40  ;;  %v425_v27 = vmul.f32 %v5925_v62, %v6092_v25 }
 0x3f8   : > { %v2250_v31 = vpop.permute.xlu1 %2249  ;;  %v4711_v41 = vpop.permute.xlu0 %2451 }
 0x3f9   : > { %6116 = vst [vmem:[#allocation28_spill] sm:$0xff] %v4711_v41  ;;  %v2252_v1 = vsel %vm745_vm15, %v6121_v42, %v2250_v31  ;;  %v2260_v26 = vadd.f32 %v2250_v31, %v2234_v32  ;;  %v406_v32 = vadd.f32 %v402_v49, %v378_v35  ;;  %v408_v42 = vadd.f32 %v404_v21, %v380_v22 }
 0x3fa   : > { %v2259_v19 = vadd.f32 %v2252_v1, %v2233_v63  ;;  %1873 = vrot.lane.b32.xlu1 %v1863_v7, %s2977_s19  ;;  %v6129_v7 = vld [vmem:[#allocation54_spill] sm:$0xff]  ;;  %v379_v49 = vmul.f32 %v6123_v29, %v6125_v40  ;;  %v429_v22 = vadd.f32 %v425_v27, %v405_v17 }
 0x3fb   : > { %v426_v55 = vmul.f32 %v6129_v7, %v6092_v25  ;;  %v428_v1 = vmul.f32 %v6129_v7, %v6095_v0  ;;  %v6133_v7 = vld [vmem:[#allocation65_spill] sm:$0xff] }
 0x3fc   : > { %v2272_v50 = vpop.permute.xlu1 %2271  ;;  %v4734_v63 = vpop.permute.xlu0 %2455 }
 0x3fd   : > { %v2277_v34 = vsel %vm745_vm15, %v6127_v61, %v2272_v50  ;;  %v2284_v53 = vadd.f32 %v2272_v50, %v2258_v37  ;;  %6128 = vst [vmem:[#allocation29_spill] sm:$0xff] %v4734_v63  ;;  %v430_v35 = vadd.f32 %v426_v55, %v406_v32  ;;  %v432_v29 = vadd.f32 %v428_v1, %v408_v42 }
 0x3fe   : > { %v2283_v31 = vadd.f32 %v2277_v34, %v2257_v43  ;;  %2581 = vrot.lane.b32.xlu1 %v2573_v6, %s2977_s19  ;;  %v2575_v43 = vmul.f32 %v6108_v16, %v6126_v2  ;;  %v450_v6 = vmul.f32 %v6131_v60, %v6096_v4  ;;  %v449_v61 = vmul.f32 %v6105_v57, %v6096_v4 }
 0x3ff   : > { %v407_v16 = vadd.f32 %v403_v18, %v379_v49  ;;  %v1887_v55 = vmul.f32 %v6094_v39, %v6133_v7  ;;  %v427_v42 = vmul.f32 %v5925_v62, %v6095_v0  ;;  %v6135_v18 = vld [vmem:[#allocation61_spill] sm:$0xff]  ;;  %v6136_v62 = vld [vmem:[#allocation208_spill] sm:$0xff] }
 0x400   : > { %v2276_v37 = vpop.permute.xlu1 %2275  ;;  %v4756_v32 = vpop.permute.xlu0 %2477  ;;  %v474_v49 = vmul.f32 %v6135_v18, %v6100_v46 }
 0x401   : > { %v2278_v30 = vsel %vm745_vm15, %v6130_v47, %v2276_v37  ;;  %v2286_v21 = vadd.f32 %v2276_v37, %v2260_v26  ;;  %6132 = vst [vmem:[#allocation81_spill] sm:$0xff] %v4756_v32  ;;  %v454_v47 = vadd.f32 %v450_v6, %v430_v35  ;;  %v452_v26 = vmul.f32 %v6131_v60, %v6099_v28 }
 0x402   : > { %v2285_v50 = vadd.f32 %v2278_v30, %v2259_v19  ;;  %2585 = vrot.lane.b32.xlu1 %v2575_v43, %s2977_s19  ;;  %v6134_v19 = vld [vmem:[#allocation207_spill] sm:$0xff]  ;;  %v453_v37 = vadd.f32 %v449_v61, %v429_v22  ;;  %v473_v35 = vmul.f32 %v6114_v15, %v6100_v46  ;;  %v431_v30 = vadd.f32 %v427_v42, %v407_v16  ;;  %v6138_v16 = vld [vmem:[#allocation33_spill] sm:$0xff] }
 0x403   : > { %v456_v1 = vadd.f32 %v452_v26, %v432_v29  ;;  %v1889_v6 = vmul.f32 %v6098_v20, %v6133_v7  ;;  %v476_v22 = vmul.f32 %v6135_v18, %v6101_v10  ;;  %v451_v29 = vmul.f32 %v6105_v57, %v6099_v28 }
 0x404   : > { %v2298_v34 = vpop.permute.xlu1 %2297 }
 0x405   : > { %v2303_v17 = vsel %vm745_vm15, %v6134_v19, %v2298_v34  ;;  %v2310_v27 = vadd.f32 %v2298_v34, %v2284_v53  ;;  %v478_v53 = vadd.f32 %v474_v49, %v454_v47  ;;  %v477_v34 = vadd.f32 %v473_v35, %v453_v37  ;;  %v6139_v49 = vld [vmem:[#allocation79_spill] sm:$0xff]  ;;  %v6140_v35 = vld [vmem:[#allocation34_spill] sm:$0xff] }
 0x406   : > { %v2309_v43 = vadd.f32 %v2303_v17, %v2283_v31  ;;  %1895 = vrot.lane.b32.xlu1 %v1887_v55, %s2977_s19  ;;  %v4779_v55 = vpop.permute.xlu0 %2481  ;;  %v498_v19 = vmul.f32 %v3461_v54, %v6138_v16  ;;  %v480_v47 = vadd.f32 %v476_v22, %v456_v1  ;;  %v497_v17 = vmul.f32 %v6133_v7, %v6138_v16 }
 0x407   : > { %6137 = vst [vmem:[#allocation30_spill] sm:$0xff] %v4779_v55  ;;  %v455_v42 = vadd.f32 %v451_v29, %v431_v30  ;;  %v500_v57 = vmul.f32 %v3461_v54, %v6140_v35  ;;  %v475_v1 = vmul.f32 %v6114_v15, %v6101_v10  ;;  %v6142_v30 = vld [vmem:[#allocation35_spill] sm:$0xff] }
 0x408   : > { %v2302_v60 = vpop.permute.xlu1 %2301  ;;  %v502_v37 = vadd.f32 %v498_v19, %v478_v53 }
 0x409   : > { %v2304_v31 = vsel %vm745_vm15, %v6136_v62, %v2302_v60  ;;  %v2312_v61 = vadd.f32 %v2302_v60, %v2286_v21  ;;  %v2599_v21 = vmul.f32 %v6083_v44, %v6139_v49  ;;  %v6141_v60 = vld [vmem:[#allocation23_spill] sm:$0xff]  ;;  %v501_v62 = vadd.f32 %v497_v17, %v477_v34  ;;  %v6145_v17 = vld [vmem:[#allocation36_spill] sm:$0xff] }
 0x40a   : > { %v2311_v26 = vadd.f32 %v2304_v31, %v2285_v50  ;;  %1899 = vrot.lane.b32.xlu1 %v1889_v6, %s2977_s19  ;;  %v6143_v31 = vld [vmem:[#allocation70_spill] sm:$0xff]  ;;  %v504_v55 = vadd.f32 %v500_v57, %v480_v47  ;;  %v521_v44 = vmul.f32 %v5950_v38, %v6142_v30  ;;  %v479_v53 = vadd.f32 %v475_v1, %v455_v42  ;;  %v4799_v19 = vpop.permute.xlu0 %2503  ;;  %v6146_v42 = vld [vmem:[#allocation7_spill] sm:$0xff] }
 0x40b   : > { %v522_v29 = vmul.f32 %v6143_v31, %v6142_v30  ;;  %6144 = vst [vmem:[#allocation31_spill] sm:$0xff] %v4799_v19  ;;  %v524_v15 = vmul.f32 %v6143_v31, %v6145_v17  ;;  %v499_v47 = vmul.f32 %v6133_v7, %v6140_v35  ;;  %v6148_v19 = vld [vmem:[#allocation71_spill] sm:$0xff] }
 0x40c   : > { %v2324_v18 = vpop.permute.xlu1 %2323 }
 0x40d   : > { %v2329_v50 = vsel %vm745_vm15, %v6141_v60, %v2324_v18  ;;  %v2336_v6 = vadd.f32 %v2324_v18, %v2310_v27  ;;  %v2601_v27 = vmul.f32 %v6085_v3, %v6139_v49  ;;  %v526_v34 = vadd.f32 %v522_v29, %v502_v37  ;;  %v6147_v60 = vld [vmem:[#allocation64_spill] sm:$0xff] }
 0x40e   : > { %v2335_v22 = vadd.f32 %v2329_v50, %v2309_v43  ;;  %2607 = vrot.lane.b32.xlu1 %v2599_v21, %s2977_s19  ;;  %v525_v21 = vadd.f32 %v521_v44, %v501_v62  ;;  %v546_v50 = vmul.f32 %v6147_v60, %v6146_v42  ;;  %v528_v1 = vadd.f32 %v524_v15, %v504_v55  ;;  %v4822_v15 = vpop.permute.xlu0 %2507 }
 0x40f   : > { %v545_v3 = vmul.f32 %v6110_v23, %v6146_v42  ;;  %v503_v37 = vadd.f32 %v499_v47, %v479_v53  ;;  %v523_v55 = vmul.f32 %v5950_v38, %v6145_v17  ;;  %6150 = vst [vmem:[#allocation201_spill] sm:$0xff] %v4822_v15  ;;  %v6151_v53 = vld [vmem:[#allocation38_spill] sm:$0xff]  ;;  %v6152_v47 = vld [vmem:[#allocation76_spill] sm:$0xff] }
 0x410   : > { %v2328_v32 = vpop.permute.xlu1 %2327  ;;  %v6158_v17 = vld [vmem:[#allocation42_spill] sm:$0xff] }
 0x411   : > { %v2330_v43 = vsel %vm745_vm15, %v4583_v13, %v2328_v32  ;;  %v2338_v18 = vadd.f32 %v2328_v32, %v2312_v61  ;;  %v2625_v13 = vmul.f32 %v6094_v39, %v6148_v19  ;;  %v550_v32 = vadd.f32 %v546_v50, %v526_v34  ;;  %v6149_v61 = vld [vmem:[#allocation37_spill] sm:$0xff] }
 0x412   : > { %v2337_v57 = vadd.f32 %v2330_v43, %v2311_v26  ;;  %2611 = vrot.lane.b32.xlu1 %v2601_v27, %s2977_s19  ;;  %v548_v62 = vmul.f32 %v6147_v60, %v6149_v61  ;;  %v549_v27 = vadd.f32 %v545_v3, %v525_v21  ;;  %v570_v39 = vmul.f32 %v6152_v47, %v6151_v53  ;;  %v6153_v21 = vld [vmem:[#allocation8_spill] sm:$0xff] }
 0x413   : > { %v569_v50 = vmul.f32 %v6126_v2, %v6151_v53  ;;  %v527_v63 = vadd.f32 %v523_v55, %v503_v37  ;;  %v572_v3 = vmul.f32 %v6152_v47, %v6153_v21  ;;  %v6154_v37 = vld [vmem:[#allocation39_spill] sm:$0xff] }
 0x414   : > { %v2350_v29 = vpop.permute.xlu1 %2349  ;;  %v552_v34 = vadd.f32 %v548_v62, %v528_v1  ;;  %v547_v1 = vmul.f32 %v6110_v23, %v6149_v61 }
 0x415   : > { %v2355_v26 = vsel %vm745_vm15, %v4606_v56, %v2350_v29  ;;  %v2362_v44 = vadd.f32 %v2350_v29, %v2336_v6  ;;  %v2627_v56 = vmul.f32 %v6098_v20, %v6148_v19  ;;  %v574_v6 = vadd.f32 %v570_v39, %v550_v32 }
 0x416   : > { %v2361_v43 = vadd.f32 %v2355_v26, %v2335_v22  ;;  %2633 = vrot.lane.b32.xlu1 %v2625_v13, %s2977_s19  ;;  %v573_v13 = vadd.f32 %v569_v50, %v549_v27  ;;  %v594_v26 = vmul.f32 %v6049_v11, %v6154_v37  ;;  %v593_v20 = vmul.f32 %v6139_v49, %v6154_v37  ;;  %v6156_v27 = vld [vmem:[#allocation40_spill] sm:$0xff] }
 0x417   : > { %v576_v32 = vadd.f32 %v572_v3, %v552_v34  ;;  %v551_v55 = vadd.f32 %v547_v1, %v527_v63  ;;  %v1288_v39 = vmul.f32 %v3461_v54, %v6119_v33  ;;  %v596_v50 = vmul.f32 %v6049_v11, %v6156_v27  ;;  %v6157_v1 = vld [vmem:[#allocation9_spill] sm:$0xff] }
 0x418   : > { %v2354_v35 = vpop.permute.xlu1 %2353  ;;  %v597_v34 = vadd.f32 %v593_v20, %v573_v13  ;;  %v571_v63 = vmul.f32 %v6126_v2, %v6153_v21  ;;  %v618_v15 = vmul.f32 %v6054_v52, %v6157_v1  ;;  %v6166_v21 = vld [vmem:[#allocation46_spill] sm:$0xff] }
 0x419   : > { %v2356_v22 = vsel %vm745_vm15, %v4632_v36, %v2354_v35  ;;  %v2364_v29 = vadd.f32 %v2354_v35, %v2338_v18  ;;  %v1296_v36 = vmul.f32 %v6143_v31, %v6117_v12  ;;  %v4846_v35 = vpop.permute.xlu0 %1819  ;;  %v600_v61 = vadd.f32 %v596_v50, %v576_v32 }
 0x41a   : > { %v2363_v62 = vadd.f32 %v2356_v22, %v2337_v57  ;;  %2637 = vrot.lane.b32.xlu1 %v2627_v56, %s2977_s19  ;;  %6155 = vst [vmem:[#allocation50_spill] sm:$0xff] %v4846_v35  ;;  %v598_v57 = vadd.f32 %v594_v26, %v574_v6  ;;  %v6159_v35 = vld [vmem:[#allocation73_spill] sm:$0xff]  ;;  %v617_v6 = vmul.f32 %v6148_v19, %v6157_v1 }
 0x41b   : > { %v642_v37 = vmul.f32 %v6159_v35, %v6158_v17  ;;  %v575_v26 = vadd.f32 %v571_v63, %v551_v55  ;;  %v1300_v53 = vadd.f32 %v1296_v36, %v1288_v39  ;;  %v595_v32 = vmul.f32 %v6139_v49, %v6156_v27  ;;  %v6162_v39 = vld [vmem:[#allocation43_spill] sm:$0xff]  ;;  %v6163_v36 = vld [vmem:[#allocation49_spill] sm:$0xff] }
 0x41c   : > { %v2376_v18 = vpop.permute.xlu1 %2375  ;;  %v1304_v50 = vmul.f32 %v6147_v60, %v6092_v25  ;;  %v6165_v63 = vld [vmem:[#allocation77_spill] sm:$0xff] }
 0x41d   : > { %v2381_v56 = vsel %vm1256_vm0, %v4656_v24, %v2376_v18  ;;  %v2388_v22 = vadd.f32 %v2376_v18, %v2362_v44  ;;  %v622_v24 = vadd.f32 %v618_v15, %v598_v57  ;;  %v6160_v44 = vld [vmem:[#allocation41_spill] sm:$0xff]  ;;  %v621_v18 = vadd.f32 %v617_v6, %v597_v34  ;;  %v6164_v57 = vld [vmem:[#allocation11_spill] sm:$0xff]  ;;  %v6168_v6 = vld [vmem:[#allocation74_spill] sm:$0xff] }
 0x41e   : > { %v2387_v3 = vadd.f32 %v2381_v56, %v2361_v43  ;;  %v620_v13 = vmul.f32 %v6054_v52, %v6160_v44  ;;  %v4868_v56 = vpop.permute.xlu0 %1823  ;;  %v666_v15 = vmul.f32 %v6163_v36, %v6162_v39  ;;  %v690_v1 = vmul.f32 %v6165_v63, %v6164_v57 }
 0x41f   : > { %6161 = vst [vmem:[#allocation199_spill] sm:$0xff] %v4868_v56  ;;  %v665_v27 = vmul.f32 %v6168_v6, %v6162_v39  ;;  %v599_v49 = vadd.f32 %v595_v32, %v575_v26  ;;  %v1308_v2 = vadd.f32 %v1304_v50, %v1300_v53  ;;  %v689_v53 = vmul.f32 %v3364_v51, %v6164_v57 }
 0x420   : > { %v2380_v41 = vpop.permute.xlu1 %2379  ;;  %v1320_v57 = vmul.f32 %v6049_v11, %v6100_v46 }
 0x421   : > { %v2382_v43 = vsel %vm1256_vm0, %v4674_v5, %v2380_v41  ;;  %v2390_v20 = vadd.f32 %v2380_v41, %v2364_v29  ;;  %v714_v5 = vmul.f32 %v6072_v48, %v6166_v21  ;;  %v624_v41 = vadd.f32 %v620_v13, %v600_v61  ;;  %v6167_v29 = vld [vmem:[#allocation83_spill] sm:$0xff] }
 0x422   : > { %v2389_v55 = vadd.f32 %v2382_v43, %v2363_v62  ;;  %v641_v34 = vmul.f32 %v6167_v29, %v6158_v17  ;;  %v646_v62 = vadd.f32 %v642_v37, %v622_v24  ;;  %v6169_v43 = vld [vmem:[#allocation10_spill] sm:$0xff]  ;;  %v619_v61 = vmul.f32 %v6148_v19, %v6160_v44  ;;  %v4898_v50 = vpop.permute.xlu0 %2531 }
 0x423   : > { %v644_v10 = vmul.f32 %v6159_v35, %v6169_v43  ;;  %v1312_v17 = vmul.f32 %v6152_v47, %v6096_v4  ;;  %v1290_v37 = vmul.f32 %v3461_v54, %v6125_v40  ;;  %v1298_v24 = vmul.f32 %v6143_v31, %v6124_v8 }
 0x424   : > { %v2402_v56 = vpop.permute.xlu1 %2401  ;;  %v645_v25 = vadd.f32 %v641_v34, %v621_v18  ;;  %v623_v18 = vadd.f32 %v619_v61, %v599_v49 }
 0x425   : > { %v2407_v42 = vsel %vm1256_vm0, %v4683_v58, %v2402_v56  ;;  %v2414_v23 = vadd.f32 %v2402_v56, %v2388_v22  ;;  %v648_v26 = vadd.f32 %v644_v10, %v624_v41  ;;  %v713_v58 = vmul.f32 %v3622_v59, %v6166_v21  ;;  %v6170_v22 = vld [vmem:[#allocation44_spill] sm:$0xff]  ;;  %v6171_v56 = vld [vmem:[#allocation45_spill] sm:$0xff] }
 0x426   : > { %v2413_v13 = vadd.f32 %v2407_v42, %v2387_v3  ;;  %v668_v44 = vmul.f32 %v6163_v36, %v6170_v22  ;;  %v1316_v32 = vadd.f32 %v1312_v17, %v1308_v2  ;;  %v670_v3 = vadd.f32 %v666_v15, %v646_v62  ;;  %v6172_v2 = vld [vmem:[#allocation12_spill] sm:$0xff] }
 0x427   : > { %v692_v10 = vmul.f32 %v6165_v63, %v6171_v56  ;;  %v669_v31 = vadd.f32 %v665_v27, %v645_v25  ;;  %v643_v21 = vmul.f32 %v6167_v29, %v6169_v43  ;;  %v716_v41 = vmul.f32 %v6072_v48, %v6172_v2 }
 0x428   : > { %v2406_v42 = vpop.permute.xlu1 %2405  ;;  %v672_v34 = vadd.f32 %v668_v44, %v648_v26  ;;  %v667_v15 = vmul.f32 %v6168_v6, %v6170_v22  ;;  %v1302_v62 = vadd.f32 %v1298_v24, %v1290_v37  ;;  %v1324_v17 = vadd.f32 %v1320_v57, %v1316_v32  ;;  %v6175_v57 = vld [vmem:[#allocation7_spill] sm:$0xff] }
 0x429   : > { %v2408_v54 = vsel %vm1256_vm0, %v4690_v45, %v2406_v42  ;;  %v2416_v39 = vadd.f32 %v2406_v42, %v2390_v20  ;;  %v647_v61 = vadd.f32 %v643_v21, %v623_v18  ;;  %v1287_v25 = vmul.f32 %v6133_v7, %v6119_v33  ;;  %v4924_v33 = vpop.permute.xlu0 %2535 }
 0x42a   : > { %v2415_v49 = vadd.f32 %v2408_v54, %v2389_v55  ;;  %v1295_v45 = vmul.f32 %v5950_v38, %v6117_v12  ;;  %v694_v20 = vadd.f32 %v690_v1, %v670_v3  ;;  %v1306_v55 = vmul.f32 %v6147_v60, %v6095_v0 }
 0x42b   : > { %v693_v44 = vadd.f32 %v689_v53, %v669_v31  ;;  %v691_v37 = vmul.f32 %v3364_v51, %v6171_v56  ;;  %v1328_v24 = vmul.f32 %v6054_v52, %v6138_v16  ;;  %v696_v12 = vadd.f32 %v692_v10, %v672_v34 }
 0x42c   : > { %v2428_v27 = vpop.permute.xlu1 %2427  ;;  %v1310_v18 = vadd.f32 %v1306_v55, %v1302_v62  ;;  %v1289_v1 = vmul.f32 %v6133_v7, %v6125_v40  ;;  %v1297_v60 = vmul.f32 %v5950_v38, %v6124_v8  ;;  %v1299_v32 = vadd.f32 %v1295_v45, %v1287_v25  ;;  %v6173_v8 = vld [vmem:[#allocation27_spill] sm:$0xff]  ;;  %v6174_v40 = vld [vmem:[#allocation72_spill] sm:$0xff] }
 0x42d   : > { %v2433_v43 = vsel %vm1256_vm0, %v4697_v14, %v2428_v27  ;;  %v2440_v26 = vadd.f32 %v2428_v27, %v2414_v23  ;;  %v715_v23 = vmul.f32 %v3622_v59, %v6172_v2  ;;  %v671_v14 = vadd.f32 %v667_v15, %v647_v61  ;;  %v6176_v62 = vld [vmem:[#allocation32_spill] sm:$0xff] }
 0x42e   : > { %v2439_v22 = vadd.f32 %v2433_v43, %v2413_v13  ;;  %v1332_v53 = vadd.f32 %v1328_v24, %v1324_v17  ;;  %v718_v3 = vadd.f32 %v714_v5, %v694_v20  ;;  %v1314_v56 = vmul.f32 %v6152_v47, %v6099_v28  ;;  %v6177_v17 = vld [vmem:[#allocation84_spill] sm:$0xff]  ;;  %v6179_v20 = vld [vmem:[#allocation86_spill] sm:$0xff] }
 0x42f   : > { %v4936_v54 = vadd.f32 %v713_v58, %v693_v44  ;;  %v1336_v38 = vmul.f32 %v6159_v35, %v6142_v30  ;;  %v1303_v7 = vmul.f32 %v6174_v40, %v6173_v8  ;;  %v720_v21 = vadd.f32 %v716_v41, %v696_v12  ;;  %v6178_v41 = vld [vmem:[#allocation28_spill] sm:$0xff]  ;;  %v6180_v43 = vld [vmem:[#allocation38_spill] sm:$0xff]  ;;  %v6182_v12 = vld [vmem:[#allocation89_spill] sm:$0xff] }
 0x430   : > { %v2432_v42 = vpop.permute.xlu1 %2431  ;;  %v1344_v5 = vmul.f32 %v6163_v36, %v6175_v57  ;;  %v1318_v2 = vadd.f32 %v1314_v56, %v1310_v18  ;;  %v1301_v34 = vadd.f32 %v1297_v60, %v1289_v1  ;;  %v695_v47 = vadd.f32 %v691_v37, %v671_v14  ;;  %v6181_v37 = vld [vmem:[#allocation39_spill] sm:$0xff] }
 0x431   : > { %v2434_v13 = vsel %vm1256_vm0, %v4704_v9, %v2432_v42  ;;  %v2442_v10 = vadd.f32 %v2432_v42, %v2416_v39  ;;  %v1340_v15 = vadd.f32 %v1336_v38, %v1332_v53  ;;  %v1322_v9 = vmul.f32 %v6049_v11, %v6176_v62  ;;  %v4946_v39 = vpop.permute.xlu0 %1845  ;;  %v6183_v60 = vld [vmem:[#allocation67_spill] sm:$0xff]  ;;  %v6185_v42 = vld [vmem:[#allocation34_spill] sm:$0xff] }
 0x432   : > { %v2441_v31 = vadd.f32 %v2434_v13, %v2415_v49  ;;  %v1307_v58 = vadd.f32 %v1303_v7, %v1299_v32  ;;  %v753_v25 = vadd.f32 %v6177_v17, %v718_v3  ;;  %v1305_v49 = vmul.f32 %v6174_v40, %v6095_v0  ;;  %v6184_v53 = vld [vmem:[#allocation91_spill] sm:$0xff]  ;;  %v6186_v38 = vld [vmem:[#allocation94_spill] sm:$0xff]  ;;  %v6187_v40 = vld [vmem:[#allocation29_spill] sm:$0xff] }
 0x433   : > { %v755_v55 = vadd.f32 %v6179_v20, %v720_v21  ;;  %v1352_v44 = vmul.f32 %v6165_v63, %v6180_v43  ;;  %v4958_v11 = vmul.f32 %v6072_v48, %v6181_v37  ;;  %v1326_v1 = vadd.f32 %v1322_v9, %v1318_v2  ;;  %v6189_v9 = vld [vmem:[#allocation36_spill] sm:$0xff] }
 0x434   : > { %v2454_v61 = vpop.permute.xlu1 %2453  ;;  %v787_v18 = vadd.f32 %v6182_v12, %v753_v25  ;;  %v1311_v0 = vmul.f32 %v6183_v60, %v6096_v4  ;;  %v1309_v14 = vadd.f32 %v1305_v49, %v1301_v34  ;;  %v1330_v3 = vmul.f32 %v6054_v52, %v6185_v42  ;;  %v6188_v4 = vld [vmem:[#allocation96_spill] sm:$0xff]  ;;  %v6190_v25 = vld [vmem:[#allocation37_spill] sm:$0xff]  ;;  %v6191_v49 = vld [vmem:[#allocation79_spill] sm:$0xff] }
 0x435   : > { %v2459_v45 = vsel %vm1256_vm0, %v6178_v41, %v2454_v61  ;;  %v2466_v27 = vadd.f32 %v2454_v61, %v2440_v26  ;;  %v789_v32 = vadd.f32 %v6184_v53, %v755_v55  ;;  %v1348_v26 = vadd.f32 %v1344_v5, %v1340_v15  ;;  %v4974_v15 = vpop.permute.xlu0 %1849  ;;  %v6192_v55 = vld [vmem:[#allocation8_spill] sm:$0xff] }
 0x436   : > { %v2465_v24 = vadd.f32 %v2459_v45, %v2439_v22  ;;  %v1313_v56 = vmul.f32 %v6183_v60, %v6099_v28  ;;  %v821_v8 = vadd.f32 %v6186_v38, %v787_v18  ;;  %v1315_v22 = vadd.f32 %v1311_v0, %v1307_v58  ;;  %v6194_v18 = vld [vmem:[#allocation95_spill] sm:$0xff]  ;;  %v6195_v60 = vld [vmem:[#allocation81_spill] sm:$0xff] }
 0x437   : > { %v719_v2 = vadd.f32 %v715_v23, %v695_v47  ;;  %v823_v34 = vadd.f32 %v6188_v4, %v789_v32  ;;  %v1338_v5 = vmul.f32 %v6159_v35, %v6189_v9  ;;  %v1334_v61 = vadd.f32 %v1330_v3, %v1326_v1  ;;  %v6198_v32 = vld [vmem:[#allocation97_spill] sm:$0xff]  ;;  %v6199_v3 = vld [vmem:[#allocation104_spill] sm:$0xff] }
 0x438   : > { %v2458_v13 = vpop.permute.xlu1 %2457  ;;  %v1346_v28 = vmul.f32 %v6163_v36, %v6190_v25  ;;  %v1319_v58 = vmul.f32 %v6191_v49, %v6100_v46  ;;  %v1317_v41 = vadd.f32 %v1313_v56, %v1309_v14  ;;  %v1356_v45 = vadd.f32 %v1352_v44, %v1348_v26  ;;  %v6196_v44 = vld [vmem:[#allocation85_spill] sm:$0xff]  ;;  %v6197_v14 = vld [vmem:[#allocation87_spill] sm:$0xff] }
 0x439   : > { %v2460_v7 = vsel %vm1256_vm0, %v6187_v40, %v2458_v13  ;;  %v2468_v21 = vadd.f32 %v2458_v13, %v2442_v10  ;;  %v4982_v23 = vmul.f32 %v6165_v63, %v6192_v55  ;;  %v6193_v10 = vld [vmem:[#allocation40_spill] sm:$0xff]  ;;  %v1321_v35 = vmul.f32 %v6191_v49, %v6176_v62 }
 0x43a   : > { %v2467_v52 = vadd.f32 %v2460_v7, %v2441_v31  ;;  %v4986_v47 = vmul.f32 %v6072_v48, %v6193_v10  ;;  %v855_v1 = vadd.f32 %v6194_v18, %v821_v8  ;;  %v1323_v36 = vadd.f32 %v1319_v58, %v1315_v22  ;;  %v6200_v22 = vld [vmem:[#allocation88_spill] sm:$0xff]  ;;  %v6203_v58 = vld [vmem:[#allocation30_spill] sm:$0xff] }
 0x43b   : > { %v746_v63 = vsel %vm745_vm15, %v6196_v44, %v6177_v17  ;;  %v747_v48 = vsel %vm745_vm15, %v6197_v14, %v6179_v20  ;;  %v857_v26 = vadd.f32 %v6198_v32, %v823_v34  ;;  %v1342_v13 = vadd.f32 %v1338_v5, %v1334_v61  ;;  %v6201_v17 = vld [vmem:[#allocation90_spill] sm:$0xff]  ;;  %v5016_v34 = vpop.permute.xlu0 %2557  ;;  %v6208_v14 = vld [vmem:[#allocation100_spill] sm:$0xff] }
 0x43c   : > { %v2480_v31 = vpop.permute.xlu1 %2479  ;;  %v889_v56 = vadd.f32 %v6199_v3, %v855_v1  ;;  %v1327_v8 = vmul.f32 %v6148_v19, %v6138_v16  ;;  %v780_v40 = vsel %vm745_vm15, %v6200_v22, %v6182_v12  ;;  %v781_v7 = vsel %vm745_vm15, %v6201_v17, %v6184_v53  ;;  %v6202_v20 = vld [vmem:[#allocation106_spill] sm:$0xff]  ;;  %v6204_v12 = vld [vmem:[#allocation92_spill] sm:$0xff]  ;;  %v6210_v22 = vld [vmem:[#allocation53_spill] sm:$0xff] }
 0x43d   : > { %v2485_v46 = vsel %vm1256_vm0, %v6195_v60, %v2480_v31  ;;  %v4993_v0 = vadd.f32 %v2480_v31, %v2466_v27  ;;  %v1325_v27 = vadd.f32 %v1321_v35, %v1317_v41  ;;  %v891_v49 = vadd.f32 %v6202_v20, %v857_v26  ;;  %v6205_v31 = vld [vmem:[#allocation93_spill] sm:$0xff] }
 0x43e   : > { %v5002_v62 = vadd.f32 %v2485_v46, %v2465_v24  ;;  %v1329_v24 = vmul.f32 %v6148_v19, %v6185_v42  ;;  %v752_v61 = vadd.f32 %v746_v63, %v4936_v54  ;;  %v754_v16 = vadd.f32 %v747_v48, %v719_v2  ;;  %v6206_v54 = vld [vmem:[#allocation101_spill] sm:$0xff]  ;;  %v6207_v63 = vld [vmem:[#allocation98_spill] sm:$0xff]  ;;  %v6209_v48 = vld [vmem:[#allocation103_spill] sm:$0xff] }
 0x43f   : > { %v814_v53 = vsel %vm745_vm15, %v6204_v12, %v6186_v38  ;;  %v815_v1 = vsel %vm745_vm15, %v6205_v31, %v6188_v4  ;;  %v1331_v19 = vadd.f32 %v1327_v8, %v1323_v36  ;;  %v923_v2 = vadd.f32 %v6206_v54, %v889_v56 }
 0x440   : > { %v2484_v5 = vpop.permute.xlu1 %2483  ;;  %v786_v60 = vadd.f32 %v780_v40, %v752_v61  ;;  %v788_v46 = vadd.f32 %v781_v7, %v754_v16  ;;  %v1333_v44 = vadd.f32 %v1329_v24, %v1325_v27  ;;  %v849_v38 = vsel %vm745_vm15, %v6208_v14, %v6198_v32  ;;  %v6212_v32 = vld [vmem:[#allocation99_spill] sm:$0xff]  ;;  %v6213_v7 = vld [vmem:[#allocation113_spill] sm:$0xff]  ;;  %v5053_v24 = vpop.permute.xlu0 %2561 }
 0x441   : > { %v2486_v41 = vsel %vm1256_vm0, %v6203_v58, %v2484_v5  ;;  %v5021_v35 = vadd.f32 %v2484_v5, %v2468_v21  ;;  %v848_v21 = vsel %vm745_vm15, %v6207_v63, %v6194_v18  ;;  %v925_v26 = vadd.f32 %v6209_v48, %v891_v49  ;;  %v6211_v18 = vld [vmem:[#allocation102_spill] sm:$0xff] }
 0x442   : > { %v5029_v42 = vadd.f32 %v2486_v41, %v2467_v52  ;;  %v1335_v4 = vmul.f32 %v6167_v29, %v6142_v30  ;;  %v820_v36 = vadd.f32 %v814_v53, %v786_v60  ;;  %v822_v8 = vadd.f32 %v815_v1, %v788_v46 }
 0x443   : > { %v957_v56 = vadd.f32 %v6210_v22, %v923_v2  ;;  %v1337_v27 = vmul.f32 %v6167_v29, %v6189_v9  ;;  %v882_v40 = vsel %vm745_vm15, %v6211_v18, %v6199_v3  ;;  %v883_v17 = vsel %vm745_vm15, %v6212_v32, %v6202_v20  ;;  %v6214_v29 = vld [vmem:[#allocation108_spill] sm:$0xff]  ;;  %v6215_v3 = vld [vmem:[#allocation13_spill] sm:$0xff] }
 0x444   : > { %v5041_v52 = vpop.permute.xlu1 %2505  ;;  %v959_v49 = vadd.f32 %v6213_v7, %v925_v26  ;;  %v1339_v30 = vadd.f32 %v1335_v4, %v1331_v19  ;;  %v854_v5 = vadd.f32 %v848_v21, %v820_v36  ;;  %v856_v61 = vadd.f32 %v849_v38, %v822_v8  ;;  %v6216_v19 = vld [vmem:[#allocation107_spill] sm:$0xff]  ;;  %v6220_v21 = vld [vmem:[#allocation121_spill] sm:$0xff] }
 0x445   : > { %v1364_v16 = vadd.f32 %v4958_v11, %v1356_v45  ;;  %v1341_v58 = vadd.f32 %v1337_v27, %v1333_v44  ;;  %v916_v9 = vsel %vm745_vm15, %v6214_v29, %v6206_v54  ;;  %v917_v41 = vsel %vm745_vm15, %v6215_v3, %v6209_v48  ;;  %v6217_v45 = vld [vmem:[#allocation56_spill] sm:$0xff]  ;;  %v6218_v54 = vld [vmem:[#allocation105_spill] sm:$0xff]  ;;  %v6221_v48 = vld [vmem:[#allocation115_spill] sm:$0xff] }
 0x446   : > { %v1350_v12 = vadd.f32 %v1346_v28, %v1342_v13  ;;  %v1343_v20 = vmul.f32 %v6168_v6, %v6175_v57  ;;  %v888_v31 = vadd.f32 %v882_v40, %v854_v5  ;;  %v890_v1 = vadd.f32 %v883_v17, %v856_v61  ;;  %v6219_v13 = vld [vmem:[#allocation109_spill] sm:$0xff]  ;;  %v6223_v4 = vld [vmem:[#allocation123_spill] sm:$0xff] }
 0x447   : > { %v991_v60 = vadd.f32 %v6216_v19, %v957_v56  ;;  %v1345_v11 = vmul.f32 %v6168_v6, %v6190_v25  ;;  %v950_v46 = vsel %vm745_vm15, %v6217_v45, %v6210_v22  ;;  %v951_v28 = vsel %vm745_vm15, %v6218_v54, %v6213_v7  ;;  %v6222_v25 = vld [vmem:[#allocation117_spill] sm:$0xff]  ;;  %v5086_v22 = vpop.permute.xlu0 %1871  ;;  %v6224_v17 = vld [vmem:[#allocation119_spill] sm:$0xff]  ;;  %v6232_v54 = vld [vmem:[#allocation128_spill] sm:$0xff] }
 0x448   : > { %v5064_v53 = vpop.permute.xlu1 %2509  ;;  %v993_v2 = vadd.f32 %v6219_v13, %v959_v49  ;;  %v1347_v57 = vadd.f32 %v1343_v20, %v1339_v30  ;;  %v922_v44 = vadd.f32 %v916_v9, %v888_v31  ;;  %v924_v63 = vadd.f32 %v917_v41, %v890_v1  ;;  %v6225_v49 = vld [vmem:[#allocation110_spill] sm:$0xff]  ;;  %v6226_v29 = vld [vmem:[#allocation111_spill] sm:$0xff]  ;;  %v6227_v3 = vld [vmem:[#allocation125_spill] sm:$0xff] }
 0x449   : > { %v1025_v14 = vadd.f32 %v6220_v21, %v991_v60  ;;  %v1349_v38 = vadd.f32 %v1345_v11, %v1341_v58  ;;  %v984_v6 = vsel %vm745_vm15, %v6221_v48, %v6216_v19  ;;  %v985_v26 = vsel %vm745_vm15, %v6222_v25, %v6219_v13  ;;  %v6229_v41 = vld [vmem:[#allocation62_spill] sm:$0xff]  ;;  %v6230_v31 = vld [vmem:[#allocation4_spill] sm:$0xff]  ;;  %v6235_v25 = vld [vmem:[#allocation131_spill] sm:$0xff] }
 0x44a   : > { %v1027_v36 = vadd.f32 %v6223_v4, %v993_v2  ;;  %v1351_v8 = vmul.f32 %v3364_v51, %v6180_v43  ;;  %v956_v27 = vadd.f32 %v950_v46, %v922_v44  ;;  %v958_v18 = vadd.f32 %v951_v28, %v924_v63  ;;  %v6231_v11 = vld [vmem:[#allocation130_spill] sm:$0xff]  ;;  %v6233_v13 = vld [vmem:[#allocation132_spill] sm:$0xff] }
 0x44b   : > { %v1358_v40 = vadd.f32 %v4982_v23, %v1350_v12  ;;  %v1353_v32 = vmul.f32 %v3364_v51, %v6192_v55  ;;  %v1018_v7 = vsel %vm745_vm15, %v6224_v17, %v6220_v21  ;;  %v1019_v30 = vsel %vm745_vm15, %v6225_v49, %v6223_v4  ;;  %v6228_v55 = vld [vmem:[#allocation112_spill] sm:$0xff]  ;;  %v6234_v2 = vld [vmem:[#allocation114_spill] sm:$0xff]  ;;  %v5125_v21 = vpop.permute.xlu0 %1875  ;;  %v6240_v17 = vld [vmem:[#allocation133_spill] sm:$0xff] }
 0x44c   : > { %v5088_v56 = vpop.permute.xlu1 %1821  ;;  %v1355_v43 = vadd.f32 %v1351_v8, %v1347_v57  ;;  %v1359_v5 = vmul.f32 %v3622_v59, %v6181_v37  ;;  %v990_v61 = vadd.f32 %v984_v6, %v956_v27  ;;  %v992_v58 = vadd.f32 %v985_v26, %v958_v18  ;;  %v6237_v26 = vld [vmem:[#allocation134_spill] sm:$0xff]  ;;  %v6239_v8 = vld [vmem:[#allocation136_spill] sm:$0xff] }
 0x44d   : > { %v1059_v9 = vadd.f32 %v6226_v29, %v1025_v14  ;;  %v1357_v23 = vadd.f32 %v1353_v32, %v1349_v38  ;;  %v1052_v51 = vsel %vm745_vm15, %v6227_v3, %v6226_v29  ;;  %v1053_v12 = vsel %vm745_vm15, %v6229_v41, %v6228_v55  ;;  %v6244_v3 = vld [vmem:[#allocation137_spill] sm:$0xff] }
 0x44e   : > { %v1061_v20 = vadd.f32 %v6228_v55, %v1027_v36  ;;  %v5110_v1 = vmul.u32 3, %v6230_v31  ;;  %v1024_v37 = vadd.f32 %v1018_v7, %v990_v61  ;;  %v1026_v60 = vadd.f32 %v1019_v30, %v992_v58  ;;  %v6238_v36 = vld [vmem:[#allocation118_spill] sm:$0xff]  ;;  %v6243_v58 = vld [vmem:[#allocation160_spill] sm:$0xff] }
 0x44f   : > { %v1093_v45 = vadd.f32 %v6231_v11, %v1059_v9  ;;  %v1361_v46 = vmul.f32 %v3622_v59, %v6193_v10  ;;  %v1086_v28 = vsel %vm745_vm15, %v6232_v54, %v6231_v11  ;;  %v1087_v57 = vsel %vm745_vm15, %v6234_v2, %v6233_v13  ;;  %v6236_v10 = vld [vmem:[#allocation116_spill] sm:$0xff]  ;;  %v6247_v31 = vld [vmem:[#allocation138_spill] sm:$0xff]  ;;  %v5161_v54 = vpop.permute.xlu0 %2583 }
 0x450   : > { %v5112_v19 = vpop.permute.xlu1 %2529  ;;  %v1095_v44 = vadd.f32 %v6233_v13, %v1061_v20  ;;  %v1366_v63 = vadd.f32 %v4986_v47, %v1358_v40  ;;  %v1058_v14 = vadd.f32 %v1052_v51, %v1024_v37  ;;  %v1060_v38 = vadd.f32 %v1053_v12, %v1026_v60  ;;  %v6245_v55 = vld [vmem:[#allocation140_spill] sm:$0xff]  ;;  %v6246_v12 = vld [vmem:[#allocation139_spill] sm:$0xff]  ;;  %v6248_v60 = vld [vmem:[#allocation162_spill] sm:$0xff] }
 0x451   : > { %v1363_v48 = vadd.f32 %v1359_v5, %v1355_v43  ;;  %v1365_v6 = vadd.f32 %v1361_v46, %v1357_v23  ;;  %v1390_v59 = vadd.f32 %v6235_v25, %v1364_v16  ;;  %v1120_v4 = vsel %vm745_vm15, %v6237_v26, %v6236_v10  ;;  %v6241_v16 = vld [vmem:[#allocation135_spill] sm:$0xff]  ;;  %v6242_v5 = vld [vmem:[#allocation158_spill] sm:$0xff]  ;;  %v6250_v13 = vld [vmem:[#allocation141_spill] sm:$0xff] }
 0x452   : > { %v1121_v27 = vsel %vm745_vm15, %v6239_v8, %v6238_v36  ;;  %v5135_v18 = vadd.s32 4294967295, %v5110_v1  ;;  %v1092_v40 = vadd.f32 %v1086_v28, %v1058_v14  ;;  %v1094_v32 = vadd.f32 %v1087_v57, %v1060_v38  ;;  %v6251_v57 = vld [vmem:[#allocation142_spill] sm:$0xff] }
 0x453   : > { %v1392_v7 = vadd.f32 %v6240_v17, %v1366_v63  ;;  %v1127_v49 = vadd.f32 %v6236_v10, %v1093_v45  ;;  %v1416_v30 = vadd.f32 %v6241_v16, %v1390_v59  ;;  %v1129_v43 = vadd.f32 %v6238_v36, %v1095_v44  ;;  %v6249_v45 = vld [vmem:[#allocation164_spill] sm:$0xff]  ;;  %v6253_v59 = vld [vmem:[#allocation143_spill] sm:$0xff]  ;;  %v6254_v26 = vld [vmem:[#allocation166_spill] sm:$0xff] }
 0x454   : > { %v5137_v47 = vpop.permute.xlu1 %2533  ;;  %v1383_v61 = vsel %vm745_vm15, %v6242_v5, %v6235_v25  ;;  %v1384_v29 = vsel %vm745_vm15, %v6243_v58, %v6240_v17  ;;  %v1126_v9 = vadd.f32 %v1120_v4, %v1092_v40  ;;  %v1128_v23 = vadd.f32 %v1121_v27, %v1094_v32  ;;  %v6252_v44 = vld [vmem:[#allocation120_spill] sm:$0xff]  ;;  %v6256_v40 = vld [vmem:[#allocation122_spill] sm:$0xff]  ;;  %v6260_v5 = vld [vmem:[#allocation145_spill] sm:$0xff] }
 0x455   : > { %v1418_v51 = vadd.f32 %v6244_v3, %v1392_v7  ;;  %v1161_v41 = vadd.f32 %v6245_v55, %v1127_v49  ;;  %v1442_v20 = vadd.f32 %v6246_v12, %v1416_v30  ;;  %v1154_v37 = vsel %vm745_vm15, %v6247_v31, %v6245_v55  ;;  %v6255_v36 = vld [vmem:[#allocation168_spill] sm:$0xff]  ;;  %v6258_v49 = vld [vmem:[#allocation147_spill] sm:$0xff]  ;;  %v6259_v30 = vld [vmem:[#allocation170_spill] sm:$0xff] }
 0x456   : > { %v1409_v11 = vsel %vm745_vm15, %v6248_v60, %v6241_v16  ;;  %v1410_v46 = vsel %vm745_vm15, %v6249_v45, %v6244_v3  ;;  %v1155_v63 = vsel %vm745_vm15, %v6252_v44, %v6251_v57  ;;  %v1389_v14 = vadd.f32 %v1383_v61, %v1363_v48  ;;  %v6257_v48 = vld [vmem:[#allocation144_spill] sm:$0xff] }
 0x457   : > { %v1444_v2 = vadd.f32 %v6250_v13, %v1418_v51  ;;  %v1391_v38 = vadd.f32 %v1384_v29, %v1365_v6  ;;  %v1163_v25 = vadd.f32 %v6251_v57, %v1129_v43  ;;  %v1468_v10 = vadd.f32 %v6253_v59, %v1442_v20  ;;  %v6261_v61 = vld [vmem:[#allocation172_spill] sm:$0xff] }
 0x458   : > { %v5163_v28 = vpop.permute.xlu1 %1843  ;;  %v1435_v4 = vsel %vm745_vm15, %v6254_v26, %v6246_v12  ;;  %v1436_v8 = vsel %vm745_vm15, %v6255_v36, %v6250_v13  ;;  %v1160_v27 = vadd.f32 %v1154_v37, %v1126_v9  ;;  %v1195_v32 = vadd.f32 %v6256_v40, %v1161_v41  ;;  %v6262_v41 = vld [vmem:[#allocation151_spill] sm:$0xff]  ;;  %v6263_v20 = vld [vmem:[#allocation124_spill] sm:$0xff]  ;;  %v6264_v37 = vld [vmem:[#allocation174_spill] sm:$0xff]  ;;  %v5199_v13 = vpop.permute.xlu0 %2587 }
 0x459   : > { %v1415_v17 = vadd.f32 %v1409_v11, %v1389_v14  ;;  %v1417_v7 = vadd.f32 %v1410_v46, %v1391_v38  ;;  %v1188_v6 = vsel %vm745_vm15, %v6257_v48, %v6256_v40  ;;  %v1494_v16 = vadd.f32 %v6258_v49, %v1468_v10  ;;  %v6265_v11 = vld [vmem:[#allocation149_spill] sm:$0xff]  ;;  %v6266_v45 = vld [vmem:[#allocation176_spill] sm:$0xff]  ;;  %v6268_v38 = vld [vmem:[#allocation155_spill] sm:$0xff] }
 0x45a   : > { %v1461_v43 = vsel %vm745_vm15, %v6259_v30, %v6253_v59  ;;  %v1462_v58 = vsel %vm745_vm15, %v6261_v61, %v6260_v5  ;;  %v1162_v9 = vadd.f32 %v1155_v63, %v1128_v23  ;;  %v1470_v3 = vadd.f32 %v6260_v5, %v1444_v2  ;;  %v6267_v63 = vld [vmem:[#allocation146_spill] sm:$0xff]  ;;  %v6270_v26 = vld [vmem:[#allocation153_spill] sm:$0xff]  ;;  %v6273_v40 = vld [vmem:[#allocation148_spill] sm:$0xff] }
 0x45b   : > { %v1441_v51 = vadd.f32 %v1435_v4, %v1415_v17  ;;  %v1443_v55 = vadd.f32 %v1436_v8, %v1417_v7  ;;  %v1520_v12 = vadd.f32 %v6262_v41, %v1494_v16  ;;  %v1197_v31 = vadd.f32 %v6263_v20, %v1163_v25  ;;  %v6269_v59 = vld [vmem:[#allocation178_spill] sm:$0xff]  ;;  %v6271_v4 = vld [vmem:[#allocation180_spill] sm:$0xff]  ;;  %v6274_v16 = vld [vmem:[#allocation159_spill] sm:$0xff] }
 0x45c   : > { %v5188_v29 = vpop.permute.xlu1 %1847  ;;  %v1487_v60 = vsel %vm745_vm15, %v6264_v37, %v6258_v49  ;;  %v1488_v46 = vsel %vm745_vm15, %v6266_v45, %v6265_v11  ;;  %v1194_v57 = vadd.f32 %v1188_v6, %v1160_v27  ;;  %v1496_v23 = vadd.f32 %v6265_v11, %v1470_v3  ;;  %v6272_v27 = vld [vmem:[#allocation150_spill] sm:$0xff]  ;;  %v6276_v61 = vld [vmem:[#allocation157_spill] sm:$0xff]  ;;  %v6278_v37 = vld [vmem:[#allocation163_spill] sm:$0xff] }
 0x45d   : > { %v1467_v2 = vadd.f32 %v1461_v43, %v1441_v51  ;;  %v1469_v44 = vadd.f32 %v1462_v58, %v1443_v55  ;;  %v1189_v14 = vsel %vm745_vm15, %v6267_v63, %v6263_v20  ;;  %v1546_v25 = vadd.f32 %v6268_v38, %v1520_v12  ;;  %v6275_v43 = vld [vmem:[#allocation182_spill] sm:$0xff]  ;;  %v6277_v58 = vld [vmem:[#allocation184_spill] sm:$0xff]  ;;  %v6280_v45 = vld [vmem:[#allocation161_spill] sm:$0xff] }
 0x45e   : > { %v1513_v10 = vsel %vm745_vm15, %v6269_v59, %v6262_v41  ;;  %v1514_v36 = vsel %vm745_vm15, %v6271_v4, %v6270_v26  ;;  %v1222_v17 = vsel %vm745_vm15, %v6273_v40, %v6272_v27  ;;  %v1522_v7 = vadd.f32 %v6270_v26, %v1496_v23  ;;  %v6285_v4 = vld [vmem:[#allocation190_spill] sm:$0xff]  ;;  %v6287_v40 = vld [vmem:[#allocation192_spill] sm:$0xff] }
 0x45f   : > { %v1493_v48 = vadd.f32 %v1487_v60, %v1467_v2  ;;  %v1495_v6 = vadd.f32 %v1488_v46, %v1469_v44  ;;  %v1229_v49 = vadd.f32 %v6272_v27, %v1195_v32  ;;  %v1572_v30 = vadd.f32 %v6274_v16, %v1546_v25  ;;  %v6279_v32 = vld [vmem:[#allocation186_spill] sm:$0xff]  ;;  %v6281_v46 = vld [vmem:[#allocation188_spill] sm:$0xff]  ;;  %v5236_v2 = vpop.permute.xlu0 %1897  ;;  %v6283_v25 = vld [vmem:[#allocation127_spill] sm:$0xff] }
 0x460   : > { %v5212_v8 = vpop.permute.xlu1 %2555  ;;  %v1539_v5 = vsel %vm745_vm15, %v6275_v43, %v6268_v38  ;;  %v1540_v3 = vsel %vm745_vm15, %v6277_v58, %v6276_v61  ;;  %v1196_v51 = vadd.f32 %v1189_v14, %v1162_v9  ;;  %v1548_v55 = vadd.f32 %v6276_v61, %v1522_v7  ;;  %v6286_v27 = vld [vmem:[#allocation165_spill] sm:$0xff]  ;;  %v6288_v7 = vld [vmem:[#allocation152_spill] sm:$0xff]  ;;  %v6291_v58 = vld [vmem:[#allocation194_spill] sm:$0xff] }
 0x461   : > { %v1519_v41 = vadd.f32 %v1513_v10, %v1493_v48  ;;  %v1521_v12 = vadd.f32 %v1514_v36, %v1495_v6  ;;  %v5227_v20 = vadd.f32 %v1222_v17, %v1194_v57  ;;  %v1598_v60 = vadd.f32 %v6278_v37, %v1572_v30  ;;  %v6282_v57 = vld [vmem:[#allocation5_spill] sm:$0xff]  ;;  %v6284_v10 = vld [vmem:[#allocation167_spill] sm:$0xff]  ;;  %v6289_v48 = vld [vmem:[#allocation126_spill] sm:$0xff] }
 0x462   : > { %v1565_v11 = vsel %vm745_vm15, %v6279_v32, %v6274_v16  ;;  %v1566_v23 = vsel %vm745_vm15, %v6281_v46, %v6280_v45  ;;  %v1574_v9 = vadd.f32 %v6280_v45, %v1548_v55  ;;  %v5242_v38 = vmul.u32 3, %v6282_v57  ;;  %v6292_v55 = vld [vmem:[#allocation169_spill] sm:$0xff]  ;;  %v6294_v46 = vld [vmem:[#allocation175_spill] sm:$0xff]  ;;  %v6297_v57 = vld [vmem:[#allocation14_spill] sm:$0xff] }
 0x463   : > { %v1545_v63 = vadd.f32 %v1539_v5, %v1519_v41  ;;  %v1547_v14 = vadd.f32 %v1540_v3, %v1521_v12  ;;  %v5245_v59 = vadd.f32 %v6283_v25, %v1229_v49  ;;  %v1624_v26 = vadd.f32 %v6284_v10, %v1598_v60  ;;  %v6290_v5 = vld [vmem:[#allocation171_spill] sm:$0xff]  ;;  %v6293_v41 = vld [vmem:[#allocation196_spill] sm:$0xff] }
 0x464   : > { %v5238_v44 = vpop.permute.xlu1 %2559  ;;  %v1591_v36 = vsel %vm745_vm15, %v6285_v4, %v6278_v37  ;;  %v1592_v17 = vsel %vm745_vm15, %v6287_v40, %v6286_v27  ;;  %v1223_v6 = vsel %vm745_vm15, %v6289_v48, %v6288_v7  ;;  %v1600_v16 = vadd.f32 %v6286_v27, %v1574_v9  ;;  %v6295_v9 = vld [vmem:[#allocation59_spill] sm:$0xff] }
 0x465   : > { %v1571_v30 = vadd.f32 %v1565_v11, %v1545_v63  ;;  %v1573_v43 = vadd.f32 %v1566_v23, %v1547_v14  ;;  %v1231_v49 = vadd.f32 %v6288_v7, %v1197_v31  ;;  %v1650_v61 = vadd.f32 %v6290_v5, %v1624_v26  ;;  %v6296_v14 = vld [vmem:[#allocation173_spill] sm:$0xff]  ;;  %v5278_v26 = vpop.permute.xlu0 %1901  ;;  %v6299_v7 = vld [vmem:[#allocation179_spill] sm:$0xff] }
 0x466   : > { %v1617_v3 = vsel %vm745_vm15, %v6291_v58, %v6284_v10  ;;  %v1618_v12 = vsel %vm745_vm15, %v6293_v41, %v6292_v55  ;;  %v1626_v60 = vadd.f32 %v6292_v55, %v1600_v16  ;;  %v1272_v11 = vadd.s32 4294967295, %v5242_v38  ;;  %v6300_v16 = vld [vmem:[#allocation15_spill] sm:$0xff] }
 0x467   : > { %v1597_v32 = vadd.f32 %v1591_v36, %v1571_v30  ;;  %v1599_v45 = vadd.f32 %v1592_v17, %v1573_v43  ;;  %v1268_v31 = vand.u32 2147483647, %v5245_v59  ;;  %v1676_v23 = vadd.f32 %v6294_v46, %v1650_v61  ;;  %v6298_v17 = vld [vmem:[#allocation129_spill] sm:$0xff]  ;;  %v6303_v55 = vld [vmem:[#allocation183_spill] sm:$0xff] }
 0x468   : > { %v5266_v37 = vpop.permute.xlu1 %1869  ;;  %v1643_v63 = vsel %vm745_vm15, %v6295_v9, %v6290_v5  ;;  %v1644_v10 = vsel %vm745_vm15, %v6297_v57, %v6296_v14  ;;  %v5280_v4 = vadd.f32 %v1223_v6, %v1196_v51  ;;  %v1652_v36 = vadd.f32 %v6296_v14, %v1626_v60  ;;  %v6301_v43 = vld [vmem:[#allocation177_spill] sm:$0xff]  ;;  %v6302_v5 = vld [vmem:[#allocation60_spill] sm:$0xff]  ;;  %v6304_v41 = vld [vmem:[#allocation63_spill] sm:$0xff] }
 0x469   : > { %v1623_v27 = vadd.f32 %v1617_v3, %v1597_v32  ;;  %v1625_v40 = vadd.f32 %v1618_v12, %v1599_v45  ;;  %v5284_v59 = vadd.f32 %v6298_v17, %v1231_v49  ;;  %v1702_v48 = vadd.f32 %v6299_v7, %v1676_v23  ;;  %v6305_v60 = vld [vmem:[#allocation181_spill] sm:$0xff]  ;;  %v6307_v57 = vld [vmem:[#allocation187_spill] sm:$0xff] }
 0x46a   : > { %v1669_v30 = vsel %vm745_vm15, %v6300_v16, %v6294_v46  ;;  %v1670_v61 = vsel %vm745_vm15, %v6302_v5, %v6301_v43  ;;  %v1678_v51 = vadd.f32 %v6301_v43, %v1652_v36  ;;  %vm1274_vm1 = vcmp.ge.s32.totalorder %v1272_v11, 0  ;;  %v6306_v32 = vld [vmem:[#allocation69_spill] sm:$0xff]  ;;  %v6308_v36 = vld [vmem:[#allocation16_spill] sm:$0xff]  ;;  %v5314_v16 = vpop.permute.xlu0 %2609 }
 0x46b   : > { %v1649_v6 = vadd.f32 %v1643_v63, %v1623_v27  ;;  %v1651_v3 = vadd.f32 %v1644_v10, %v1625_v40  ;;  %v1728_v49 = vadd.f32 %v6303_v55, %v1702_v48  ;;  %v1695_v12 = vsel %vm745_vm15, %v6304_v41, %v6299_v7  ;;  %v6309_v40 = vld [vmem:[#allocation185_spill] sm:$0xff] }
 0x46c   : > { %v5293_v58 = vpop.permute.xlu1 %1873  ;;  %v1696_v45 = vsel %vm745_vm15, %v6306_v32, %v6305_v60  ;;  %v2518_v46 = vadd.f32 %v5041_v52, %v4993_v0  ;;  %v1704_v23 = vadd.f32 %v6305_v60, %v1678_v51  ;;  %vm1276_vm2 = vcmp.lt.s32.totalorder %v1272_v11, 400  ;;  %v6310_v7 = vld [vmem:[#allocation17_spill] sm:$0xff]  ;;  %v6315_v60 = vld [vmem:[#allocation66_spill] sm:$0xff]  ;;  %v6319_v11 = vld [vmem:[#allocation68_spill] sm:$0xff] }
 0x46d   : > { %v1675_v9 = vadd.f32 %v1669_v30, %v1649_v6  ;;  %v1677_v14 = vadd.f32 %v1670_v61, %v1651_v3  ;;  %v1270_v63 = vand.u32 2147483647, %v5284_v59  ;;  %v1754_v10 = vadd.f32 %v6307_v57, %v1728_v49  ;;  %v6311_v30 = vld [vmem:[#allocation154_spill] sm:$0xff]  ;;  %v6312_v6 = vld [vmem:[#allocation191_spill] sm:$0xff]  ;;  %v6314_v41 = vld [vmem:[#allocation189_spill] sm:$0xff] }
 0x46e   : > { %v1721_v27 = vsel %vm745_vm15, %v6308_v36, %v6303_v55  ;;  %v1722_v48 = vsel %vm745_vm15, %v6310_v7, %v6309_v40  ;;  %v1257_v43 = vsel %vm1256_vm0, %v6311_v30, %v6283_v25  ;;  %v1730_v5 = vadd.f32 %v6309_v40, %v1704_v23  ;;  %v6313_v55 = vld [vmem:[#allocation82_spill] sm:$0xff]  ;;  %vm5330_vm3 = vmand %vm1274_vm1, %vm1276_vm2  ;;  %v6320_v7 = vld [vmem:[#allocation193_spill] sm:$0xff] }
 0x46f   : > { %v1701_v61 = vadd.f32 %v1695_v12, %v1675_v9  ;;  %v1703_v51 = vadd.f32 %v1696_v45, %v1677_v14  ;;  %v1780_v3 = vadd.f32 %v6312_v6, %v1754_v10  ;;  %v1747_v49 = vsel %vm745_vm15, %v6313_v55, %v6307_v57  ;;  %v6318_v57 = vld [vmem:[#allocation195_spill] sm:$0xff]  ;;  %v6321_v30 = vld [vmem:[#allocation18_spill] sm:$0xff] }
 0x470   : > { %v5316_v0 = vpop.permute.xlu1 %2581  ;;  %v1748_v32 = vsel %vm745_vm15, %v6315_v60, %v6314_v41  ;;  %v2544_v25 = vadd.f32 %v4898_v50, %v2518_v46  ;;  %v1756_v12 = vadd.f32 %v6314_v41, %v1730_v5  ;;  %v2520_v9 = vadd.f32 %v5064_v53, %v5021_v35 }
 0x471   : > { %v1727_v45 = vadd.f32 %v1721_v27, %v1701_v61  ;;  %v1729_v23 = vadd.f32 %v1722_v48, %v1703_v51  ;;  %v5339_v14 = vadd.f32 %v1257_v43, %v5227_v20  ;;  %v1806_v10 = vadd.f32 %v6318_v57, %v1780_v3  ;;  %v6322_v20 = vld [vmem:[#allocation19_spill] sm:$0xff]  ;;  %v6323_v61 = vld [vmem:[#allocation197_spill] sm:$0xff]  ;;  %v6324_v51 = vld [vmem:[#allocation198_spill] sm:$0xff] }
 0x472   : > { %v1773_v40 = vsel %vm1256_vm0, %v6319_v11, %v6312_v6  ;;  %v1774_v46 = vsel %vm1256_vm0, %v6321_v30, %v6320_v7  ;;  %v1782_v27 = vadd.f32 %v6320_v7, %v1756_v12  ;;  %v5353_v35 = vsel %vm5330_vm3, %v1268_v31, -inf  ;;  %v6325_v3 = vld [vmem:[#allocation50_spill] sm:$0xff]  ;;  %v5363_v11 = vpop.permute.xlu0 %2613 }
 0x473   : > { %v1753_v48 = vadd.f32 %v1747_v49, %v1727_v45  ;;  %v1755_v5 = vadd.f32 %v1748_v32, %v1729_v23  ;;  %v1799_v43 = vsel %vm1256_vm0, %v6322_v20, %v6318_v57  ;;  %v1800_v6 = vsel %vm1256_vm0, %v6324_v51, %v6323_v61  ;;  %v6326_v23 = vld [vmem:[#allocation156_spill] sm:$0xff] }
 0x474   : > { %v5348_v55 = vpop.permute.xlu1 %2585  ;;  %v1832_v41 = vadd.f32 %v6325_v3, %v1806_v10  ;;  %v2570_v60 = vadd.f32 %v5016_v34, %v2544_v25  ;;  %v2546_v12 = vadd.f32 %v4924_v33, %v2520_v9  ;;  %v5367_v31 = vadd.s32 1, %v5242_v38 }
 0x475   : > { %v1779_v49 = vadd.f32 %v1773_v40, %v1753_v48  ;;  %v1781_v32 = vadd.f32 %v1774_v46, %v1755_v5  ;;  %v1267_v45 = vand.u32 2147483647, %v5339_v14  ;;  %v5373_v57 = vsel %vm1256_vm0, %v6326_v23, %v6298_v17  ;;  %v6327_v46 = vld [vmem:[#allocation200_spill] sm:$0xff]  ;;  %v6328_v48 = vld [vmem:[#allocation199_spill] sm:$0xff] }
 0x476   : > { %v1808_v10 = vadd.f32 %v6323_v61, %v1782_v27  ;;  %v1858_v25 = vadd.f32 %v4946_v39, %v1832_v41  ;;  %v1825_v9 = vsel %vm1256_vm0, %v6327_v46, %v6325_v3  ;;  %vm1918_vm4 = vcmp.ge.s32.totalorder %v5242_v38, 0  ;;  %v5393_v3 = vpop.permute.xlu0 %2635 }
 0x477   : > { %v1805_v30 = vadd.f32 %v1799_v43, %v1779_v49  ;;  %v1807_v40 = vadd.f32 %v1800_v6, %v1781_v32  ;;  %vm1920_vm5 = vcmp.lt.s32.totalorder %v5242_v38, 400  ;;  %v2596_v17 = vadd.f32 %v5161_v54, %v2570_v60  ;;  %v6329_v60 = vld [vmem:[#allocation31_spill] sm:$0xff] }
 0x478   : > { %v1896_v7 = vpop.permute.xlu1 %1895  ;;  %v1834_v5 = vadd.f32 %v6328_v48, %v1808_v10  ;;  %v1884_v20 = vadd.f32 %v5086_v22, %v1858_v25  ;;  %v2572_v27 = vadd.f32 %v5053_v24, %v2546_v12  ;;  %vm2658_vm6 = vcmp.ge.s32.totalorder %v5367_v31, 0  ;;  %vm5425_vm12 = vmand %vm1918_vm4, %vm1920_vm5 }
 0x479   : > { %vm2660_vm7 = vcmp.lt.s32.totalorder %v5367_v31, 400  ;;  %v1851_v43 = vsel %vm1256_vm0, %v5163_v28, %v4946_v39  ;;  %v1831_v61 = vadd.f32 %v1825_v9, %v1805_v30  ;;  %vm1917_vm8 = vcmp.ge.s32.totalorder %v5110_v1, 0 }
 0x47a   : > { %v1860_v51 = vadd.f32 %v4974_v15, %v1834_v5  ;;  %v1910_v6 = vadd.f32 %v5236_v2, %v1884_v20  ;;  %vm1273_vm9 = vcmp.ge.s32.totalorder %v5135_v18, 0  ;;  %vm1275_vm10 = vcmp.lt.s32.totalorder %v5135_v18, 400  ;;  %vm5461_vm13 = vmand %vm2658_vm6, %vm2660_vm7 }
 0x47b   : > { %v2511_v49 = vsel %vm1256_vm0, %v6329_v60, %v5041_v52  ;;  %v1826_v39 = vsel %vm1256_vm0, %v5088_v56, %v6328_v48  ;;  %v1877_v28 = vsel %vm1256_vm0, %v5266_v37, %v5086_v22  ;;  %vm1919_vm11 = vcmp.lt.s32.totalorder %v5110_v1, 400  ;;  %vm5482_vm1 = vmand %vm1273_vm9, %vm1275_vm10 }
 0x47c   : > { %v1900_v41 = vpop.permute.xlu1 %1899  ;;  %v1886_v32 = vadd.f32 %v5125_v21, %v1860_v51  ;;  %v2622_v12 = vadd.f32 %v5314_v16, %v2596_v17  ;;  %v1857_v23 = vadd.f32 %v1851_v43, %v1831_v61  ;;  %v2655_v10 = vadd.s32 1, %v5110_v1  ;;  %vm5474_vm14 = vmand %vm1917_vm8, %vm1919_vm11 }
 0x47d   : > { %v2598_v25 = vadd.f32 %v5199_v13, %v2572_v27  ;;  %v2537_v52 = vsel %vm1256_vm0, %v5112_v19, %v4898_v50  ;;  %v1852_v56 = vsel %vm1256_vm0, %v5188_v29, %v4974_v15  ;;  %v1903_v22 = vsel %vm1256_vm0, %v1896_v7, %v5236_v2  ;;  %v6332_v50 = vld [vmem:[#allocation201_spill] sm:$0xff]  ;;  %v2640_v7 = vpop.permute.xlu0 %2639 }
 0x47e   : > { %v1914_v37 = vand.u32 2147483647, %v1910_v6  ;;  %v2517_v30 = vadd.f32 %v2511_v49, %v5002_v62  ;;  %v1833_v46 = vadd.f32 %v1826_v39, %v1807_v40  ;;  %v1883_v9 = vadd.f32 %v1877_v28, %v1857_v23 }
 0x47f   : > { %v2512_v15 = vsel %vm1256_vm0, %v6332_v50, %v5064_v53  ;;  %v2648_v19 = vadd.f32 %v5393_v3, %v2622_v12  ;;  %v2563_v62 = vsel %vm1256_vm0, %v5212_v8, %v5016_v34  ;;  %v1878_v29 = vsel %vm1256_vm0, %v5293_v58, %v5125_v21 }
 0x480   : > { %v2608_v48 = vpop.permute.xlu1 %2607  ;;  %v1912_v2 = vadd.f32 %v5278_v26, %v1886_v32  ;;  %v2543_v38 = vadd.f32 %v2537_v52, %v2517_v30  ;;  %v1859_v40 = vadd.f32 %v1852_v56, %v1833_v46  ;;  %v1909_v20 = vadd.f32 %v1903_v22, %v1883_v9 }
 0x481   : > { %v2624_v17 = vadd.f32 %v5363_v11, %v2598_v25  ;;  %v2538_v53 = vsel %vm1256_vm0, %v5137_v47, %v4924_v33  ;;  %v2589_v34 = vsel %vm1256_vm0, %v5316_v0, %v5161_v54  ;;  %v1904_v8 = vsel %vm1256_vm0, %v1900_v41, %v5278_v26 }
 0x482   : > { %v1928_v21 = vsel %vm5425_vm12, %v1914_v37, -inf  ;;  %v2519_v58 = vadd.f32 %v2512_v15, %v5029_v42  ;;  %v2569_v27 = vadd.f32 %v2563_v62, %v2543_v38  ;;  %v1885_v43 = vadd.f32 %v1878_v29, %v1859_v40  ;;  %v2714_v40 = vld [vmem:[%s5551_s4 + $0x8] sm:$0xff] }
 0x483   : > { %v2652_v51 = vand.u32 2147483647, %v2648_v19  ;;  %v2650_v6 = vadd.f32 %v2640_v7, %v2624_v17  ;;  %v2564_v33 = vsel %vm1256_vm0, %v5238_v44, %v5053_v24  ;;  %v2615_v47 = vsel %vm1256_vm0, %v2608_v48, %v5314_v16 }
 0x484   : > { %v2612_v61 = vpop.permute.xlu1 %2611  ;;  %v2545_v42 = vadd.f32 %v2538_v53, %v2519_v58  ;;  %v2595_v26 = vadd.f32 %v2589_v34, %v2569_v27  ;;  %v1913_v0 = vand.u32 2147483647, %v1909_v20  ;;  %v1911_v41 = vadd.f32 %v1904_v8, %v1885_v43  ;;  %v2729_v20 = vld [vmem:[%s5552_s5] sm:$0xff] }
 0x485   : > { %v1265_v60 = vadd.f32 %v5373_v57, %v5280_v4  ;;  %v1916_v49 = vand.u32 2147483647, %v1912_v2  ;;  %v2590_v24 = vsel %vm1256_vm0, %v5348_v55, %v5199_v13  ;;  %vm2657_vm15 = vcmp.ge.s32.totalorder %v2655_v10, 0 }
 0x486   : > { %v1932_v16 = vmax.f32 %v5353_v35, %v1928_v21  ;;  %v2571_v13 = vadd.f32 %v2564_v33, %v2545_v42  ;;  %v2621_v55 = vadd.f32 %v2615_v47, %v2595_v26  ;;  %vm2659_vm2 = vcmp.lt.s32.totalorder %v2655_v10, 400 }
 0x487   : > { %v2668_v1 = vsel %vm5461_vm13, %v2652_v51, -inf  ;;  %v2654_v57 = vand.u32 2147483647, %v2650_v6  ;;  %v2616_v39 = vsel %vm1256_vm0, %v2612_v61, %v5363_v11  ;;  %v1927_v32 = vsel %vm5474_vm14, %v1913_v0, -inf  ;;  %vm5506_vm4 = vmand %vm2657_vm15, %vm2659_vm2  ;;  %v2730_v0 = vld [vmem:[%s5552_s5 + $0x8] sm:$0xff] }
 0x488   : > { %v2634_v31 = vpop.permute.xlu1 %2633  ;;  %v2597_v28 = vadd.f32 %v2590_v24, %v2571_v13  ;;  %v1915_v12 = vand.u32 2147483647, %v1911_v41  ;;  %v1283_v23 = vsel %vm5482_vm1, %v1267_v45, -inf  ;;  %v1286_v25 = vsel %vm5330_vm3, %v1270_v63, -inf  ;;  %v2713_v41 = vld [vmem:[%s5551_s4] sm:$0xff] }
 0x489   : > { %v2641_v18 = vsel %vm1256_vm0, %v2634_v31, %v5393_v3  ;;  %v1930_v11 = vsel %vm5425_vm12, %v1916_v49, -inf  ;;  %v1269_v52 = vand.u32 2147483647, %v1265_v60  ;;  %v2672_v56 = vmax.f32 %v1932_v16, %v2668_v1 }
 0x48a   : > { %v2647_v35 = vadd.f32 %v2641_v18, %v2621_v55  ;;  %v2623_v22 = vadd.f32 %v2616_v39, %v2597_v28  ;;  %v2670_v45 = vsel %vm5461_vm13, %v2654_v57, -inf  ;;  %v1931_v59 = vmax.f32 %v1283_v23, %v1927_v32 }
 0x48b   : > { %vm2675_vm3 = vcmask 48128   ;;  %v1934_v63 = vmax.f32 %v1286_v25, %v1930_v11  ;;  %v1929_v10 = vsel %vm5474_vm14, %v1915_v12, -inf  ;;  %v1285_v48 = vsel %vm5482_vm1, %v1269_v52, -inf }
 0x48c   : > { %v2651_v14 = vand.u32 2147483647, %v2647_v35  ;;  %v2638_v37 = vpop.permute.xlu1 %2637  ;;  %v2676_v15 = vsel %vm2675_vm3, %v2672_v56, 0.0  ;;  %v1933_v19 = vmax.f32 %v1285_v48, %v1929_v10 }
 0x48d   : > { %v2642_v36 = vsel %vm1256_vm0, %v2638_v37, %v2640_v7  ;;  %v2674_v5 = vmax.f32 %v1934_v63, %v2670_v45 }
 0x48e   : > { %v2667_v30 = vsel %vm5506_vm4, %v2651_v14, -inf  ;;  %v2649_v46 = vadd.f32 %v2642_v36, %v2623_v22 }
 0x48f   : > { %v2671_v9 = vmax.f32 %v1931_v59, %v2667_v30  ;;  %v2680_v38 = vsel %vm2675_vm3, %v2674_v5, 0.0 }
 0x490   : > { %v2653_v50 = vand.u32 2147483647, %v2649_v46 }
 0x491   : > { %v2677_v62 = vadd.f32 %v2676_v15, %v2671_v9 }
 0x492   : > { %v2669_v29 = vsel %vm5506_vm4, %v2653_v50, -inf }
 0x493   : > { %2678 = vadd.xlane.f32.xlu1 %v2677_v62  ;;  %v2673_v2 = vmax.f32 %v1933_v19, %v2669_v29 }
 0x495   : > { %v2681_v7 = vadd.f32 %v2680_v38, %v2673_v2 }
 0x497   : > { %2682 = vadd.xlane.f32.xlu0 %v2681_v7 }
 0x4a4   : > { %2722 = vperm.xlu1 %2930, %v2714_v40  }
 0x4a8   : > { %2733 = vperm.xlu1 %2930, %v2729_v20  }
 0x51c   : > { %v2679_v17 = vpop.xlane.xlu1 %2678 }
 0x51d   : > { %v2685_v53 = vmul.f32 0.0074626864, %v2679_v17 }
 0x51f   : > { %v2687_v34 = vsub.f32 %v2671_v9, %v2685_v53  ;;  %v2688_v8 = vsub.f32 %v2672_v56, %v2685_v53 }
 0x520   : > { %v2683_v21 = vpop.xlane.xlu0 %2682  ;;  %v2723_v60 = vpop.permute.xlu1 %2722 }
 0x521   : > { %v2691_v58 = vmul.f32 %v2687_v34, %v2687_v34  ;;  %v2692_v27 = vmul.f32 %v2688_v8, %v2688_v8  ;;  %v2686_v43 = vmul.f32 0.0074626864, %v2683_v21 }
 0x523   : > { %v2689_v61 = vsub.f32 %v2673_v2, %v2686_v43  ;;  %v2690_v51 = vsub.f32 %v2674_v5, %v2686_v43  ;;  %v2695_v6 = vsel %vm2675_vm3, %v2692_v27, 0.0 }
 0x524   : > { %v2696_v33 = vadd.f32 %v2695_v6, %v2691_v58  ;;  %v2734_v49 = vpop.permute.xlu1 %2733 }
 0x525   : > { %v2693_v47 = vmul.f32 %v2689_v61, %v2689_v61  ;;  %v2694_v54 = vmul.f32 %v2690_v51, %v2690_v51 }
 0x526   : > { %2697 = vadd.xlane.f32.xlu0 %v2696_v33 }
 0x527   : > { %v2699_v42 = vsel %vm2675_vm3, %v2694_v54, 0.0 }
 0x528   : > { %v2700_v26 = vadd.f32 %v2699_v42, %v2693_v47 }
 0x52a   : > { %2701 = vadd.xlane.f32.xlu1 %v2700_v26 }
 0x53b   : > { %2738 = vperm.xlu1 %2930, %v2730_v0  }
 0x53c   : > { %2717 = vperm.xlu0 %2929, %v2713_v41  }
 0x5af   : > { %v2698_v24 = vpop.xlane.xlu0 %2697 }
 0x5b0   : > { %v2703_v44 = vmul.f32 0.0074626864, %v2698_v24 }
 0x5b2   : > { %v2705_v4 = vadd.f32 1e-05, %v2703_v44 }
 0x5b3   : > { %v2702_v16 = vpop.xlane.xlu1 %2701 }
 0x5b4   : > { %2933 = vrsqrt.f32 %v2705_v4  ;;  %v2704_v13 = vmul.f32 0.0074626864, %v2702_v16 }
 0x5b6   : > { %v2706_v55 = vadd.f32 1e-05, %v2704_v13 }
 0x5b7   : > { %v2718_v1 = vpop.permute.xlu0 %2717  ;;  %v2739_v52 = vpop.permute.xlu1 %2738 }
 0x5b8   : > { %2935 = vrsqrt.f32 %v2706_v55 }
 0x5c1   : > { %v2934_v31 = vpop.eup %2933 }
 0x5c2   : > { %v2709_v57 = vmul.f32 %v2934_v31, %v2687_v34  ;;  %v2710_v39 = vmul.f32 %v2934_v31, %v2688_v8 }
 0x5c4   : > { %v2725_v18 = vmul.f32 %v2718_v1, %v2709_v57  ;;  %v2726_v28 = vmul.f32 %v2718_v1, %v2710_v39 }
 0x5c5   : > { %v2936_v32 = vpop.eup %2935 }
 0x5c6   : > { %v2711_v12 = vmul.f32 %v2936_v32, %v2689_v61  ;;  %v2712_v35 = vmul.f32 %v2936_v32, %v2690_v51  ;;  %v2741_v23 = vadd.f32 %v2734_v49, %v2725_v18  ;;  %v2742_v25 = vadd.f32 %v2734_v49, %v2726_v28 }
 0x5c8   : > { %v2727_v11 = vmul.f32 %v2723_v60, %v2711_v12  ;;  %v2728_v3 = vmul.f32 %v2723_v60, %v2712_v35  ;;  %vm2745_vm0 = vcmp.ge.f32.partialorder %v2741_v23, 0.0  ;;  %vm2746_vm5 = vcmp.ge.f32.partialorder %v2742_v25, 0.0 }
 0x5c9   : > { %v2749_v56 = vmul.f32 0.2, %v2741_v23  ;;  %v2750_v22 = vmul.f32 0.2, %v2742_v25 }
 0x5ca   : > { %v2743_v14 = vadd.f32 %v2739_v52, %v2727_v11  ;;  %v2744_v37 = vadd.f32 %v2739_v52, %v2728_v3 }
 0x5cb   : > { %v2753_v45 = vsel %vm2745_vm0, %v2741_v23, %v2749_v56  ;;  %v2754_v59 = vsel %vm2746_vm5, %v2742_v25, %v2750_v22 }
 0x5cc   : > { %vm2747_vm6 = vcmp.ge.f32.partialorder %v2743_v14, 0.0  ;;  %vm2748_vm7 = vcmp.ge.f32.partialorder %v2744_v37, 0.0  ;;  %v2751_v36 = vmul.f32 0.2, %v2743_v14  ;;  %v2752_v63 = vmul.f32 0.2, %v2744_v37  ;;  %2757 = vst [vmem:[%s253_s7] sm:$0xff] %v2753_v45 }
 0x5cd   : > { %2758 = vst.msk [vmem:[%s253_s7 + $0x8] sm:$0xff] %vm2675_vm3, %v2754_v59 }
 0x5ce   : > { %v2755_v10 = vsel %vm2747_vm6, %v2743_v14, %v2751_v36  ;;  %v2756_v30 = vsel %vm2748_vm7, %v2744_v37, %v2752_v63 }
 0x5cf   : > { %2759 = vst [vmem:[%s253_s7 + $0x10] sm:$0xff] %v2755_v10  ;;  %2760 = vst.msk [vmem:[%s253_s7 + $0x18] sm:$0xff] %vm2675_vm3, %v2756_v30 }
 0x5d0 PF: > { %s18_s25 = sadd.s32 1, %s2943_s25  }
 0x5d1   : > { %p15_p4 = scmp.ge.s32.totalorder %s18_s25, 4  }
 0x5d3   :  { %17 = sbr.rel (!%p15_p4) target bundleno = 3 (0x3), region = 74 }

// kernel: sinctdnn_forward.6
= control target key start
LH: loop header
LB: loop body
LE: loop exit
PB: predicated region body
PF: predicated region fallthrough
CT: control target
= control target key end

     0   :  { %s1885_s18 = smov 0   ;;  %s2096_s0 = inlined_call_operand.vmem [shape: f32[2,48,17], index: 0, kind: input, shape index: {}]   ;;  %s2097_s1 = inlined_call_operand.vmem [shape: f32[5,16,16], index: 1, kind: input, shape index: {}]   ;;  %s2098_s2 = inlined_call_operand.vmem [shape: f32[16,1], index: 2, kind: input, shape index: {}]   ;;  %s2099_s3 = inlined_call_operand.vmem [shape: f32[16,1], index: 3, kind: input, shape index: {}]   ;;  %s2100_s4 = inlined_call_operand.vmem [shape: f32[16,1], index: 4, kind: input, shape index: {}]   ;;  %s2101_s5 = inlined_call_operand.vmem [shape: f32[2,16,15], index: 5, kind: output, shape index: {}]  }
   0x1 LB: > { %s1612_s19 = sadd.s32 4294967295, %s1850_s18   ;;  %p1616_p0 = scmp.ge.s32.totalorder %s1850_s18, 1  ;;  %s1850_s18 = sphi %s1885_s18, %s15_s18  }
   0x2   : > { %p187_p1 = scmp.lt.s32.totalorder %s1850_s18, 3 }
   0x4   : > { %p188_p2 = pnand %p1616_p0, %p187_p1 }
   0x5   : > { %p215_p3 = scmp.lt.s32.totalorder (!%p188_p2), %s1612_s19, 1  ;;  %s1852_s28 = smov (!%p188_p2), 127  }
   0x6   : > { %191 = sbr.rel (%p188_p2) target bundleno = 682 (0x2aa), region = 40  ;;  %s1853_s16 = smov (!%p188_p2), 126  }
   0xb   : > { %v1896_v0 = vld [vmem:[%s2097_s1 + $0x10] sm:$0xff]  ;;  %vm239_vm0 = vcmask 130048   ;;  %v1901_v1 = vld [vmem:[%s2097_s1] sm:$0xff]  ;;  %s2109_s19 = smov (!%p215_p3, %s1612_s19), 1  ;;  %v1924_v6 = vld [vmem:[%s2097_s1 + $0x18] sm:$0xff]  ;;  %v1854_v16 = vmov 0   ;;  %v231_v41 = vlaneseq }
   0xc   : > { %1725 = vmatprep.mubr.msk.f32.mxu0 %vm239_vm0, %v1896_v0  ;;  %1732 = vmatprep.mubr.msk.f32.mxu1 %vm239_vm0, %v1901_v1  ;;  %s1826_s24 = smul.u32 48, %s2109_s19  ;;  %v1930_v7 = vld [vmem:[%s2097_s1 + $0x8] sm:$0xff]  ;;  %v1943_v10 = vld [vmem:[%s2097_s1 + $0x20] sm:$0xff]  ;;  %v1951_v11 = vld [vmem:[%s2097_s1 + $0x30] sm:$0xff]  ;;  %vm1493_vm10 = vcmask 121856   ;;  %s1660_s10 = sshll.u32 %s2109_s19, 4 }
   0xd   : > { %v1958_v12 = vld [vmem:[%s2097_s1 + $0x28] sm:$0xff]  ;;  %v1969_v13 = vld [vmem:[%s2097_s1 + $0x40] sm:$0xff]  ;;  %1839 = vset.pattern.permute.xlu1 %v1854_v16  ;;  %1838 = vset.pattern.permute.xlu0 %v1854_v16  ;;  %v1984_v21 = vld [vmem:[%s2097_s1 + $0x38] sm:$0xff]  ;;  %v232_v44 = vand.u32 127, %v231_v41  ;;  %s224_s13 = scalar_lea.vmem %s2101_s5, %s1660_s10 }
   0xe   : > { %s219_s27 = scalar_lea.vmem %s2096_s0, %s1826_s24  ;;  %v1480_v14 = vld [vmem:[%s2098_s2 + $0x8] sm:$0xff]  ;;  %v1479_v15 = vld [vmem:[%s2098_s2] sm:$0xff] }
   0xf   : > { %v1913_v2 = vld [vmem:[%s219_s27 + $0x18] sm:$0xff]  ;;  %v226_v3 = vld [vmem:[%s219_s27 + $0x8] sm:$0xff]  ;;  %v1916_v4 = vld [vmem:[%s219_s27 + $0x10] sm:$0xff]  ;;  %v233_v50 = vmul.u32 3, %v232_v44 }
  0x10   : > { %589 = vrot.lane.b32.xlu1 %v1913_v2, %s1852_s28  ;;  %495 = vrot.lane.b32.xlu0 %v226_v3, %s1852_s28  ;;  %v225_v5 = vld [vmem:[%s219_s27] sm:$0xff]  ;;  %v1932_v8 = vld [vmem:[%s219_s27 + $0x28] sm:$0xff] }
  0x11   : > { %1721 = vmatprep.subr.mxu0 %v1913_v2  ;;  %1728 = vmatprep.subr.mxu1 %v226_v3  ;;  %v1934_v9 = vld [vmem:[%s219_s27 + $0x20] sm:$0xff]  ;;  %v1989_v22 = vld [vmem:[%s2097_s1 + $0x48] sm:$0xff]  ;;  %v676_v59 = vadd.s32 4294967295, %v233_v50  ;;  %vm1073_vm1 = vcmp.ge.s32.totalorder %v233_v50, 0  ;;  %vm1074_vm2 = vcmp.lt.s32.totalorder %v233_v50, 45 }
  0x12   : > { %1722 = vmatpush3.msra.mxu0 %v1913_v2  ;;  %1729 = vmatpush3.msra.mxu1 %v226_v3  ;;  %vm2047_vm5 = vmand %vm1073_vm1, %vm1074_vm2  ;;  %v1522_v41 = vld [vmem:[%s2099_s3 + $0x8] sm:$0xff] }
  0x13   : > { %1723 = vmatprep.subr.mxu0 %v1916_v4  ;;  %1730 = vmatprep.subr.mxu1 %v225_v5  ;;  %vm677_vm3 = vcmp.ge.s32.totalorder %v676_v59, 0  ;;  %vm678_vm4 = vcmp.lt.s32.totalorder %v676_v59, 45 }
  0x14   : > { %587 = vrot.lane.b32.xlu1 %v1916_v4, %s1852_s28  ;;  %493 = vrot.lane.b32.xlu0 %v225_v5, %s1852_s28  ;;  %vm2051_vm8 = vmand %vm677_vm3, %vm678_vm4 }
  0x15   : > { %1724 = vmatpush3.msra.mxu0 %v1916_v4  ;;  %1731 = vmatpush3.msra.mxu1 %v225_v5 }
  0x16   : > { %1726 = vmatmul.mubr.msk.f32.vlgmr.msra.gmra.mxu0 %vm239_vm0, %v1924_v6  ;;  %1735 = vmatprep.subr.mxu0 %v1932_v8 }
  0x17   : > { %1736 = vmatpush3.msra.mxu0 %v1932_v8  ;;  %1733 = vmatmul.mubr.msk.f32.vlgmr.msra.gmra.mxu1 %vm239_vm0, %v1930_v7 }
  0x18   : > { %992 = vrot.lane.b32.xlu0 %v1932_v8, %s1852_s28  ;;  %990 = vrot.lane.b32.xlu1 %v1934_v9, %s1852_s28 }
  0x19   : > { %1737 = vmatprep.subr.mxu0 %v1934_v9  ;;  %1739 = vmatprep.mubr.msk.f32.mxu0 %vm239_vm0, %v1943_v10 }
  0x1a   : > { %1738 = vmatpush3.msra.mxu0 %v1934_v9  ;;  %1746 = vmatprep.mubr.msk.f32.mxu1 %vm239_vm0, %v1951_v11 }
  0x1b   : > { %1740 = vmatmul.mubr.msk.f32.vlgmr.msra.gmra.mxu0 %vm239_vm0, %v1958_v12 }
  0x1c   : > { %1388 = vrot.lane.b32.xlu0 %v226_v3, %s1853_s16  ;;  %1386 = vrot.lane.b32.xlu1 %v225_v5, %s1853_s16 }
  0x1d   : > { %1753 = vmatprep.mubr.msk.f32.mxu0 %vm239_vm0, %v1969_v13 }
  0x20   : > { %1488 = vperm.xlu1 %1839, %v1480_v14   ;;  %1483 = vperm.xlu0 %1838, %v1479_v15  }
  0x82   : > { %v590_v17 = vpop.permute.xlu1 %589  ;;  %v496_v18 = vpop.permute.xlu0 %495 }
  0x83   : > { %1742 = vmatprep.subr.mxu1 %v496_v18  ;;  %1749 = vmatprep.subr.mxu0 %v590_v17 }
  0x84   : > { %1743 = vmatpush3.msra.mxu1 %v496_v18  ;;  %1750 = vmatpush3.msra.mxu0 %v590_v17 }
  0x86   : > { %v588_v19 = vpop.permute.xlu1 %587  ;;  %v494_v20 = vpop.permute.xlu0 %493 }
  0x87   : > { %1744 = vmatprep.subr.mxu1 %v494_v20  ;;  %1751 = vmatprep.subr.mxu0 %v588_v19 }
  0x88   : > { %1745 = vmatpush3.msra.mxu1 %v494_v20  ;;  %1752 = vmatpush3.msra.mxu0 %v588_v19 }
  0x89   : > { %1747 = vmatmul.mubr.msk.f32.vlgmr.msra.gmra.mxu1 %vm239_vm0, %v1984_v21  ;;  %1754 = vmatmul.mubr.msk.f32.vlgmr.msra.gmra.mxu0 %vm239_vm0, %v1989_v22 }
  0x8a   : > { %1756 = vmatprep.subr.mxu1 %v1932_v8  ;;  %1763 = vmatprep.subr.mxu0 %v1913_v2  ;;  %v993_v23 = vpop.permute.xlu0 %992  ;;  %v991_v24 = vpop.permute.xlu1 %990 }
  0x8b   : > { %1757 = vmatpush3.msra.mxu1 %v1932_v8  ;;  %1764 = vmatpush3.msra.mxu0 %v1913_v2 }
  0x8c   : > { %1758 = vmatprep.subr.mxu1 %v1934_v9  ;;  %1765 = vmatprep.subr.mxu0 %v1916_v4 }
  0x8d   : > { %1759 = vmatpush3.msra.mxu1 %v1934_v9  ;;  %1760 = vmatprep.mubr.msk.f32.mxu1 %vm239_vm0, %v1896_v0 }
  0x8e   : > { %1766 = vmatpush3.msra.mxu0 %v1916_v4  ;;  %1767 = vmatprep.mubr.msk.f32.mxu0 %vm239_vm0, %v1901_v1  ;;  %v1389_v25 = vpop.permute.xlu0 %1388  ;;  %v1387_v26 = vpop.permute.xlu1 %1386 }
  0x8f   : > { %1761 = vmatmul.mubr.msk.f32.vlgmr.msra.gmra.mxu1 %vm239_vm0, %v1924_v6  ;;  %1768 = vmatmul.mubr.msk.f32.vlgmr.msra.gmra.mxu0 %vm239_vm0, %v1930_v7 }
  0x90   : > { %1770 = vmatprep.subr.mxu1 %v496_v18  ;;  %1777 = vmatprep.subr.mxu0 %v590_v17 }
  0x91   : > { %1771 = vmatpush3.msra.mxu1 %v496_v18  ;;  %1778 = vmatpush3.msra.mxu0 %v590_v17 }
  0x92   : > { %1772 = vmatprep.subr.mxu1 %v494_v20  ;;  %1779 = vmatprep.subr.mxu0 %v588_v19 }
  0x93   : > { %1780 = vmatpush3.msra.mxu0 %v588_v19  ;;  %1773 = vmatpush3.msra.mxu1 %v494_v20 }
  0x94   : > { %1774 = vmatprep.mubr.msk.f32.mxu1 %vm239_vm0, %v1943_v10  ;;  %1781 = vmatprep.mubr.msk.f32.mxu0 %vm239_vm0, %v1951_v11 }
  0x95   : > { %1775 = vmatmul.mubr.msk.f32.vlgmr.msra.gmra.mxu1 %vm239_vm0, %v1958_v12  ;;  %1784 = vmatprep.subr.mxu1 %v993_v23 }
  0x96   : > { %1791 = vmatprep.subr.mxu0 %v496_v18  ;;  %1782 = vmatmul.mubr.msk.f32.vlgmr.msra.gmra.mxu0 %vm239_vm0, %v1984_v21 }
  0x97   : > { %1785 = vmatpush3.msra.mxu1 %v993_v23  ;;  %1792 = vmatpush3.msra.mxu0 %v496_v18 }
  0x98   : > { %1786 = vmatprep.subr.mxu1 %v991_v24  ;;  %1793 = vmatprep.subr.mxu0 %v494_v20 }
  0x99   : > { %1787 = vmatpush3.msra.mxu1 %v991_v24  ;;  %1788 = vmatprep.mubr.msk.f32.mxu1 %vm239_vm0, %v1969_v13 }
  0x9a   : > { %1794 = vmatpush3.msra.mxu0 %v494_v20  ;;  %1789 = vmatmul.mubr.msk.f32.vlgmr.msra.gmra.mxu1 %vm239_vm0, %v1989_v22 }
  0x9b   : > { %1795 = vmatprep.mubr.msk.f32.mxu0 %vm239_vm0, %v1896_v0  ;;  %1798 = vmatprep.subr.mxu1 %v1932_v8 }
  0x9c   : > { %1805 = vmatprep.subr.mxu0 %v590_v17  ;;  %1796 = vmatmul.mubr.msk.f32.vlgmr.msra.gmra.mxu0 %vm239_vm0, %v1924_v6 }
  0x9d   : > { %1799 = vmatpush3.msra.mxu1 %v1932_v8  ;;  %1806 = vmatpush3.msra.mxu0 %v590_v17 }
  0x9e   : > { %1800 = vmatprep.subr.mxu1 %v1934_v9  ;;  %1807 = vmatprep.subr.mxu0 %v588_v19 }
  0x9f   : > { %1801 = vmatpush3.msra.mxu1 %v1934_v9  ;;  %1802 = vmatprep.mubr.msk.f32.mxu1 %vm239_vm0, %v1901_v1  ;;  %v1469_v1 = vadd.s32 1, %v233_v50 }
  0xa0   : > { %1808 = vmatpush3.msra.mxu0 %v588_v19  ;;  %1809 = vmatprep.mubr.msk.f32.mxu0 %vm239_vm0, %v1943_v10 }
  0xa1   : > { %1803 = vmatmul.mubr.msk.f32.vlgmr.msra.gmra.mxu1 %vm239_vm0, %v1930_v7  ;;  %1812 = vmatprep.subr.mxu1 %v993_v23  ;;  %vm1470_vm6 = vcmp.ge.s32.totalorder %v1469_v1, 0  ;;  %vm1471_vm7 = vcmp.lt.s32.totalorder %v1469_v1, 45 }
  0xa2   : > { %1810 = vmatmul.mubr.msk.f32.vlgmr.msra.gmra.mxu0 %vm239_vm0, %v1958_v12  ;;  %1813 = vmatpush3.msra.mxu1 %v993_v23  ;;  %vm2057_vm9 = vmand %vm1470_vm6, %vm1471_vm7 }
  0xa3   : > { %1819 = vmatprep.subr.mxu0 %v1389_v25  ;;  %1814 = vmatprep.subr.mxu1 %v991_v24 }
  0xa4   : > { %1820 = vmatpush3.msra.mxu0 %v1389_v25  ;;  %1815 = vmatpush3.msra.mxu1 %v991_v24 }
  0xa5   : > { %1816 = vmatprep.mubr.msk.f32.mxu1 %vm239_vm0, %v1951_v11  ;;  %1821 = vmatprep.subr.mxu0 %v1387_v26 }
  0xa6   : > { %1817 = vmatmul.mubr.msk.f32.vlgmr.msra.gmra.mxu1 %vm239_vm0, %v1984_v21  ;;  %1822 = vmatpush3.msra.mxu0 %v1387_v26 }
  0xa7   : > { %1823 = vmatprep.mubr.msk.f32.mxu0 %vm239_vm0, %v1969_v13 }
  0xa8   : > { %1824 = vmatmul.mubr.msk.f32.vlgmr.msra.gmra.mxu0 %vm239_vm0, %v1989_v22 }
  0xd6   : > { %v1727_v27 = vpop.f32.mrf.mxu0 }
  0xd7   : > { %v1734_v29 = vpop.f32.mrf.mxu1 }
  0xd8   : > { %v312_v28 = vpop.f32.mrf.mxu0  ;;  %v399_v49 = vadd.f32 %v1734_v29, %v1727_v27 }
  0xd9   : > { %v393_v31 = vpop.f32.mrf.mxu1 }
  0xda   : > { %v394_v54 = vadd.f32 %v393_v31, %v312_v28  ;;  %v1489_v31 = vpop.permute.xlu1 %1488 }
  0xdb   : > { %v1741_v30 = vpop.f32.mrf.mxu0 }
  0xdc   : > { %v487_v58 = vadd.f32 %v1741_v30, %v399_v49 }
  0xdd   : > { %v477_v32 = vpop.f32.mrf.mxu0 }
  0xde   : > { %v486_v61 = vadd.f32 %v477_v32, %v394_v54  ;;  %v1536_v54 = vld [vmem:[%s2100_s4 + $0x8] sm:$0xff] }
 0x149   : > { %v1748_v33 = vpop.f32.mrf.mxu1  ;;  %v1755_v34 = vpop.f32.mrf.mxu0 }
 0x14a   : > { %v581_v62 = vadd.f32 %v1748_v33, %v487_v58 }
 0x14b   : > { %v571_v35 = vpop.f32.mrf.mxu1  ;;  %v665_v36 = vpop.f32.mrf.mxu0 }
 0x14c   : > { %v580_v4 = vadd.f32 %v571_v35, %v486_v61  ;;  %v675_v11 = vadd.f32 %v1755_v34, %v581_v62  ;;  %v1484_v35 = vpop.permute.xlu0 %1483 }
 0x14e   : > { %v674_v16 = vadd.f32 %v665_v36, %v580_v4  ;;  %v683_v22 = vsel %vm2051_vm8, %v675_v11, -inf }
 0x14f   : > { %v1762_v37 = vpop.f32.mrf.mxu1  ;;  %v1769_v38 = vpop.f32.mrf.mxu0 }
 0x150   : > { %v831_v47 = vadd.f32 %v1769_v38, %v1762_v37  ;;  %v682_v28 = vsel %vm2051_vm8, %v674_v16, -inf }
 0x151   : > { %v750_v39 = vpop.f32.mrf.mxu1  ;;  %v825_v40 = vpop.f32.mrf.mxu0 }
 0x152   : > { %v826_v51 = vadd.f32 %v825_v40, %v750_v39 }
 0x155   : > { %v1776_v42 = vpop.f32.mrf.mxu1 }
 0x156   : > { %v1783_v43 = vpop.f32.mrf.mxu0  ;;  %v910_v52 = vadd.f32 %v1776_v42, %v831_v47  ;;  %v1521_v42 = vld [vmem:[%s2099_s3] sm:$0xff] }
 0x157   : > { %v900_v45 = vpop.f32.mrf.mxu1 }
 0x158   : > { %v977_v46 = vpop.f32.mrf.mxu0  ;;  %v909_v55 = vadd.f32 %v900_v45, %v826_v51  ;;  %v987_v60 = vadd.f32 %v1783_v43, %v910_v52 }
 0x15a   : > { %v1790_v48 = vpop.f32.mrf.mxu1  ;;  %v986_v63 = vadd.f32 %v977_v46, %v909_v55 }
 0x15b   : > { %v1072_v5 = vadd.f32 %v1790_v48, %v987_v60 }
 0x15c   : > { %v1797_v53 = vpop.f32.mrf.mxu0  ;;  %v1062_v56 = vpop.f32.mrf.mxu1 }
 0x15d   : > { %v1071_v12 = vadd.f32 %v1062_v56, %v986_v63  ;;  %v1079_v17 = vsel %vm2047_vm5, %v1072_v5, -inf }
 0x15e   : > { %v1148_v57 = vpop.f32.mrf.mxu0  ;;  %v1081_v26 = vmax.f32 %v683_v22, %v1079_v17 }
 0x15f   : > { %v1078_v23 = vsel %vm2047_vm5, %v1071_v12, -inf }
 0x160   : > { %v1080_v32 = vmax.f32 %v682_v28, %v1078_v23 }
 0x161   : > { %v1804_v0 = vpop.f32.mrf.mxu1 }
 0x162   : > { %v1229_v2 = vadd.f32 %v1804_v0, %v1797_v53  ;;  %v1811_v3 = vpop.f32.mrf.mxu0  ;;  %v1535_v53 = vld [vmem:[%s2100_s4] sm:$0xff] }
 0x163   : > { %v1223_v6 = vpop.f32.mrf.mxu1 }
 0x164   : > { %v1308_v8 = vadd.f32 %v1811_v3, %v1229_v2  ;;  %v1224_v9 = vadd.f32 %v1223_v6, %v1148_v57  ;;  %v1298_v10 = vpop.f32.mrf.mxu0 }
 0x166   : > { %v1307_v14 = vadd.f32 %v1298_v10, %v1224_v9  ;;  %v1818_v15 = vpop.f32.mrf.mxu1 }
 0x167   : > { %v1385_v18 = vadd.f32 %v1818_v15, %v1308_v8 }
 0x168   : > { %v1825_v19 = vpop.f32.mrf.mxu0  ;;  %v1375_v21 = vpop.f32.mrf.mxu1 }
 0x169   : > { %v1468_v24 = vadd.f32 %v1825_v19, %v1385_v18  ;;  %v1384_v25 = vadd.f32 %v1375_v21, %v1307_v14 }
 0x16a   : > { %v1458_v27 = vpop.f32.mrf.mxu0 }
 0x16b   : > { %v1476_v29 = vsel %vm2057_vm9, %v1468_v24, -inf  ;;  %v1467_v30 = vadd.f32 %v1458_v27, %v1384_v25 }
 0x16c   : > { %v1478_v33 = vmax.f32 %v1081_v26, %v1476_v29 }
 0x16d   : > { %v1475_v34 = vsel %vm2057_vm9, %v1467_v30, -inf }
 0x16e   : > { %v1492_v36 = vadd.f32 %v1489_v31, %v1478_v33  ;;  %v1477_v37 = vmax.f32 %v1080_v32, %v1475_v34 }
 0x170   : > { %v1491_v38 = vadd.f32 %v1484_v35, %v1477_v37  ;;  %v1497_v39 = vsel %vm1493_vm10, %v1492_v36, 0.0 }
 0x171   : > { %1498 = vadd.xlane.f32.xlu0 %v1497_v39 }
 0x172   : > { %v1494_v40 = vsel %vm1493_vm10, %v1491_v38, 0.0 }
 0x173   : > { %1495 = vadd.xlane.f32.xlu1 %v1494_v40 }
 0x184   : > { %1530 = vperm.xlu1 %1839, %v1522_v41  }
 0x187   : > { %1525 = vperm.xlu0 %1838, %v1521_v42  }
 0x1fa   : > { %v1499_v43 = vpop.xlane.xlu0 %1498 }
 0x1fb   : > { %v1502_v44 = vmul.f32 0.06666667, %v1499_v43 }
 0x1fc   : > { %v1496_v45 = vpop.xlane.xlu1 %1495 }
 0x1fd   : > { %v1504_v46 = vsub.f32 %v1492_v36, %v1502_v44  ;;  %v1501_v47 = vmul.f32 0.06666667, %v1496_v45 }
 0x1ff   : > { %v1503_v48 = vsub.f32 %v1491_v38, %v1501_v47  ;;  %v1506_v49 = vmul.f32 %v1504_v46, %v1504_v46 }
 0x200   : > { %v1531_v55 = vpop.permute.xlu1 %1530 }
 0x201   : > { %v1510_v50 = vsel %vm1493_vm10, %v1506_v49, 0.0  ;;  %v1505_v51 = vmul.f32 %v1503_v48, %v1503_v48 }
 0x202   : > { %1511 = vadd.xlane.f32.xlu1 %v1510_v50  ;;  %v1526_v56 = vpop.permute.xlu0 %1525 }
 0x203   : > { %v1507_v52 = vsel %vm1493_vm10, %v1505_v51, 0.0 }
 0x204   : > { %1508 = vadd.xlane.f32.xlu0 %v1507_v52 }
 0x213   : > { %1539 = vperm.xlu1 %1839, %v1535_v53  }
 0x21a   : > { %1544 = vperm.xlu0 %1838, %v1536_v54  }
 0x28b   : > { %v1512_v57 = vpop.xlane.xlu1 %1511 }
 0x28c   : > { %v1514_v58 = vmul.f32 0.06666667, %v1512_v57 }
 0x28d   : > { %v1509_v59 = vpop.xlane.xlu0 %1508 }
 0x28e   : > { %v1516_v60 = vadd.f32 1e-05, %v1514_v58  ;;  %v1513_v61 = vmul.f32 0.06666667, %v1509_v59 }
 0x28f   : > { %v1540_v7 = vpop.permute.xlu1 %1539 }
 0x290   : > { %1840 = vrsqrt.f32 %v1516_v60  ;;  %v1515_v62 = vadd.f32 1e-05, %v1513_v61 }
 0x292   : > { %1842 = vrsqrt.f32 %v1515_v62 }
 0x295   : > { %v1545_v4 = vpop.permute.xlu0 %1544 }
 0x29d   : > { %v1841_v63 = vpop.eup %1840 }
 0x29e   : > { %v1520_v0 = vmul.f32 %v1841_v63, %v1504_v46 }
 0x29f   : > { %v1843_v1 = vpop.eup %1842 }
 0x2a0   : > { %v1519_v2 = vmul.f32 %v1843_v1, %v1503_v48  ;;  %v1534_v3 = vmul.f32 %v1531_v55, %v1520_v0 }
 0x2a2   : > { %v1533_v5 = vmul.f32 %v1526_v56, %v1519_v2  ;;  %v1548_v6 = vadd.f32 %v1545_v4, %v1534_v3 }
 0x2a4   : > { %v1547_v8 = vadd.f32 %v1540_v7, %v1533_v5  ;;  %vm1550_vm11 = vcmp.ge.f32.partialorder %v1548_v6, 0.0  ;;  %v1552_v9 = vmul.f32 0.2, %v1548_v6 }
 0x2a6   : > { %vm1549_vm12 = vcmp.ge.f32.partialorder %v1547_v8, 0.0  ;;  %v1551_v10 = vmul.f32 0.2, %v1547_v8  ;;  %v1554_v11 = vsel %vm1550_vm11, %v1548_v6, %v1552_v9 }
 0x2a7   : > { %1556 = vst.msk [vmem:[%s224_s13 + $0x8] sm:$0xff] %vm1493_vm10, %v1554_v11 }
 0x2a8   : > { %v1553_v12 = vsel %vm1549_vm12, %v1547_v8, %v1551_v10 }
 0x2a9   : > { %1555 = vst.msk [vmem:[%s224_s13] sm:$0xff] %vm1493_vm10, %v1553_v12 }
 0x2aa PF: > { %s15_s18 = sadd.s32 1, %s1850_s18  }
 0x2ab   : > { %p12_p4 = scmp.ge.s32.totalorder %s15_s18, 4  }
 0x2ad   :  { %14 = sbr.rel (!%p12_p4) target bundleno = 1 (0x1), region = 74 }

// kernel: sinctdnn_forward.7
= control target key start
LH: loop header
LB: loop body
LE: loop exit
PB: predicated region body
PF: predicated region fallthrough
CT: control target
= control target key end

     0   :  { %s3217_s29 = smov 0   ;;  %s3716_s0 = inlined_call_operand.vmem [shape: f32[2,16,15], index: 0, kind: input, shape index: {}]   ;;  %s3717_s1 = inlined_call_operand.vmem [shape: f32[5,32,16], index: 1, kind: input, shape index: {}]   ;;  %s3718_s2 = inlined_call_operand.vmem [shape: f32[32,1], index: 2, kind: input, shape index: {}]   ;;  %s3719_s3 = inlined_call_operand.vmem [shape: f32[3,32,32], index: 3, kind: input, shape index: {}]   ;;  %s3720_s4 = inlined_call_operand.vmem [shape: f32[32,1], index: 4, kind: input, shape index: {}]   ;;  %s3721_s5 = inlined_call_operand.vmem [shape: f32[3,32,32], index: 5, kind: input, shape index: {}]   ;;  %s3722_s6 = inlined_call_operand.vmem [shape: f32[32,1], index: 6, kind: input, shape index: {}]   ;;  %s3723_s7 = inlined_call_operand.vmem [shape: f32[1,32,32], index: 7, kind: input, shape index: {}]   ;;  %s3724_s8 = inlined_call_operand.vmem [shape: f32[32,1], index: 8, kind: input, shape index: {}]   ;;  %s3725_s9 = inlined_call_operand.vmem [shape: f32[1,48,32], index: 9, kind: input, shape index: {}]   ;;  %s3726_s10 = inlined_call_operand.vmem [shape: f32[48,1], index: 10, kind: input, shape index: {}]   ;;  %s3727_s11 = inlined_call_operand.vmem [shape: f32[64,48], index: 11, kind: input, shape index: {}]   ;;  %s3728_s12 = inlined_call_operand.vmem [shape: f32[64,48], index: 12, kind: input, shape index: {}]   ;;  %s3729_s13 = inlined_call_operand.vmem [shape: f32[64,1], index: 13, kind: input, shape index: {}]   ;;  %s3730_s14 = inlined_call_operand.vmem [shape: f32[2,64,1], index: 14, kind: output, shape index: {}]  }
   0x1 LB: > { %s2638_s30 = sadd.s32 4294967295, %s3131_s29   ;;  %p2642_p0 = scmp.ge.s32.totalorder %s3131_s29, 1  ;;  %s3131_s29 = sphi %s3217_s29, %s24_s29  }
   0x2   : > { %p412_p1 = scmp.lt.s32.totalorder %s3131_s29, 3 }
   0x4   : > { %p413_p2 = pnand %p2642_p0, %p412_p1 }
   0x5   : > { %p458_p3 = scmp.lt.s32.totalorder (!%p413_p2), %s2638_s30, 1  ;;  %s3134_s19 = smov (!%p413_p2), 2  }
   0x6   : > { %416 = sbr.rel (%p413_p2) target bundleno = 2362 (0x93a), region = 76  ;;  %s3135_s24 = smov (!%p413_p2), 127  }
   0x7   : > { %s3136_s25 = smov (!%p413_p2), 126   ;;  %s3137_s26 = smov (!%p413_p2), 125  }
   0x8   : > { %s3138_s27 = smov (!%p413_p2), 124   ;;  %s3141_s22 = smov (!%p413_p2), 122  }
   0xb   : > { %vm470_vm0 = vcmask 171008   ;;  %v3133_v0 = vmov 0.0   ;;  %s3732_s30 = smov (!%p458_p3, %s2638_s30), 1  ;;  %vm483_vm1 = vcmask 138256   ;;  %v2647_v4 = vld [vmem:[%s3717_s1 + $0x20] sm:$0xff]  ;;  %vm505_vm2 = vcmask 130048  }
   0xc   : > { %472 = vst.msk [vmem:[#allocation2 + $0x8] sm:$0xff] %vm470_vm0, %v3133_v0  ;;  %471 = vst.msk [vmem:[#allocation2] sm:$0xff] %vm470_vm0, %v3133_v0  ;;  %s2751_s15 = sshll.u32 %s3732_s30, 4  ;;  %v2649_v5 = vld [vmem:[%s3717_s1 + $0x30] sm:$0xff]  ;;  %2881 = vmatprep.mubr.msk.f32.mxu0 %vm505_vm2, %v2647_v4  ;;  %v1039_v9 = vld [vmem:[%s3718_s2 + $0x18] sm:$0xff]  ;;  %v3139_v10 = vmov 0  }
   0xd   : > { %473 = vst.msk [vmem:[#allocation2 + $0x10] sm:$0xff] %vm470_vm0, %v3133_v0  ;;  %474 = vst.msk [vmem:[#allocation2 + $0x18] sm:$0xff] %vm470_vm0, %v3133_v0  ;;  %s462_s18 = scalar_lea.vmem %s3716_s0, %s2751_s15  ;;  %2884 = vmatprep.mubr.msk.f32.mxu1 %vm505_vm2, %v2649_v5  ;;  %3112 = vset.pattern.permute.xlu1 %v3139_v10  ;;  %v1036_v11 = vld [vmem:[%s3718_s2] sm:$0xff]  ;;  %v1038_v12 = vld [vmem:[%s3718_s2 + $0x10] sm:$0xff]  ;;  %vm1121_vm3 = vcmask 261120   ;;  %vm1486_vm4 = vcmask 146456  }
   0xe   : > { %1070 = vst.msk [vmem:[#allocation2 + $0x10] sm:$0xff] %vm470_vm0, %v3133_v0  ;;  %1071 = vst.msk [vmem:[#allocation2 + $0x18] sm:$0xff] %vm470_vm0, %v3133_v0  ;;  %v469_v1 = vld [vmem:[%s462_s18 + $0x8] sm:$0xff]  ;;  %v468_v2 = vld [vmem:[%s462_s18] sm:$0xff]  ;;  %3111 = vset.pattern.permute.xlu0 %v3139_v10  ;;  %vm1868_vm5 = vcmask 121856   ;;  %vm2299_vm6 = vcmask 392192  }
   0xf   : > { %479 = vrot.lane.b32.xlu0 %v469_v1, %s3134_s19  ;;  %v1037_v13 = vld [vmem:[%s3718_s2 + $0x8] sm:$0xff]  ;;  %v2650_v18 = vld [vmem:[%s3717_s1 + $0x38] sm:$0xff]  ;;  %v486_v21 = vld [vmem:[%s3717_s1] sm:$0xff]  ;;  %s2752_s21 = sshll.u32 %s3732_s30, 6 }
  0x10   : > { %v2648_v17 = vld [vmem:[%s3717_s1 + $0x28] sm:$0xff]  ;;  %v2659_v22 = vld [vmem:[%s3717_s1 + $0x40] sm:$0xff]  ;;  %v488_v27 = vld [vmem:[%s3717_s1 + $0x10] sm:$0xff] }
  0x11   : > { %v487_v23 = vld [vmem:[%s3717_s1 + $0x8] sm:$0xff]  ;;  %v2661_v28 = vld [vmem:[%s3717_s1 + $0x50] sm:$0xff]  ;;  %v489_v29 = vld [vmem:[%s3717_s1 + $0x18] sm:$0xff] }
  0x12   : > { %v2660_v24 = vld [vmem:[%s3717_s1 + $0x48] sm:$0xff]  ;;  %v2662_v30 = vld [vmem:[%s3717_s1 + $0x58] sm:$0xff]  ;;  %v2667_v32 = vld [vmem:[%s3717_s1 + $0x60] sm:$0xff] }
  0x13   : > { %477 = vrot.lane.b32.xlu0 %v468_v2, %s3134_s19  ;;  %v2675_v33 = vld [vmem:[%s3717_s1 + $0x80] sm:$0xff]  ;;  %v2668_v34 = vld [vmem:[%s3717_s1 + $0x68] sm:$0xff]  ;;  %v2669_v36 = vld [vmem:[%s3717_s1 + $0x70] sm:$0xff] }
  0x14   : > { %v2676_v35 = vld [vmem:[%s3717_s1 + $0x88] sm:$0xff]  ;;  %v2677_v37 = vld [vmem:[%s3717_s1 + $0x90] sm:$0xff]  ;;  %v2670_v38 = vld [vmem:[%s3717_s1 + $0x78] sm:$0xff] }
  0x15   : > { %v2678_v39 = vld [vmem:[%s3717_s1 + $0x98] sm:$0xff] }
  0x81   : > { %v480_v3 = vpop.permute.xlu0 %479 }
  0x82   : > { %485 = vst.msk [vmem:[#allocation2 + $0x8] sm:$0xff] %vm483_vm1, %v480_v3 }
  0x85   : > { %v478_v6 = vpop.permute.xlu0 %477 }
  0x86   : > { %484 = vst.msk [vmem:[#allocation2] sm:$0xff] %vm483_vm1, %v478_v6 }
  0x89   : > { %v491_v7 = vld [vmem:[#allocation2 + $0x8] sm:$0xff] }
  0x8a   : > { %501 = vrot.lane.b32.xlu1 %v491_v7, %s3135_s24  ;;  %1069 = vst.msk [vmem:[#allocation2 + $0x8] sm:$0xff] %vm470_vm0, %v3133_v0  ;;  %707 = vrot.lane.b32.xlu0 %v491_v7, %s3136_s25 }
  0x8d   : > { %v490_v8 = vld [vmem:[#allocation2] sm:$0xff] }
  0x8e   : > { %819 = vrot.lane.b32.xlu0 %v491_v7, %s3137_s26  ;;  %499 = vrot.lane.b32.xlu1 %v490_v8, %s3135_s24  ;;  %1068 = vst.msk [vmem:[#allocation2] sm:$0xff] %vm470_vm0, %v3133_v0  ;;  %s3140_s24 = smov 3  }
  0x92   : > { %931 = vrot.lane.b32.xlu0 %v491_v7, %s3138_s27  ;;  %705 = vrot.lane.b32.xlu1 %v490_v8, %s3136_s25 }
  0x96   : > { %817 = vrot.lane.b32.xlu1 %v490_v8, %s3137_s26  ;;  %1057 = vperm.xlu0 %3111, %v1039_v9  }
  0x9a   : > { %929 = vrot.lane.b32.xlu1 %v490_v8, %s3138_s27  ;;  %1042 = vperm.xlu0 %3111, %v1036_v11  }
  0x9e   : > { %1052 = vperm.xlu1 %3112, %v1038_v12  }
  0xa2   : > { %1047 = vperm.xlu1 %3112, %v1037_v13  }
  0xfc   : > { %v502_v14 = vpop.permute.xlu1 %501  ;;  %v708_v15 = vpop.permute.xlu0 %707 }
  0xfd   : > { %2877 = vmatprep.subr.mxu0 %v502_v14  ;;  %3090 = vmatprep.subr.mxu1 %v502_v14 }
  0xfe   : > { %2878 = vmatpush3.msra.mxu0 %v502_v14  ;;  %3092 = vmatpush3.msra.mxu1 %v502_v14 }
 0x100   : > { %v500_v16 = vpop.permute.xlu1 %499  ;;  %v820_v19 = vpop.permute.xlu0 %819 }
 0x101   : > { %2879 = vmatprep.subr.mxu0 %v500_v16  ;;  %3091 = vmatprep.subr.mxu1 %v500_v16 }
 0x102   : > { %2880 = vmatpush3.msra.mxu0 %v500_v16  ;;  %3093 = vmatpush3.msra.mxu1 %v500_v16 }
 0x103   : > { %2882 = vmatmul.mubr.msk.f32.vlgmr.msra.gmra.mxu0 %vm505_vm2, %v2648_v17  ;;  %2885 = vmatmul.mubr.msk.f32.vlgmr.msra.gmra.mxu1 %vm505_vm2, %v2650_v18 }
 0x104   : > { %2887 = vmatprep.subr.mxu1 %v491_v7  ;;  %2897 = vmatprep.subr.mxu0 %v708_v15  ;;  %v706_v20 = vpop.permute.xlu1 %705  ;;  %v932_v26 = vpop.permute.xlu0 %931 }
 0x105   : > { %2888 = vmatpush3.msra.mxu1 %v491_v7  ;;  %2898 = vmatpush3.msra.mxu0 %v708_v15 }
 0x106   : > { %2889 = vmatprep.subr.mxu1 %v490_v8  ;;  %2899 = vmatprep.subr.mxu0 %v706_v20 }
 0x107   : > { %2890 = vmatpush3.msra.mxu1 %v490_v8  ;;  %2891 = vmatprep.mubr.msk.f32.mxu1 %vm505_vm2, %v486_v21 }
 0x108   : > { %2900 = vmatpush3.msra.mxu0 %v706_v20  ;;  %2901 = vmatprep.mubr.msk.f32.mxu0 %vm505_vm2, %v2659_v22  ;;  %v818_v25 = vpop.permute.xlu1 %817 }
 0x109   : > { %2892 = vmatmul.mubr.msk.f32.vlgmr.msra.gmra.mxu1 %vm505_vm2, %v487_v23  ;;  %2902 = vmatmul.mubr.msk.f32.vlgmr.msra.gmra.mxu0 %vm505_vm2, %v2660_v24 }
 0x10a   : > { %2907 = vmatprep.subr.mxu1 %v820_v19  ;;  %2917 = vmatprep.subr.mxu0 %v932_v26 }
 0x10b   : > { %2908 = vmatpush3.msra.mxu1 %v820_v19  ;;  %2918 = vmatpush3.msra.mxu0 %v932_v26 }
 0x10c   : > { %2909 = vmatprep.subr.mxu1 %v818_v25  ;;  %2894 = vmatprep.mubr.msk.f32.mxu1 %vm505_vm2, %v488_v27  ;;  %v930_v31 = vpop.permute.xlu1 %929  ;;  %v2683_v27 = vld [vmem:[%s3719_s3 + $0x20] sm:$0xff] }
 0x10d   : > { %2904 = vmatprep.mubr.msk.f32.mxu0 %vm505_vm2, %v2661_v28  ;;  %2910 = vmatpush3.msra.mxu1 %v818_v25  ;;  %v1092_v28 = vld [vmem:[%s3719_s3] sm:$0xff] }
 0x10e   : > { %2895 = vmatmul.mubr.msk.f32.gmra.mxu1 %vm505_vm2, %v489_v29  ;;  %2905 = vmatmul.mubr.msk.f32.gmra.mxu0 %vm505_vm2, %v2662_v30 }
 0x10f   : > { %2919 = vmatprep.subr.mxu0 %v930_v31  ;;  %2911 = vmatprep.mubr.msk.f32.mxu1 %vm505_vm2, %v2667_v32 }
 0x110   : > { %2920 = vmatpush3.msra.mxu0 %v930_v31  ;;  %2921 = vmatprep.mubr.msk.f32.mxu0 %vm505_vm2, %v2675_v33 }
 0x111   : > { %v1058_v2 = vpop.permute.xlu0 %1057 }
 0x112   : > { %2912 = vmatmul.mubr.msk.f32.vlgmr.msra.gmra.mxu1 %vm505_vm2, %v2668_v34  ;;  %2922 = vmatmul.mubr.msk.f32.vlgmr.msra.gmra.mxu0 %vm505_vm2, %v2676_v35  ;;  %v1093_v35 = vld [vmem:[%s3719_s3 + $0x8] sm:$0xff] }
 0x113   : > { %2914 = vmatprep.mubr.msk.f32.mxu1 %vm505_vm2, %v2669_v36  ;;  %2924 = vmatprep.mubr.msk.f32.mxu0 %vm505_vm2, %v2677_v37  ;;  %v1094_v36 = vld [vmem:[%s3719_s3 + $0x10] sm:$0xff]  ;;  %v1095_v37 = vld [vmem:[%s3719_s3 + $0x18] sm:$0xff] }
 0x115   : > { %v1043_v17 = vpop.permute.xlu0 %1042 }
 0x116   : > { %2915 = vmatmul.mubr.msk.f32.gmra.mxu1 %vm505_vm2, %v2670_v38  ;;  %2925 = vmatmul.mubr.msk.f32.gmra.mxu0 %vm505_vm2, %v2678_v39  ;;  %v1437_v38 = vld [vmem:[%s3720_s4 + $0x18] sm:$0xff]  ;;  %v1436_v39 = vld [vmem:[%s3720_s4 + $0x10] sm:$0xff] }
 0x117   : > { %2935 = vmatprep.mubr.msk.f32.mxu1 %vm1121_vm3, %v2683_v27  ;;  %2949 = vmatprep.mubr.msk.f32.mxu0 %vm1121_vm3, %v1092_v28  ;;  %v2703_v28 = vld [vmem:[%s3721_s5 + $0x20] sm:$0xff] }
 0x119   : > { %v1053_v59 = vpop.permute.xlu1 %1052 }
 0x11d   : > { %v1048_v12 = vpop.permute.xlu1 %1047 }
 0x1c3   : > { %v2883_v40 = vpop.f32.mrf.mxu0  ;;  %v2886_v41 = vpop.f32.mrf.mxu1 }
 0x1c5   : > { %v584_v42 = vpop.f32.mrf.mxu0  ;;  %v594_v43 = vpop.f32.mrf.mxu1 }
 0x1c9   : > { %v2893_v44 = vpop.f32.mrf.mxu1  ;;  %v2903_v45 = vpop.f32.mrf.mxu0 }
 0x1ca   : > { %v687_v50 = vadd.f32 %v2893_v44, %v2883_v40  ;;  %v1435_v40 = vld [vmem:[%s3720_s4 + $0x8] sm:$0xff] }
 0x1cb   : > { %v681_v46 = vpop.f32.mrf.mxu1  ;;  %v789_v47 = vpop.f32.mrf.mxu0 }
 0x1cc   : > { %v682_v53 = vadd.f32 %v681_v46, %v584_v42  ;;  %v809_v57 = vadd.f32 %v2903_v45, %v687_v50  ;;  %v2684_v46 = vld [vmem:[%s3719_s3 + $0x28] sm:$0xff]  ;;  %v2686_v50 = vld [vmem:[%s3719_s3 + $0x38] sm:$0xff] }
 0x1ce   : > { %v2896_v48 = vpop.f32.mrf.mxu1  ;;  %v2906_v49 = vpop.f32.mrf.mxu0  ;;  %v808_v62 = vadd.f32 %v789_v47, %v682_v53  ;;  %v2685_v47 = vld [vmem:[%s3719_s3 + $0x30] sm:$0xff] }
 0x1cf   : > { %v697_v54 = vadd.f32 %v2896_v48, %v2886_v41  ;;  %v1434_v41 = vld [vmem:[%s3720_s4] sm:$0xff] }
 0x1d0   : > { %v691_v51 = vpop.f32.mrf.mxu1  ;;  %v799_v52 = vpop.f32.mrf.mxu0 }
 0x1d1   : > { %v692_v58 = vadd.f32 %v691_v51, %v594_v43  ;;  %v811_v63 = vadd.f32 %v2906_v49, %v697_v54  ;;  %v2695_v51 = vld [vmem:[%s3719_s3 + $0x40] sm:$0xff]  ;;  %v2696_v54 = vld [vmem:[%s3719_s3 + $0x48] sm:$0xff] }
 0x1d2   : > { %v2913_v55 = vpop.f32.mrf.mxu1  ;;  %v2923_v56 = vpop.f32.mrf.mxu0 }
 0x1d3   : > { %v921_v1 = vadd.f32 %v2913_v55, %v809_v57  ;;  %v810_v5 = vadd.f32 %v799_v52, %v692_v58  ;;  %v2697_v55 = vld [vmem:[%s3719_s3 + $0x50] sm:$0xff] }
 0x1d4   : > { %v901_v60 = vpop.f32.mrf.mxu1  ;;  %v1013_v61 = vpop.f32.mrf.mxu0 }
 0x1d5   : > { %v920_v6 = vadd.f32 %v901_v60, %v808_v62  ;;  %v1033_v9 = vadd.f32 %v2923_v56, %v921_v1  ;;  %v2698_v56 = vld [vmem:[%s3719_s3 + $0x58] sm:$0xff] }
 0x1d6   : > { %v2916_v3 = vpop.f32.mrf.mxu1  ;;  %v2926_v4 = vpop.f32.mrf.mxu0 }
 0x1d7   : > { %v923_v7 = vadd.f32 %v2916_v3, %v811_v63  ;;  %v1032_v14 = vadd.f32 %v1013_v61, %v920_v6  ;;  %v1061_v18 = vadd.f32 %v1048_v12, %v1033_v9 }
 0x1d8   : > { %v911_v8 = vpop.f32.mrf.mxu1  ;;  %v1023_v13 = vpop.f32.mrf.mxu0 }
 0x1d9   : > { %v1035_v10 = vadd.f32 %v2926_v4, %v923_v7  ;;  %v922_v11 = vadd.f32 %v911_v8, %v810_v5  ;;  %v1060_v22 = vadd.f32 %v1043_v17, %v1032_v14  ;;  %v1065_v23 = vmax.f32 %v1061_v18, 0.0 }
 0x1db   : > { %v1063_v15 = vadd.f32 %v1058_v2, %v1035_v10  ;;  %v1034_v16 = vadd.f32 %v1023_v13, %v922_v11  ;;  %v1064_v24 = vmax.f32 %v1060_v22, 0.0 }
 0x1dd   : > { %v1067_v19 = vmax.f32 %v1063_v15, 0.0  ;;  %v1062_v20 = vadd.f32 %v1053_v59, %v1034_v16 }
 0x1df   : > { %v1066_v21 = vmax.f32 %v1062_v20, 0.0  ;;  %1082 = vrot.lane.b32.xlu1 %v1067_v19, %s3134_s19 }
 0x1e1   : > { %1080 = vrot.lane.b32.xlu0 %v1066_v21, %s3134_s19 }
 0x1e3   : > { %1078 = vrot.lane.b32.xlu1 %v1065_v23, %s3134_s19 }
 0x1e5   : > { %1076 = vrot.lane.b32.xlu0 %v1064_v24, %s3134_s19 }
 0x251   : > { %v1083_v25 = vpop.permute.xlu1 %1082 }
 0x252   : > { %1091 = vst.msk [vmem:[#allocation2 + $0x18] sm:$0xff] %vm483_vm1, %v1083_v25 }
 0x253   : > { %v1081_v26 = vpop.permute.xlu0 %1080 }
 0x254   : > { %1090 = vst.msk [vmem:[#allocation2 + $0x10] sm:$0xff] %vm483_vm1, %v1081_v26 }
 0x255   : > { %v1079_v29 = vpop.permute.xlu1 %1078 }
 0x256   : > { %1089 = vst.msk [vmem:[#allocation2 + $0x8] sm:$0xff] %vm483_vm1, %v1079_v29  ;;  %v1491_v29 = vld [vmem:[%s3721_s5] sm:$0xff] }
 0x257   : > { %v1077_v30 = vpop.permute.xlu0 %1076 }
 0x258   : > { %1088 = vst.msk [vmem:[#allocation2] sm:$0xff] %vm483_vm1, %v1077_v30 }
 0x259   : > { %v1099_v31 = vld [vmem:[#allocation2 + $0x18] sm:$0xff] }
 0x25a   : > { %1115 = vrot.lane.b32.xlu1 %v1099_v31, %s3136_s25  ;;  %1469 = vst.msk [vmem:[#allocation2 + $0x18] sm:$0xff] %vm470_vm0, %v3133_v0  ;;  %2941 = vmatprep.subr.mxu0 %v1099_v31 }
 0x25b   : > { %2942 = vmatpush3.msra.mxu0 %v1099_v31  ;;  %v1098_v32 = vld [vmem:[#allocation2 + $0x10] sm:$0xff] }
 0x25c   : > { %1113 = vrot.lane.b32.xlu0 %v1098_v32, %s3136_s25  ;;  %1468 = vst.msk [vmem:[#allocation2 + $0x10] sm:$0xff] %vm470_vm0, %v3133_v0  ;;  %2943 = vmatprep.subr.mxu0 %v1098_v32 }
 0x25d   : > { %2944 = vmatpush3.msra.mxu0 %v1098_v32  ;;  %v1097_v33 = vld [vmem:[#allocation2 + $0x8] sm:$0xff] }
 0x25e   : > { %1111 = vrot.lane.b32.xlu1 %v1097_v33, %s3136_s25  ;;  %1467 = vst.msk [vmem:[#allocation2 + $0x8] sm:$0xff] %vm470_vm0, %v3133_v0  ;;  %2945 = vmatprep.subr.mxu0 %v1097_v33 }
 0x25f   : > { %2946 = vmatpush3.msra.mxu0 %v1097_v33  ;;  %v1096_v34 = vld [vmem:[#allocation2] sm:$0xff] }
 0x260   : > { %1109 = vrot.lane.b32.xlu0 %v1096_v34, %s3136_s25  ;;  %1466 = vst.msk [vmem:[#allocation2] sm:$0xff] %vm470_vm0, %v3133_v0  ;;  %2947 = vmatprep.subr.mxu0 %v1096_v34 }
 0x261   : > { %2948 = vmatpush3.msra.mxu0 %v1096_v34 }
 0x262   : > { %1327 = vrot.lane.b32.xlu1 %v1099_v31, %s3138_s27  ;;  %2950 = vmatmul.mubr.msk.f32.vlgmr.msra.gmra.mxu0 %vm1121_vm3, %v1093_v35 }
 0x263   : > { %2952 = vmatprep.mubr.msk.f32.mxu0 %vm1121_vm3, %v1094_v36  ;;  %v1492_v36 = vld [vmem:[%s3721_s5 + $0x8] sm:$0xff] }
 0x264   : > { %1325 = vrot.lane.b32.xlu0 %v1098_v32, %s3138_s27 }
 0x266   : > { %1323 = vrot.lane.b32.xlu1 %v1097_v33, %s3138_s27  ;;  %2953 = vmatmul.mubr.msk.f32.gmra.mxu0 %vm1121_vm3, %v1095_v37  ;;  %v1493_v37 = vld [vmem:[%s3721_s5 + $0x10] sm:$0xff] }
 0x267   : > { %2977 = vmatprep.mubr.msk.f32.mxu0 %vm1121_vm3, %v2703_v28 }
 0x268   : > { %1321 = vrot.lane.b32.xlu0 %v1096_v34, %s3138_s27  ;;  %s3674_s27 = scalar_lea.vmem %s3730_s14, %s2752_s21 }
 0x26a   : > { %1455 = vperm.xlu1 %3112, %v1437_v38   ;;  %v1494_v38 = vld [vmem:[%s3721_s5 + $0x18] sm:$0xff] }
 0x26c   : > { %1450 = vperm.xlu0 %3111, %v1436_v39   ;;  %v1835_v39 = vld [vmem:[%s3722_s6 + $0x18] sm:$0xff] }
 0x26e   : > { %1445 = vperm.xlu1 %3112, %v1435_v40   ;;  %v1834_v40 = vld [vmem:[%s3722_s6 + $0x10] sm:$0xff] }
 0x270   : > { %1440 = vperm.xlu0 %3111, %v1434_v41   ;;  %v1833_v41 = vld [vmem:[%s3722_s6 + $0x8] sm:$0xff] }
 0x2cc   : > { %v1116_v42 = vpop.permute.xlu1 %1115 }
 0x2cd   : > { %2927 = vmatprep.subr.mxu1 %v1116_v42 }
 0x2ce   : > { %2928 = vmatpush3.msra.mxu1 %v1116_v42  ;;  %v1114_v43 = vpop.permute.xlu0 %1113  ;;  %v1832_v42 = vld [vmem:[%s3722_s6] sm:$0xff] }
 0x2cf   : > { %2929 = vmatprep.subr.mxu1 %v1114_v43 }
 0x2d0   : > { %v1112_v44 = vpop.permute.xlu1 %1111  ;;  %2930 = vmatpush3.msra.mxu1 %v1114_v43  ;;  %v1884_v43 = vld [vmem:[%s3724_s8 + $0x18] sm:$0xff] }
 0x2d1   : > { %2931 = vmatprep.subr.mxu1 %v1112_v44 }
 0x2d2   : > { %2932 = vmatpush3.msra.mxu1 %v1112_v44  ;;  %v1110_v45 = vpop.permute.xlu0 %1109  ;;  %v1883_v44 = vld [vmem:[%s3724_s8 + $0x10] sm:$0xff] }
 0x2d3   : > { %2933 = vmatprep.subr.mxu1 %v1110_v45 }
 0x2d4   : > { %v1328_v48 = vpop.permute.xlu1 %1327  ;;  %2934 = vmatpush3.msra.mxu1 %v1110_v45  ;;  %v1882_v45 = vld [vmem:[%s3724_s8 + $0x8] sm:$0xff] }
 0x2d5   : > { %2936 = vmatmul.mubr.msk.f32.vlgmr.msra.gmra.mxu1 %vm1121_vm3, %v2684_v46  ;;  %2955 = vmatprep.subr.mxu1 %v1328_v48  ;;  %v1881_v46 = vld [vmem:[%s3724_s8] sm:$0xff] }
 0x2d6   : > { %2956 = vmatpush3.msra.mxu1 %v1328_v48  ;;  %v1326_v49 = vpop.permute.xlu0 %1325  ;;  %2938 = vmatprep.mubr.msk.f32.mxu1 %vm1121_vm3, %v2685_v47  ;;  %v2029_v47 = vld [vmem:[%s3726_s10 + $0x28] sm:$0xff]  ;;  %v2028_v48 = vld [vmem:[%s3726_s10 + $0x20] sm:$0xff] }
 0x2d7   : > { %2957 = vmatprep.subr.mxu1 %v1326_v49 }
 0x2d8   : > { %v1324_v52 = vpop.permute.xlu1 %1323  ;;  %2958 = vmatpush3.msra.mxu1 %v1326_v49  ;;  %v2027_v49 = vld [vmem:[%s3726_s10 + $0x18] sm:$0xff] }
 0x2d9   : > { %2939 = vmatmul.mubr.msk.f32.gmra.mxu1 %vm1121_vm3, %v2686_v50  ;;  %2959 = vmatprep.subr.mxu1 %v1324_v52  ;;  %v2026_v50 = vld [vmem:[%s3726_s10 + $0x10] sm:$0xff] }
 0x2da   : > { %2960 = vmatpush3.msra.mxu1 %v1324_v52  ;;  %v1322_v53 = vpop.permute.xlu0 %1321  ;;  %2963 = vmatprep.mubr.msk.f32.mxu1 %vm1121_vm3, %v2695_v51  ;;  %v2025_v51 = vld [vmem:[%s3726_s10 + $0x8] sm:$0xff]  ;;  %v2024_v52 = vld [vmem:[%s3726_s10] sm:$0xff] }
 0x2db   : > { %2961 = vmatprep.subr.mxu1 %v1322_v53 }
 0x2dc   : > { %2962 = vmatpush3.msra.mxu1 %v1322_v53 }
 0x2dd   : > { %2964 = vmatmul.mubr.msk.f32.vlgmr.msra.gmra.mxu1 %vm1121_vm3, %v2696_v54 }
 0x2de   : > { %2966 = vmatprep.mubr.msk.f32.mxu1 %vm1121_vm3, %v2697_v55 }
 0x2e1   : > { %2967 = vmatmul.mubr.msk.f32.gmra.mxu1 %vm1121_vm3, %v2698_v56 }
 0x2e2   : > { %2991 = vmatprep.mubr.msk.f32.mxu1 %vm1121_vm3, %v1491_v29 }
 0x2e5   : > { %v1456_v2 = vpop.permute.xlu1 %1455 }
 0x2e7   : > { %v1451_v7 = vpop.permute.xlu0 %1450 }
 0x2e9   : > { %v1446_v17 = vpop.permute.xlu1 %1445 }
 0x2eb   : > { %v1441_v21 = vpop.permute.xlu0 %1440 }
 0x322   : > { %v2951_v57 = vpop.f32.mrf.mxu0 }
 0x324   : > { %v1297_v60 = vpop.f32.mrf.mxu0 }
 0x326   : > { %v2954_v62 = vpop.f32.mrf.mxu0 }
 0x328   : > { %v1307_v3 = vpop.f32.mrf.mxu0 }
 0x395   : > { %v2937_v58 = vpop.f32.mrf.mxu1 }
 0x396   : > { %v1303_v5 = vadd.f32 %v2951_v57, %v2937_v58  ;;  %v2704_v57 = vld [vmem:[%s3721_s5 + $0x28] sm:$0xff]  ;;  %v2705_v58 = vld [vmem:[%s3721_s5 + $0x30] sm:$0xff] }
 0x397   : > { %v1200_v59 = vpop.f32.mrf.mxu1 }
 0x398   : > { %v1298_v9 = vadd.f32 %v1297_v60, %v1200_v59 }
 0x399   : > { %v2940_v61 = vpop.f32.mrf.mxu1 }
 0x39a   : > { %v1313_v6 = vadd.f32 %v2954_v62, %v2940_v61  ;;  %v2706_v61 = vld [vmem:[%s3721_s5 + $0x38] sm:$0xff]  ;;  %v2715_v62 = vld [vmem:[%s3721_s5 + $0x40] sm:$0xff] }
 0x39b   : > { %v1210_v63 = vpop.f32.mrf.mxu1 }
 0x39c   : > { %v1308_v10 = vadd.f32 %v1307_v3, %v1210_v63  ;;  %v2717_v3 = vld [vmem:[%s3721_s5 + $0x50] sm:$0xff] }
 0x39d   : > { %v2965_v1 = vpop.f32.mrf.mxu1 }
 0x39e   : > { %v1431_v11 = vadd.f32 %v2965_v1, %v1303_v5  ;;  %v1873_v5 = vld [vmem:[%s3723_s7] sm:$0xff] }
 0x39f   : > { %v1411_v4 = vpop.f32.mrf.mxu1 }
 0x3a0   : > { %v1430_v14 = vadd.f32 %v1411_v4, %v1298_v9  ;;  %v1459_v18 = vadd.f32 %v1446_v17, %v1431_v11  ;;  %v2718_v4 = vld [vmem:[%s3721_s5 + $0x58] sm:$0xff] }
 0x3a1   : > { %v2968_v8 = vpop.f32.mrf.mxu1 }
 0x3a2   : > { %v1433_v12 = vadd.f32 %v2968_v8, %v1313_v6  ;;  %v1458_v22 = vadd.f32 %v1441_v21, %v1430_v14  ;;  %v1463_v24 = vmax.f32 %v1459_v18, 0.0 }
 0x3a3   : > { %v1421_v13 = vpop.f32.mrf.mxu1 }
 0x3a4   : > { %v1461_v15 = vadd.f32 %v1456_v2, %v1433_v12  ;;  %v1432_v16 = vadd.f32 %v1421_v13, %v1308_v10  ;;  %v1462_v25 = vmax.f32 %v1458_v22, 0.0  ;;  %v2716_v2 = vld [vmem:[%s3721_s5 + $0x48] sm:$0xff] }
 0x3a6   : > { %v1465_v19 = vmax.f32 %v1461_v15, 0.0  ;;  %v1460_v20 = vadd.f32 %v1451_v7, %v1432_v16 }
 0x3a8   : > { %v1464_v23 = vmax.f32 %v1460_v20, 0.0  ;;  %1480 = vrot.lane.b32.xlu1 %v1465_v19, %s3140_s24 }
 0x3aa   : > { %1478 = vrot.lane.b32.xlu0 %v1464_v23, %s3140_s24 }
 0x3ac   : > { %1476 = vrot.lane.b32.xlu1 %v1463_v24, %s3140_s24 }
 0x3ae   : > { %1474 = vrot.lane.b32.xlu0 %v1462_v25, %s3140_s24 }
 0x41a   : > { %v1481_v26 = vpop.permute.xlu1 %1480 }
 0x41b   : > { %1490 = vst.msk [vmem:[#allocation2 + $0x18] sm:$0xff] %vm1486_vm4, %v1481_v26 }
 0x41c   : > { %v1479_v27 = vpop.permute.xlu0 %1478 }
 0x41d   : > { %1489 = vst.msk [vmem:[#allocation2 + $0x10] sm:$0xff] %vm1486_vm4, %v1479_v27 }
 0x41e   : > { %v1477_v30 = vpop.permute.xlu1 %1476 }
 0x41f   : > { %1488 = vst.msk [vmem:[#allocation2 + $0x8] sm:$0xff] %vm1486_vm4, %v1477_v30 }
 0x420   : > { %v1475_v31 = vpop.permute.xlu0 %1474 }
 0x421   : > { %1487 = vst.msk [vmem:[#allocation2] sm:$0xff] %vm1486_vm4, %v1475_v31 }
 0x422   : > { %v1498_v32 = vld [vmem:[#allocation2 + $0x18] sm:$0xff] }
 0x423   : > { %1867 = vst.msk [vmem:[#allocation2 + $0x18] sm:$0xff] %vm470_vm0, %v3133_v0  ;;  %1514 = vrot.lane.b32.xlu1 %v1498_v32, %s3137_s26  ;;  %2983 = vmatprep.subr.mxu1 %v1498_v32 }
 0x424   : > { %v1497_v33 = vld [vmem:[#allocation2 + $0x10] sm:$0xff]  ;;  %2984 = vmatpush3.msra.mxu1 %v1498_v32 }
 0x425   : > { %1866 = vst.msk [vmem:[#allocation2 + $0x10] sm:$0xff] %vm470_vm0, %v3133_v0  ;;  %1512 = vrot.lane.b32.xlu0 %v1497_v33, %s3137_s26  ;;  %2985 = vmatprep.subr.mxu1 %v1497_v33 }
 0x426   : > { %v1496_v34 = vld [vmem:[#allocation2 + $0x8] sm:$0xff]  ;;  %2986 = vmatpush3.msra.mxu1 %v1497_v33 }
 0x427   : > { %1865 = vst.msk [vmem:[#allocation2 + $0x8] sm:$0xff] %vm470_vm0, %v3133_v0  ;;  %1510 = vrot.lane.b32.xlu1 %v1496_v34, %s3137_s26  ;;  %2987 = vmatprep.subr.mxu1 %v1496_v34 }
 0x428   : > { %v1495_v35 = vld [vmem:[#allocation2] sm:$0xff]  ;;  %2988 = vmatpush3.msra.mxu1 %v1496_v34 }
 0x429   : > { %1864 = vst.msk [vmem:[#allocation2] sm:$0xff] %vm470_vm0, %v3133_v0  ;;  %1508 = vrot.lane.b32.xlu0 %v1495_v35, %s3137_s26  ;;  %2989 = vmatprep.subr.mxu1 %v1495_v35 }
 0x42a   : > { %2990 = vmatpush3.msra.mxu1 %v1495_v35 }
 0x42b   : > { %1725 = vrot.lane.b32.xlu1 %v1498_v32, %s3141_s22  ;;  %2992 = vmatmul.mubr.msk.f32.vlgmr.msra.gmra.mxu1 %vm1121_vm3, %v1492_v36 }
 0x42c   : > { %2994 = vmatprep.mubr.msk.f32.mxu1 %vm1121_vm3, %v1493_v37 }
 0x42d   : > { %1723 = vrot.lane.b32.xlu0 %v1497_v33, %s3141_s22 }
 0x42f   : > { %1721 = vrot.lane.b32.xlu1 %v1496_v34, %s3141_s22  ;;  %2995 = vmatmul.mubr.msk.f32.gmra.mxu1 %vm1121_vm3, %v1494_v38 }
 0x430   : > { %3019 = vmatprep.mubr.msk.f32.mxu1 %vm1121_vm3, %v1873_v5  ;;  %v2018_v5 = vld [vmem:[%s3725_s9 + $0x20] sm:$0xff] }
 0x431   : > { %1719 = vrot.lane.b32.xlu0 %v1495_v35, %s3141_s22 }
 0x433   : > { %1853 = vperm.xlu1 %3112, %v1835_v39  }
 0x435   : > { %1848 = vperm.xlu0 %3111, %v1834_v40  }
 0x437   : > { %1843 = vperm.xlu1 %3112, %v1833_v41  }
 0x439   : > { %1838 = vperm.xlu0 %3111, %v1832_v42   ;;  %v1874_v42 = vld [vmem:[%s3723_s7 + $0x8] sm:$0xff] }
 0x43b   : > { %1902 = vperm.xlu1 %3112, %v1884_v43   ;;  %v1875_v43 = vld [vmem:[%s3723_s7 + $0x10] sm:$0xff] }
 0x43d   : > { %1897 = vperm.xlu0 %3111, %v1883_v44   ;;  %v2014_v44 = vld [vmem:[%s3725_s9] sm:$0xff] }
 0x43f   : > { %1892 = vperm.xlu1 %3112, %v1882_v45  }
 0x441   : > { %1887 = vperm.xlu0 %3111, %v1881_v46  }
 0x443   : > { %2057 = vperm.xlu1 %3112, %v2029_v47  }
 0x445   : > { %2052 = vperm.xlu0 %3111, %v2028_v48  }
 0x447   : > { %2047 = vperm.xlu1 %3112, %v2027_v49  }
 0x449   : > { %2042 = vperm.xlu0 %3111, %v2026_v50  }
 0x44b   : > { %2037 = vperm.xlu1 %3112, %v2025_v51  }
 0x44d   : > { %2032 = vperm.xlu0 %3111, %v2024_v52  }
 0x495   : > { %v1515_v53 = vpop.permute.xlu1 %1514 }
 0x496   : > { %2969 = vmatprep.subr.mxu0 %v1515_v53 }
 0x497   : > { %2970 = vmatpush3.msra.mxu0 %v1515_v53  ;;  %v1513_v54 = vpop.permute.xlu0 %1512 }
 0x498   : > { %2971 = vmatprep.subr.mxu0 %v1513_v54 }
 0x499   : > { %v1511_v55 = vpop.permute.xlu1 %1510  ;;  %2972 = vmatpush3.msra.mxu0 %v1513_v54 }
 0x49a   : > { %2973 = vmatprep.subr.mxu0 %v1511_v55 }
 0x49b   : > { %2974 = vmatpush3.msra.mxu0 %v1511_v55  ;;  %v1509_v56 = vpop.permute.xlu0 %1508 }
 0x49c   : > { %2975 = vmatprep.subr.mxu0 %v1509_v56 }
 0x49d   : > { %v1726_v59 = vpop.permute.xlu1 %1725  ;;  %2976 = vmatpush3.msra.mxu0 %v1509_v56 }
 0x49e   : > { %2978 = vmatmul.mubr.msk.f32.vlgmr.msra.gmra.mxu0 %vm1121_vm3, %v2704_v57  ;;  %2997 = vmatprep.subr.mxu0 %v1726_v59 }
 0x49f   : > { %2998 = vmatpush3.msra.mxu0 %v1726_v59  ;;  %v1724_v60 = vpop.permute.xlu0 %1723  ;;  %2980 = vmatprep.mubr.msk.f32.mxu0 %vm1121_vm3, %v2705_v58 }
 0x4a0   : > { %2999 = vmatprep.subr.mxu0 %v1724_v60 }
 0x4a1   : > { %v1722_v63 = vpop.permute.xlu1 %1721  ;;  %3000 = vmatpush3.msra.mxu0 %v1724_v60 }
 0x4a2   : > { %2981 = vmatmul.mubr.msk.f32.gmra.mxu0 %vm1121_vm3, %v2706_v61  ;;  %3001 = vmatprep.subr.mxu0 %v1722_v63 }
 0x4a3   : > { %3002 = vmatpush3.msra.mxu0 %v1722_v63  ;;  %v1720_v1 = vpop.permute.xlu0 %1719  ;;  %3005 = vmatprep.mubr.msk.f32.mxu0 %vm1121_vm3, %v2715_v62 }
 0x4a4   : > { %3003 = vmatprep.subr.mxu0 %v1720_v1 }
 0x4a5   : > { %3004 = vmatpush3.msra.mxu0 %v1720_v1 }
 0x4a6   : > { %3006 = vmatmul.mubr.msk.f32.vlgmr.msra.gmra.mxu0 %vm1121_vm3, %v2716_v2  ;;  %v2015_v2 = vld [vmem:[%s3725_s9 + $0x8] sm:$0xff] }
 0x4a7   : > { %3008 = vmatprep.mubr.msk.f32.mxu0 %vm1121_vm3, %v2717_v3  ;;  %v2016_v3 = vld [vmem:[%s3725_s9 + $0x10] sm:$0xff] }
 0x4aa   : > { %3009 = vmatmul.mubr.msk.f32.gmra.mxu0 %vm1121_vm3, %v2718_v4  ;;  %v2017_v4 = vld [vmem:[%s3725_s9 + $0x18] sm:$0xff] }
 0x4ab   : > { %3033 = vmatprep.mubr.msk.f32.mxu0 %vm1121_vm3, %v2014_v44 }
 0x4ae   : > { %v1854_v10 = vpop.permute.xlu1 %1853 }
 0x4b0   : > { %v1849_v12 = vpop.permute.xlu0 %1848 }
 0x4b2   : > { %v1844_v17 = vpop.permute.xlu1 %1843 }
 0x4b4   : > { %v1839_v25 = vpop.permute.xlu0 %1838 }
 0x4b6   : > { %v1903_v45 = vpop.permute.xlu1 %1902 }
 0x4b8   : > { %v1898_v46 = vpop.permute.xlu0 %1897 }
 0x4ba   : > { %v1893_v47 = vpop.permute.xlu1 %1892 }
 0x4bc   : > { %v1888_v50 = vpop.permute.xlu0 %1887 }
 0x4eb   : > { %v2993_v6 = vpop.f32.mrf.mxu1 }
 0x4ed   : > { %v1695_v9 = vpop.f32.mrf.mxu1 }
 0x4ef   : > { %v2996_v13 = vpop.f32.mrf.mxu1 }
 0x4f1   : > { %v1705_v20 = vpop.f32.mrf.mxu1 }
 0x55e   : > { %v2979_v7 = vpop.f32.mrf.mxu0 }
 0x55f   : > { %v1701_v15 = vadd.f32 %v2993_v6, %v2979_v7  ;;  %v2019_v6 = vld [vmem:[%s3725_s9 + $0x28] sm:$0xff]  ;;  %v2053_v7 = vpop.permute.xlu0 %2052 }
 0x560   : > { %v1598_v8 = vpop.f32.mrf.mxu0 }
 0x561   : > { %v1696_v18 = vadd.f32 %v1695_v9, %v1598_v8  ;;  %v2058_v9 = vpop.permute.xlu1 %2057 }
 0x562   : > { %v2982_v11 = vpop.f32.mrf.mxu0 }
 0x563   : > { %v1711_v22 = vadd.f32 %v2996_v13, %v2982_v11 }
 0x564   : > { %v1608_v14 = vpop.f32.mrf.mxu0 }
 0x565   : > { %v1706_v27 = vadd.f32 %v1705_v20, %v1608_v14  ;;  %v2048_v14 = vpop.permute.xlu1 %2047 }
 0x566   : > { %v3007_v16 = vpop.f32.mrf.mxu0 }
 0x567   : > { %v1829_v19 = vadd.f32 %v3007_v16, %v1701_v15 }
 0x568   : > { %v1809_v21 = vpop.f32.mrf.mxu0 }
 0x569   : > { %v1857_v23 = vadd.f32 %v1844_v17, %v1829_v19  ;;  %v1828_v24 = vadd.f32 %v1809_v21, %v1696_v18 }
 0x56a   : > { %v3010_v26 = vpop.f32.mrf.mxu0 }
 0x56b   : > { %v1861_v28 = vmax.f32 %v1857_v23, 0.0  ;;  %v1856_v29 = vadd.f32 %v1839_v25, %v1828_v24  ;;  %v1831_v30 = vadd.f32 %v3010_v26, %v1711_v22 }
 0x56c   : > { %v1819_v31 = vpop.f32.mrf.mxu0 }
 0x56d   : > { %1870 = vst.msk [vmem:[#allocation2 + $0x8] sm:$0xff] %vm1868_vm5, %v1861_v28  ;;  %v1860_v32 = vmax.f32 %v1856_v29, 0.0  ;;  %v1859_v33 = vadd.f32 %v1854_v10, %v1831_v30  ;;  %v1830_v34 = vadd.f32 %v1819_v31, %v1706_v27  ;;  %v2038_v27 = vpop.permute.xlu1 %2037 }
 0x56f   : > { %1869 = vst.msk [vmem:[#allocation2] sm:$0xff] %vm1868_vm5, %v1860_v32  ;;  %v1863_v35 = vmax.f32 %v1859_v33, 0.0  ;;  %v1858_v36 = vadd.f32 %v1849_v12, %v1830_v34  ;;  %v2043_v12 = vpop.permute.xlu0 %2042 }
 0x571   : > { %1872 = vst.msk [vmem:[#allocation2 + $0x18] sm:$0xff] %vm1868_vm5, %v1863_v35  ;;  %v1862_v37 = vmax.f32 %v1858_v36, 0.0 }
 0x573   : > { %1871 = vst.msk [vmem:[#allocation2 + $0x10] sm:$0xff] %vm1868_vm5, %v1862_v37  ;;  %v2033_v22 = vpop.permute.xlu0 %2032 }
 0x574   : > { %v1878_v38 = vld [vmem:[#allocation2 + $0x8] sm:$0xff] }
 0x575   : > { %2007 = vst.msk [vmem:[#allocation2 + $0x8] sm:$0xff] %vm470_vm0, %v3133_v0 }
 0x576   : > { %v1877_v39 = vld [vmem:[#allocation2] sm:$0xff] }
 0x577   : > { %2006 = vst.msk [vmem:[#allocation2] sm:$0xff] %vm470_vm0, %v3133_v0 }
 0x578   : > { %v1880_v40 = vld [vmem:[#allocation2 + $0x18] sm:$0xff] }
 0x579   : > { %3011 = vmatprep.subr.mxu1 %v1880_v40  ;;  %2009 = vst.msk [vmem:[#allocation2 + $0x18] sm:$0xff] %vm470_vm0, %v3133_v0 }
 0x57a   : > { %3012 = vmatpush3.msra.mxu1 %v1880_v40  ;;  %v1879_v41 = vld [vmem:[#allocation2 + $0x10] sm:$0xff] }
 0x57b   : > { %3013 = vmatprep.subr.mxu1 %v1879_v41  ;;  %2008 = vst.msk [vmem:[#allocation2 + $0x10] sm:$0xff] %vm470_vm0, %v3133_v0  ;;  %v1876_v0 = vld [vmem:[%s3723_s7 + $0x18] sm:$0xff] }
 0x57c   : > { %3014 = vmatpush3.msra.mxu1 %v1879_v41 }
 0x57d   : > { %3015 = vmatprep.subr.mxu1 %v1878_v38 }
 0x57e   : > { %3016 = vmatpush3.msra.mxu1 %v1878_v38 }
 0x57f   : > { %3017 = vmatprep.subr.mxu1 %v1877_v39 }
 0x580   : > { %3018 = vmatpush3.msra.mxu1 %v1877_v39 }
 0x581   : > { %3020 = vmatmul.mubr.msk.f32.vlgmr.msra.gmra.mxu1 %vm1121_vm3, %v1874_v42 }
 0x582   : > { %3022 = vmatprep.mubr.msk.f32.mxu1 %vm1121_vm3, %v1875_v43 }
 0x585   : > { %3023 = vmatmul.mubr.msk.f32.gmra.mxu1 %vm1121_vm3, %v1876_v0 }
 0x641   : > { %v3021_v48 = vpop.f32.mrf.mxu1 }
 0x642   : > { %v1989_v49 = vadd.f32 %v3021_v48, %v1893_v47 }
 0x643   : > { %v1983_v51 = vpop.f32.mrf.mxu1 }
 0x644   : > { %v2003_v52 = vmax.f32 %v1989_v49, 0.0  ;;  %v1984_v53 = vadd.f32 %v1983_v51, %v1888_v50 }
 0x645   : > { %v3024_v54 = vpop.f32.mrf.mxu1 }
 0x646   : > { %2011 = vst.msk [vmem:[#allocation2 + $0x8] sm:$0xff] %vm1868_vm5, %v2003_v52  ;;  %v2002_v55 = vmax.f32 %v1984_v53, 0.0  ;;  %v1999_v56 = vadd.f32 %v3024_v54, %v1903_v45 }
 0x647   : > { %v1993_v57 = vpop.f32.mrf.mxu1 }
 0x648   : > { %2010 = vst.msk [vmem:[#allocation2] sm:$0xff] %vm1868_vm5, %v2002_v55  ;;  %v2005_v58 = vmax.f32 %v1999_v56, 0.0  ;;  %v1994_v59 = vadd.f32 %v1993_v57, %v1898_v46 }
 0x64a   : > { %2013 = vst.msk [vmem:[#allocation2 + $0x18] sm:$0xff] %vm1868_vm5, %v2005_v58  ;;  %v2004_v60 = vmax.f32 %v1994_v59, 0.0 }
 0x64c   : > { %2012 = vst.msk [vmem:[#allocation2 + $0x10] sm:$0xff] %vm1868_vm5, %v2004_v60 }
 0x64d   : > { %v2021_v63 = vld [vmem:[#allocation2 + $0x8] sm:$0xff] }
 0x64f   : > { %v2020_v1 = vld [vmem:[#allocation2] sm:$0xff] }
 0x651   : > { %v2023_v61 = vld [vmem:[#allocation2 + $0x18] sm:$0xff] }
 0x652   : > { %3025 = vmatprep.subr.mxu0 %v2023_v61 }
 0x653   : > { %3026 = vmatpush3.msra.mxu0 %v2023_v61  ;;  %v2022_v62 = vld [vmem:[#allocation2 + $0x10] sm:$0xff] }
 0x654   : > { %3027 = vmatprep.subr.mxu0 %v2022_v62 }
 0x655   : > { %3028 = vmatpush3.msra.mxu0 %v2022_v62 }
 0x656   : > { %3029 = vmatprep.subr.mxu0 %v2021_v63 }
 0x657   : > { %3030 = vmatpush3.msra.mxu0 %v2021_v63 }
 0x658   : > { %3031 = vmatprep.subr.mxu0 %v2020_v1 }
 0x659   : > { %3032 = vmatpush3.msra.mxu0 %v2020_v1 }
 0x65a   : > { %3034 = vmatmul.mubr.msk.f32.vlgmr.msra.gmra.mxu0 %vm1121_vm3, %v2015_v2 }
 0x65b   : > { %3036 = vmatprep.mubr.msk.f32.mxu0 %vm1121_vm3, %v2016_v3  ;;  %v2283_v3 = vld [vmem:[%s3727_s11] sm:$0xff] }
 0x65e   : > { %3037 = vmatmul.mubr.msk.f32.gmra.mxu0 %vm1121_vm3, %v2017_v4  ;;  %v2284_v4 = vld [vmem:[%s3727_s11 + $0x8] sm:$0xff] }
 0x65f   : > { %3039 = vmatprep.mubr.msk.f32.mxu0 %vm1121_vm3, %v2018_v5  ;;  %v2291_v5 = vld [vmem:[%s3728_s12] sm:$0xff] }
 0x660   : > { %3054 = vmatprep.mubr.msk.f32.mxu1 %vm2299_vm6, %v2291_v5  ;;  %v2558_v5 = vld [vmem:[%s3729_s13] sm:$0xff] }
 0x662   : > { %3040 = vmatmul.mubr.msk.f32.gmra.mxu0 %vm1121_vm3, %v2019_v6  ;;  %v2285_v6 = vld [vmem:[%s3727_s11 + $0x10] sm:$0xff]  ;;  %vm2574_vm3 = vcmask 7168  }
 0x663   : > { %3078 = vmatprep.mubr.msk.f32.mxu0 %vm2299_vm6, %v2283_v3 }
 0x71a   : > { %v3035_v8 = vpop.f32.mrf.mxu0 }
 0x71b   : > { %v2150_v28 = vadd.f32 %v3035_v8, %v2038_v27  ;;  %v2287_v8 = vld [vmem:[%s3727_s11 + $0x20] sm:$0xff] }
 0x71c   : > { %v2144_v10 = vpop.f32.mrf.mxu0 }
 0x71d   : > { %v2145_v23 = vadd.f32 %v2144_v10, %v2033_v22  ;;  %v2174_v33 = vmax.f32 %v2150_v28, 0.0  ;;  %v2289_v10 = vld [vmem:[%s3727_s11 + $0x30] sm:$0xff] }
 0x71e   : > { %v3038_v11 = vpop.f32.mrf.mxu0 }
 0x71f   : > { %v2160_v19 = vadd.f32 %v3038_v11, %v2048_v14  ;;  %v2173_v31 = vmax.f32 %v2145_v23, 0.0  ;;  %v2182_v36 = vsel %vm1868_vm5, %v2174_v33, 0.0  ;;  %v2290_v11 = vld [vmem:[%s3727_s11 + $0x38] sm:$0xff] }
 0x720   : > { %v2154_v13 = vpop.f32.mrf.mxu0 }
 0x721   : > { %v2155_v16 = vadd.f32 %v2154_v13, %v2043_v12  ;;  %v2176_v29 = vmax.f32 %v2160_v19, 0.0  ;;  %v2179_v35 = vsel %vm1868_vm5, %v2173_v31, 0.0 }
 0x722   : > { %v3041_v15 = vpop.f32.mrf.mxu0 }
 0x723   : > { %v2170_v17 = vadd.f32 %v3041_v15, %v2058_v9  ;;  %v2175_v24 = vmax.f32 %v2155_v16, 0.0  ;;  %v2188_v34 = vsel %vm1868_vm5, %v2176_v29, 0.0  ;;  %v2288_v9 = vld [vmem:[%s3727_s11 + $0x28] sm:$0xff] }
 0x724   : > { %v2164_v18 = vpop.f32.mrf.mxu0 }
 0x725   : > { %v2178_v20 = vmax.f32 %v2170_v17, 0.0  ;;  %v2165_v21 = vadd.f32 %v2164_v18, %v2053_v7  ;;  %v2185_v32 = vsel %vm1868_vm5, %v2175_v24, 0.0  ;;  %v2286_v7 = vld [vmem:[%s3727_s11 + $0x18] sm:$0xff] }
 0x727   : > { %v2177_v25 = vmax.f32 %v2165_v21, 0.0  ;;  %v2194_v26 = vsel %vm1868_vm5, %v2178_v20, 0.0 }
 0x728   : > { %2195 = vadd.xlane.f32.xlu1 %v2194_v26 }
 0x729   : > { %v2191_v30 = vsel %vm1868_vm5, %v2177_v25, 0.0 }
 0x72a   : > { %2192 = vadd.xlane.f32.xlu0 %v2191_v30 }
 0x72c   : > { %2186 = vadd.xlane.f32.xlu1 %v2185_v32 }
 0x72e   : > { %2189 = vadd.xlane.f32.xlu0 %v2188_v34 }
 0x730   : > { %2180 = vadd.xlane.f32.xlu1 %v2179_v35 }
 0x732   : > { %2183 = vadd.xlane.f32.xlu0 %v2182_v36 }
 0x7b1   : > { %v2196_v37 = vpop.xlane.xlu1 %2195 }
 0x7b2   : > { %v2203_v38 = vmul.f32 0.06666667, %v2196_v37 }
 0x7b3   : > { %v2193_v39 = vpop.xlane.xlu0 %2192 }
 0x7b4   : > { %v2202_v40 = vmul.f32 0.06666667, %v2193_v39  ;;  %3066 = vmatprep.subr.mxu0 %v2203_v38  ;;  %v2209_v41 = vsub.f32 %v2178_v20, %v2203_v38 }
 0x7b5   : > { %3067 = vmatpush3.msra.mxu0 %v2203_v38  ;;  %v2187_v42 = vpop.xlane.xlu1 %2186 }
 0x7b6   : > { %v2200_v43 = vmul.f32 0.06666667, %v2187_v42  ;;  %3068 = vmatprep.subr.mxu0 %v2202_v40  ;;  %v2215_v0 = vmul.f32 %v2209_v41, %v2209_v41  ;;  %v2208_v44 = vsub.f32 %v2177_v25, %v2202_v40 }
 0x7b7   : > { %3069 = vmatpush3.msra.mxu0 %v2202_v40  ;;  %v2190_v45 = vpop.xlane.xlu0 %2189 }
 0x7b8   : > { %v2201_v46 = vmul.f32 0.06666667, %v2190_v45  ;;  %v2231_v47 = vsel %vm1868_vm5, %v2215_v0, 0.0  ;;  %v2214_v48 = vmul.f32 %v2208_v44, %v2208_v44  ;;  %v2206_v49 = vsub.f32 %v2175_v24, %v2200_v43 }
 0x7b9   : > { %2232 = vadd.xlane.f32.xlu0 %v2231_v47  ;;  %v2181_v50 = vpop.xlane.xlu1 %2180 }
 0x7ba   : > { %v2198_v51 = vmul.f32 0.06666667, %v2181_v50  ;;  %3070 = vmatprep.subr.mxu0 %v2201_v46  ;;  %v2228_v52 = vsel %vm1868_vm5, %v2214_v48, 0.0  ;;  %v2212_v53 = vmul.f32 %v2206_v49, %v2206_v49  ;;  %v2207_v54 = vsub.f32 %v2176_v29, %v2201_v46 }
 0x7bb   : > { %2229 = vadd.xlane.f32.xlu1 %v2228_v52  ;;  %3071 = vmatpush3.msra.mxu0 %v2201_v46  ;;  %v2184_v55 = vpop.xlane.xlu0 %2183 }
 0x7bc   : > { %v2199_v56 = vmul.f32 0.06666667, %v2184_v55  ;;  %3072 = vmatprep.subr.mxu0 %v2200_v43  ;;  %v2213_v57 = vmul.f32 %v2207_v54, %v2207_v54  ;;  %v2204_v58 = vsub.f32 %v2173_v31, %v2198_v51  ;;  %v2222_v59 = vsel %vm1868_vm5, %v2212_v53, 0.0  ;;  %v2292_v53 = vld [vmem:[%s3728_s12 + $0x8] sm:$0xff]  ;;  %v2293_v54 = vld [vmem:[%s3728_s12 + $0x10] sm:$0xff]  ;;  %v2294_v55 = vld [vmem:[%s3728_s12 + $0x18] sm:$0xff] }
 0x7bd   : > { %3073 = vmatpush3.msra.mxu0 %v2200_v43 }
 0x7be   : > { %3074 = vmatprep.subr.mxu0 %v2199_v56  ;;  %v2225_v60 = vsel %vm1868_vm5, %v2213_v57, 0.0  ;;  %v2210_v61 = vmul.f32 %v2204_v58, %v2204_v58  ;;  %v2205_v62 = vsub.f32 %v2174_v33, %v2199_v56  ;;  %v2296_v57 = vld [vmem:[%s3728_s12 + $0x28] sm:$0xff]  ;;  %v2297_v58 = vld [vmem:[%s3728_s12 + $0x30] sm:$0xff] }
 0x7bf   : > { %2223 = vadd.xlane.f32.xlu1 %v2222_v59  ;;  %2226 = vadd.xlane.f32.xlu0 %v2225_v60  ;;  %v2298_v59 = vld [vmem:[%s3728_s12 + $0x38] sm:$0xff] }
 0x7c0   : > { %3075 = vmatpush3.msra.mxu0 %v2199_v56  ;;  %v2211_v63 = vmul.f32 %v2205_v62, %v2205_v62  ;;  %v2216_v1 = vsel %vm1868_vm5, %v2210_v61, 0.0  ;;  %v2295_v56 = vld [vmem:[%s3728_s12 + $0x20] sm:$0xff] }
 0x7c1   : > { %3076 = vmatprep.subr.mxu0 %v2198_v51 }
 0x7c2   : > { %3077 = vmatpush3.msra.mxu0 %v2198_v51  ;;  %v2219_v2 = vsel %vm1868_vm5, %v2211_v63, 0.0 }
 0x7c3   : > { %2217 = vadd.xlane.f32.xlu1 %v2216_v1  ;;  %2220 = vadd.xlane.f32.xlu0 %v2219_v2  ;;  %v2559_v2 = vld [vmem:[%s3729_s13 + $0x8] sm:$0xff] }
 0x7c4   : > { %3079 = vmatmul.mubr.msk.f32.vlgmr.msra.gmra.mxu0 %vm2299_vm6, %v2284_v4 }
 0x7c5   : > { %3081 = vmatprep.mubr.msk.f32.mxu0 %vm2299_vm6, %v2285_v6 }
 0x7c8   : > { %3082 = vmatmul.mubr.msk.f32.gmra.mxu0 %vm2299_vm6, %v2286_v7 }
 0x7c9   : > { %3084 = vmatprep.mubr.msk.f32.mxu0 %vm2299_vm6, %v2287_v8 }
 0x7cc   : > { %3085 = vmatmul.mubr.msk.f32.gmra.mxu0 %vm2299_vm6, %v2288_v9 }
 0x7cd   : > { %3087 = vmatprep.mubr.msk.f32.mxu0 %vm2299_vm6, %v2289_v10  ;;  %v2561_v10 = vld [vmem:[%s3729_s13 + $0x18] sm:$0xff] }
 0x7d0   : > { %3088 = vmatmul.mubr.msk.f32.gmra.mxu0 %vm2299_vm6, %v2290_v11 }
 0x842   : > { %v2233_v12 = vpop.xlane.xlu0 %2232 }
 0x843   : > { %v2240_v13 = vmul.f32 0.071428575, %v2233_v12 }
 0x844   : > { %v2230_v14 = vpop.xlane.xlu1 %2229 }
 0x845   : > { %3113 = vrsqrt.f32 %v2240_v13  ;;  %v2239_v15 = vmul.f32 0.071428575, %v2230_v14  ;;  %vm2278_vm7 = vcmp.eq.f32.partialorder %v2240_v13, inf  ;;  %v2281_v27 = vand.u32 2147483648, %v2240_v13  ;;  %v2560_v14 = vld [vmem:[%s3729_s13 + $0x10] sm:$0xff] }
 0x846   : > { %vm2280_vm8 = vcmp.eq.f32.partialorder %v2240_v13, 0.0 }
 0x847   : > { %3115 = vrsqrt.f32 %v2239_v15  ;;  %vm2271_vm9 = vcmp.eq.f32.partialorder %v2239_v15, inf  ;;  %v2274_v31 = vand.u32 2147483648, %v2239_v15  ;;  %vm2273_vm10 = vcmp.eq.f32.partialorder %v2239_v15, 0.0 }
 0x848   : > { %v2224_v16 = vpop.xlane.xlu1 %2223  ;;  %v2227_v17 = vpop.xlane.xlu0 %2226 }
 0x849   : > { %v2237_v18 = vmul.f32 0.071428575, %v2224_v16  ;;  %v2238_v19 = vmul.f32 0.071428575, %v2227_v17 }
 0x84b   : > { %3117 = vrsqrt.f32 %v2237_v18  ;;  %vm2264_vm11 = vcmp.eq.f32.partialorder %v2238_v19, inf  ;;  %v2267_v38 = vand.u32 2147483648, %v2238_v19  ;;  %vm2257_vm12 = vcmp.eq.f32.partialorder %v2237_v18, inf }
 0x84c   : > { %3119 = vrsqrt.f32 %v2238_v19  ;;  %v2218_v20 = vpop.xlane.xlu1 %2217  ;;  %v2221_v21 = vpop.xlane.xlu0 %2220  ;;  %vm2266_vm13 = vcmp.eq.f32.partialorder %v2238_v19, 0.0  ;;  %v2260_v0 = vand.u32 2147483648, %v2237_v18  ;;  %vm2259_vm14 = vcmp.eq.f32.partialorder %v2237_v18, 0.0 }
 0x84d   : > { %v2235_v22 = vmul.f32 0.071428575, %v2218_v20  ;;  %v2236_v23 = vmul.f32 0.071428575, %v2221_v21 }
 0x84f   : > { %3121 = vrsqrt.f32 %v2235_v22  ;;  %vm2250_vm15 = vcmp.eq.f32.partialorder %v2236_v23, inf  ;;  %v2253_v47 = vand.u32 2147483648, %v2236_v23  ;;  %vm2243_vm0 = vcmp.eq.f32.partialorder %v2235_v22, inf }
 0x850   : > { %3123 = vrsqrt.f32 %v2236_v23  ;;  %vm2252_vm1 = vcmp.eq.f32.partialorder %v2236_v23, 0.0  ;;  %v2246_v51 = vand.u32 2147483648, %v2235_v22  ;;  %vm2245_vm2 = vcmp.eq.f32.partialorder %v2235_v22, 0.0 }
 0x852   : > { %v3114_v24 = vpop.eup %3113 }
 0x853   : > { %v2277_v25 = vmul.f32 %v3114_v24, %v2240_v13 }
 0x854   : > { %v3116_v26 = vpop.eup %3115 }
 0x855   : > { %v2279_v28 = vsel %vm2278_vm7, %v2240_v13, %v2277_v25  ;;  %v2270_v29 = vmul.f32 %v3116_v26, %v2239_v15 }
 0x856   : > { %v2282_v30 = vsel %vm2280_vm8, %v2281_v27, %v2279_v28  ;;  %v2565_v28 = vld [vmem:[%s3729_s13 + $0x38] sm:$0xff] }
 0x857   : > { %3042 = vmatprep.subr.mxu1 %v2282_v30  ;;  %v2272_v32 = vsel %vm2271_vm9, %v2239_v15, %v2270_v29 }
 0x858   : > { %v3118_v33 = vpop.eup %3117  ;;  %3043 = vmatpush3.msra.mxu1 %v2282_v30  ;;  %v2275_v34 = vsel %vm2273_vm10, %v2274_v31, %v2272_v32 }
 0x859   : > { %v3120_v35 = vpop.eup %3119  ;;  %3044 = vmatprep.subr.mxu1 %v2275_v34  ;;  %v2256_v36 = vmul.f32 %v3118_v33, %v2237_v18  ;;  %v2564_v33 = vld [vmem:[%s3729_s13 + $0x30] sm:$0xff] }
 0x85a   : > { %3045 = vmatpush3.msra.mxu1 %v2275_v34  ;;  %v2263_v37 = vmul.f32 %v3120_v35, %v2238_v19 }
 0x85b   : > { %v2258_v41 = vsel %vm2257_vm12, %v2237_v18, %v2256_v36 }
 0x85c   : > { %v3122_v39 = vpop.eup %3121  ;;  %v2265_v40 = vsel %vm2264_vm11, %v2238_v19, %v2263_v37  ;;  %v2261_v46 = vsel %vm2259_vm14, %v2260_v0, %v2258_v41  ;;  %v2563_v19 = vld [vmem:[%s3729_s13 + $0x28] sm:$0xff] }
 0x85d   : > { %v3124_v42 = vpop.eup %3123  ;;  %v2268_v43 = vsel %vm2266_vm13, %v2267_v38, %v2265_v40  ;;  %v2242_v44 = vmul.f32 %v3122_v39, %v2235_v22 }
 0x85e   : > { %3046 = vmatprep.subr.mxu1 %v2268_v43  ;;  %v2249_v45 = vmul.f32 %v3124_v42, %v2236_v23 }
 0x85f   : > { %3047 = vmatpush3.msra.mxu1 %v2268_v43  ;;  %v2244_v49 = vsel %vm2243_vm0, %v2235_v22, %v2242_v44 }
 0x860   : > { %3048 = vmatprep.subr.mxu1 %v2261_v46  ;;  %v2251_v48 = vsel %vm2250_vm15, %v2236_v23, %v2249_v45  ;;  %v2247_v52 = vsel %vm2245_vm2, %v2246_v51, %v2244_v49  ;;  %v2562_v23 = vld [vmem:[%s3729_s13 + $0x20] sm:$0xff] }
 0x861   : > { %3049 = vmatpush3.msra.mxu1 %v2261_v46  ;;  %v2254_v50 = vsel %vm2252_vm1, %v2253_v47, %v2251_v48 }
 0x862   : > { %3050 = vmatprep.subr.mxu1 %v2254_v50 }
 0x863   : > { %3051 = vmatpush3.msra.mxu1 %v2254_v50 }
 0x864   : > { %3052 = vmatprep.subr.mxu1 %v2247_v52 }
 0x865   : > { %3053 = vmatpush3.msra.mxu1 %v2247_v52 }
 0x866   : > { %3055 = vmatmul.mubr.msk.f32.vlgmr.msra.gmra.mxu1 %vm2299_vm6, %v2292_v53 }
 0x867   : > { %3057 = vmatprep.mubr.msk.f32.mxu1 %vm2299_vm6, %v2293_v54 }
 0x86a   : > { %3058 = vmatmul.mubr.msk.f32.gmra.mxu1 %vm2299_vm6, %v2294_v55 }
 0x86b   : > { %3060 = vmatprep.mubr.msk.f32.mxu1 %vm2299_vm6, %v2295_v56 }
 0x86e   : > { %3061 = vmatmul.mubr.msk.f32.gmra.mxu1 %vm2299_vm6, %v2296_v57 }
 0x86f   : > { %3063 = vmatprep.mubr.msk.f32.mxu1 %vm2299_vm6, %v2297_v58 }
 0x872   : > { %3064 = vmatmul.mubr.msk.f32.gmra.mxu1 %vm2299_vm6, %v2298_v59 }
 0x884   : > { %v3080_v60 = vpop.f32.mrf.mxu0 }
 0x886   : > { %v2519_v61 = vpop.f32.mrf.mxu0 }
 0x888   : > { %v3083_v62 = vpop.f32.mrf.mxu0 }
 0x88a   : > { %v2529_v63 = vpop.f32.mrf.mxu0 }
 0x88c   : > { %v3086_v6 = vpop.f32.mrf.mxu0 }
 0x88e   : > { %v2539_v15 = vpop.f32.mrf.mxu0 }
 0x890   : > { %v3089_v24 = vpop.f32.mrf.mxu0 }
 0x892   : > { %v2549_v31 = vpop.f32.mrf.mxu0 }
 0x926   : > { %v3056_v1 = vpop.f32.mrf.mxu1 }
 0x927   : > { %v2525_v3 = vadd.f32 %v3080_v60, %v3056_v1 }
 0x928   : > { %v2390_v4 = vpop.f32.mrf.mxu1 }
 0x929   : > { %v2567_v7 = vadd.f32 %v2559_v2, %v2525_v3  ;;  %v2520_v8 = vadd.f32 %v2519_v61, %v2390_v4 }
 0x92a   : > { %v3059_v9 = vpop.f32.mrf.mxu1 }
 0x92b   : > { %2576 = vst.msk [vmem:[%s3674_s27 + $0x8] sm:$0xff] %vm2574_vm3, %v2567_v7  ;;  %v2566_v11 = vadd.f32 %v2558_v5, %v2520_v8  ;;  %v2535_v12 = vadd.f32 %v3083_v62, %v3059_v9 }
 0x92c   : > { %v2400_v13 = vpop.f32.mrf.mxu1 }
 0x92d   : > { %2575 = vst.msk [vmem:[%s3674_s27] sm:$0xff] %vm2574_vm3, %v2566_v11  ;;  %v2569_v16 = vadd.f32 %v2561_v10, %v2535_v12  ;;  %v2530_v17 = vadd.f32 %v2529_v63, %v2400_v13 }
 0x92e   : > { %v3062_v18 = vpop.f32.mrf.mxu1 }
 0x92f   : > { %2578 = vst.msk [vmem:[%s3674_s27 + $0x18] sm:$0xff] %vm2574_vm3, %v2569_v16  ;;  %v2568_v20 = vadd.f32 %v2560_v14, %v2530_v17  ;;  %v2545_v21 = vadd.f32 %v3086_v6, %v3062_v18 }
 0x930   : > { %v2410_v22 = vpop.f32.mrf.mxu1 }
 0x931   : > { %2577 = vst.msk [vmem:[%s3674_s27 + $0x10] sm:$0xff] %vm2574_vm3, %v2568_v20  ;;  %v2571_v25 = vadd.f32 %v2563_v19, %v2545_v21  ;;  %v2540_v26 = vadd.f32 %v2539_v15, %v2410_v22 }
 0x932   : > { %v3065_v27 = vpop.f32.mrf.mxu1 }
 0x933   : > { %2580 = vst.msk [vmem:[%s3674_s27 + $0x28] sm:$0xff] %vm2574_vm3, %v2571_v25  ;;  %v2570_v29 = vadd.f32 %v2562_v23, %v2540_v26  ;;  %v2555_v30 = vadd.f32 %v3089_v24, %v3065_v27 }
 0x934   : > { %v2420_v32 = vpop.f32.mrf.mxu1 }
 0x935   : > { %2579 = vst.msk [vmem:[%s3674_s27 + $0x20] sm:$0xff] %vm2574_vm3, %v2570_v29  ;;  %v2573_v34 = vadd.f32 %v2565_v28, %v2555_v30  ;;  %v2550_v35 = vadd.f32 %v2549_v31, %v2420_v32 }
 0x937   : > { %2582 = vst.msk [vmem:[%s3674_s27 + $0x38] sm:$0xff] %vm2574_vm3, %v2573_v34  ;;  %v2572_v36 = vadd.f32 %v2564_v33, %v2550_v35 }
 0x939   : > { %2581 = vst.msk [vmem:[%s3674_s27 + $0x30] sm:$0xff] %vm2574_vm3, %v2572_v36 }
 0x93a PF: > { %s24_s29 = sadd.s32 1, %s3131_s29  }
 0x93b   : > { %p21_p4 = scmp.ge.s32.totalorder %s24_s29, 4  }
 0x93d   :  { %23 = sbr.rel (!%p21_p4) target bundleno = 1 (0x1), region = 114 }

</bundles_post_ra>
